<compile_context>
chip_gen: v7x
topology: tpu7x:2x2x1
jax: 0.10.0
libtpu: 0.0.40
codegen_flags: <defaults>
</compile_context>

<pallas_src>
import math
import jax
import jax.numpy as jnp
from jax.experimental import pallas as pl
from jax.experimental.pallas import tpu as pltpu

# ----------------------------- model config ---------------------------------
BATCH = 2
SEQ_ITEMS = 4          # length of the recommendation item sequence
N_ITEMS = 32           # item vocabulary (rows of input_embeds)
INPUT_DIM = 32         # item embedding dim (args['input_dim'])
HIDDEN = 128           # llama_model.config.hidden_size (synthetic)
N_HEADS = 4
HEAD_DIM = HIDDEN // N_HEADS
MLP_DIM = 256
N_LAYERS = 4
VOCAB = 16             # synthetic token vocab for instruct/response tokens
DISTILL_BLOCK = 2
IS_CLS_MULTIPLE = True

INSTRUCT_IDS = jnp.array([1, 2, 3], dtype=jnp.int32)   # synthetic tokenizer output
RESPONSE_IDS = jnp.array([4, 5], dtype=jnp.int32)

N_INSTRUCT = int(INSTRUCT_IDS.shape[0])
N_RESPONSE = int(RESPONSE_IDS.shape[0])
SEQ_TOTAL = N_INSTRUCT + SEQ_ITEMS + N_RESPONSE        # 9 real tokens
S_PAD = 16                                             # padded per-batch seq (mult of 8)
M_PAD = BATCH * S_PAD                                  # 32 rows, sublane aligned
ATTN_SCALE = 1.0 / math.sqrt(HEAD_DIM)

# ========================== fused decoder-stack kernel =======================

def _rms(x, w):
    xf = x.astype(jnp.float32)
    var = jnp.mean(xf * xf, axis=-1, keepdims=True)
    return xf * jax.lax.rsqrt(var + 1e-6) * w          # w: (1, H)


def _stack_kernel(x0_ref, w_qkv_ref, w_o_ref, w_gu_ref, w_down_ref,
                  ln1_ref, ln2_ref, fnorm_ref, cos_ref, sin_ref, mask_ref,
                  hs_ref, final_ref):
    """Whole N_LAYERS decoder stack in one invocation (grid=(1,))."""
    H = HIDDEN
    x = x0_ref[...]                          # (M, H) f32 resident activations
    cos = cos_ref[...]                       # (M, H) f32, per-head tiled RoPE cos
    sin = sin_ref[...]
    mask = mask_ref[...]                     # (M, M) block-diagonal additive mask

    for l in range(N_LAYERS):                # unrolled; weights fully resident
        # ---------------- attention block ------------------------------------
        h1b = _rms(x, ln1_ref[l]).astype(jnp.bfloat16)
        # one lane-dense fused QKV matmul: (M,128)@(128,640)
        qkv = jnp.dot(h1b, w_qkv_ref[l], preferred_element_type=jnp.float32)
        q = qkv[:, 0 * H:1 * H] * cos + qkv[:, 1 * H:2 * H] * sin   # RoPE folded
        k = qkv[:, 2 * H:3 * H] * cos + qkv[:, 3 * H:4 * H] * sin
        v = qkv[:, 4 * H:5 * H]

        heads = []
        for hh in range(N_HEADS):
            sl = slice(hh * HEAD_DIM, (hh + 1) * HEAD_DIM)
            qh, kh, vh = q[:, sl], k[:, sl], v[:, sl]
            s = jax.lax.dot_general(qh, kh, (((1,), (1,)), ((), ())),
                                    preferred_element_type=jnp.float32)
            s = s * ATTN_SCALE + mask                       # both batches at once
            s = s - jnp.max(s, axis=-1, keepdims=True)
            p = jnp.exp(s)
            p = p * pl.reciprocal(jnp.sum(p, axis=-1, keepdims=True), approx=True)
            heads.append(jnp.dot(p, vh, preferred_element_type=jnp.float32))
        o = jnp.concatenate(heads, axis=-1).astype(jnp.bfloat16)    # (M, H)
        # single full-width o-projection: (M,128)@(128,128)
        x = x + jnp.dot(o, w_o_ref[l], preferred_element_type=jnp.float32)

        # ---------------- MLP block (fused gate/up + SwiGLU + down) ----------
        h2b = _rms(x, ln2_ref[l]).astype(jnp.bfloat16)
        gu = jnp.dot(h2b, w_gu_ref[l], preferred_element_type=jnp.float32)  # (M, 2*MLP)
        g = gu[:, :MLP_DIM]
        u = gu[:, MLP_DIM:]
        act = (g * jax.nn.sigmoid(g) * u).astype(jnp.bfloat16)
        x = x + jnp.dot(act, w_down_ref[l], preferred_element_type=jnp.float32)

        hs_ref[l] = x                                                # per-layer output

    final_ref[...] = _rms(x, fnorm_ref[...])                         # final RMSNorm


def llama_stack(x0_flat, packed, add_mask):
    """Run the whole N_LAYERS decoder stack in one pallas_call (grid=(1,))."""
    M, H = x0_flat.shape
    L = N_LAYERS
    return pl.pallas_call(
        _stack_kernel,
        out_shape=(jax.ShapeDtypeStruct((L, M, H), jnp.float32),
                   jax.ShapeDtypeStruct((M, H), jnp.float32)),
        grid_spec=pltpu.PrefetchScalarGridSpec(
            num_scalar_prefetch=0,
            grid=(1,),
            in_specs=[
                pl.BlockSpec((M, H), lambda i: (0, 0)),                     # x0
                pl.BlockSpec((L, H, 5 * H), lambda i: (0, 0, 0)),           # fused q|qrot|k|krot|v
                pl.BlockSpec((L, H, H), lambda i: (0, 0, 0)),               # o-proj
                pl.BlockSpec((L, H, 2 * MLP_DIM), lambda i: (0, 0, 0)),     # gate|up concat
                pl.BlockSpec((L, MLP_DIM, H), lambda i: (0, 0, 0)),         # down
                pl.BlockSpec((L, 1, H), lambda i: (0, 0, 0)),               # ln1
                pl.BlockSpec((L, 1, H), lambda i: (0, 0, 0)),               # ln2
                pl.BlockSpec((1, H), lambda i: (0, 0)),                     # final norm
                pl.BlockSpec((M, H), lambda i: (0, 0)),                     # rope cos (head-tiled)
                pl.BlockSpec((M, H), lambda i: (0, 0)),                     # rope sin
                pl.BlockSpec((M, M), lambda i: (0, 0)),                     # block-diag mask
            ],
            out_specs=[
                pl.BlockSpec((L, M, H), lambda i: (0, 0, 0)),               # per-layer hidden states
                pl.BlockSpec((M, H), lambda i: (0, 0)),                     # final normalized output
            ]),
        compiler_params=pltpu.CompilerParams(
            dimension_semantics=("arbitrary",)),
    )(x0_flat, packed["w_qkv"], packed["w_o"], packed["w_gu"],
      packed["w_down"], packed["ln1"], packed["ln2"], packed["final_norm"],
      packed["rope_cos"], packed["rope_sin"], add_mask)

# ----------------------------- plain-JAX glue --------------------------------

def build_block_diag_mask(attn_mask):
    """attn_mask: (B, S_PAD) of 1/0 -> (B*S, B*S) additive block-diagonal mask."""
    B_, S_ = attn_mask.shape
    causal = jnp.tril(jnp.ones((S_, S_), jnp.float32))
    keep = causal[None, :, :] * attn_mask[:, None, :]          # (B, S, S)
    eye = jnp.eye(B_, dtype=jnp.float32)
    full = jnp.einsum('bc,bij->bicj', eye, keep).reshape(B_ * S_, B_ * S_)
    return (1.0 - full) * (-1e9)


def cross_entropy(logits, labels):
    logz = jax.nn.logsumexp(logits, axis=-1)
    gold = jnp.take_along_axis(logits, labels[:, None], axis=-1)[:, 0]
    return jnp.mean(logz - gold)


def bce_with_logits(x, y):
    return jnp.mean(jnp.maximum(x, 0.0) - x * y + jnp.log1p(jnp.exp(-jnp.abs(x))))

# ----------------------------- parameters ------------------------------------

def init_params(key):
    keys = iter(jax.random.split(key, 64))

    def nrm(shape, scale=0.02):
        return scale * jax.random.normal(next(keys), shape, jnp.float32)

    params = {
        "token_emb": nrm((VOCAB, HIDDEN)),
        "item_emb": nrm((N_ITEMS, INPUT_DIM)),       # nn.Embedding.from_pretrained
        "input_proj_w": nrm((INPUT_DIM, HIDDEN)),    # nn.Linear(input_dim, hidden)
        "input_proj_b": jnp.zeros((HIDDEN,), jnp.float32),
        "score_w": nrm((HIDDEN, INPUT_DIM)),         # nn.Linear(hidden, input_dim, bias=False)
        "final_norm": jnp.ones((HIDDEN,), jnp.float32),
        "down_layers": [nrm((HIDDEN, INPUT_DIM)) for _ in range(DISTILL_BLOCK - 1)],
        "layers": [],
    }
    for _ in range(N_LAYERS):
        params["layers"].append({
            "ln1": jnp.ones((HIDDEN,), jnp.float32),
            "ln2": jnp.ones((HIDDEN,), jnp.float32),
            "wq": nrm((HIDDEN, HIDDEN)), "wk": nrm((HIDDEN, HIDDEN)),
            "wv": nrm((HIDDEN, HIDDEN)), "wo": nrm((HIDDEN, HIDDEN)),
            "wg": nrm((HIDDEN, MLP_DIM)), "wu": nrm((HIDDEN, MLP_DIM)),
            "wd": nrm((MLP_DIM, HIDDEN)),
        })
    return params


def pack_params(params):
    """One-time packing: lane-dense fused bf16 decoder weights + tiled RoPE tables."""
    half = HEAD_DIM // 2

    def rot_cols(w):
        # rotate-half folded into per-head column blocks of the weight:
        # (x @ w_rot) == rotate_half(x @ w) per head
        w3 = w.reshape(HIDDEN, N_HEADS, HEAD_DIM)
        w3r = jnp.concatenate([-w3[..., half:], w3[..., :half]], axis=-1)
        return w3r.reshape(HIDDEN, HIDDEN)

    w_qkv, w_o, w_gu, w_dn, ln1, ln2 = [], [], [], [], [], []
    for lp in params["layers"]:
        w_qkv.append(jnp.concatenate(
            [lp["wq"], rot_cols(lp["wq"]),
             lp["wk"], rot_cols(lp["wk"]),
             lp["wv"]], axis=1))                                # (H, 5*H) = (128, 640)
        w_o.append(lp["wo"])                                    # (H, H)
        w_gu.append(jnp.concatenate([lp["wg"], lp["wu"]], axis=1))
        w_dn.append(lp["wd"])
        ln1.append(lp["ln1"].reshape(1, HIDDEN))
        ln2.append(lp["ln2"].reshape(1, HIDDEN))

    pos = jnp.arange(S_PAD, dtype=jnp.float32)
    inv = 1.0 / (10000.0 ** (jnp.arange(half, dtype=jnp.float32) / half))
    ang = pos[:, None] * inv[None, :]
    cos_h = jnp.concatenate([jnp.cos(ang), jnp.cos(ang)], axis=-1)   # (S_PAD, Dh)
    sin_h = jnp.concatenate([jnp.sin(ang), jnp.sin(ang)], axis=-1)

    return {
        "w_qkv": jnp.stack(w_qkv).astype(jnp.bfloat16),                 # (L, H, 5H)
        "w_o": jnp.stack(w_o).astype(jnp.bfloat16),                     # (L, H, H)
        "w_gu": jnp.stack(w_gu).astype(jnp.bfloat16),                   # (L, H, 2*MLP)
        "w_down": jnp.stack(w_dn).astype(jnp.bfloat16),                 # (L, MLP, H)
        "ln1": jnp.stack(ln1), "ln2": jnp.stack(ln2),                   # (L, 1, H) f32
        "final_norm": params["final_norm"].reshape(1, HIDDEN),
        "rope_cos": jnp.tile(cos_h, (BATCH, N_HEADS)),                  # (M_PAD, H)
        "rope_sin": jnp.tile(sin_h, (BATCH, N_HEADS)),
        "item_emb": params["item_emb"],
        "instruct_emb": params["token_emb"][INSTRUCT_IDS],
        "response_emb": params["token_emb"][RESPONSE_IDS],
        "input_proj_w": params["input_proj_w"],
        "input_proj_b": params["input_proj_b"].reshape(1, HIDDEN),
        "score_w": params["score_w"],
        "down_ws": jnp.stack(params["down_layers"]),                    # (n_taps, H, input_dim)
    }

# ----------------------------- model ----------------------------------------

def _predict(packed, inputs, inputs_mask):
    bs, L = inputs.shape
    instruct = jnp.broadcast_to(packed["instruct_emb"][None],
                                (bs, N_INSTRUCT, HIDDEN))
    response = jnp.broadcast_to(packed["response_emb"][None],
                                (bs, N_RESPONSE, HIDDEN))
    item_vecs = packed["item_emb"][inputs]                              # (bs, L, D_in)
    # input projection in plain JAX: XLA fuses it with the gather/concat/pad.
    item_h = item_vecs @ packed["input_proj_w"] + packed["input_proj_b"]

    x = jnp.concatenate([instruct, item_h, response], axis=1)           # (bs, 9, H)
    seq = x.shape[1]
    x_pad = jnp.pad(x, ((0, 0), (0, S_PAD - seq), (0, 0)))              # pad 9 -> 16

    attn_mask = jnp.concatenate(
        [jnp.ones((bs, N_INSTRUCT), jnp.float32),
         inputs_mask.astype(jnp.float32),
         jnp.ones((bs, N_RESPONSE), jnp.float32),
         jnp.zeros((bs, S_PAD - seq), jnp.float32)], axis=1)
    add_mask = build_block_diag_mask(attn_mask)                         # (bs*16, bs*16)

    hs_stack, final = llama_stack(x_pad.reshape(bs * S_PAD, HIDDEN),
                                  packed, add_mask)
    hs = hs_stack.reshape(N_LAYERS, bs, S_PAD, HIDDEN)[:, :, :seq, :]
    final3 = final.reshape(bs, S_PAD, HIDDEN)[:, :seq, :]

    # HF convention: [embeddings, layer1..layerN-1 outputs, norm(layerN output)]
    hidden_states = [x] + [hs[l] for l in range(N_LAYERS - 1)] + [final3]
    pooled_final = final3[:, -1]                                        # (bs, H)
    return pooled_final, hidden_states


@jax.jit
def _forward_dt0(packed, inputs, inputs_mask, answers):
    pooled_final, hidden_states = _predict(packed, inputs, inputs_mask)
    labels = jnp.squeeze(answers, -1)
    item = packed["item_emb"]

    # tiny classification head in plain JAX (launch overhead > compute in a kernel)
    pooled_logits = pooled_final @ packed["score_w"]                    # (bs, D_in)
    logits = pooled_logits @ item.T                                     # (bs, N_ITEMS)
    loss = cross_entropy(logits, labels)

    n_hs = len(hidden_states)
    loss_cls_multiple = jnp.float32(0.0)
    if IS_CLS_MULTIPLE:
        for i in range(DISTILL_BLOCK - 1):
            tap = hidden_states[n_hs // DISTILL_BLOCK * (i + 1)][:, -1]  # (bs, H)
            tap_logits = (tap @ packed["down_ws"][i]) @ item.T
            loss_cls_multiple = loss_cls_multiple + cross_entropy(tap_logits, labels)

    return {"loss": loss, "logits": logits,
            "student_output_states": hidden_states,
            "loss_cls_multiple": loss_cls_multiple}


@jax.jit
def _forward_dt1(packed, inputs, inputs_mask, answers, neg_samples):
    pooled_final, _ = _predict(packed, inputs, inputs_mask)
    pooled_logits = pooled_final @ packed["score_w"]                    # (bs, D_in)
    pos_embs = packed["item_emb"][answers]                              # (bs, 1, D_in)
    neg_embs = packed["item_emb"][neg_samples]                          # (bs, K, D_in)
    # MXU-hostile (1,D)@(D,K) products -> VPU reduce via einsum
    pos_logits = jnp.einsum('bd,bkd->bk', pooled_logits, pos_embs)[:, None, :]
    neg_logits = jnp.einsum('bd,bkd->bk', pooled_logits, neg_embs)[:, None, :]
    loss = (bce_with_logits(pos_logits, jnp.ones_like(pos_logits))
            + bce_with_logits(neg_logits, jnp.zeros_like(neg_logits)))
    predict_out = jnp.squeeze(jnp.concatenate([pos_logits, neg_logits], axis=-1))
    return {"loss": loss, "logits": predict_out}


def forward(packed, input_ids, labels, inputs, inputs_mask, answers,
            neg_samples, data_type):
    # torch.max(data_type).item() equivalent: host-side branch outside jit.
    dt = int(jax.device_get(jnp.max(data_type)))
    if dt == 0:
        out = dict(_forward_dt0(packed, inputs, inputs_mask, answers))
        out["data_type"] = data_type
        return out
    elif dt == 1:
        return dict(_forward_dt1(packed, inputs, inputs_mask, answers, neg_samples))
    # TODO(synk): data_type==2 (multiple_predict) is only in the parent LLM4Rec
    # forward, not LLM4RecStudent.forward; omitted.
    raise ValueError("unsupported data_type")


# ----------------------------- driver ----------------------------------------
if __name__ == "__main__":
    root = jax.random.PRNGKey(0)
    pkey, dkey = jax.random.split(root)
    params = init_params(pkey)
    packed = pack_params(params)

    ks = jax.random.split(dkey, 4)
    inputs = jax.random.randint(ks[0], (BATCH, SEQ_ITEMS), 0, N_ITEMS, dtype=jnp.int32)
    inputs_mask = jnp.array([[1, 1, 1, 1], [1, 1, 1, 0]], dtype=jnp.float32)
    answers = jax.random.randint(ks[1], (BATCH, 1), 0, N_ITEMS, dtype=jnp.int32)
    neg_samples = jax.random.randint(ks[2], (BATCH, 3), 0, N_ITEMS, dtype=jnp.int32)
    input_ids = None   # unused by forward
    labels = None      # unused by forward

    out0 = forward(packed, input_ids, labels, inputs, inputs_mask, answers,
                   neg_samples, jnp.array([0], jnp.int32))
    jax.block_until_ready((out0["loss"], out0["logits"], out0["loss_cls_multiple"]))

    out1 = forward(packed, input_ids, labels, inputs, inputs_mask, answers,
                   neg_samples, jnp.array([1], jnp.int32))
    jax.block_until_ready((out1["loss"], out1["logits"]))

    print("KERNEL_OK")
</pallas_src>

<mosaic_0001>
module attributes {stable_mosaic.version = 11 : i64} {
  func.func @_stack_kernel(%arg0: i32, %arg1: memref<32x128xf32, #tpu.memory_space<vmem>>, %arg2: memref<4x128x640xbf16, #tpu.memory_space<vmem>>, %arg3: memref<4x128x128xbf16, #tpu.memory_space<vmem>>, %arg4: memref<4x128x512xbf16, #tpu.memory_space<vmem>>, %arg5: memref<4x256x128xbf16, #tpu.memory_space<vmem>>, %arg6: memref<4x1x128xf32, #tpu.memory_space<vmem>>, %arg7: memref<4x1x128xf32, #tpu.memory_space<vmem>>, %arg8: memref<1x128xf32, #tpu.memory_space<vmem>>, %arg9: memref<32x128xf32, #tpu.memory_space<vmem>>, %arg10: memref<32x128xf32, #tpu.memory_space<vmem>>, %arg11: memref<32x32xf32, #tpu.memory_space<vmem>>, %arg12: memref<4x32x128xf32, #tpu.memory_space<vmem>>, %arg13: memref<32x128xf32, #tpu.memory_space<vmem>>) attributes {dimension_semantics = [#tpu.dimension_semantics<arbitrary>], iteration_bounds = array<i64: 1>, scalar_prefetch = 0 : i64, scratch_operands = 0 : i64, tpu.core_type = #tpu.core_type<tc>, window_params = [{pipeline_mode = #tpu.pipeline_mode<synchronous>, transform_indices = @transform_0, window_bounds = array<i64: 32, 128>}, {pipeline_mode = #tpu.pipeline_mode<synchronous>, transform_indices = @transform_1, window_bounds = array<i64: 4, 128, 640>}, {pipeline_mode = #tpu.pipeline_mode<synchronous>, transform_indices = @transform_2, window_bounds = array<i64: 4, 128, 128>}, {pipeline_mode = #tpu.pipeline_mode<synchronous>, transform_indices = @transform_3, window_bounds = array<i64: 4, 128, 512>}, {pipeline_mode = #tpu.pipeline_mode<synchronous>, transform_indices = @transform_4, window_bounds = array<i64: 4, 256, 128>}, {pipeline_mode = #tpu.pipeline_mode<synchronous>, transform_indices = @transform_5, window_bounds = array<i64: 4, 1, 128>}, {pipeline_mode = #tpu.pipeline_mode<synchronous>, transform_indices = @transform_6, window_bounds = array<i64: 4, 1, 128>}, {pipeline_mode = #tpu.pipeline_mode<synchronous>, transform_indices = @transform_7, window_bounds = array<i64: 1, 128>}, {pipeline_mode = #tpu.pipeline_mode<synchronous>, transform_indices = @transform_8, window_bounds = array<i64: 32, 128>}, {pipeline_mode = #tpu.pipeline_mode<synchronous>, transform_indices = @transform_9, window_bounds = array<i64: 32, 128>}, {pipeline_mode = #tpu.pipeline_mode<synchronous>, transform_indices = @transform_10, window_bounds = array<i64: 32, 32>}, {pipeline_mode = #tpu.pipeline_mode<synchronous>, transform_indices = @transform_11, window_bounds = array<i64: 4, 32, 128>}, {pipeline_mode = #tpu.pipeline_mode<synchronous>, transform_indices = @transform_12, window_bounds = array<i64: 32, 128>}]} {
    %c0 = arith.constant 0 : index
    %c0_0 = arith.constant 0 : index
    %0 = vector.load %arg1[%c0, %c0_0] : memref<32x128xf32, #tpu.memory_space<vmem>>, vector<32x128xf32>
    %c0_1 = arith.constant 0 : index
    %c0_2 = arith.constant 0 : index
    %1 = vector.load %arg9[%c0_1, %c0_2] : memref<32x128xf32, #tpu.memory_space<vmem>>, vector<32x128xf32>
    %c0_3 = arith.constant 0 : index
    %c0_4 = arith.constant 0 : index
    %2 = vector.load %arg10[%c0_3, %c0_4] : memref<32x128xf32, #tpu.memory_space<vmem>>, vector<32x128xf32>
    %c0_5 = arith.constant 0 : index
    %c0_6 = arith.constant 0 : index
    %3 = vector.load %arg11[%c0_5, %c0_6] : memref<32x32xf32, #tpu.memory_space<vmem>>, vector<32x32xf32>
    %c0_7 = arith.constant 0 : index
    %c0_8 = arith.constant 0 : index
    %c0_9 = arith.constant 0 : index
    %4 = vector.load %arg6[%c0_7, %c0_8, %c0_9] : memref<4x1x128xf32, #tpu.memory_space<vmem>>, vector<1x1x128xf32>
    %5 = vector.shape_cast %4 : vector<1x1x128xf32> to vector<1x128xf32>
    %6 = arith.mulf %0, %0 : vector<32x128xf32>
    %cst = arith.constant dense<0.000000e+00> : vector<32xf32>
    %7 = vector.multi_reduction <add>, %6, %cst [1] : vector<32x128xf32> to vector<32xf32>
    %8 = vector.shape_cast %7 : vector<32xf32> to vector<32x1xf32>
    %cst_10 = arith.constant 1.280000e+02 : f32
    %9 = vector.broadcast %cst_10 : f32 to vector<32x1xf32>
    %10 = arith.divf %8, %9 : vector<32x1xf32>
    %cst_11 = arith.constant 9.99999997E-7 : f32
    %11 = vector.broadcast %cst_11 : f32 to vector<32x1xf32>
    %12 = arith.addf %10, %11 : vector<32x1xf32>
    %13 = math.rsqrt %12 : vector<32x1xf32>
    %14 = vector.broadcast %13 : vector<32x1xf32> to vector<32x128xf32>
    %15 = arith.mulf %0, %14 : vector<32x128xf32>
    %16 = vector.broadcast %5 : vector<1x128xf32> to vector<32x128xf32>
    %17 = arith.mulf %15, %16 : vector<32x128xf32>
    %18 = arith.truncf %17 : vector<32x128xf32> to vector<32x128xbf16>
    %c0_12 = arith.constant 0 : index
    %c0_13 = arith.constant 0 : index
    %c0_14 = arith.constant 0 : index
    %19 = vector.load %arg2[%c0_12, %c0_13, %c0_14] : memref<4x128x640xbf16, #tpu.memory_space<vmem>>, vector<1x128x640xbf16>
    %20 = vector.shape_cast %19 : vector<1x128x640xbf16> to vector<128x640xbf16>
    %cst_15 = arith.constant dense<0.000000e+00> : vector<32x640xf32>
    %21 = tpu.matmul %18, %20, %cst_15 {dimension_numbers = #tpu.dot_dimension_numbers<[1], [0], [0], [1], [0, 0, 1, 1], [], []>} : vector<32x128xbf16>, vector<128x640xbf16>, vector<32x640xf32> -> vector<32x640xf32>
    %22 = vector.extract_strided_slice %21 {offsets = [0, 0], sizes = [32, 128], strides = [1, 1]} : vector<32x640xf32> to vector<32x128xf32>
    %23 = arith.mulf %22, %1 : vector<32x128xf32>
    %24 = vector.extract_strided_slice %21 {offsets = [0, 128], sizes = [32, 128], strides = [1, 1]} : vector<32x640xf32> to vector<32x128xf32>
    %25 = arith.mulf %24, %2 : vector<32x128xf32>
    %26 = arith.addf %23, %25 : vector<32x128xf32>
    %27 = vector.extract_strided_slice %21 {offsets = [0, 256], sizes = [32, 128], strides = [1, 1]} : vector<32x640xf32> to vector<32x128xf32>
    %28 = arith.mulf %27, %1 : vector<32x128xf32>
    %29 = vector.extract_strided_slice %21 {offsets = [0, 384], sizes = [32, 128], strides = [1, 1]} : vector<32x640xf32> to vector<32x128xf32>
    %30 = arith.mulf %29, %2 : vector<32x128xf32>
    %31 = arith.addf %28, %30 : vector<32x128xf32>
    %32 = vector.extract_strided_slice %21 {offsets = [0, 512], sizes = [32, 128], strides = [1, 1]} : vector<32x640xf32> to vector<32x128xf32>
    %33 = vector.extract_strided_slice %26 {offsets = [0, 0], sizes = [32, 32], strides = [1, 1]} : vector<32x128xf32> to vector<32x32xf32>
    %34 = vector.extract_strided_slice %31 {offsets = [0, 0], sizes = [32, 32], strides = [1, 1]} : vector<32x128xf32> to vector<32x32xf32>
    %35 = vector.extract_strided_slice %32 {offsets = [0, 0], sizes = [32, 32], strides = [1, 1]} : vector<32x128xf32> to vector<32x32xf32>
    %cst_16 = arith.constant dense<0.000000e+00> : vector<32x32xf32>
    %36 = tpu.matmul %33, %34, %cst_16 {dimension_numbers = #tpu.dot_dimension_numbers<[1], [1], [0], [0], [0, 0, 1, 0], [], []>} : vector<32x32xf32>, vector<32x32xf32>, vector<32x32xf32> -> vector<32x32xf32>
    %cst_17 = arith.constant 0.176776692 : f32
    %37 = vector.broadcast %cst_17 : f32 to vector<32x32xf32>
    %38 = arith.mulf %36, %37 : vector<32x32xf32>
    %39 = arith.addf %38, %3 : vector<32x32xf32>
    %cst_18 = arith.constant dense<0xFF800000> : vector<32xf32>
    %40 = vector.multi_reduction <maximumf>, %39, %cst_18 [1] : vector<32x32xf32> to vector<32xf32>
    %41 = vector.shape_cast %40 : vector<32xf32> to vector<32x1xf32>
    %42 = vector.broadcast %41 : vector<32x1xf32> to vector<32x32xf32>
    %43 = arith.subf %39, %42 : vector<32x32xf32>
    %44 = math.exp %43 : vector<32x32xf32>
    %cst_19 = arith.constant dense<0.000000e+00> : vector<32xf32>
    %45 = vector.multi_reduction <add>, %44, %cst_19 [1] : vector<32x32xf32> to vector<32xf32>
    %46 = vector.shape_cast %45 : vector<32xf32> to vector<32x1xf32>
    %47 = tpu.reciprocal %46 {approx = true} : vector<32x1xf32> -> vector<32x1xf32>
    %48 = vector.broadcast %47 : vector<32x1xf32> to vector<32x32xf32>
    %49 = arith.mulf %44, %48 : vector<32x32xf32>
    %cst_20 = arith.constant dense<0.000000e+00> : vector<32x32xf32>
    %50 = tpu.matmul %49, %35, %cst_20 {dimension_numbers = #tpu.dot_dimension_numbers<[1], [0], [0], [1], [0, 0, 1, 1], [], []>} : vector<32x32xf32>, vector<32x32xf32>, vector<32x32xf32> -> vector<32x32xf32>
    %51 = vector.extract_strided_slice %26 {offsets = [0, 32], sizes = [32, 32], strides = [1, 1]} : vector<32x128xf32> to vector<32x32xf32>
    %52 = vector.extract_strided_slice %31 {offsets = [0, 32], sizes = [32, 32], strides = [1, 1]} : vector<32x128xf32> to vector<32x32xf32>
    %53 = vector.extract_strided_slice %32 {offsets = [0, 32], sizes = [32, 32], strides = [1, 1]} : vector<32x128xf32> to vector<32x32xf32>
    %cst_21 = arith.constant dense<0.000000e+00> : vector<32x32xf32>
    %54 = tpu.matmul %51, %52, %cst_21 {dimension_numbers = #tpu.dot_dimension_numbers<[1], [1], [0], [0], [0, 0, 1, 0], [], []>} : vector<32x32xf32>, vector<32x32xf32>, vector<32x32xf32> -> vector<32x32xf32>
    %cst_22 = arith.constant 0.176776692 : f32
    %55 = vector.broadcast %cst_22 : f32 to vector<32x32xf32>
    %56 = arith.mulf %54, %55 : vector<32x32xf32>
    %57 = arith.addf %56, %3 : vector<32x32xf32>
    %cst_23 = arith.constant dense<0xFF800000> : vector<32xf32>
    %58 = vector.multi_reduction <maximumf>, %57, %cst_23 [1] : vector<32x32xf32> to vector<32xf32>
    %59 = vector.shape_cast %58 : vector<32xf32> to vector<32x1xf32>
    %60 = vector.broadcast %59 : vector<32x1xf32> to vector<32x32xf32>
    %61 = arith.subf %57, %60 : vector<32x32xf32>
    %62 = math.exp %61 : vector<32x32xf32>
    %cst_24 = arith.constant dense<0.000000e+00> : vector<32xf32>
    %63 = vector.multi_reduction <add>, %62, %cst_24 [1] : vector<32x32xf32> to vector<32xf32>
    %64 = vector.shape_cast %63 : vector<32xf32> to vector<32x1xf32>
    %65 = tpu.reciprocal %64 {approx = true} : vector<32x1xf32> -> vector<32x1xf32>
    %66 = vector.broadcast %65 : vector<32x1xf32> to vector<32x32xf32>
    %67 = arith.mulf %62, %66 : vector<32x32xf32>
    %cst_25 = arith.constant dense<0.000000e+00> : vector<32x32xf32>
    %68 = tpu.matmul %67, %53, %cst_25 {dimension_numbers = #tpu.dot_dimension_numbers<[1], [0], [0], [1], [0, 0, 1, 1], [], []>} : vector<32x32xf32>, vector<32x32xf32>, vector<32x32xf32> -> vector<32x32xf32>
    %69 = vector.extract_strided_slice %26 {offsets = [0, 64], sizes = [32, 32], strides = [1, 1]} : vector<32x128xf32> to vector<32x32xf32>
    %70 = vector.extract_strided_slice %31 {offsets = [0, 64], sizes = [32, 32], strides = [1, 1]} : vector<32x128xf32> to vector<32x32xf32>
    %71 = vector.extract_strided_slice %32 {offsets = [0, 64], sizes = [32, 32], strides = [1, 1]} : vector<32x128xf32> to vector<32x32xf32>
    %cst_26 = arith.constant dense<0.000000e+00> : vector<32x32xf32>
    %72 = tpu.matmul %69, %70, %cst_26 {dimension_numbers = #tpu.dot_dimension_numbers<[1], [1], [0], [0], [0, 0, 1, 0], [], []>} : vector<32x32xf32>, vector<32x32xf32>, vector<32x32xf32> -> vector<32x32xf32>
    %cst_27 = arith.constant 0.176776692 : f32
    %73 = vector.broadcast %cst_27 : f32 to vector<32x32xf32>
    %74 = arith.mulf %72, %73 : vector<32x32xf32>
    %75 = arith.addf %74, %3 : vector<32x32xf32>
    %cst_28 = arith.constant dense<0xFF800000> : vector<32xf32>
    %76 = vector.multi_reduction <maximumf>, %75, %cst_28 [1] : vector<32x32xf32> to vector<32xf32>
    %77 = vector.shape_cast %76 : vector<32xf32> to vector<32x1xf32>
    %78 = vector.broadcast %77 : vector<32x1xf32> to vector<32x32xf32>
    %79 = arith.subf %75, %78 : vector<32x32xf32>
    %80 = math.exp %79 : vector<32x32xf32>
    %cst_29 = arith.constant dense<0.000000e+00> : vector<32xf32>
    %81 = vector.multi_reduction <add>, %80, %cst_29 [1] : vector<32x32xf32> to vector<32xf32>
    %82 = vector.shape_cast %81 : vector<32xf32> to vector<32x1xf32>
    %83 = tpu.reciprocal %82 {approx = true} : vector<32x1xf32> -> vector<32x1xf32>
    %84 = vector.broadcast %83 : vector<32x1xf32> to vector<32x32xf32>
    %85 = arith.mulf %80, %84 : vector<32x32xf32>
    %cst_30 = arith.constant dense<0.000000e+00> : vector<32x32xf32>
    %86 = tpu.matmul %85, %71, %cst_30 {dimension_numbers = #tpu.dot_dimension_numbers<[1], [0], [0], [1], [0, 0, 1, 1], [], []>} : vector<32x32xf32>, vector<32x32xf32>, vector<32x32xf32> -> vector<32x32xf32>
    %87 = vector.extract_strided_slice %26 {offsets = [0, 96], sizes = [32, 32], strides = [1, 1]} : vector<32x128xf32> to vector<32x32xf32>
    %88 = vector.extract_strided_slice %31 {offsets = [0, 96], sizes = [32, 32], strides = [1, 1]} : vector<32x128xf32> to vector<32x32xf32>
    %89 = vector.extract_strided_slice %32 {offsets = [0, 96], sizes = [32, 32], strides = [1, 1]} : vector<32x128xf32> to vector<32x32xf32>
    %cst_31 = arith.constant dense<0.000000e+00> : vector<32x32xf32>
    %90 = tpu.matmul %87, %88, %cst_31 {dimension_numbers = #tpu.dot_dimension_numbers<[1], [1], [0], [0], [0, 0, 1, 0], [], []>} : vector<32x32xf32>, vector<32x32xf32>, vector<32x32xf32> -> vector<32x32xf32>
    %cst_32 = arith.constant 0.176776692 : f32
    %91 = vector.broadcast %cst_32 : f32 to vector<32x32xf32>
    %92 = arith.mulf %90, %91 : vector<32x32xf32>
    %93 = arith.addf %92, %3 : vector<32x32xf32>
    %cst_33 = arith.constant dense<0xFF800000> : vector<32xf32>
    %94 = vector.multi_reduction <maximumf>, %93, %cst_33 [1] : vector<32x32xf32> to vector<32xf32>
    %95 = vector.shape_cast %94 : vector<32xf32> to vector<32x1xf32>
    %96 = vector.broadcast %95 : vector<32x1xf32> to vector<32x32xf32>
    %97 = arith.subf %93, %96 : vector<32x32xf32>
    %98 = math.exp %97 : vector<32x32xf32>
    %cst_34 = arith.constant dense<0.000000e+00> : vector<32xf32>
    %99 = vector.multi_reduction <add>, %98, %cst_34 [1] : vector<32x32xf32> to vector<32xf32>
    %100 = vector.shape_cast %99 : vector<32xf32> to vector<32x1xf32>
    %101 = tpu.reciprocal %100 {approx = true} : vector<32x1xf32> -> vector<32x1xf32>
    %102 = vector.broadcast %101 : vector<32x1xf32> to vector<32x32xf32>
    %103 = arith.mulf %98, %102 : vector<32x32xf32>
    %cst_35 = arith.constant dense<0.000000e+00> : vector<32x32xf32>
    %104 = tpu.matmul %103, %89, %cst_35 {dimension_numbers = #tpu.dot_dimension_numbers<[1], [0], [0], [1], [0, 0, 1, 1], [], []>} : vector<32x32xf32>, vector<32x32xf32>, vector<32x32xf32> -> vector<32x32xf32>
    %105 = tpu.concatenate %50, %68, %86, %104 in 1 : vector<32x32xf32>, vector<32x32xf32>, vector<32x32xf32>, vector<32x32xf32> -> vector<32x128xf32>
    %106 = arith.truncf %105 : vector<32x128xf32> to vector<32x128xbf16>
    %c0_36 = arith.constant 0 : index
    %c0_37 = arith.constant 0 : index
    %c0_38 = arith.constant 0 : index
    %107 = vector.load %arg3[%c0_36, %c0_37, %c0_38] : memref<4x128x128xbf16, #tpu.memory_space<vmem>>, vector<1x128x128xbf16>
    %108 = vector.shape_cast %107 : vector<1x128x128xbf16> to vector<128x128xbf16>
    %cst_39 = arith.constant dense<0.000000e+00> : vector<32x128xf32>
    %109 = tpu.matmul %106, %108, %cst_39 {dimension_numbers = #tpu.dot_dimension_numbers<[1], [0], [0], [1], [0, 0, 1, 1], [], []>} : vector<32x128xbf16>, vector<128x128xbf16>, vector<32x128xf32> -> vector<32x128xf32>
    %110 = arith.addf %0, %109 : vector<32x128xf32>
    %c0_40 = arith.constant 0 : index
    %c0_41 = arith.constant 0 : index
    %c0_42 = arith.constant 0 : index
    %111 = vector.load %arg7[%c0_40, %c0_41, %c0_42] : memref<4x1x128xf32, #tpu.memory_space<vmem>>, vector<1x1x128xf32>
    %112 = vector.shape_cast %111 : vector<1x1x128xf32> to vector<1x128xf32>
    %113 = arith.mulf %110, %110 : vector<32x128xf32>
    %cst_43 = arith.constant dense<0.000000e+00> : vector<32xf32>
    %114 = vector.multi_reduction <add>, %113, %cst_43 [1] : vector<32x128xf32> to vector<32xf32>
    %115 = vector.shape_cast %114 : vector<32xf32> to vector<32x1xf32>
    %cst_44 = arith.constant 1.280000e+02 : f32
    %116 = vector.broadcast %cst_44 : f32 to vector<32x1xf32>
    %117 = arith.divf %115, %116 : vector<32x1xf32>
    %cst_45 = arith.constant 9.99999997E-7 : f32
    %118 = vector.broadcast %cst_45 : f32 to vector<32x1xf32>
    %119 = arith.addf %117, %118 : vector<32x1xf32>
    %120 = math.rsqrt %119 : vector<32x1xf32>
    %121 = vector.broadcast %120 : vector<32x1xf32> to vector<32x128xf32>
    %122 = arith.mulf %110, %121 : vector<32x128xf32>
    %123 = vector.broadcast %112 : vector<1x128xf32> to vector<32x128xf32>
    %124 = arith.mulf %122, %123 : vector<32x128xf32>
    %125 = arith.truncf %124 : vector<32x128xf32> to vector<32x128xbf16>
    %c0_46 = arith.constant 0 : index
    %c0_47 = arith.constant 0 : index
    %c0_48 = arith.constant 0 : index
    %126 = vector.load %arg4[%c0_46, %c0_47, %c0_48] : memref<4x128x512xbf16, #tpu.memory_space<vmem>>, vector<1x128x512xbf16>
    %127 = vector.shape_cast %126 : vector<1x128x512xbf16> to vector<128x512xbf16>
    %cst_49 = arith.constant dense<0.000000e+00> : vector<32x512xf32>
    %128 = tpu.matmul %125, %127, %cst_49 {dimension_numbers = #tpu.dot_dimension_numbers<[1], [0], [0], [1], [0, 0, 1, 1], [], []>} : vector<32x128xbf16>, vector<128x512xbf16>, vector<32x512xf32> -> vector<32x512xf32>
    %129 = vector.extract_strided_slice %128 {offsets = [0, 0], sizes = [32, 256], strides = [1, 1]} : vector<32x512xf32> to vector<32x256xf32>
    %130 = vector.extract_strided_slice %128 {offsets = [0, 256], sizes = [32, 256], strides = [1, 1]} : vector<32x512xf32> to vector<32x256xf32>
    %131 = arith.negf %129 : vector<32x256xf32>
    %132 = math.exp %131 : vector<32x256xf32>
    %cst_50 = arith.constant 1.000000e+00 : f32
    %133 = vector.broadcast %cst_50 : f32 to vector<32x256xf32>
    %134 = arith.addf %133, %132 : vector<32x256xf32>
    %135 = arith.divf %133, %134 : vector<32x256xf32>
    %136 = arith.mulf %129, %135 : vector<32x256xf32>
    %137 = arith.mulf %136, %130 : vector<32x256xf32>
    %138 = arith.truncf %137 : vector<32x256xf32> to vector<32x256xbf16>
    %c0_51 = arith.constant 0 : index
    %c0_52 = arith.constant 0 : index
    %c0_53 = arith.constant 0 : index
    %139 = vector.load %arg5[%c0_51, %c0_52, %c0_53] : memref<4x256x128xbf16, #tpu.memory_space<vmem>>, vector<1x256x128xbf16>
    %140 = vector.shape_cast %139 : vector<1x256x128xbf16> to vector<256x128xbf16>
    %cst_54 = arith.constant dense<0.000000e+00> : vector<32x128xf32>
    %141 = tpu.matmul %138, %140, %cst_54 {dimension_numbers = #tpu.dot_dimension_numbers<[1], [0], [0], [1], [0, 0, 1, 1], [], []>} : vector<32x256xbf16>, vector<256x128xbf16>, vector<32x128xf32> -> vector<32x128xf32>
    %142 = arith.addf %110, %141 : vector<32x128xf32>
    %c0_55 = arith.constant 0 : index
    %c0_56 = arith.constant 0 : index
    %c0_57 = arith.constant 0 : index
    %143 = vector.load %arg12[%c0_55, %c0_56, %c0_57] : memref<4x32x128xf32, #tpu.memory_space<vmem>>, vector<1x32x128xf32>
    %144 = vector.shape_cast %143 : vector<1x32x128xf32> to vector<32x128xf32>
    %145 = vector.shape_cast %142 : vector<32x128xf32> to vector<1x32x128xf32>
    tpu.vector_store %arg12[%c0_55, %c0_56, %c0_57], %145 {strides = array<i32>} : memref<4x32x128xf32, #tpu.memory_space<vmem>>, vector<1x32x128xf32>,
    %c1 = arith.constant 1 : index
    %c0_58 = arith.constant 0 : index
    %c0_59 = arith.constant 0 : index
    %146 = vector.load %arg6[%c1, %c0_58, %c0_59] : memref<4x1x128xf32, #tpu.memory_space<vmem>>, vector<1x1x128xf32>
    %147 = vector.shape_cast %146 : vector<1x1x128xf32> to vector<1x128xf32>
    %148 = arith.mulf %142, %142 : vector<32x128xf32>
    %cst_60 = arith.constant dense<0.000000e+00> : vector<32xf32>
    %149 = vector.multi_reduction <add>, %148, %cst_60 [1] : vector<32x128xf32> to vector<32xf32>
    %150 = vector.shape_cast %149 : vector<32xf32> to vector<32x1xf32>
    %cst_61 = arith.constant 1.280000e+02 : f32
    %151 = vector.broadcast %cst_61 : f32 to vector<32x1xf32>
    %152 = arith.divf %150, %151 : vector<32x1xf32>
    %cst_62 = arith.constant 9.99999997E-7 : f32
    %153 = vector.broadcast %cst_62 : f32 to vector<32x1xf32>
    %154 = arith.addf %152, %153 : vector<32x1xf32>
    %155 = math.rsqrt %154 : vector<32x1xf32>
    %156 = vector.broadcast %155 : vector<32x1xf32> to vector<32x128xf32>
    %157 = arith.mulf %142, %156 : vector<32x128xf32>
    %158 = vector.broadcast %147 : vector<1x128xf32> to vector<32x128xf32>
    %159 = arith.mulf %157, %158 : vector<32x128xf32>
    %160 = arith.truncf %159 : vector<32x128xf32> to vector<32x128xbf16>
    %c1_63 = arith.constant 1 : index
    %c0_64 = arith.constant 0 : index
    %c0_65 = arith.constant 0 : index
    %161 = vector.load %arg2[%c1_63, %c0_64, %c0_65] : memref<4x128x640xbf16, #tpu.memory_space<vmem>>, vector<1x128x640xbf16>
    %162 = vector.shape_cast %161 : vector<1x128x640xbf16> to vector<128x640xbf16>
    %cst_66 = arith.constant dense<0.000000e+00> : vector<32x640xf32>
    %163 = tpu.matmul %160, %162, %cst_66 {dimension_numbers = #tpu.dot_dimension_numbers<[1], [0], [0], [1], [0, 0, 1, 1], [], []>} : vector<32x128xbf16>, vector<128x640xbf16>, vector<32x640xf32> -> vector<32x640xf32>
    %164 = vector.extract_strided_slice %163 {offsets = [0, 0], sizes = [32, 128], strides = [1, 1]} : vector<32x640xf32> to vector<32x128xf32>
    %165 = arith.mulf %164, %1 : vector<32x128xf32>
    %166 = vector.extract_strided_slice %163 {offsets = [0, 128], sizes = [32, 128], strides = [1, 1]} : vector<32x640xf32> to vector<32x128xf32>
    %167 = arith.mulf %166, %2 : vector<32x128xf32>
    %168 = arith.addf %165, %167 : vector<32x128xf32>
    %169 = vector.extract_strided_slice %163 {offsets = [0, 256], sizes = [32, 128], strides = [1, 1]} : vector<32x640xf32> to vector<32x128xf32>
    %170 = arith.mulf %169, %1 : vector<32x128xf32>
    %171 = vector.extract_strided_slice %163 {offsets = [0, 384], sizes = [32, 128], strides = [1, 1]} : vector<32x640xf32> to vector<32x128xf32>
    %172 = arith.mulf %171, %2 : vector<32x128xf32>
    %173 = arith.addf %170, %172 : vector<32x128xf32>
    %174 = vector.extract_strided_slice %163 {offsets = [0, 512], sizes = [32, 128], strides = [1, 1]} : vector<32x640xf32> to vector<32x128xf32>
    %175 = vector.extract_strided_slice %168 {offsets = [0, 0], sizes = [32, 32], strides = [1, 1]} : vector<32x128xf32> to vector<32x32xf32>
    %176 = vector.extract_strided_slice %173 {offsets = [0, 0], sizes = [32, 32], strides = [1, 1]} : vector<32x128xf32> to vector<32x32xf32>
    %177 = vector.extract_strided_slice %174 {offsets = [0, 0], sizes = [32, 32], strides = [1, 1]} : vector<32x128xf32> to vector<32x32xf32>
    %cst_67 = arith.constant dense<0.000000e+00> : vector<32x32xf32>
    %178 = tpu.matmul %175, %176, %cst_67 {dimension_numbers = #tpu.dot_dimension_numbers<[1], [1], [0], [0], [0, 0, 1, 0], [], []>} : vector<32x32xf32>, vector<32x32xf32>, vector<32x32xf32> -> vector<32x32xf32>
    %cst_68 = arith.constant 0.176776692 : f32
    %179 = vector.broadcast %cst_68 : f32 to vector<32x32xf32>
    %180 = arith.mulf %178, %179 : vector<32x32xf32>
    %181 = arith.addf %180, %3 : vector<32x32xf32>
    %cst_69 = arith.constant dense<0xFF800000> : vector<32xf32>
    %182 = vector.multi_reduction <maximumf>, %181, %cst_69 [1] : vector<32x32xf32> to vector<32xf32>
    %183 = vector.shape_cast %182 : vector<32xf32> to vector<32x1xf32>
    %184 = vector.broadcast %183 : vector<32x1xf32> to vector<32x32xf32>
    %185 = arith.subf %181, %184 : vector<32x32xf32>
    %186 = math.exp %185 : vector<32x32xf32>
    %cst_70 = arith.constant dense<0.000000e+00> : vector<32xf32>
    %187 = vector.multi_reduction <add>, %186, %cst_70 [1] : vector<32x32xf32> to vector<32xf32>
    %188 = vector.shape_cast %187 : vector<32xf32> to vector<32x1xf32>
    %189 = tpu.reciprocal %188 {approx = true} : vector<32x1xf32> -> vector<32x1xf32>
    %190 = vector.broadcast %189 : vector<32x1xf32> to vector<32x32xf32>
    %191 = arith.mulf %186, %190 : vector<32x32xf32>
    %cst_71 = arith.constant dense<0.000000e+00> : vector<32x32xf32>
    %192 = tpu.matmul %191, %177, %cst_71 {dimension_numbers = #tpu.dot_dimension_numbers<[1], [0], [0], [1], [0, 0, 1, 1], [], []>} : vector<32x32xf32>, vector<32x32xf32>, vector<32x32xf32> -> vector<32x32xf32>
    %193 = vector.extract_strided_slice %168 {offsets = [0, 32], sizes = [32, 32], strides = [1, 1]} : vector<32x128xf32> to vector<32x32xf32>
    %194 = vector.extract_strided_slice %173 {offsets = [0, 32], sizes = [32, 32], strides = [1, 1]} : vector<32x128xf32> to vector<32x32xf32>
    %195 = vector.extract_strided_slice %174 {offsets = [0, 32], sizes = [32, 32], strides = [1, 1]} : vector<32x128xf32> to vector<32x32xf32>
    %cst_72 = arith.constant dense<0.000000e+00> : vector<32x32xf32>
    %196 = tpu.matmul %193, %194, %cst_72 {dimension_numbers = #tpu.dot_dimension_numbers<[1], [1], [0], [0], [0, 0, 1, 0], [], []>} : vector<32x32xf32>, vector<32x32xf32>, vector<32x32xf32> -> vector<32x32xf32>
    %cst_73 = arith.constant 0.176776692 : f32
    %197 = vector.broadcast %cst_73 : f32 to vector<32x32xf32>
    %198 = arith.mulf %196, %197 : vector<32x32xf32>
    %199 = arith.addf %198, %3 : vector<32x32xf32>
    %cst_74 = arith.constant dense<0xFF800000> : vector<32xf32>
    %200 = vector.multi_reduction <maximumf>, %199, %cst_74 [1] : vector<32x32xf32> to vector<32xf32>
    %201 = vector.shape_cast %200 : vector<32xf32> to vector<32x1xf32>
    %202 = vector.broadcast %201 : vector<32x1xf32> to vector<32x32xf32>
    %203 = arith.subf %199, %202 : vector<32x32xf32>
    %204 = math.exp %203 : vector<32x32xf32>
    %cst_75 = arith.constant dense<0.000000e+00> : vector<32xf32>
    %205 = vector.multi_reduction <add>, %204, %cst_75 [1] : vector<32x32xf32> to vector<32xf32>
    %206 = vector.shape_cast %205 : vector<32xf32> to vector<32x1xf32>
    %207 = tpu.reciprocal %206 {approx = true} : vector<32x1xf32> -> vector<32x1xf32>
    %208 = vector.broadcast %207 : vector<32x1xf32> to vector<32x32xf32>
    %209 = arith.mulf %204, %208 : vector<32x32xf32>
    %cst_76 = arith.constant dense<0.000000e+00> : vector<32x32xf32>
    %210 = tpu.matmul %209, %195, %cst_76 {dimension_numbers = #tpu.dot_dimension_numbers<[1], [0], [0], [1], [0, 0, 1, 1], [], []>} : vector<32x32xf32>, vector<32x32xf32>, vector<32x32xf32> -> vector<32x32xf32>
    %211 = vector.extract_strided_slice %168 {offsets = [0, 64], sizes = [32, 32], strides = [1, 1]} : vector<32x128xf32> to vector<32x32xf32>
    %212 = vector.extract_strided_slice %173 {offsets = [0, 64], sizes = [32, 32], strides = [1, 1]} : vector<32x128xf32> to vector<32x32xf32>
    %213 = vector.extract_strided_slice %174 {offsets = [0, 64], sizes = [32, 32], strides = [1, 1]} : vector<32x128xf32> to vector<32x32xf32>
    %cst_77 = arith.constant dense<0.000000e+00> : vector<32x32xf32>
    %214 = tpu.matmul %211, %212, %cst_77 {dimension_numbers = #tpu.dot_dimension_numbers<[1], [1], [0], [0], [0, 0, 1, 0], [], []>} : vector<32x32xf32>, vector<32x32xf32>, vector<32x32xf32> -> vector<32x32xf32>
    %cst_78 = arith.constant 0.176776692 : f32
    %215 = vector.broadcast %cst_78 : f32 to vector<32x32xf32>
    %216 = arith.mulf %214, %215 : vector<32x32xf32>
    %217 = arith.addf %216, %3 : vector<32x32xf32>
    %cst_79 = arith.constant dense<0xFF800000> : vector<32xf32>
    %218 = vector.multi_reduction <maximumf>, %217, %cst_79 [1] : vector<32x32xf32> to vector<32xf32>
    %219 = vector.shape_cast %218 : vector<32xf32> to vector<32x1xf32>
    %220 = vector.broadcast %219 : vector<32x1xf32> to vector<32x32xf32>
    %221 = arith.subf %217, %220 : vector<32x32xf32>
    %222 = math.exp %221 : vector<32x32xf32>
    %cst_80 = arith.constant dense<0.000000e+00> : vector<32xf32>
    %223 = vector.multi_reduction <add>, %222, %cst_80 [1] : vector<32x32xf32> to vector<32xf32>
    %224 = vector.shape_cast %223 : vector<32xf32> to vector<32x1xf32>
    %225 = tpu.reciprocal %224 {approx = true} : vector<32x1xf32> -> vector<32x1xf32>
    %226 = vector.broadcast %225 : vector<32x1xf32> to vector<32x32xf32>
    %227 = arith.mulf %222, %226 : vector<32x32xf32>
    %cst_81 = arith.constant dense<0.000000e+00> : vector<32x32xf32>
    %228 = tpu.matmul %227, %213, %cst_81 {dimension_numbers = #tpu.dot_dimension_numbers<[1], [0], [0], [1], [0, 0, 1, 1], [], []>} : vector<32x32xf32>, vector<32x32xf32>, vector<32x32xf32> -> vector<32x32xf32>
    %229 = vector.extract_strided_slice %168 {offsets = [0, 96], sizes = [32, 32], strides = [1, 1]} : vector<32x128xf32> to vector<32x32xf32>
    %230 = vector.extract_strided_slice %173 {offsets = [0, 96], sizes = [32, 32], strides = [1, 1]} : vector<32x128xf32> to vector<32x32xf32>
    %231 = vector.extract_strided_slice %174 {offsets = [0, 96], sizes = [32, 32], strides = [1, 1]} : vector<32x128xf32> to vector<32x32xf32>
    %cst_82 = arith.constant dense<0.000000e+00> : vector<32x32xf32>
    %232 = tpu.matmul %229, %230, %cst_82 {dimension_numbers = #tpu.dot_dimension_numbers<[1], [1], [0], [0], [0, 0, 1, 0], [], []>} : vector<32x32xf32>, vector<32x32xf32>, vector<32x32xf32> -> vector<32x32xf32>
    %cst_83 = arith.constant 0.176776692 : f32
    %233 = vector.broadcast %cst_83 : f32 to vector<32x32xf32>
    %234 = arith.mulf %232, %233 : vector<32x32xf32>
    %235 = arith.addf %234, %3 : vector<32x32xf32>
    %cst_84 = arith.constant dense<0xFF800000> : vector<32xf32>
    %236 = vector.multi_reduction <maximumf>, %235, %cst_84 [1] : vector<32x32xf32> to vector<32xf32>
    %237 = vector.shape_cast %236 : vector<32xf32> to vector<32x1xf32>
    %238 = vector.broadcast %237 : vector<32x1xf32> to vector<32x32xf32>
    %239 = arith.subf %235, %238 : vector<32x32xf32>
    %240 = math.exp %239 : vector<32x32xf32>
    %cst_85 = arith.constant dense<0.000000e+00> : vector<32xf32>
    %241 = vector.multi_reduction <add>, %240, %cst_85 [1] : vector<32x32xf32> to vector<32xf32>
    %242 = vector.shape_cast %241 : vector<32xf32> to vector<32x1xf32>
    %243 = tpu.reciprocal %242 {approx = true} : vector<32x1xf32> -> vector<32x1xf32>
    %244 = vector.broadcast %243 : vector<32x1xf32> to vector<32x32xf32>
    %245 = arith.mulf %240, %244 : vector<32x32xf32>
    %cst_86 = arith.constant dense<0.000000e+00> : vector<32x32xf32>
    %246 = tpu.matmul %245, %231, %cst_86 {dimension_numbers = #tpu.dot_dimension_numbers<[1], [0], [0], [1], [0, 0, 1, 1], [], []>} : vector<32x32xf32>, vector<32x32xf32>, vector<32x32xf32> -> vector<32x32xf32>
    %247 = tpu.concatenate %192, %210, %228, %246 in 1 : vector<32x32xf32>, vector<32x32xf32>, vector<32x32xf32>, vector<32x32xf32> -> vector<32x128xf32>
    %248 = arith.truncf %247 : vector<32x128xf32> to vector<32x128xbf16>
    %c1_87 = arith.constant 1 : index
    %c0_88 = arith.constant 0 : index
    %c0_89 = arith.constant 0 : index
    %249 = vector.load %arg3[%c1_87, %c0_88, %c0_89] : memref<4x128x128xbf16, #tpu.memory_space<vmem>>, vector<1x128x128xbf16>
    %250 = vector.shape_cast %249 : vector<1x128x128xbf16> to vector<128x128xbf16>
    %cst_90 = arith.constant dense<0.000000e+00> : vector<32x128xf32>
    %251 = tpu.matmul %248, %250, %cst_90 {dimension_numbers = #tpu.dot_dimension_numbers<[1], [0], [0], [1], [0, 0, 1, 1], [], []>} : vector<32x128xbf16>, vector<128x128xbf16>, vector<32x128xf32> -> vector<32x128xf32>
    %252 = arith.addf %142, %251 : vector<32x128xf32>
    %c1_91 = arith.constant 1 : index
    %c0_92 = arith.constant 0 : index
    %c0_93 = arith.constant 0 : index
    %253 = vector.load %arg7[%c1_91, %c0_92, %c0_93] : memref<4x1x128xf32, #tpu.memory_space<vmem>>, vector<1x1x128xf32>
    %254 = vector.shape_cast %253 : vector<1x1x128xf32> to vector<1x128xf32>
    %255 = arith.mulf %252, %252 : vector<32x128xf32>
    %cst_94 = arith.constant dense<0.000000e+00> : vector<32xf32>
    %256 = vector.multi_reduction <add>, %255, %cst_94 [1] : vector<32x128xf32> to vector<32xf32>
    %257 = vector.shape_cast %256 : vector<32xf32> to vector<32x1xf32>
    %cst_95 = arith.constant 1.280000e+02 : f32
    %258 = vector.broadcast %cst_95 : f32 to vector<32x1xf32>
    %259 = arith.divf %257, %258 : vector<32x1xf32>
    %cst_96 = arith.constant 9.99999997E-7 : f32
    %260 = vector.broadcast %cst_96 : f32 to vector<32x1xf32>
    %261 = arith.addf %259, %260 : vector<32x1xf32>
    %262 = math.rsqrt %261 : vector<32x1xf32>
    %263 = vector.broadcast %262 : vector<32x1xf32> to vector<32x128xf32>
    %264 = arith.mulf %252, %263 : vector<32x128xf32>
    %265 = vector.broadcast %254 : vector<1x128xf32> to vector<32x128xf32>
    %266 = arith.mulf %264, %265 : vector<32x128xf32>
    %267 = arith.truncf %266 : vector<32x128xf32> to vector<32x128xbf16>
    %c1_97 = arith.constant 1 : index
    %c0_98 = arith.constant 0 : index
    %c0_99 = arith.constant 0 : index
    %268 = vector.load %arg4[%c1_97, %c0_98, %c0_99] : memref<4x128x512xbf16, #tpu.memory_space<vmem>>, vector<1x128x512xbf16>
    %269 = vector.shape_cast %268 : vector<1x128x512xbf16> to vector<128x512xbf16>
    %cst_100 = arith.constant dense<0.000000e+00> : vector<32x512xf32>
    %270 = tpu.matmul %267, %269, %cst_100 {dimension_numbers = #tpu.dot_dimension_numbers<[1], [0], [0], [1], [0, 0, 1, 1], [], []>} : vector<32x128xbf16>, vector<128x512xbf16>, vector<32x512xf32> -> vector<32x512xf32>
    %271 = vector.extract_strided_slice %270 {offsets = [0, 0], sizes = [32, 256], strides = [1, 1]} : vector<32x512xf32> to vector<32x256xf32>
    %272 = vector.extract_strided_slice %270 {offsets = [0, 256], sizes = [32, 256], strides = [1, 1]} : vector<32x512xf32> to vector<32x256xf32>
    %273 = arith.negf %271 : vector<32x256xf32>
    %274 = math.exp %273 : vector<32x256xf32>
    %cst_101 = arith.constant 1.000000e+00 : f32
    %275 = vector.broadcast %cst_101 : f32 to vector<32x256xf32>
    %276 = arith.addf %275, %274 : vector<32x256xf32>
    %277 = arith.divf %275, %276 : vector<32x256xf32>
    %278 = arith.mulf %271, %277 : vector<32x256xf32>
    %279 = arith.mulf %278, %272 : vector<32x256xf32>
    %280 = arith.truncf %279 : vector<32x256xf32> to vector<32x256xbf16>
    %c1_102 = arith.constant 1 : index
    %c0_103 = arith.constant 0 : index
    %c0_104 = arith.constant 0 : index
    %281 = vector.load %arg5[%c1_102, %c0_103, %c0_104] : memref<4x256x128xbf16, #tpu.memory_space<vmem>>, vector<1x256x128xbf16>
    %282 = vector.shape_cast %281 : vector<1x256x128xbf16> to vector<256x128xbf16>
    %cst_105 = arith.constant dense<0.000000e+00> : vector<32x128xf32>
    %283 = tpu.matmul %280, %282, %cst_105 {dimension_numbers = #tpu.dot_dimension_numbers<[1], [0], [0], [1], [0, 0, 1, 1], [], []>} : vector<32x256xbf16>, vector<256x128xbf16>, vector<32x128xf32> -> vector<32x128xf32>
    %284 = arith.addf %252, %283 : vector<32x128xf32>
    %c1_106 = arith.constant 1 : index
    %c0_107 = arith.constant 0 : index
    %c0_108 = arith.constant 0 : index
    %285 = vector.load %arg12[%c1_106, %c0_107, %c0_108] : memref<4x32x128xf32, #tpu.memory_space<vmem>>, vector<1x32x128xf32>
    %286 = vector.shape_cast %285 : vector<1x32x128xf32> to vector<32x128xf32>
    %287 = vector.shape_cast %284 : vector<32x128xf32> to vector<1x32x128xf32>
    tpu.vector_store %arg12[%c1_106, %c0_107, %c0_108], %287 {strides = array<i32>} : memref<4x32x128xf32, #tpu.memory_space<vmem>>, vector<1x32x128xf32>,
    %c2 = arith.constant 2 : index
    %c0_109 = arith.constant 0 : index
    %c0_110 = arith.constant 0 : index
    %288 = vector.load %arg6[%c2, %c0_109, %c0_110] : memref<4x1x128xf32, #tpu.memory_space<vmem>>, vector<1x1x128xf32>
    %289 = vector.shape_cast %288 : vector<1x1x128xf32> to vector<1x128xf32>
    %290 = arith.mulf %284, %284 : vector<32x128xf32>
    %cst_111 = arith.constant dense<0.000000e+00> : vector<32xf32>
    %291 = vector.multi_reduction <add>, %290, %cst_111 [1] : vector<32x128xf32> to vector<32xf32>
    %292 = vector.shape_cast %291 : vector<32xf32> to vector<32x1xf32>
    %cst_112 = arith.constant 1.280000e+02 : f32
    %293 = vector.broadcast %cst_112 : f32 to vector<32x1xf32>
    %294 = arith.divf %292, %293 : vector<32x1xf32>
    %cst_113 = arith.constant 9.99999997E-7 : f32
    %295 = vector.broadcast %cst_113 : f32 to vector<32x1xf32>
    %296 = arith.addf %294, %295 : vector<32x1xf32>
    %297 = math.rsqrt %296 : vector<32x1xf32>
    %298 = vector.broadcast %297 : vector<32x1xf32> to vector<32x128xf32>
    %299 = arith.mulf %284, %298 : vector<32x128xf32>
    %300 = vector.broadcast %289 : vector<1x128xf32> to vector<32x128xf32>
    %301 = arith.mulf %299, %300 : vector<32x128xf32>
    %302 = arith.truncf %301 : vector<32x128xf32> to vector<32x128xbf16>
    %c2_114 = arith.constant 2 : index
    %c0_115 = arith.constant 0 : index
    %c0_116 = arith.constant 0 : index
    %303 = vector.load %arg2[%c2_114, %c0_115, %c0_116] : memref<4x128x640xbf16, #tpu.memory_space<vmem>>, vector<1x128x640xbf16>
    %304 = vector.shape_cast %303 : vector<1x128x640xbf16> to vector<128x640xbf16>
    %cst_117 = arith.constant dense<0.000000e+00> : vector<32x640xf32>
    %305 = tpu.matmul %302, %304, %cst_117 {dimension_numbers = #tpu.dot_dimension_numbers<[1], [0], [0], [1], [0, 0, 1, 1], [], []>} : vector<32x128xbf16>, vector<128x640xbf16>, vector<32x640xf32> -> vector<32x640xf32>
    %306 = vector.extract_strided_slice %305 {offsets = [0, 0], sizes = [32, 128], strides = [1, 1]} : vector<32x640xf32> to vector<32x128xf32>
    %307 = arith.mulf %306, %1 : vector<32x128xf32>
    %308 = vector.extract_strided_slice %305 {offsets = [0, 128], sizes = [32, 128], strides = [1, 1]} : vector<32x640xf32> to vector<32x128xf32>
    %309 = arith.mulf %308, %2 : vector<32x128xf32>
    %310 = arith.addf %307, %309 : vector<32x128xf32>
    %311 = vector.extract_strided_slice %305 {offsets = [0, 256], sizes = [32, 128], strides = [1, 1]} : vector<32x640xf32> to vector<32x128xf32>
    %312 = arith.mulf %311, %1 : vector<32x128xf32>
    %313 = vector.extract_strided_slice %305 {offsets = [0, 384], sizes = [32, 128], strides = [1, 1]} : vector<32x640xf32> to vector<32x128xf32>
    %314 = arith.mulf %313, %2 : vector<32x128xf32>
    %315 = arith.addf %312, %314 : vector<32x128xf32>
    %316 = vector.extract_strided_slice %305 {offsets = [0, 512], sizes = [32, 128], strides = [1, 1]} : vector<32x640xf32> to vector<32x128xf32>
    %317 = vector.extract_strided_slice %310 {offsets = [0, 0], sizes = [32, 32], strides = [1, 1]} : vector<32x128xf32> to vector<32x32xf32>
    %318 = vector.extract_strided_slice %315 {offsets = [0, 0], sizes = [32, 32], strides = [1, 1]} : vector<32x128xf32> to vector<32x32xf32>
    %319 = vector.extract_strided_slice %316 {offsets = [0, 0], sizes = [32, 32], strides = [1, 1]} : vector<32x128xf32> to vector<32x32xf32>
    %cst_118 = arith.constant dense<0.000000e+00> : vector<32x32xf32>
    %320 = tpu.matmul %317, %318, %cst_118 {dimension_numbers = #tpu.dot_dimension_numbers<[1], [1], [0], [0], [0, 0, 1, 0], [], []>} : vector<32x32xf32>, vector<32x32xf32>, vector<32x32xf32> -> vector<32x32xf32>
    %cst_119 = arith.constant 0.176776692 : f32
    %321 = vector.broadcast %cst_119 : f32 to vector<32x32xf32>
    %322 = arith.mulf %320, %321 : vector<32x32xf32>
    %323 = arith.addf %322, %3 : vector<32x32xf32>
    %cst_120 = arith.constant dense<0xFF800000> : vector<32xf32>
    %324 = vector.multi_reduction <maximumf>, %323, %cst_120 [1] : vector<32x32xf32> to vector<32xf32>
    %325 = vector.shape_cast %324 : vector<32xf32> to vector<32x1xf32>
    %326 = vector.broadcast %325 : vector<32x1xf32> to vector<32x32xf32>
    %327 = arith.subf %323, %326 : vector<32x32xf32>
    %328 = math.exp %327 : vector<32x32xf32>
    %cst_121 = arith.constant dense<0.000000e+00> : vector<32xf32>
    %329 = vector.multi_reduction <add>, %328, %cst_121 [1] : vector<32x32xf32> to vector<32xf32>
    %330 = vector.shape_cast %329 : vector<32xf32> to vector<32x1xf32>
    %331 = tpu.reciprocal %330 {approx = true} : vector<32x1xf32> -> vector<32x1xf32>
    %332 = vector.broadcast %331 : vector<32x1xf32> to vector<32x32xf32>
    %333 = arith.mulf %328, %332 : vector<32x32xf32>
    %cst_122 = arith.constant dense<0.000000e+00> : vector<32x32xf32>
    %334 = tpu.matmul %333, %319, %cst_122 {dimension_numbers = #tpu.dot_dimension_numbers<[1], [0], [0], [1], [0, 0, 1, 1], [], []>} : vector<32x32xf32>, vector<32x32xf32>, vector<32x32xf32> -> vector<32x32xf32>
    %335 = vector.extract_strided_slice %310 {offsets = [0, 32], sizes = [32, 32], strides = [1, 1]} : vector<32x128xf32> to vector<32x32xf32>
    %336 = vector.extract_strided_slice %315 {offsets = [0, 32], sizes = [32, 32], strides = [1, 1]} : vector<32x128xf32> to vector<32x32xf32>
    %337 = vector.extract_strided_slice %316 {offsets = [0, 32], sizes = [32, 32], strides = [1, 1]} : vector<32x128xf32> to vector<32x32xf32>
    %cst_123 = arith.constant dense<0.000000e+00> : vector<32x32xf32>
    %338 = tpu.matmul %335, %336, %cst_123 {dimension_numbers = #tpu.dot_dimension_numbers<[1], [1], [0], [0], [0, 0, 1, 0], [], []>} : vector<32x32xf32>, vector<32x32xf32>, vector<32x32xf32> -> vector<32x32xf32>
    %cst_124 = arith.constant 0.176776692 : f32
    %339 = vector.broadcast %cst_124 : f32 to vector<32x32xf32>
    %340 = arith.mulf %338, %339 : vector<32x32xf32>
    %341 = arith.addf %340, %3 : vector<32x32xf32>
    %cst_125 = arith.constant dense<0xFF800000> : vector<32xf32>
    %342 = vector.multi_reduction <maximumf>, %341, %cst_125 [1] : vector<32x32xf32> to vector<32xf32>
    %343 = vector.shape_cast %342 : vector<32xf32> to vector<32x1xf32>
    %344 = vector.broadcast %343 : vector<32x1xf32> to vector<32x32xf32>
    %345 = arith.subf %341, %344 : vector<32x32xf32>
    %346 = math.exp %345 : vector<32x32xf32>
    %cst_126 = arith.constant dense<0.000000e+00> : vector<32xf32>
    %347 = vector.multi_reduction <add>, %346, %cst_126 [1] : vector<32x32xf32> to vector<32xf32>
    %348 = vector.shape_cast %347 : vector<32xf32> to vector<32x1xf32>
    %349 = tpu.reciprocal %348 {approx = true} : vector<32x1xf32> -> vector<32x1xf32>
    %350 = vector.broadcast %349 : vector<32x1xf32> to vector<32x32xf32>
    %351 = arith.mulf %346, %350 : vector<32x32xf32>
    %cst_127 = arith.constant dense<0.000000e+00> : vector<32x32xf32>
    %352 = tpu.matmul %351, %337, %cst_127 {dimension_numbers = #tpu.dot_dimension_numbers<[1], [0], [0], [1], [0, 0, 1, 1], [], []>} : vector<32x32xf32>, vector<32x32xf32>, vector<32x32xf32> -> vector<32x32xf32>
    %353 = vector.extract_strided_slice %310 {offsets = [0, 64], sizes = [32, 32], strides = [1, 1]} : vector<32x128xf32> to vector<32x32xf32>
    %354 = vector.extract_strided_slice %315 {offsets = [0, 64], sizes = [32, 32], strides = [1, 1]} : vector<32x128xf32> to vector<32x32xf32>
    %355 = vector.extract_strided_slice %316 {offsets = [0, 64], sizes = [32, 32], strides = [1, 1]} : vector<32x128xf32> to vector<32x32xf32>
    %cst_128 = arith.constant dense<0.000000e+00> : vector<32x32xf32>
    %356 = tpu.matmul %353, %354, %cst_128 {dimension_numbers = #tpu.dot_dimension_numbers<[1], [1], [0], [0], [0, 0, 1, 0], [], []>} : vector<32x32xf32>, vector<32x32xf32>, vector<32x32xf32> -> vector<32x32xf32>
    %cst_129 = arith.constant 0.176776692 : f32
    %357 = vector.broadcast %cst_129 : f32 to vector<32x32xf32>
    %358 = arith.mulf %356, %357 : vector<32x32xf32>
    %359 = arith.addf %358, %3 : vector<32x32xf32>
    %cst_130 = arith.constant dense<0xFF800000> : vector<32xf32>
    %360 = vector.multi_reduction <maximumf>, %359, %cst_130 [1] : vector<32x32xf32> to vector<32xf32>
    %361 = vector.shape_cast %360 : vector<32xf32> to vector<32x1xf32>
    %362 = vector.broadcast %361 : vector<32x1xf32> to vector<32x32xf32>
    %363 = arith.subf %359, %362 : vector<32x32xf32>
    %364 = math.exp %363 : vector<32x32xf32>
    %cst_131 = arith.constant dense<0.000000e+00> : vector<32xf32>
    %365 = vector.multi_reduction <add>, %364, %cst_131 [1] : vector<32x32xf32> to vector<32xf32>
    %366 = vector.shape_cast %365 : vector<32xf32> to vector<32x1xf32>
    %367 = tpu.reciprocal %366 {approx = true} : vector<32x1xf32> -> vector<32x1xf32>
    %368 = vector.broadcast %367 : vector<32x1xf32> to vector<32x32xf32>
    %369 = arith.mulf %364, %368 : vector<32x32xf32>
    %cst_132 = arith.constant dense<0.000000e+00> : vector<32x32xf32>
    %370 = tpu.matmul %369, %355, %cst_132 {dimension_numbers = #tpu.dot_dimension_numbers<[1], [0], [0], [1], [0, 0, 1, 1], [], []>} : vector<32x32xf32>, vector<32x32xf32>, vector<32x32xf32> -> vector<32x32xf32>
    %371 = vector.extract_strided_slice %310 {offsets = [0, 96], sizes = [32, 32], strides = [1, 1]} : vector<32x128xf32> to vector<32x32xf32>
    %372 = vector.extract_strided_slice %315 {offsets = [0, 96], sizes = [32, 32], strides = [1, 1]} : vector<32x128xf32> to vector<32x32xf32>
    %373 = vector.extract_strided_slice %316 {offsets = [0, 96], sizes = [32, 32], strides = [1, 1]} : vector<32x128xf32> to vector<32x32xf32>
    %cst_133 = arith.constant dense<0.000000e+00> : vector<32x32xf32>
    %374 = tpu.matmul %371, %372, %cst_133 {dimension_numbers = #tpu.dot_dimension_numbers<[1], [1], [0], [0], [0, 0, 1, 0], [], []>} : vector<32x32xf32>, vector<32x32xf32>, vector<32x32xf32> -> vector<32x32xf32>
    %cst_134 = arith.constant 0.176776692 : f32
    %375 = vector.broadcast %cst_134 : f32 to vector<32x32xf32>
    %376 = arith.mulf %374, %375 : vector<32x32xf32>
    %377 = arith.addf %376, %3 : vector<32x32xf32>
    %cst_135 = arith.constant dense<0xFF800000> : vector<32xf32>
    %378 = vector.multi_reduction <maximumf>, %377, %cst_135 [1] : vector<32x32xf32> to vector<32xf32>
    %379 = vector.shape_cast %378 : vector<32xf32> to vector<32x1xf32>
    %380 = vector.broadcast %379 : vector<32x1xf32> to vector<32x32xf32>
    %381 = arith.subf %377, %380 : vector<32x32xf32>
    %382 = math.exp %381 : vector<32x32xf32>
    %cst_136 = arith.constant dense<0.000000e+00> : vector<32xf32>
    %383 = vector.multi_reduction <add>, %382, %cst_136 [1] : vector<32x32xf32> to vector<32xf32>
    %384 = vector.shape_cast %383 : vector<32xf32> to vector<32x1xf32>
    %385 = tpu.reciprocal %384 {approx = true} : vector<32x1xf32> -> vector<32x1xf32>
    %386 = vector.broadcast %385 : vector<32x1xf32> to vector<32x32xf32>
    %387 = arith.mulf %382, %386 : vector<32x32xf32>
    %cst_137 = arith.constant dense<0.000000e+00> : vector<32x32xf32>
    %388 = tpu.matmul %387, %373, %cst_137 {dimension_numbers = #tpu.dot_dimension_numbers<[1], [0], [0], [1], [0, 0, 1, 1], [], []>} : vector<32x32xf32>, vector<32x32xf32>, vector<32x32xf32> -> vector<32x32xf32>
    %389 = tpu.concatenate %334, %352, %370, %388 in 1 : vector<32x32xf32>, vector<32x32xf32>, vector<32x32xf32>, vector<32x32xf32> -> vector<32x128xf32>
    %390 = arith.truncf %389 : vector<32x128xf32> to vector<32x128xbf16>
    %c2_138 = arith.constant 2 : index
    %c0_139 = arith.constant 0 : index
    %c0_140 = arith.constant 0 : index
    %391 = vector.load %arg3[%c2_138, %c0_139, %c0_140] : memref<4x128x128xbf16, #tpu.memory_space<vmem>>, vector<1x128x128xbf16>
    %392 = vector.shape_cast %391 : vector<1x128x128xbf16> to vector<128x128xbf16>
    %cst_141 = arith.constant dense<0.000000e+00> : vector<32x128xf32>
    %393 = tpu.matmul %390, %392, %cst_141 {dimension_numbers = #tpu.dot_dimension_numbers<[1], [0], [0], [1], [0, 0, 1, 1], [], []>} : vector<32x128xbf16>, vector<128x128xbf16>, vector<32x128xf32> -> vector<32x128xf32>
    %394 = arith.addf %284, %393 : vector<32x128xf32>
    %c2_142 = arith.constant 2 : index
    %c0_143 = arith.constant 0 : index
    %c0_144 = arith.constant 0 : index
    %395 = vector.load %arg7[%c2_142, %c0_143, %c0_144] : memref<4x1x128xf32, #tpu.memory_space<vmem>>, vector<1x1x128xf32>
    %396 = vector.shape_cast %395 : vector<1x1x128xf32> to vector<1x128xf32>
    %397 = arith.mulf %394, %394 : vector<32x128xf32>
    %cst_145 = arith.constant dense<0.000000e+00> : vector<32xf32>
    %398 = vector.multi_reduction <add>, %397, %cst_145 [1] : vector<32x128xf32> to vector<32xf32>
    %399 = vector.shape_cast %398 : vector<32xf32> to vector<32x1xf32>
    %cst_146 = arith.constant 1.280000e+02 : f32
    %400 = vector.broadcast %cst_146 : f32 to vector<32x1xf32>
    %401 = arith.divf %399, %400 : vector<32x1xf32>
    %cst_147 = arith.constant 9.99999997E-7 : f32
    %402 = vector.broadcast %cst_147 : f32 to vector<32x1xf32>
    %403 = arith.addf %401, %402 : vector<32x1xf32>
    %404 = math.rsqrt %403 : vector<32x1xf32>
    %405 = vector.broadcast %404 : vector<32x1xf32> to vector<32x128xf32>
    %406 = arith.mulf %394, %405 : vector<32x128xf32>
    %407 = vector.broadcast %396 : vector<1x128xf32> to vector<32x128xf32>
    %408 = arith.mulf %406, %407 : vector<32x128xf32>
    %409 = arith.truncf %408 : vector<32x128xf32> to vector<32x128xbf16>
    %c2_148 = arith.constant 2 : index
    %c0_149 = arith.constant 0 : index
    %c0_150 = arith.constant 0 : index
    %410 = vector.load %arg4[%c2_148, %c0_149, %c0_150] : memref<4x128x512xbf16, #tpu.memory_space<vmem>>, vector<1x128x512xbf16>
    %411 = vector.shape_cast %410 : vector<1x128x512xbf16> to vector<128x512xbf16>
    %cst_151 = arith.constant dense<0.000000e+00> : vector<32x512xf32>
    %412 = tpu.matmul %409, %411, %cst_151 {dimension_numbers = #tpu.dot_dimension_numbers<[1], [0], [0], [1], [0, 0, 1, 1], [], []>} : vector<32x128xbf16>, vector<128x512xbf16>, vector<32x512xf32> -> vector<32x512xf32>
    %413 = vector.extract_strided_slice %412 {offsets = [0, 0], sizes = [32, 256], strides = [1, 1]} : vector<32x512xf32> to vector<32x256xf32>
    %414 = vector.extract_strided_slice %412 {offsets = [0, 256], sizes = [32, 256], strides = [1, 1]} : vector<32x512xf32> to vector<32x256xf32>
    %415 = arith.negf %413 : vector<32x256xf32>
    %416 = math.exp %415 : vector<32x256xf32>
    %cst_152 = arith.constant 1.000000e+00 : f32
    %417 = vector.broadcast %cst_152 : f32 to vector<32x256xf32>
    %418 = arith.addf %417, %416 : vector<32x256xf32>
    %419 = arith.divf %417, %418 : vector<32x256xf32>
    %420 = arith.mulf %413, %419 : vector<32x256xf32>
    %421 = arith.mulf %420, %414 : vector<32x256xf32>
    %422 = arith.truncf %421 : vector<32x256xf32> to vector<32x256xbf16>
    %c2_153 = arith.constant 2 : index
    %c0_154 = arith.constant 0 : index
    %c0_155 = arith.constant 0 : index
    %423 = vector.load %arg5[%c2_153, %c0_154, %c0_155] : memref<4x256x128xbf16, #tpu.memory_space<vmem>>, vector<1x256x128xbf16>
    %424 = vector.shape_cast %423 : vector<1x256x128xbf16> to vector<256x128xbf16>
    %cst_156 = arith.constant dense<0.000000e+00> : vector<32x128xf32>
    %425 = tpu.matmul %422, %424, %cst_156 {dimension_numbers = #tpu.dot_dimension_numbers<[1], [0], [0], [1], [0, 0, 1, 1], [], []>} : vector<32x256xbf16>, vector<256x128xbf16>, vector<32x128xf32> -> vector<32x128xf32>
    %426 = arith.addf %394, %425 : vector<32x128xf32>
    %c2_157 = arith.constant 2 : index
    %c0_158 = arith.constant 0 : index
    %c0_159 = arith.constant 0 : index
    %427 = vector.load %arg12[%c2_157, %c0_158, %c0_159] : memref<4x32x128xf32, #tpu.memory_space<vmem>>, vector<1x32x128xf32>
    %428 = vector.shape_cast %427 : vector<1x32x128xf32> to vector<32x128xf32>
    %429 = vector.shape_cast %426 : vector<32x128xf32> to vector<1x32x128xf32>
    tpu.vector_store %arg12[%c2_157, %c0_158, %c0_159], %429 {strides = array<i32>} : memref<4x32x128xf32, #tpu.memory_space<vmem>>, vector<1x32x128xf32>,
    %c3 = arith.constant 3 : index
    %c0_160 = arith.constant 0 : index
    %c0_161 = arith.constant 0 : index
    %430 = vector.load %arg6[%c3, %c0_160, %c0_161] : memref<4x1x128xf32, #tpu.memory_space<vmem>>, vector<1x1x128xf32>
    %431 = vector.shape_cast %430 : vector<1x1x128xf32> to vector<1x128xf32>
    %432 = arith.mulf %426, %426 : vector<32x128xf32>
    %cst_162 = arith.constant dense<0.000000e+00> : vector<32xf32>
    %433 = vector.multi_reduction <add>, %432, %cst_162 [1] : vector<32x128xf32> to vector<32xf32>
    %434 = vector.shape_cast %433 : vector<32xf32> to vector<32x1xf32>
    %cst_163 = arith.constant 1.280000e+02 : f32
    %435 = vector.broadcast %cst_163 : f32 to vector<32x1xf32>
    %436 = arith.divf %434, %435 : vector<32x1xf32>
    %cst_164 = arith.constant 9.99999997E-7 : f32
    %437 = vector.broadcast %cst_164 : f32 to vector<32x1xf32>
    %438 = arith.addf %436, %437 : vector<32x1xf32>
    %439 = math.rsqrt %438 : vector<32x1xf32>
    %440 = vector.broadcast %439 : vector<32x1xf32> to vector<32x128xf32>
    %441 = arith.mulf %426, %440 : vector<32x128xf32>
    %442 = vector.broadcast %431 : vector<1x128xf32> to vector<32x128xf32>
    %443 = arith.mulf %441, %442 : vector<32x128xf32>
    %444 = arith.truncf %443 : vector<32x128xf32> to vector<32x128xbf16>
    %c3_165 = arith.constant 3 : index
    %c0_166 = arith.constant 0 : index
    %c0_167 = arith.constant 0 : index
    %445 = vector.load %arg2[%c3_165, %c0_166, %c0_167] : memref<4x128x640xbf16, #tpu.memory_space<vmem>>, vector<1x128x640xbf16>
    %446 = vector.shape_cast %445 : vector<1x128x640xbf16> to vector<128x640xbf16>
    %cst_168 = arith.constant dense<0.000000e+00> : vector<32x640xf32>
    %447 = tpu.matmul %444, %446, %cst_168 {dimension_numbers = #tpu.dot_dimension_numbers<[1], [0], [0], [1], [0, 0, 1, 1], [], []>} : vector<32x128xbf16>, vector<128x640xbf16>, vector<32x640xf32> -> vector<32x640xf32>
    %448 = vector.extract_strided_slice %447 {offsets = [0, 0], sizes = [32, 128], strides = [1, 1]} : vector<32x640xf32> to vector<32x128xf32>
    %449 = arith.mulf %448, %1 : vector<32x128xf32>
    %450 = vector.extract_strided_slice %447 {offsets = [0, 128], sizes = [32, 128], strides = [1, 1]} : vector<32x640xf32> to vector<32x128xf32>
    %451 = arith.mulf %450, %2 : vector<32x128xf32>
    %452 = arith.addf %449, %451 : vector<32x128xf32>
    %453 = vector.extract_strided_slice %447 {offsets = [0, 256], sizes = [32, 128], strides = [1, 1]} : vector<32x640xf32> to vector<32x128xf32>
    %454 = arith.mulf %453, %1 : vector<32x128xf32>
    %455 = vector.extract_strided_slice %447 {offsets = [0, 384], sizes = [32, 128], strides = [1, 1]} : vector<32x640xf32> to vector<32x128xf32>
    %456 = arith.mulf %455, %2 : vector<32x128xf32>
    %457 = arith.addf %454, %456 : vector<32x128xf32>
    %458 = vector.extract_strided_slice %447 {offsets = [0, 512], sizes = [32, 128], strides = [1, 1]} : vector<32x640xf32> to vector<32x128xf32>
    %459 = vector.extract_strided_slice %452 {offsets = [0, 0], sizes = [32, 32], strides = [1, 1]} : vector<32x128xf32> to vector<32x32xf32>
    %460 = vector.extract_strided_slice %457 {offsets = [0, 0], sizes = [32, 32], strides = [1, 1]} : vector<32x128xf32> to vector<32x32xf32>
    %461 = vector.extract_strided_slice %458 {offsets = [0, 0], sizes = [32, 32], strides = [1, 1]} : vector<32x128xf32> to vector<32x32xf32>
    %cst_169 = arith.constant dense<0.000000e+00> : vector<32x32xf32>
    %462 = tpu.matmul %459, %460, %cst_169 {dimension_numbers = #tpu.dot_dimension_numbers<[1], [1], [0], [0], [0, 0, 1, 0], [], []>} : vector<32x32xf32>, vector<32x32xf32>, vector<32x32xf32> -> vector<32x32xf32>
    %cst_170 = arith.constant 0.176776692 : f32
    %463 = vector.broadcast %cst_170 : f32 to vector<32x32xf32>
    %464 = arith.mulf %462, %463 : vector<32x32xf32>
    %465 = arith.addf %464, %3 : vector<32x32xf32>
    %cst_171 = arith.constant dense<0xFF800000> : vector<32xf32>
    %466 = vector.multi_reduction <maximumf>, %465, %cst_171 [1] : vector<32x32xf32> to vector<32xf32>
    %467 = vector.shape_cast %466 : vector<32xf32> to vector<32x1xf32>
    %468 = vector.broadcast %467 : vector<32x1xf32> to vector<32x32xf32>
    %469 = arith.subf %465, %468 : vector<32x32xf32>
    %470 = math.exp %469 : vector<32x32xf32>
    %cst_172 = arith.constant dense<0.000000e+00> : vector<32xf32>
    %471 = vector.multi_reduction <add>, %470, %cst_172 [1] : vector<32x32xf32> to vector<32xf32>
    %472 = vector.shape_cast %471 : vector<32xf32> to vector<32x1xf32>
    %473 = tpu.reciprocal %472 {approx = true} : vector<32x1xf32> -> vector<32x1xf32>
    %474 = vector.broadcast %473 : vector<32x1xf32> to vector<32x32xf32>
    %475 = arith.mulf %470, %474 : vector<32x32xf32>
    %cst_173 = arith.constant dense<0.000000e+00> : vector<32x32xf32>
    %476 = tpu.matmul %475, %461, %cst_173 {dimension_numbers = #tpu.dot_dimension_numbers<[1], [0], [0], [1], [0, 0, 1, 1], [], []>} : vector<32x32xf32>, vector<32x32xf32>, vector<32x32xf32> -> vector<32x32xf32>
    %477 = vector.extract_strided_slice %452 {offsets = [0, 32], sizes = [32, 32], strides = [1, 1]} : vector<32x128xf32> to vector<32x32xf32>
    %478 = vector.extract_strided_slice %457 {offsets = [0, 32], sizes = [32, 32], strides = [1, 1]} : vector<32x128xf32> to vector<32x32xf32>
    %479 = vector.extract_strided_slice %458 {offsets = [0, 32], sizes = [32, 32], strides = [1, 1]} : vector<32x128xf32> to vector<32x32xf32>
    %cst_174 = arith.constant dense<0.000000e+00> : vector<32x32xf32>
    %480 = tpu.matmul %477, %478, %cst_174 {dimension_numbers = #tpu.dot_dimension_numbers<[1], [1], [0], [0], [0, 0, 1, 0], [], []>} : vector<32x32xf32>, vector<32x32xf32>, vector<32x32xf32> -> vector<32x32xf32>
    %cst_175 = arith.constant 0.176776692 : f32
    %481 = vector.broadcast %cst_175 : f32 to vector<32x32xf32>
    %482 = arith.mulf %480, %481 : vector<32x32xf32>
    %483 = arith.addf %482, %3 : vector<32x32xf32>
    %cst_176 = arith.constant dense<0xFF800000> : vector<32xf32>
    %484 = vector.multi_reduction <maximumf>, %483, %cst_176 [1] : vector<32x32xf32> to vector<32xf32>
    %485 = vector.shape_cast %484 : vector<32xf32> to vector<32x1xf32>
    %486 = vector.broadcast %485 : vector<32x1xf32> to vector<32x32xf32>
    %487 = arith.subf %483, %486 : vector<32x32xf32>
    %488 = math.exp %487 : vector<32x32xf32>
    %cst_177 = arith.constant dense<0.000000e+00> : vector<32xf32>
    %489 = vector.multi_reduction <add>, %488, %cst_177 [1] : vector<32x32xf32> to vector<32xf32>
    %490 = vector.shape_cast %489 : vector<32xf32> to vector<32x1xf32>
    %491 = tpu.reciprocal %490 {approx = true} : vector<32x1xf32> -> vector<32x1xf32>
    %492 = vector.broadcast %491 : vector<32x1xf32> to vector<32x32xf32>
    %493 = arith.mulf %488, %492 : vector<32x32xf32>
    %cst_178 = arith.constant dense<0.000000e+00> : vector<32x32xf32>
    %494 = tpu.matmul %493, %479, %cst_178 {dimension_numbers = #tpu.dot_dimension_numbers<[1], [0], [0], [1], [0, 0, 1, 1], [], []>} : vector<32x32xf32>, vector<32x32xf32>, vector<32x32xf32> -> vector<32x32xf32>
    %495 = vector.extract_strided_slice %452 {offsets = [0, 64], sizes = [32, 32], strides = [1, 1]} : vector<32x128xf32> to vector<32x32xf32>
    %496 = vector.extract_strided_slice %457 {offsets = [0, 64], sizes = [32, 32], strides = [1, 1]} : vector<32x128xf32> to vector<32x32xf32>
    %497 = vector.extract_strided_slice %458 {offsets = [0, 64], sizes = [32, 32], strides = [1, 1]} : vector<32x128xf32> to vector<32x32xf32>
    %cst_179 = arith.constant dense<0.000000e+00> : vector<32x32xf32>
    %498 = tpu.matmul %495, %496, %cst_179 {dimension_numbers = #tpu.dot_dimension_numbers<[1], [1], [0], [0], [0, 0, 1, 0], [], []>} : vector<32x32xf32>, vector<32x32xf32>, vector<32x32xf32> -> vector<32x32xf32>
    %cst_180 = arith.constant 0.176776692 : f32
    %499 = vector.broadcast %cst_180 : f32 to vector<32x32xf32>
    %500 = arith.mulf %498, %499 : vector<32x32xf32>
    %501 = arith.addf %500, %3 : vector<32x32xf32>
    %cst_181 = arith.constant dense<0xFF800000> : vector<32xf32>
    %502 = vector.multi_reduction <maximumf>, %501, %cst_181 [1] : vector<32x32xf32> to vector<32xf32>
    %503 = vector.shape_cast %502 : vector<32xf32> to vector<32x1xf32>
    %504 = vector.broadcast %503 : vector<32x1xf32> to vector<32x32xf32>
    %505 = arith.subf %501, %504 : vector<32x32xf32>
    %506 = math.exp %505 : vector<32x32xf32>
    %cst_182 = arith.constant dense<0.000000e+00> : vector<32xf32>
    %507 = vector.multi_reduction <add>, %506, %cst_182 [1] : vector<32x32xf32> to vector<32xf32>
    %508 = vector.shape_cast %507 : vector<32xf32> to vector<32x1xf32>
    %509 = tpu.reciprocal %508 {approx = true} : vector<32x1xf32> -> vector<32x1xf32>
    %510 = vector.broadcast %509 : vector<32x1xf32> to vector<32x32xf32>
    %511 = arith.mulf %506, %510 : vector<32x32xf32>
    %cst_183 = arith.constant dense<0.000000e+00> : vector<32x32xf32>
    %512 = tpu.matmul %511, %497, %cst_183 {dimension_numbers = #tpu.dot_dimension_numbers<[1], [0], [0], [1], [0, 0, 1, 1], [], []>} : vector<32x32xf32>, vector<32x32xf32>, vector<32x32xf32> -> vector<32x32xf32>
    %513 = vector.extract_strided_slice %452 {offsets = [0, 96], sizes = [32, 32], strides = [1, 1]} : vector<32x128xf32> to vector<32x32xf32>
    %514 = vector.extract_strided_slice %457 {offsets = [0, 96], sizes = [32, 32], strides = [1, 1]} : vector<32x128xf32> to vector<32x32xf32>
    %515 = vector.extract_strided_slice %458 {offsets = [0, 96], sizes = [32, 32], strides = [1, 1]} : vector<32x128xf32> to vector<32x32xf32>
    %cst_184 = arith.constant dense<0.000000e+00> : vector<32x32xf32>
    %516 = tpu.matmul %513, %514, %cst_184 {dimension_numbers = #tpu.dot_dimension_numbers<[1], [1], [0], [0], [0, 0, 1, 0], [], []>} : vector<32x32xf32>, vector<32x32xf32>, vector<32x32xf32> -> vector<32x32xf32>
    %cst_185 = arith.constant 0.176776692 : f32
    %517 = vector.broadcast %cst_185 : f32 to vector<32x32xf32>
    %518 = arith.mulf %516, %517 : vector<32x32xf32>
    %519 = arith.addf %518, %3 : vector<32x32xf32>
    %cst_186 = arith.constant dense<0xFF800000> : vector<32xf32>
    %520 = vector.multi_reduction <maximumf>, %519, %cst_186 [1] : vector<32x32xf32> to vector<32xf32>
    %521 = vector.shape_cast %520 : vector<32xf32> to vector<32x1xf32>
    %522 = vector.broadcast %521 : vector<32x1xf32> to vector<32x32xf32>
    %523 = arith.subf %519, %522 : vector<32x32xf32>
    %524 = math.exp %523 : vector<32x32xf32>
    %cst_187 = arith.constant dense<0.000000e+00> : vector<32xf32>
    %525 = vector.multi_reduction <add>, %524, %cst_187 [1] : vector<32x32xf32> to vector<32xf32>
    %526 = vector.shape_cast %525 : vector<32xf32> to vector<32x1xf32>
    %527 = tpu.reciprocal %526 {approx = true} : vector<32x1xf32> -> vector<32x1xf32>
    %528 = vector.broadcast %527 : vector<32x1xf32> to vector<32x32xf32>
    %529 = arith.mulf %524, %528 : vector<32x32xf32>
    %cst_188 = arith.constant dense<0.000000e+00> : vector<32x32xf32>
    %530 = tpu.matmul %529, %515, %cst_188 {dimension_numbers = #tpu.dot_dimension_numbers<[1], [0], [0], [1], [0, 0, 1, 1], [], []>} : vector<32x32xf32>, vector<32x32xf32>, vector<32x32xf32> -> vector<32x32xf32>
    %531 = tpu.concatenate %476, %494, %512, %530 in 1 : vector<32x32xf32>, vector<32x32xf32>, vector<32x32xf32>, vector<32x32xf32> -> vector<32x128xf32>
    %532 = arith.truncf %531 : vector<32x128xf32> to vector<32x128xbf16>
    %c3_189 = arith.constant 3 : index
    %c0_190 = arith.constant 0 : index
    %c0_191 = arith.constant 0 : index
    %533 = vector.load %arg3[%c3_189, %c0_190, %c0_191] : memref<4x128x128xbf16, #tpu.memory_space<vmem>>, vector<1x128x128xbf16>
    %534 = vector.shape_cast %533 : vector<1x128x128xbf16> to vector<128x128xbf16>
    %cst_192 = arith.constant dense<0.000000e+00> : vector<32x128xf32>
    %535 = tpu.matmul %532, %534, %cst_192 {dimension_numbers = #tpu.dot_dimension_numbers<[1], [0], [0], [1], [0, 0, 1, 1], [], []>} : vector<32x128xbf16>, vector<128x128xbf16>, vector<32x128xf32> -> vector<32x128xf32>
    %536 = arith.addf %426, %535 : vector<32x128xf32>
    %c3_193 = arith.constant 3 : index
    %c0_194 = arith.constant 0 : index
    %c0_195 = arith.constant 0 : index
    %537 = vector.load %arg7[%c3_193, %c0_194, %c0_195] : memref<4x1x128xf32, #tpu.memory_space<vmem>>, vector<1x1x128xf32>
    %538 = vector.shape_cast %537 : vector<1x1x128xf32> to vector<1x128xf32>
    %539 = arith.mulf %536, %536 : vector<32x128xf32>
    %cst_196 = arith.constant dense<0.000000e+00> : vector<32xf32>
    %540 = vector.multi_reduction <add>, %539, %cst_196 [1] : vector<32x128xf32> to vector<32xf32>
    %541 = vector.shape_cast %540 : vector<32xf32> to vector<32x1xf32>
    %cst_197 = arith.constant 1.280000e+02 : f32
    %542 = vector.broadcast %cst_197 : f32 to vector<32x1xf32>
    %543 = arith.divf %541, %542 : vector<32x1xf32>
    %cst_198 = arith.constant 9.99999997E-7 : f32
    %544 = vector.broadcast %cst_198 : f32 to vector<32x1xf32>
    %545 = arith.addf %543, %544 : vector<32x1xf32>
    %546 = math.rsqrt %545 : vector<32x1xf32>
    %547 = vector.broadcast %546 : vector<32x1xf32> to vector<32x128xf32>
    %548 = arith.mulf %536, %547 : vector<32x128xf32>
    %549 = vector.broadcast %538 : vector<1x128xf32> to vector<32x128xf32>
    %550 = arith.mulf %548, %549 : vector<32x128xf32>
    %551 = arith.truncf %550 : vector<32x128xf32> to vector<32x128xbf16>
    %c3_199 = arith.constant 3 : index
    %c0_200 = arith.constant 0 : index
    %c0_201 = arith.constant 0 : index
    %552 = vector.load %arg4[%c3_199, %c0_200, %c0_201] : memref<4x128x512xbf16, #tpu.memory_space<vmem>>, vector<1x128x512xbf16>
    %553 = vector.shape_cast %552 : vector<1x128x512xbf16> to vector<128x512xbf16>
    %cst_202 = arith.constant dense<0.000000e+00> : vector<32x512xf32>
    %554 = tpu.matmul %551, %553, %cst_202 {dimension_numbers = #tpu.dot_dimension_numbers<[1], [0], [0], [1], [0, 0, 1, 1], [], []>} : vector<32x128xbf16>, vector<128x512xbf16>, vector<32x512xf32> -> vector<32x512xf32>
    %555 = vector.extract_strided_slice %554 {offsets = [0, 0], sizes = [32, 256], strides = [1, 1]} : vector<32x512xf32> to vector<32x256xf32>
    %556 = vector.extract_strided_slice %554 {offsets = [0, 256], sizes = [32, 256], strides = [1, 1]} : vector<32x512xf32> to vector<32x256xf32>
    %557 = arith.negf %555 : vector<32x256xf32>
    %558 = math.exp %557 : vector<32x256xf32>
    %cst_203 = arith.constant 1.000000e+00 : f32
    %559 = vector.broadcast %cst_203 : f32 to vector<32x256xf32>
    %560 = arith.addf %559, %558 : vector<32x256xf32>
    %561 = arith.divf %559, %560 : vector<32x256xf32>
    %562 = arith.mulf %555, %561 : vector<32x256xf32>
    %563 = arith.mulf %562, %556 : vector<32x256xf32>
    %564 = arith.truncf %563 : vector<32x256xf32> to vector<32x256xbf16>
    %c3_204 = arith.constant 3 : index
    %c0_205 = arith.constant 0 : index
    %c0_206 = arith.constant 0 : index
    %565 = vector.load %arg5[%c3_204, %c0_205, %c0_206] : memref<4x256x128xbf16, #tpu.memory_space<vmem>>, vector<1x256x128xbf16>
    %566 = vector.shape_cast %565 : vector<1x256x128xbf16> to vector<256x128xbf16>
    %cst_207 = arith.constant dense<0.000000e+00> : vector<32x128xf32>
    %567 = tpu.matmul %564, %566, %cst_207 {dimension_numbers = #tpu.dot_dimension_numbers<[1], [0], [0], [1], [0, 0, 1, 1], [], []>} : vector<32x256xbf16>, vector<256x128xbf16>, vector<32x128xf32> -> vector<32x128xf32>
    %568 = arith.addf %536, %567 : vector<32x128xf32>
    %c3_208 = arith.constant 3 : index
    %c0_209 = arith.constant 0 : index
    %c0_210 = arith.constant 0 : index
    %569 = vector.load %arg12[%c3_208, %c0_209, %c0_210] : memref<4x32x128xf32, #tpu.memory_space<vmem>>, vector<1x32x128xf32>
    %570 = vector.shape_cast %569 : vector<1x32x128xf32> to vector<32x128xf32>
    %571 = vector.shape_cast %568 : vector<32x128xf32> to vector<1x32x128xf32>
    tpu.vector_store %arg12[%c3_208, %c0_209, %c0_210], %571 {strides = array<i32>} : memref<4x32x128xf32, #tpu.memory_space<vmem>>, vector<1x32x128xf32>,
    %c0_211 = arith.constant 0 : index
    %c0_212 = arith.constant 0 : index
    %572 = vector.load %arg8[%c0_211, %c0_212] : memref<1x128xf32, #tpu.memory_space<vmem>>, vector<1x128xf32>
    %573 = arith.mulf %568, %568 : vector<32x128xf32>
    %cst_213 = arith.constant dense<0.000000e+00> : vector<32xf32>
    %574 = vector.multi_reduction <add>, %573, %cst_213 [1] : vector<32x128xf32> to vector<32xf32>
    %575 = vector.shape_cast %574 : vector<32xf32> to vector<32x1xf32>
    %cst_214 = arith.constant 1.280000e+02 : f32
    %576 = vector.broadcast %cst_214 : f32 to vector<32x1xf32>
    %577 = arith.divf %575, %576 : vector<32x1xf32>
    %cst_215 = arith.constant 9.99999997E-7 : f32
    %578 = vector.broadcast %cst_215 : f32 to vector<32x1xf32>
    %579 = arith.addf %577, %578 : vector<32x1xf32>
    %580 = math.rsqrt %579 : vector<32x1xf32>
    %581 = vector.broadcast %580 : vector<32x1xf32> to vector<32x128xf32>
    %582 = arith.mulf %568, %581 : vector<32x128xf32>
    %583 = vector.broadcast %572 : vector<1x128xf32> to vector<32x128xf32>
    %584 = arith.mulf %582, %583 : vector<32x128xf32>
    %c0_216 = arith.constant 0 : index
    %c0_217 = arith.constant 0 : index
    %585 = vector.load %arg13[%c0_216, %c0_217] : memref<32x128xf32, #tpu.memory_space<vmem>>, vector<32x128xf32>
    tpu.vector_store %arg13[%c0_216, %c0_217], %584 {strides = array<i32>} : memref<32x128xf32, #tpu.memory_space<vmem>>, vector<32x128xf32>,
    return
  }
  func.func @transform_0(%arg0: i32) -> (i32, i32) {
    %c0_i32 = arith.constant 0 : i32
    %c0_i32_0 = arith.constant 0 : i32
    %c0_i32_1 = arith.constant 0 : i32
    return %c0_i32, %c0_i32_0 : i32, i32
  }
  func.func @transform_1(%arg0: i32) -> (i32, i32, i32) {
    %c0_i32 = arith.constant 0 : i32
    %c0_i32_0 = arith.constant 0 : i32
    %c0_i32_1 = arith.constant 0 : i32
    %c0_i32_2 = arith.constant 0 : i32
    return %c0_i32, %c0_i32_0, %c0_i32_1 : i32, i32, i32
  }
  func.func @transform_2(%arg0: i32) -> (i32, i32, i32) {
    %c0_i32 = arith.constant 0 : i32
    %c0_i32_0 = arith.constant 0 : i32
    %c0_i32_1 = arith.constant 0 : i32
    %c0_i32_2 = arith.constant 0 : i32
    return %c0_i32, %c0_i32_0, %c0_i32_1 : i32, i32, i32
  }
  func.func @transform_3(%arg0: i32) -> (i32, i32, i32) {
    %c0_i32 = arith.constant 0 : i32
    %c0_i32_0 = arith.constant 0 : i32
    %c0_i32_1 = arith.constant 0 : i32
    %c0_i32_2 = arith.constant 0 : i32
    return %c0_i32, %c0_i32_0, %c0_i32_1 : i32, i32, i32
  }
  func.func @transform_4(%arg0: i32) -> (i32, i32, i32) {
    %c0_i32 = arith.constant 0 : i32
    %c0_i32_0 = arith.constant 0 : i32
    %c0_i32_1 = arith.constant 0 : i32
    %c0_i32_2 = arith.constant 0 : i32
    return %c0_i32, %c0_i32_0, %c0_i32_1 : i32, i32, i32
  }
  func.func @transform_5(%arg0: i32) -> (i32, i32, i32) {
    %c0_i32 = arith.constant 0 : i32
    %c0_i32_0 = arith.constant 0 : i32
    %c0_i32_1 = arith.constant 0 : i32
    %c0_i32_2 = arith.constant 0 : i32
    return %c0_i32, %c0_i32_0, %c0_i32_1 : i32, i32, i32
  }
  func.func @transform_6(%arg0: i32) -> (i32, i32, i32) {
    %c0_i32 = arith.constant 0 : i32
    %c0_i32_0 = arith.constant 0 : i32
    %c0_i32_1 = arith.constant 0 : i32
    %c0_i32_2 = arith.constant 0 : i32
    return %c0_i32, %c0_i32_0, %c0_i32_1 : i32, i32, i32
  }
  func.func @transform_7(%arg0: i32) -> (i32, i32) {
    %c0_i32 = arith.constant 0 : i32
    %c0_i32_0 = arith.constant 0 : i32
    %c0_i32_1 = arith.constant 0 : i32
    return %c0_i32, %c0_i32_0 : i32, i32
  }
  func.func @transform_8(%arg0: i32) -> (i32, i32) {
    %c0_i32 = arith.constant 0 : i32
    %c0_i32_0 = arith.constant 0 : i32
    %c0_i32_1 = arith.constant 0 : i32
    return %c0_i32, %c0_i32_0 : i32, i32
  }
  func.func @transform_9(%arg0: i32) -> (i32, i32) {
    %c0_i32 = arith.constant 0 : i32
    %c0_i32_0 = arith.constant 0 : i32
    %c0_i32_1 = arith.constant 0 : i32
    return %c0_i32, %c0_i32_0 : i32, i32
  }
  func.func @transform_10(%arg0: i32) -> (i32, i32) {
    %c0_i32 = arith.constant 0 : i32
    %c0_i32_0 = arith.constant 0 : i32
    %c0_i32_1 = arith.constant 0 : i32
    return %c0_i32, %c0_i32_0 : i32, i32
  }
  func.func @transform_11(%arg0: i32) -> (i32, i32, i32) {
    %c0_i32 = arith.constant 0 : i32
    %c0_i32_0 = arith.constant 0 : i32
    %c0_i32_1 = arith.constant 0 : i32
    %c0_i32_2 = arith.constant 0 : i32
    return %c0_i32, %c0_i32_0, %c0_i32_1 : i32, i32, i32
  }
  func.func @transform_12(%arg0: i32) -> (i32, i32) {
    %c0_i32 = arith.constant 0 : i32
    %c0_i32_0 = arith.constant 0 : i32
    %c0_i32_1 = arith.constant 0 : i32
    return %c0_i32, %c0_i32_0 : i32, i32
  }
}

</mosaic_0001>

<bundles_post_ra>
// kernel: _forward_dt0.1
= control target key start
LH: loop header
LB: loop body
LE: loop exit
PB: predicated region body
PF: predicated region fallthrough
CT: control target
= control target key end

     0   :  { %18 = vsyncpa [#allocation3], 0  ;;  %s14881_s0 = inlined_call_operand.vmem [shape: f32[32,128], index: 0, kind: input, shape index: {}]   ;;  %s14882_s1 = inlined_call_operand.hbm [shape: bf16[4,128,640], index: 1, kind: input, shape index: {}]   ;;  %s14883_s2 = inlined_call_operand.hbm [shape: bf16[4,128,128], index: 2, kind: input, shape index: {}]   ;;  %s14884_s3 = inlined_call_operand.hbm [shape: bf16[4,128,512], index: 3, kind: input, shape index: {}]   ;;  %s14885_s4 = inlined_call_operand.vmem [shape: bf16[4,256,128], index: 4, kind: input, shape index: {}]   ;;  %s14886_s5 = inlined_call_operand.vmem [shape: f32[4,1,128], index: 5, kind: input, shape index: {}]   ;;  %s14887_s6 = inlined_call_operand.vmem [shape: f32[4,1,128], index: 6, kind: input, shape index: {}]   ;;  %s14888_s7 = inlined_call_operand.vmem [shape: f32[1,128], index: 7, kind: input, shape index: {}]   ;;  %s14889_s8 = inlined_call_operand.vmem [shape: f32[32,128], index: 8, kind: input, shape index: {}]   ;;  %s14890_s9 = inlined_call_operand.vmem [shape: f32[32,128], index: 9, kind: input, shape index: {}]   ;;  %s14891_s10 = inlined_call_operand.vmem [shape: f32[32,32], index: 10, kind: input, shape index: {}]   ;;  %s14892_s11 = inlined_call_operand.vmem [shape: f32[4,32,128], index: 11, kind: output, shape index: {0}]   ;;  %s14893_s12 = inlined_call_operand.vmem [shape: f32[32,128], index: 12, kind: output, shape index: {1}]  }
   0x1   :  { %19 = vsyncpa [#allocation5], 0  ;;  %s13121_s21 = smov [#allocation4]   ;;  %s13051_s25 = scalar_lea.hbm %s14883_s2, 4096 }
   0x2   :  { %s39_s22 = sshll.u32 %s13121_s21, 4  ;;  %p13052_p0 = scmp.ne.s32.totalorder %s14883_s2, %s13051_s25  ;;  %s40_s22 = int_to_ptr.vmem [resolvable:$true] %s39_s22 }
   0x3   :  { %p13055_p1 = scmp.lt.u32.totalorder %s13051_s25, %s14883_s2 }
   0x5   :  { %p13057_p2 = pnand %p13055_p1, %p13052_p0 }
   0x7   :  { %13060 = shalt.err (!%p13057_p2)
}
   0x8   :  { %s13061_s30 = scalar_lea.vmem %s40_s22, 4096  ;;  %p13066_p4 = scmp.lt.s32.totalorder %s40_s22, %s40_s22 }
   0x9   :  { %p13062_p3 = scmp.ne.s32.totalorder %s40_s22, %s13061_s30  ;;  %p13067_p5 = scmp.lt.s32.totalorder %s13061_s30, %s13061_s30 }
   0xb   :  { %p13068_p6 = por %p13067_p5, %p13066_p4 }
   0xd   :  { %p13069_p7 = pnand %p13068_p6, %p13062_p3 }
   0xf   :  { %13072 = shalt.err (!%p13069_p7)
}
  0x10   :  { %s13122_s13 = smov 64   ;;  %s13123_s14 = smov 4  }
  0x11   :  { %45 = dma.hbm_to_vmem [thread:$0]  %s14883_s2, 4096, %s40_s22, [#allocation5], %s13122_s13, %s13122_s13, %s13123_s14  }
  0x12   :  { %s13124_s17 = smov [#allocation2]   ;;  %s13073_s21 = scalar_lea.hbm %s14882_s1, 20480 }
  0x13   :  { %s27_s18 = sshll.u32 %s13124_s17, 4  ;;  %p13074_p8 = scmp.ne.s32.totalorder %s14882_s1, %s13073_s21  ;;  %s28_s18 = int_to_ptr.vmem [resolvable:$true] %s27_s18 }
  0x14   :  { %p13077_p9 = scmp.lt.u32.totalorder %s13073_s21, %s14882_s1 }
  0x16   :  { %p13079_p10 = pnand %p13077_p9, %p13074_p8 }
  0x18   :  { %13082 = shalt.err (!%p13079_p10)
}
  0x19   :  { %s13083_s27 = scalar_lea.vmem %s28_s18, 20480  ;;  %p13088_p12 = scmp.lt.s32.totalorder %s28_s18, %s28_s18 }
  0x1a   :  { %p13084_p11 = scmp.ne.s32.totalorder %s28_s18, %s13083_s27  ;;  %p13089_p13 = scmp.lt.s32.totalorder %s13083_s27, %s13083_s27 }
  0x1c   :  { %p13090_p0 = por %p13089_p13, %p13088_p12 }
  0x1e   :  { %p13091_p1 = pnand %p13090_p0, %p13084_p11 }
  0x20   :  { %13094 = shalt.err (!%p13091_p1)
}
  0x21   :  { %s13125_s2 = smov 320   ;;  %s13126_s22 = smov 20  }
  0x22   :  { %33 = dma.hbm_to_vmem [thread:$0]  %s14882_s1, 20480, %s28_s18, [#allocation3], %s13125_s2, %s13125_s2, %s13126_s22  }
  0x23   :  { %s13127_s30 = smov [#allocation6]   ;;  %s13095_s17 = scalar_lea.hbm %s14884_s3, 16384 }
  0x24   :  { %s51_s14 = sshll.u32 %s13127_s30, 4  ;;  %p13096_p2 = scmp.ne.s32.totalorder %s14884_s3, %s13095_s17  ;;  %s52_s14 = int_to_ptr.vmem [resolvable:$true] %s51_s14 }
  0x25   :  { %p13099_p3 = scmp.lt.u32.totalorder %s13095_s17, %s14884_s3 }
  0x27   :  { %p13101_p4 = pnand %p13099_p3, %p13096_p2 }
  0x29   :  { %13104 = shalt.err (!%p13101_p4)
}
  0x2a   :  { %s13105_s24 = scalar_lea.vmem %s52_s14, 16384  ;;  %p13110_p6 = scmp.lt.s32.totalorder %s52_s14, %s52_s14 }
  0x2b   :  { %p13106_p5 = scmp.ne.s32.totalorder %s52_s14, %s13105_s24  ;;  %p13111_p7 = scmp.lt.s32.totalorder %s13105_s24, %s13105_s24 }
  0x2d   :  { %p13112_p8 = por %p13111_p7, %p13110_p6 }
  0x2f   :  { %p13113_p9 = pnand %p13112_p8, %p13106_p5 }
  0x31   :  { %13116 = shalt.err (!%p13113_p9)
}
  0x32   :  { %s13128_s1 = smov 256   ;;  %s13129_s18 = smov 16  }
  0x33   :  { %57 = dma.hbm_to_vmem [thread:$0]  %s14884_s3, 16384, %s52_s14, [#allocation5], %s13128_s1, %s13128_s1, %s13129_s18  }
  0x34   :  { %13117 = dma.done.wait [#allocation3], 20480  }
  0x35   :  { %13118 = vsyncadd [#allocation3], 4294946816 }
  0x36   :  { %13119 = dma.done.wait [#allocation5], 20480  }
  0x37   :  { %13120 = vsyncadd [#allocation5], 4294946816  ;;  %v82_v0 = vld [vmem:[%s14881_s0] sm:$0xff]  ;;  %v84_v1 = vld [vmem:[%s14881_s0 + $0x10] sm:$0xff]  ;;  %v13130_v39 = vmov 0   ;;  %vm575_vm0 = vcmask 261120  }
  0x38   :  { %v83_v2 = vld [vmem:[%s14881_s0 + $0x8] sm:$0xff]  ;;  %v99_v3 = vmul.f32 %v82_v0, %v82_v0  ;;  %v101_v4 = vmul.f32 %v84_v1, %v84_v1  ;;  %v85_v5 = vld [vmem:[%s14881_s0 + $0x18] sm:$0xff]  ;;  %v12029_v7 = vld [vmem:[#allocation2] ss:$20 sps:$4 sm:$0xff]   ;;  %428 = vmatprep.mubr.bf16.mxu0 %v13130_v39  ;;  %481 = vmatprep.mubr.bf16.mxu1 %v13130_v39  ;;  %s13131_s22 = smov 96   ;;  %s13132_s28 = smov 32  }
  0x39   :  { %v12027_v6 = vld [vmem:[#allocation2 + $0x4] ss:$20 sps:$4 sm:$0xff]   ;;  %v100_v8 = vmul.f32 %v83_v2, %v83_v2  ;;  %v102_v9 = vmul.f32 %v85_v5, %v85_v5  ;;  %v12030_v10 = vld [vmem:[#allocation2 + $0xc] ss:$20 sps:$4 sm:$0xff]   ;;  %v12032_v11 = vld [vmem:[#allocation2 + $0x8] ss:$20 sps:$4 sm:$0xff]  }
  0x3a   :  { %103 = vadd.xlane.f32.xlu0 %v99_v3  ;;  %107 = vadd.xlane.f32.xlu1 %v101_v4  ;;  %v12033_v12 = vld [vmem:[#allocation2 + $0x2c] ss:$20 sps:$4 sm:$0xff]   ;;  %v12035_v13 = vld [vmem:[#allocation2 + $0x28] ss:$20 sps:$4 sm:$0xff]   ;;  %v12038_v15 = vld [vmem:[#allocation2 + $0x30] ss:$20 sps:$4 sm:$0xff]  }
  0x3b   :  { %396 = vmatprep.subr.bf16.mxu0 %v12027_v6  ;;  %449 = vmatprep.subr.bf16.mxu1 %v12030_v10  ;;  %v12036_v14 = vld [vmem:[#allocation2 + $0x34] ss:$20 sps:$4 sm:$0xff]   ;;  %v12041_v17 = vld [vmem:[#allocation2 + $0x50] ss:$20 sps:$4 sm:$0xff]   ;;  %v12044_v19 = vld [vmem:[#allocation2 + $0x58] ss:$20 sps:$4 sm:$0xff]  }
  0x3c   :  { %397 = vmatpush1.bf16.msra.mxu0 %v12029_v7  ;;  %450 = vmatpush1.bf16.msra.mxu1 %v12032_v11  ;;  %v12039_v16 = vld [vmem:[#allocation2 + $0x54] ss:$20 sps:$4 sm:$0xff]   ;;  %v12042_v18 = vld [vmem:[#allocation2 + $0x5c] ss:$20 sps:$4 sm:$0xff]   ;;  %v12047_v21 = vld [vmem:[#allocation2 + $0x78] ss:$20 sps:$4 sm:$0xff]  }
  0x3d   :  { %398 = vmatprep.subr.bf16.mxu0 %v12033_v12  ;;  %451 = vmatprep.subr.bf16.mxu1 %v12036_v14  ;;  %v12045_v20 = vld [vmem:[#allocation2 + $0x7c] ss:$20 sps:$4 sm:$0xff]   ;;  %v12048_v22 = vld [vmem:[#allocation2 + $0x84] ss:$20 sps:$4 sm:$0xff]   ;;  %v12050_v23 = vld [vmem:[#allocation2 + $0x80] ss:$20 sps:$4 sm:$0xff]  }
  0x3e   :  { %105 = vadd.xlane.f32.xlu0 %v100_v8  ;;  %109 = vadd.xlane.f32.xlu1 %v102_v9  ;;  %v12051_v24 = vld [vmem:[#allocation2 + $0xa4] ss:$20 sps:$4 sm:$0xff]   ;;  %v12053_v25 = vld [vmem:[#allocation2 + $0xa0] ss:$20 sps:$4 sm:$0xff]   ;;  %v12056_v27 = vld [vmem:[#allocation2 + $0xa8] ss:$20 sps:$4 sm:$0xff]  }
  0x3f   :  { %v12054_v26 = vld [vmem:[#allocation2 + $0xac] ss:$20 sps:$4 sm:$0xff]   ;;  %v12059_v29 = vld [vmem:[#allocation2 + $0xc8] ss:$20 sps:$4 sm:$0xff]   ;;  %v12062_v31 = vld [vmem:[#allocation2 + $0xd0] ss:$20 sps:$4 sm:$0xff]  }
  0x40   :  { %399 = vmatpush1.bf16.msra.mxu0 %v12035_v13  ;;  %452 = vmatpush1.bf16.msra.mxu1 %v12038_v15  ;;  %v12057_v28 = vld [vmem:[#allocation2 + $0xcc] ss:$20 sps:$4 sm:$0xff]   ;;  %v12060_v30 = vld [vmem:[#allocation2 + $0xd4] ss:$20 sps:$4 sm:$0xff]   ;;  %v12066_v33 = vld [vmem:[#allocation2 + $0xfc] ss:$20 sps:$4 sm:$0xff]  }
  0x41   :  { %400 = vmatprep.subr.bf16.mxu0 %v12039_v16  ;;  %453 = vmatprep.subr.bf16.mxu1 %v12042_v18  ;;  %v12063_v32 = vld [vmem:[#allocation2 + $0xf4] ss:$20 sps:$4 sm:$0xff]   ;;  %v12065_v34 = vld [vmem:[#allocation2 + $0xf0] ss:$20 sps:$4 sm:$0xff]   ;;  %v12068_v35 = vld [vmem:[#allocation2 + $0xf8] ss:$20 sps:$4 sm:$0xff]  }
  0x42   :  { %v12069_v36 = vld [vmem:[#allocation2 + $0x11c] ss:$20 sps:$4 sm:$0xff]   ;;  %v12072_v37 = vld [vmem:[#allocation2 + $0x124] ss:$20 sps:$4 sm:$0xff]   ;;  %v12074_v40 = vld [vmem:[#allocation2 + $0x120] ss:$20 sps:$4 sm:$0xff]  }
  0x43   :  { %v12071_v38 = vld [vmem:[#allocation2 + $0x118] ss:$20 sps:$4 sm:$0xff]   ;;  %v12075_v41 = vld [vmem:[#allocation2 + $0x10] ss:$20 sps:$4 sm:$0xff]   ;;  %v9548_v55 = vld [vmem:[%s14886_s5] ss:$0 sm:$0xff] }
  0x44   :  { %401 = vmatpush1.bf16.msra.mxu0 %v12041_v17  ;;  %454 = vmatpush1.bf16.msra.mxu1 %v12044_v19  ;;  %v12995_v56 = vld [vmem:[%s14881_s0] sm:$0xff]  ;;  %v12996_v60 = vld [vmem:[%s14881_s0 + $0x8] sm:$0xff]  ;;  %v12997_v3 = vld [vmem:[%s14881_s0 + $0x10] sm:$0xff]  ;;  %vm1724_vm2 = vcmask 523264   ;;  %vm1729_vm3 = vcmask 785408  }
  0x45   :  { %402 = vmatprep.subr.bf16.mxu0 %v12045_v20  ;;  %455 = vmatprep.subr.bf16.mxu1 %v12048_v22  ;;  %v12076_v1 = vld [vmem:[#allocation2 + $0x38] ss:$20 sps:$4 sm:$0xff]   ;;  %v12077_v7 = vld [vmem:[#allocation2 + $0x60] ss:$20 sps:$4 sm:$0xff]   ;;  %v12078_v10 = vld [vmem:[#allocation2 + $0x88] ss:$20 sps:$4 sm:$0xff]  }
  0x46   :  { %v12998_v5 = vld [vmem:[%s14881_s0 + $0x18] sm:$0xff]  ;;  %v12079_v12 = vld [vmem:[#allocation2 + $0xb0] ss:$20 sps:$4 sm:$0xff]   ;;  %v12081_v14 = vld [vmem:[#allocation2 + $0x100] ss:$20 sps:$4 sm:$0xff]  }
  0x47   :  { %v12080_v13 = vld [vmem:[#allocation2 + $0xd8] ss:$20 sps:$4 sm:$0xff]   ;;  %v12082_v15 = vld [vmem:[#allocation2 + $0x128] ss:$20 sps:$4 sm:$0xff]   ;;  %v86_v16 = vld [vmem:[%s14889_s8] sm:$0xff] }
  0x48   :  { %403 = vmatpush1.bf16.msra.mxu0 %v12047_v21  ;;  %456 = vmatpush1.bf16.msra.mxu1 %v12050_v23  ;;  %v90_v17 = vld [vmem:[%s14890_s9] sm:$0xff]  ;;  %v87_v20 = vld [vmem:[%s14889_s8 + $0x8] sm:$0xff]  ;;  %vm13293_vm1 = vmpackc.low %vm575_vm0, %vm575_vm0 }
  0x49   :  { %404 = vmatprep.subr.bf16.mxu0 %v12051_v24  ;;  %457 = vmatprep.subr.bf16.mxu1 %v12054_v26 }
  0x4c   :  { %405 = vmatpush1.bf16.msra.mxu0 %v12053_v25  ;;  %458 = vmatpush1.bf16.msra.mxu1 %v12056_v27  ;;  %v91_v25 = vld [vmem:[%s14890_s9 + $0x8] sm:$0xff] }
  0x4d   :  { %406 = vmatprep.subr.bf16.mxu0 %v12057_v28  ;;  %459 = vmatprep.subr.bf16.mxu1 %v12060_v30 }
  0x50   :  { %407 = vmatpush1.bf16.msra.mxu0 %v12059_v29  ;;  %460 = vmatpush1.bf16.msra.mxu1 %v12062_v31 }
  0x51   :  { %408 = vmatprep.subr.bf16.mxu0 %v12063_v32  ;;  %461 = vmatprep.subr.bf16.mxu1 %v12066_v33 }
  0x54   :  { %409 = vmatpush1.bf16.msra.mxu0 %v12065_v34  ;;  %462 = vmatpush1.bf16.msra.mxu1 %v12068_v35 }
  0x55   :  { %410 = vmatprep.subr.bf16.mxu0 %v12069_v36  ;;  %463 = vmatprep.subr.bf16.mxu1 %v12072_v37 }
  0x58   :  { %411 = vmatpush1.bf16.msra.mxu0 %v12071_v38  ;;  %464 = vmatpush1.bf16.msra.mxu1 %v12074_v40 }
  0x59   :  { %10727 = vmatprep.subr.bf16.mxu0 %v12075_v41 }
  0xc7   :  { %v104_v42 = vpop.xlane.xlu0 %103  ;;  %v108_v43 = vpop.xlane.xlu1 %107 }
  0xc8   :  { %v112_v44 = vmul.f32 0.0078125, %v104_v42  ;;  %v114_v45 = vmul.f32 0.0078125, %v108_v43  ;;  %v92_v42 = vld [vmem:[%s14890_s9 + $0x10] sm:$0xff] }
  0xca   :  { %v116_v46 = vadd.f32 1e-06, %v112_v44  ;;  %v118_v51 = vadd.f32 1e-06, %v114_v45 }
  0xcb   :  { %v106_v47 = vpop.xlane.xlu0 %105  ;;  %v110_v48 = vpop.xlane.xlu1 %109 }
  0xcc   :  { %12539 = vrsqrt.f32 %v116_v46  ;;  %v113_v49 = vmul.f32 0.0078125, %v106_v47  ;;  %v115_v50 = vmul.f32 0.0078125, %v110_v48  ;;  %v89_v46 = vld [vmem:[%s14889_s8 + $0x18] sm:$0xff] }
  0xce   :  { %v117_v52 = vadd.f32 1e-06, %v113_v49  ;;  %v119_v53 = vadd.f32 1e-06, %v115_v50 }
  0xd0   :  { %12541 = vrsqrt.f32 %v117_v52 }
  0xd1   :  { %12543 = vrsqrt.f32 %v118_v51 }
  0xd2   :  { %12545 = vrsqrt.f32 %v119_v53  ;;  %v93_v53 = vld [vmem:[%s14890_s9 + $0x18] sm:$0xff] }
  0xd6   :  { %v12540_v54 = vpop.eup %12539 }
  0xd7   :  { %v124_v57 = vmul.f32 %v12995_v56, %v12540_v54 }
  0xd9   :  { %v134_v63 = vmul.f32 %v9548_v55, %v124_v57 }
  0xda   :  { %v12542_v58 = vpop.eup %12541 }
  0xdb   :  { %v12544_v59 = vpop.eup %12543  ;;  %v125_v61 = vmul.f32 %v12996_v60, %v12542_v58 }
  0xdc   :  { %v12546_v62 = vpop.eup %12545  ;;  %v126_v4 = vmul.f32 %v12997_v3, %v12544_v59 }
  0xdd   :  { %v135_v0 = vmul.f32 %v9548_v55, %v125_v61  ;;  %v127_v6 = vmul.f32 %v12998_v5, %v12546_v62 }
  0xde   :  { %v136_v8 = vmul.f32 %v9548_v55, %v126_v4 }
  0xdf   :  { %v138_v2 = vpack.c.bf16 %v135_v0, %v134_v63  ;;  %v137_v9 = vmul.f32 %v9548_v55, %v127_v6 }
  0xe1   :  { %429 = vmatmul.mubr.bf16.vlgmr.msra.gmra.mrb[0].mxu0 %v138_v2  ;;  %482 = vmatmul.mubr.bf16.vlgmr.msra.gmra.mrb[0].mxu1 %v138_v2  ;;  %v139_v11 = vpack.c.bf16 %v137_v9, %v136_v8 }
  0xe2   :  { %10728 = vmatpush3.bf16.msra.mxu0 %v12075_v41  ;;  %438 = vmatprep.mubr.bf16.mxu0 %v13130_v39  ;;  %v88_v41 = vld [vmem:[%s14889_s8 + $0x10] sm:$0xff] }
  0xe3   :  { %10729 = vmatprep.subr.bf16.mxu0 %v12076_v1  ;;  %491 = vmatprep.mubr.bf16.mxu1 %v13130_v39 }
  0xe6   :  { %10730 = vmatpush3.bf16.msra.mxu0 %v12076_v1 }
  0xe7   :  { %10731 = vmatprep.subr.bf16.mxu0 %v12077_v7 }
  0xe9   :  { %439 = vmatmul.mubr.bf16.gmra.mrb[4].mxu0 %v139_v11  ;;  %492 = vmatmul.mubr.bf16.gmra.mrb[4].mxu1 %v139_v11 }
  0xea   :  { %10732 = vmatpush3.bf16.msra.mxu0 %v12077_v7  ;;  %10743 = vmatprep.mubr.bf16.mxu0 %v138_v2 }
  0xeb   :  { %10733 = vmatprep.subr.bf16.mxu0 %v12078_v10 }
  0xee   :  { %10734 = vmatpush3.bf16.msra.mxu0 %v12078_v10 }
  0xef   :  { %10735 = vmatprep.subr.bf16.mxu0 %v12079_v12 }
  0xf2   :  { %10736 = vmatpush3.bf16.msra.mxu0 %v12079_v12 }
  0xf3   :  { %10737 = vmatprep.subr.bf16.mxu0 %v12080_v13 }
  0xf6   :  { %10738 = vmatpush3.bf16.msra.mxu0 %v12080_v13 }
  0xf7   :  { %10739 = vmatprep.subr.bf16.mxu0 %v12081_v14 }
  0xfa   :  { %10740 = vmatpush3.bf16.msra.mxu0 %v12081_v14 }
  0xfb   :  { %10741 = vmatprep.subr.bf16.mxu0 %v12082_v15 }
  0xfe   :  { %10742 = vmatpush3.bf16.msra.mxu0 %v12082_v15  ;;  %v13332_v15 = vld [vmem:[%s14891_s10 + $0x8] sm:$0xff] }
 0x101   :  { %10744 = vmatmul.mubr.bf16.vlgmr.msra.gmra.mrb[8].mxu0 %v139_v11 }
 0x1b4   :  { %v430_v18 = vpop.f32.mrb[0].mxu0  ;;  %v483_v19 = vpop.f32.mrb[0].mxu1 }
 0x1b5   :  { %v551_v21 = vmul.f32 %v430_v18, %v86_v16  ;;  %v563_v22 = vmul.f32 %v483_v19, %v86_v16  ;;  %v432_v23 = vpop.f32.mrb[1].mxu0  ;;  %v485_v24 = vpop.f32.mrb[1].mxu1  ;;  %v13337_v18 = vld [vmem:[%s14891_s10] sm:$0xff] }
 0x1b6   :  { %v555_v26 = vmul.f32 %v432_v23, %v90_v17  ;;  %v567_v27 = vmul.f32 %v485_v24, %v90_v17  ;;  %v434_v28 = vpop.f32.mrb[2].mxu0  ;;  %v487_v29 = vpop.f32.mrb[2].mxu1  ;;  %v13344_v23 = vld [vmem:[%s14891_s10 + $0x18] sm:$0xff] }
 0x1b7   :  { %v552_v30 = vmul.f32 %v434_v28, %v87_v20  ;;  %v564_v31 = vmul.f32 %v487_v29, %v87_v20  ;;  %v436_v32 = vpop.f32.mrb[3].mxu0  ;;  %v489_v33 = vpop.f32.mrb[3].mxu1 }
 0x1b8   :  { %v13279_v34 = vadd.f32 %v555_v26, %v551_v21  ;;  %v571_v35 = vadd.f32 %v567_v27, %v563_v22  ;;  %v556_v36 = vmul.f32 %v436_v32, %v91_v25  ;;  %v568_v37 = vmul.f32 %v489_v33, %v91_v25  ;;  %v13350_v27 = vld [vmem:[%s14891_s10 + $0x10] sm:$0xff] }
 0x1ba   :  { %v13281_v38 = vadd.f32 %v556_v36, %v552_v30  ;;  %v572_v40 = vadd.f32 %v568_v37, %v564_v31  ;;  %10755 = vmatprep.mubr.msk.f32.mxu1 %vm575_vm0, %v13279_v34 }
 0x1bc   :  { %v440_v44 = vpop.f32.mrb[4].mxu0  ;;  %v493_v45 = vpop.f32.mrb[4].mxu1  ;;  %v11335_v47 = vpack.c.bf16 %v572_v40, %v571_v35  ;;  %v13300_v48 = vpack.i.bf16 %v572_v40, %v571_v35 }
 0x1bd   :  { %v553_v49 = vmul.f32 %v440_v44, %v88_v41  ;;  %v565_v50 = vmul.f32 %v493_v45, %v88_v41  ;;  %v442_v51 = vpop.f32.mrb[5].mxu0  ;;  %v495_v52 = vpop.f32.mrb[5].mxu1 }
 0x1be   :  { %v557_v54 = vmul.f32 %v442_v51, %v92_v42  ;;  %v569_v55 = vmul.f32 %v495_v52, %v92_v42  ;;  %v444_v56 = vpop.f32.mrb[6].mxu0  ;;  %v497_v57 = vpop.f32.mrb[6].mxu1  ;;  %11337 = vmatprep.subr.msk.bf16.mxu1 %vm13293_vm1, %v11335_v47 }
 0x1bf   :  { %v554_v58 = vmul.f32 %v444_v56, %v89_v46  ;;  %v566_v59 = vmul.f32 %v497_v57, %v89_v46  ;;  %v446_v60 = vpop.f32.mrb[7].mxu0  ;;  %v499_v61 = vpop.f32.mrb[7].mxu1  ;;  %11340 = vmatpush3.bf16.xpose.msk.msra.mxu1 %vm13293_vm1, %v11335_v47 }
 0x1c0   :  { %v13309_v62 = vadd.f32 %v557_v54, %v553_v49  ;;  %v573_v63 = vadd.f32 %v569_v55, %v565_v50  ;;  %v558_v0 = vmul.f32 %v446_v60, %v93_v53  ;;  %v570_v1 = vmul.f32 %v499_v61, %v93_v53 }
 0x1c2   :  { %v13311_v2 = vadd.f32 %v558_v0, %v554_v58  ;;  %v574_v3 = vadd.f32 %v570_v1, %v566_v59 }
 0x1c4   :  { %v11341_v4 = vpack.c.bf16 %v574_v3, %v573_v63  ;;  %v13313_v5 = vpack.i.bf16 %v574_v3, %v573_v63 }
 0x1c6   :  { %11343 = vmatprep.subr.msk.bf16.mxu1 %vm13293_vm1, %v11341_v4 }
 0x1c7   :  { %11346 = vmatpush3.bf16.xpose.msk.msra.mxu1 %vm13293_vm1, %v11341_v4 }
 0x1ce   :  { %10756 = vmatmul.mubr.msk.f32.vlgmr.msra.gmra.mrb[8].mxu1 %vm575_vm0, %v13281_v38 }
 0x1cf   :  { %10758 = vmatprep.mubr.msk.f32.mxu1 %vm575_vm0, %v13309_v62 }
 0x1d2   :  { %10759 = vmatmul.mubr.msk.f32.gmra.mrb[10].mxu1 %vm575_vm0, %v13311_v2 }
 0x1d4   :  { %v10745_v6 = vpop.f32.mrb[8].mxu0 }
 0x1d5   :  { %v536_v7 = vpop.f32.mrb[9].mxu0 }
 0x1d6   :  { %v10746_v8 = vpop.f32.mrb[10].mxu0 }
 0x1d7   :  { %v539_v9 = vpop.f32.mrb[11].mxu0  ;;  %v11351_v10 = vpack.c.bf16 %v10746_v8, %v10745_v6  ;;  %v13325_v11 = vpack.i.bf16 %v10746_v8, %v10745_v6 }
 0x1d8   :  { %v11347_v12 = vpack.c.bf16 %v539_v9, %v536_v7  ;;  %v13327_v13 = vpack.i.bf16 %v539_v9, %v536_v7 }
 0x1da   :  { %11348 = vmatprep.subr.bf16.mxu1 %v11347_v12 }
 0x1db   :  { %11350 = vmatpush3.bf16.msra.mxu1 %v11347_v12 }
 0x1dc   :  { %11352 = vmatprep.subr.bf16.mxu1 %v11351_v10 }
 0x1df   :  { %11354 = vmatpush3.bf16.msra.mxu1 %v11351_v10 }
 0x2a1   :  { %v10757_v14 = vpop.f32.mrb[8].mxu1 }
 0x2a2   :  { %v686_v16 = vmul.f32 0.17677669, %v10757_v14  ;;  %v666_v17 = vpop.f32.mrb[9].mxu1 }
 0x2a3   :  { %v685_v19 = vmul.f32 0.17677669, %v666_v17 }
 0x2a4   :  { %v690_v20 = vadd.f32 %v686_v16, %v13332_v15 }
 0x2a5   :  { %v10760_v21 = vpop.f32.mrb[10].mxu1  ;;  %v689_v22 = vadd.f32 %v685_v19, %v13337_v18 }
 0x2a6   :  { %v688_v24 = vmul.f32 0.17677669, %v10760_v21  ;;  %v676_v25 = vpop.f32.mrb[11].mxu1  ;;  %v696_v26 = vsel %vm575_vm0, %v690_v20, -inf }
 0x2a7   :  { %v687_v28 = vmul.f32 0.17677669, %v676_v25  ;;  %697 = vmax.xlane.f32.xlu1 %v696_v26  ;;  %v693_v29 = vsel %vm575_vm0, %v689_v22, -inf }
 0x2a8   :  { %694 = vmax.xlane.f32.xlu0 %v693_v29  ;;  %v692_v30 = vadd.f32 %v688_v24, %v13344_v23 }
 0x2a9   :  { %v691_v31 = vadd.f32 %v687_v28, %v13350_v27 }
 0x2aa   :  { %v702_v32 = vsel %vm575_vm0, %v692_v30, -inf }
 0x2ab   :  { %703 = vmax.xlane.f32.xlu1 %v702_v32  ;;  %v699_v33 = vsel %vm575_vm0, %v691_v31, -inf }
 0x2ac   :  { %700 = vmax.xlane.f32.xlu0 %v699_v33 }
 0x334   :  { %v698_v35 = vpop.xlane.xlu1 %697 }
 0x335   :  { %v706_v36 = vsub.f32 %v690_v20, %v698_v35  ;;  %v695_v37 = vpop.xlane.xlu0 %694 }
 0x336   :  { %v705_v40 = vsub.f32 %v689_v22, %v695_v37 }
 0x337   :  { %v711_v41 = vmul.f32 1.442695, %v706_v36 }
 0x338   :  { %v709_v42 = vmul.f32 1.442695, %v705_v40  ;;  %v704_v44 = vpop.xlane.xlu1 %703 }
 0x339   :  { %12547 = vpow2.f32 %v711_v41  ;;  %v708_v45 = vsub.f32 %v692_v30, %v704_v44  ;;  %v701_v46 = vpop.xlane.xlu0 %700 }
 0x33a   :  { %12549 = vpow2.f32 %v709_v42  ;;  %v707_v47 = vsub.f32 %v691_v31, %v701_v46 }
 0x33b   :  { %v715_v49 = vmul.f32 1.442695, %v708_v45 }
 0x33c   :  { %v713_v50 = vmul.f32 1.442695, %v707_v47 }
 0x33d   :  { %12551 = vpow2.f32 %v715_v49 }
 0x33e   :  { %12553 = vpow2.f32 %v713_v50 }
 0x343   :  { %v12548_v51 = vpop.eup %12547 }
 0x344   :  { %v12550_v52 = vpop.eup %12549  ;;  %v720_v53 = vsel %vm575_vm0, %v12548_v51, 0.0 }
 0x345   :  { %721 = vadd.xlane.f32.xlu1 %v720_v53  ;;  %v717_v54 = vsel %vm575_vm0, %v12550_v52, 0.0 }
 0x346   :  { %718 = vadd.xlane.f32.xlu0 %v717_v54 }
 0x347   :  { %v12552_v55 = vpop.eup %12551 }
 0x348   :  { %v12554_v56 = vpop.eup %12553  ;;  %v726_v57 = vsel %vm575_vm0, %v12552_v55, 0.0 }
 0x349   :  { %727 = vadd.xlane.f32.xlu1 %v726_v57  ;;  %v723_v58 = vsel %vm575_vm0, %v12554_v56, 0.0 }
 0x34a   :  { %724 = vadd.xlane.f32.xlu0 %v723_v58 }
 0x35a   :  { %11673 = vrot.lane.b32.xlu1 %v13313_v5, %s13131_s22 }
 0x35e   :  { %834 = vrot.lane.b32.xlu1 %v13279_v34, %s13131_s22 }
 0x360   :  { %11668 = vrot.lane.b32.xlu0 %v13300_v48, %s13131_s22 }
 0x362   :  { %836 = vrot.lane.b32.xlu1 %v13281_v38, %s13131_s22 }
 0x364   :  { %838 = vrot.lane.b32.xlu0 %v13309_v62, %s13131_s22 }
 0x366   :  { %840 = vrot.lane.b32.xlu1 %v13311_v2, %s13131_s22 }
 0x3d2   :  { %v722_v59 = vpop.xlane.xlu1 %721 }
 0x3d3   :  { %12555 = vrcp.f32 %v722_v59  ;;  %v719_v60 = vpop.xlane.xlu0 %718 }
 0x3d4   :  { %12557 = vrcp.f32 %v719_v60 }
 0x3d6   :  { %v728_v61 = vpop.xlane.xlu1 %727 }
 0x3d7   :  { %12559 = vrcp.f32 %v728_v61  ;;  %v725_v63 = vpop.xlane.xlu0 %724 }
 0x3d8   :  { %12561 = vrcp.f32 %v725_v63 }
 0x3da   :  { %v11674_v0 = vpop.permute.xlu1 %11673 }
 0x3db   :  { %v11669_v1 = vpop.permute.xlu0 %11668  ;;  %v11676_v8 = vunpack.i.h.bf16 %v11674_v0  ;;  %v11675_v9 = vunpack.i.l.bf16 %v11674_v0 }
 0x3dc   :  { %v11671_v3 = vunpack.i.h.bf16 %v11669_v1  ;;  %v11670_v4 = vunpack.i.l.bf16 %v11669_v1 }
 0x3dd   :  { %v12556_v6 = vpop.eup %12555  ;;  %v11361_v19 = vpack.c.bf16 %v11676_v8, %v11675_v9 }
 0x3de   :  { %v12558_v7 = vpop.eup %12557  ;;  %v11355_v10 = vpack.c.bf16 %v11671_v3, %v11670_v4  ;;  %v734_v14 = vmul.f32 %v12556_v6, %v12548_v51  ;;  %v835_v22 = vpop.permute.xlu1 %834 }
 0x3df   :  { %v733_v12 = vmul.f32 %v12558_v7, %v12550_v52  ;;  %v839_v25 = vpop.permute.xlu0 %838 }
 0x3e0   :  { %11357 = vmatprep.subr.msk.bf16.mxu1 %vm13293_vm1, %v11355_v10 }
 0x3e1   :  { %v12560_v16 = vpop.eup %12559  ;;  %10769 = vmatprep.mubr.msk.f32.mxu1 %vm575_vm0, %v733_v12 }
 0x3e2   :  { %v12562_v17 = vpop.eup %12561  ;;  %10770 = vmatmul.mubr.msk.f32.vlgmr.msra.gmra.mrb[12].mxu1 %vm575_vm0, %v734_v14  ;;  %v736_v21 = vmul.f32 %v12560_v16, %v12552_v55  ;;  %v837_v24 = vpop.permute.xlu1 %836 }
 0x3e3   :  { %11360 = vmatpush3.bf16.xpose.msk.msra.mxu1 %vm13293_vm1, %v11355_v10  ;;  %v735_v20 = vmul.f32 %v12562_v17, %v12554_v56 }
 0x3e4   :  { %11363 = vmatprep.subr.msk.bf16.mxu1 %vm13293_vm1, %v11361_v19 }
 0x3e5   :  { %10772 = vmatprep.mubr.msk.f32.mxu1 %vm575_vm0, %v735_v20 }
 0x3e6   :  { %10773 = vmatmul.mubr.msk.f32.gmra.mrb[14].mxu1 %vm575_vm0, %v736_v21  ;;  %v841_v26 = vpop.permute.xlu1 %840 }
 0x3e7   :  { %10783 = vmatprep.mubr.msk.f32.mxu1 %vm575_vm0, %v835_v22 }
 0x3eb   :  { %11366 = vmatpush3.bf16.xpose.msk.msra.mxu1 %vm13293_vm1, %v11361_v19 }
 0x3f2   :  { %10784 = vmatmul.mubr.msk.f32.vlgmr.msra.gmra.mrb[16].mxu1 %vm575_vm0, %v837_v24 }
 0x3f3   :  { %10786 = vmatprep.mubr.msk.f32.mxu1 %vm575_vm0, %v839_v25 }
 0x3f6   :  { %10787 = vmatmul.mubr.msk.f32.gmra.mrb[18].mxu1 %vm575_vm0, %v841_v26 }
 0x4b5   :  { %v13389_v28 = vpop.f32.mrb[12].mxu1 }
 0x4b6   :  { %v13391_v29 = vpop.f32.mrb[13].mxu1 }
 0x4b9   :  { %v13393_v30 = vpop.f32.mrb[14].mxu1 }
 0x4ba   :  { %v13395_v31 = vpop.f32.mrb[15].mxu1 }
 0x4c5   :  { %v10785_v32 = vpop.f32.mrb[16].mxu1 }
 0x4c6   :  { %v952_v33 = vmul.f32 0.17677669, %v10785_v32  ;;  %v932_v35 = vpop.f32.mrb[17].mxu1 }
 0x4c7   :  { %v951_v36 = vmul.f32 0.17677669, %v932_v35 }
 0x4c8   :  { %v956_v37 = vadd.f32 %v952_v33, %v13332_v15 }
 0x4c9   :  { %v10788_v40 = vpop.f32.mrb[18].mxu1  ;;  %v955_v41 = vadd.f32 %v951_v36, %v13337_v18 }
 0x4ca   :  { %v942_v42 = vpop.f32.mrb[19].mxu1  ;;  %v962_v44 = vsel %vm575_vm0, %v956_v37, -inf  ;;  %v954_v45 = vmul.f32 0.17677669, %v10788_v40 }
 0x4cb   :  { %v953_v46 = vmul.f32 0.17677669, %v942_v42  ;;  %963 = vmax.xlane.f32.xlu1 %v962_v44  ;;  %v959_v47 = vsel %vm575_vm0, %v955_v41, -inf }
 0x4cc   :  { %960 = vmax.xlane.f32.xlu0 %v959_v47  ;;  %v958_v51 = vadd.f32 %v954_v45, %v13344_v23 }
 0x4cd   :  { %v957_v49 = vadd.f32 %v953_v46, %v13350_v27 }
 0x4ce   :  { %v968_v52 = vsel %vm575_vm0, %v958_v51, -inf }
 0x4cf   :  { %v965_v50 = vsel %vm575_vm0, %v957_v49, -inf }
 0x4d0   :  { %966 = vmax.xlane.f32.xlu0 %v965_v50 }
 0x4d4   :  { %969 = vmax.xlane.f32.xlu0 %v968_v52 }
 0x558   :  { %v964_v53 = vpop.xlane.xlu1 %963 }
 0x559   :  { %v972_v54 = vsub.f32 %v956_v37, %v964_v53  ;;  %v961_v55 = vpop.xlane.xlu0 %960 }
 0x55a   :  { %v971_v56 = vsub.f32 %v955_v41, %v961_v55 }
 0x55b   :  { %v977_v57 = vmul.f32 1.442695, %v972_v54 }
 0x55c   :  { %v975_v58 = vmul.f32 1.442695, %v971_v56 }
 0x55d   :  { %12563 = vpow2.f32 %v977_v57  ;;  %v967_v0 = vpop.xlane.xlu0 %966 }
 0x55e   :  { %12565 = vpow2.f32 %v975_v58  ;;  %v973_v1 = vsub.f32 %v957_v49, %v967_v0 }
 0x560   :  { %v979_v3 = vmul.f32 1.442695, %v973_v1 }
 0x561   :  { %v970_v4 = vpop.xlane.xlu0 %969 }
 0x562   :  { %v974_v6 = vsub.f32 %v958_v51, %v970_v4  ;;  %12567 = vpow2.f32 %v979_v3 }
 0x564   :  { %v981_v7 = vmul.f32 1.442695, %v974_v6 }
 0x566   :  { %12569 = vpow2.f32 %v981_v7 }
 0x567   :  { %v12564_v59 = vpop.eup %12563 }
 0x568   :  { %v12566_v60 = vpop.eup %12565  ;;  %v986_v61 = vsel %vm575_vm0, %v12564_v59, 0.0 }
 0x569   :  { %987 = vadd.xlane.f32.xlu1 %v986_v61  ;;  %v983_v63 = vsel %vm575_vm0, %v12566_v60, 0.0 }
 0x56a   :  { %984 = vadd.xlane.f32.xlu0 %v983_v63 }
 0x56c   :  { %v12568_v8 = vpop.eup %12567 }
 0x56d   :  { %v989_v9 = vsel %vm575_vm0, %v12568_v8, 0.0 }
 0x570   :  { %v12570_v10 = vpop.eup %12569 }
 0x571   :  { %v992_v12 = vsel %vm575_vm0, %v12570_v10, 0.0 }
 0x57a   :  { %11683 = vrot.lane.b32.xlu1 %v13325_v11, %s13131_s22 }
 0x57e   :  { %11688 = vrot.lane.b32.xlu1 %v13300_v48, %s13122_s13 }
 0x580   :  { %11678 = vrot.lane.b32.xlu0 %v13327_v13, %s13131_s22 }
 0x582   :  { %11693 = vrot.lane.b32.xlu1 %v13313_v5, %s13122_s13 }
 0x59f   :  { %990 = vadd.xlane.f32.xlu0 %v989_v9 }
 0x5a6   :  { %993 = vadd.xlane.f32.xlu1 %v992_v12 }
 0x5b5   :  { %1116 = vrot.lane.b32.xlu0 %v13279_v34, %s13122_s13 }
 0x5b7   :  { %1118 = vrot.lane.b32.xlu1 %v13281_v38, %s13122_s13 }
 0x5b9   :  { %1120 = vrot.lane.b32.xlu0 %v13309_v62, %s13122_s13 }
 0x5bb   :  { %1122 = vrot.lane.b32.xlu1 %v13311_v2, %s13122_s13 }
 0x5f6   :  { %v988_v14 = vpop.xlane.xlu1 %987 }
 0x5f7   :  { %v985_v16 = vpop.xlane.xlu0 %984 }
 0x5f8   :  { %12571 = vrcp.f32 %v985_v16 }
 0x5f9   :  { %12573 = vrcp.f32 %v988_v14 }
 0x5fa   :  { %v11684_v17 = vpop.permute.xlu1 %11683 }
 0x5fb   :  { %v11679_v19 = vpop.permute.xlu0 %11678  ;;  %v11686_v20 = vunpack.i.h.bf16 %v11684_v17  ;;  %v11685_v21 = vunpack.i.l.bf16 %v11684_v17 }
 0x5fc   :  { %v11681_v22 = vunpack.i.h.bf16 %v11679_v19  ;;  %v11680_v24 = vunpack.i.l.bf16 %v11679_v19 }
 0x5fd   :  { %v11371_v35 = vpack.c.bf16 %v11686_v20, %v11685_v21 }
 0x5fe   :  { %v11689_v25 = vpop.permute.xlu1 %11688  ;;  %v11367_v26 = vpack.c.bf16 %v11681_v22, %v11680_v24 }
 0x5ff   :  { %v11691_v32 = vunpack.i.h.bf16 %v11689_v25  ;;  %v11690_v33 = vunpack.i.l.bf16 %v11689_v25 }
 0x600   :  { %11368 = vmatprep.subr.bf16.mxu0 %v11367_v26 }
 0x601   :  { %11370 = vmatpush3.bf16.msra.mxu0 %v11367_v26  ;;  %v11375_v41 = vpack.c.bf16 %v11691_v32, %v11690_v33 }
 0x602   :  { %v12572_v36 = vpop.eup %12571  ;;  %11372 = vmatprep.subr.bf16.mxu0 %v11371_v35  ;;  %v11694_v42 = vpop.permute.xlu1 %11693 }
 0x603   :  { %v12574_v37 = vpop.eup %12573  ;;  %v999_v40 = vmul.f32 %v12572_v36, %v12566_v60  ;;  %v11696_v45 = vunpack.i.h.bf16 %v11694_v42  ;;  %v11695_v46 = vunpack.i.l.bf16 %v11694_v42 }
 0x604   :  { %v1000_v44 = vmul.f32 %v12574_v37, %v12564_v59 }
 0x605   :  { %11374 = vmatpush3.bf16.msra.mxu0 %v11371_v35  ;;  %10797 = vmatprep.mubr.msk.f32.mxu0 %vm575_vm0, %v999_v40  ;;  %v11381_v47 = vpack.c.bf16 %v11696_v45, %v11695_v46 }
 0x606   :  { %11377 = vmatprep.subr.msk.bf16.mxu0 %vm13293_vm1, %v11375_v41 }
 0x608   :  { %10798 = vmatmul.mubr.msk.f32.vlgmr.msra.gmra.mrb[12].mxu0 %vm575_vm0, %v1000_v44 }
 0x60e   :  { %11380 = vmatpush3.bf16.xpose.msk.msra.mxu0 %vm13293_vm1, %v11375_v41 }
 0x60f   :  { %11383 = vmatprep.subr.msk.bf16.mxu0 %vm13293_vm1, %v11381_v47 }
 0x616   :  { %11386 = vmatpush3.bf16.xpose.msk.msra.mxu0 %vm13293_vm1, %v11381_v47 }
 0x62c   :  { %v991_v49 = vpop.xlane.xlu0 %990 }
 0x62d   :  { %12575 = vrcp.f32 %v991_v49 }
 0x630   :  { %v1117_v54 = vpop.permute.xlu0 %1116 }
 0x633   :  { %v994_v50 = vpop.xlane.xlu1 %993 }
 0x634   :  { %12577 = vrcp.f32 %v994_v50  ;;  %v1121_v57 = vpop.permute.xlu0 %1120 }
 0x637   :  { %v12576_v51 = vpop.eup %12575  ;;  %v1119_v56 = vpop.permute.xlu1 %1118 }
 0x638   :  { %v1001_v52 = vmul.f32 %v12576_v51, %v12568_v8 }
 0x63a   :  { %10800 = vmatprep.mubr.msk.f32.mxu0 %vm575_vm0, %v1001_v52 }
 0x63b   :  { %v1123_v58 = vpop.permute.xlu1 %1122 }
 0x63e   :  { %v12578_v53 = vpop.eup %12577 }
 0x63f   :  { %v1002_v55 = vmul.f32 %v12578_v53, %v12570_v10 }
 0x641   :  { %10801 = vmatmul.mubr.msk.f32.gmra.mrb[14].mxu0 %vm575_vm0, %v1002_v55 }
 0x642   :  { %10811 = vmatprep.mubr.msk.f32.mxu0 %vm575_vm0, %v1117_v54 }
 0x645   :  { %10812 = vmatmul.mubr.msk.f32.vlgmr.msra.gmra.mrb[16].mxu0 %vm575_vm0, %v1119_v56 }
 0x646   :  { %10814 = vmatprep.mubr.msk.f32.mxu0 %vm575_vm0, %v1121_v57 }
 0x649   :  { %10815 = vmatmul.mubr.msk.f32.gmra.mrb[18].mxu0 %vm575_vm0, %v1123_v58 }
 0x6db   :  { %v13441_v59 = vpop.f32.mrb[12].mxu0 }
 0x6dc   :  { %v13443_v60 = vpop.f32.mrb[13].mxu0 }
 0x6dd   :  { %v11727_v61 = vpack.i.bf16 %v13441_v59, %v13443_v60 }
 0x714   :  { %v13447_v63 = vpop.f32.mrb[14].mxu0 }
 0x715   :  { %v13449_v0 = vpop.f32.mrb[15].mxu0 }
 0x716   :  { %v11732_v1 = vpack.i.bf16 %v13447_v63, %v13449_v0 }
 0x718   :  { %v10813_v3 = vpop.f32.mrb[16].mxu0 }
 0x719   :  { %v1234_v4 = vmul.f32 0.17677669, %v10813_v3  ;;  %v1214_v6 = vpop.f32.mrb[17].mxu0 }
 0x71a   :  { %v1233_v7 = vmul.f32 0.17677669, %v1214_v6 }
 0x71b   :  { %v1238_v8 = vadd.f32 %v1234_v4, %v13332_v15 }
 0x71c   :  { %v10816_v9 = vpop.f32.mrb[18].mxu0  ;;  %v1237_v10 = vadd.f32 %v1233_v7, %v13337_v18 }
 0x71d   :  { %v1224_v12 = vpop.f32.mrb[19].mxu0  ;;  %v1244_v14 = vsel %vm575_vm0, %v1238_v8, -inf  ;;  %v1236_v16 = vmul.f32 0.17677669, %v10816_v9 }
 0x71e   :  { %v1235_v17 = vmul.f32 0.17677669, %v1224_v12  ;;  %1245 = vmax.xlane.f32.xlu1 %v1244_v14  ;;  %v1241_v19 = vsel %vm575_vm0, %v1237_v10, -inf }
 0x71f   :  { %1242 = vmax.xlane.f32.xlu0 %v1241_v19  ;;  %v1240_v22 = vadd.f32 %v1236_v16, %v13344_v23 }
 0x720   :  { %v1239_v20 = vadd.f32 %v1235_v17, %v13350_v27 }
 0x721   :  { %v1250_v24 = vsel %vm575_vm0, %v1240_v22, -inf }
 0x722   :  { %v1247_v21 = vsel %vm575_vm0, %v1239_v20, -inf }
 0x723   :  { %1248 = vmax.xlane.f32.xlu0 %v1247_v21 }
 0x727   :  { %1251 = vmax.xlane.f32.xlu0 %v1250_v24 }
 0x7ab   :  { %v1246_v25 = vpop.xlane.xlu1 %1245 }
 0x7ac   :  { %v1254_v26 = vsub.f32 %v1238_v8, %v1246_v25  ;;  %v1243_v32 = vpop.xlane.xlu0 %1242 }
 0x7ad   :  { %v1253_v33 = vsub.f32 %v1237_v10, %v1243_v32 }
 0x7ae   :  { %v1259_v35 = vmul.f32 1.442695, %v1254_v26 }
 0x7af   :  { %v1257_v36 = vmul.f32 1.442695, %v1253_v33 }
 0x7b0   :  { %12579 = vpow2.f32 %v1259_v35  ;;  %v1249_v44 = vpop.xlane.xlu0 %1248 }
 0x7b1   :  { %12581 = vpow2.f32 %v1257_v36  ;;  %v1255_v45 = vsub.f32 %v1239_v20, %v1249_v44 }
 0x7b3   :  { %v1261_v46 = vmul.f32 1.442695, %v1255_v45 }
 0x7b4   :  { %v1252_v47 = vpop.xlane.xlu0 %1251 }
 0x7b5   :  { %v1256_v49 = vsub.f32 %v1240_v22, %v1252_v47  ;;  %12583 = vpow2.f32 %v1261_v46 }
 0x7b7   :  { %v1263_v50 = vmul.f32 1.442695, %v1256_v49 }
 0x7b9   :  { %12585 = vpow2.f32 %v1263_v50 }
 0x7ba   :  { %v12580_v37 = vpop.eup %12579 }
 0x7bb   :  { %v12582_v40 = vpop.eup %12581  ;;  %v1268_v41 = vsel %vm575_vm0, %v12580_v37, 0.0 }
 0x7bc   :  { %1269 = vadd.xlane.f32.xlu1 %v1268_v41  ;;  %v1265_v42 = vsel %vm575_vm0, %v12582_v40, 0.0 }
 0x7bd   :  { %1266 = vadd.xlane.f32.xlu0 %v1265_v42 }
 0x7bf   :  { %v12584_v51 = vpop.eup %12583 }
 0x7c0   :  { %v1271_v52 = vsel %vm575_vm0, %v12584_v51, 0.0 }
 0x7c3   :  { %v12586_v53 = vpop.eup %12585 }
 0x7cd   :  { %11703 = vrot.lane.b32.xlu1 %v13325_v11, %s13122_s13 }
 0x7d1   :  { %11708 = vrot.lane.b32.xlu1 %v13300_v48, %s13132_s28  ;;  %v1274_v48 = vsel %vm575_vm0, %v12586_v53, 0.0 }
 0x7d3   :  { %11698 = vrot.lane.b32.xlu0 %v13327_v13, %s13122_s13 }
 0x7d5   :  { %11713 = vrot.lane.b32.xlu1 %v13313_v5, %s13132_s28 }
 0x7f2   :  { %1272 = vadd.xlane.f32.xlu0 %v1271_v52 }
 0x7f9   :  { %1275 = vadd.xlane.f32.xlu1 %v1274_v48 }
 0x808   :  { %1394 = vrot.lane.b32.xlu0 %v13279_v34, %s13132_s28 }
 0x80a   :  { %1396 = vrot.lane.b32.xlu1 %v13281_v38, %s13132_s28 }
 0x80c   :  { %1398 = vrot.lane.b32.xlu0 %v13309_v62, %s13132_s28 }
 0x80e   :  { %1400 = vrot.lane.b32.xlu1 %v13311_v2, %s13132_s28 }
 0x849   :  { %v1270_v5 = vpop.xlane.xlu1 %1269 }
 0x84a   :  { %v1267_v54 = vpop.xlane.xlu0 %1266 }
 0x84b   :  { %12587 = vrcp.f32 %v1267_v54 }
 0x84c   :  { %12589 = vrcp.f32 %v1270_v5 }
 0x84d   :  { %v11704_v55 = vpop.permute.xlu1 %11703 }
 0x84e   :  { %v11699_v56 = vpop.permute.xlu0 %11698  ;;  %v11706_v57 = vunpack.i.h.bf16 %v11704_v55  ;;  %v11705_v58 = vunpack.i.l.bf16 %v11704_v55 }
 0x84f   :  { %v11701_v3 = vunpack.i.h.bf16 %v11699_v56  ;;  %v11700_v4 = vunpack.i.l.bf16 %v11699_v56 }
 0x850   :  { %v11391_v8 = vpack.c.bf16 %v11706_v57, %v11705_v58 }
 0x851   :  { %v11709_v34 = vpop.permute.xlu1 %11708  ;;  %v11387_v6 = vpack.c.bf16 %v11701_v3, %v11700_v4 }
 0x852   :  { %v11711_v7 = vunpack.i.h.bf16 %v11709_v34  ;;  %v11710_v38 = vunpack.i.l.bf16 %v11709_v34 }
 0x853   :  { %11388 = vmatprep.subr.bf16.mxu1 %v11387_v6 }
 0x854   :  { %11390 = vmatpush3.bf16.msra.mxu1 %v11387_v6  ;;  %v11395_v10 = vpack.c.bf16 %v11711_v7, %v11710_v38 }
 0x855   :  { %v12588_v62 = vpop.eup %12587  ;;  %11392 = vmatprep.subr.bf16.mxu1 %v11391_v8  ;;  %v11714_v14 = vpop.permute.xlu1 %11713 }
 0x856   :  { %v12590_v2 = vpop.eup %12589  ;;  %v1281_v9 = vmul.f32 %v12588_v62, %v12582_v40  ;;  %v11716_v16 = vunpack.i.h.bf16 %v11714_v14  ;;  %v11715_v17 = vunpack.i.l.bf16 %v11714_v14 }
 0x857   :  { %v1282_v12 = vmul.f32 %v12590_v2, %v12580_v37 }
 0x858   :  { %11394 = vmatpush3.bf16.msra.mxu1 %v11391_v8  ;;  %10825 = vmatprep.mubr.msk.f32.mxu1 %vm575_vm0, %v1281_v9  ;;  %v11401_v19 = vpack.c.bf16 %v11716_v16, %v11715_v17 }
 0x859   :  { %11397 = vmatprep.subr.msk.bf16.mxu1 %vm13293_vm1, %v11395_v10 }
 0x85b   :  { %10826 = vmatmul.mubr.msk.f32.vlgmr.msra.gmra.mrb[20].mxu1 %vm575_vm0, %v1282_v12 }
 0x861   :  { %11400 = vmatpush3.bf16.xpose.msk.msra.mxu1 %vm13293_vm1, %v11395_v10 }
 0x862   :  { %11403 = vmatprep.subr.msk.bf16.mxu1 %vm13293_vm1, %v11401_v19 }
 0x869   :  { %11406 = vmatpush3.bf16.xpose.msk.msra.mxu1 %vm13293_vm1, %v11401_v19 }
 0x87f   :  { %v1273_v20 = vpop.xlane.xlu0 %1272 }
 0x880   :  { %12591 = vrcp.f32 %v1273_v20 }
 0x883   :  { %v1395_v26 = vpop.permute.xlu0 %1394 }
 0x886   :  { %v1276_v21 = vpop.xlane.xlu1 %1275 }
 0x887   :  { %12593 = vrcp.f32 %v1276_v21  ;;  %v1399_v35 = vpop.permute.xlu0 %1398 }
 0x88a   :  { %v12592_v22 = vpop.eup %12591  ;;  %v1397_v33 = vpop.permute.xlu1 %1396 }
 0x88b   :  { %v1283_v24 = vmul.f32 %v12592_v22, %v12584_v51 }
 0x88d   :  { %10828 = vmatprep.mubr.msk.f32.mxu1 %vm575_vm0, %v1283_v24 }
 0x88e   :  { %v1401_v36 = vpop.permute.xlu1 %1400 }
 0x891   :  { %v12594_v25 = vpop.eup %12593 }
 0x892   :  { %v1284_v32 = vmul.f32 %v12594_v25, %v12586_v53 }
 0x894   :  { %10829 = vmatmul.mubr.msk.f32.gmra.mrb[22].mxu1 %vm575_vm0, %v1284_v32 }
 0x895   :  { %10839 = vmatprep.mubr.msk.f32.mxu1 %vm575_vm0, %v1395_v26 }
 0x898   :  { %10840 = vmatmul.mubr.msk.f32.vlgmr.msra.gmra.mrb[24].mxu1 %vm575_vm0, %v1397_v33 }
 0x899   :  { %10842 = vmatprep.mubr.msk.f32.mxu1 %vm575_vm0, %v1399_v35 }
 0x89c   :  { %10843 = vmatmul.mubr.msk.f32.gmra.mrb[26].mxu1 %vm575_vm0, %v1401_v36 }
 0x89d   :  { %2118 = vmatprep.mubr.bf16.mxu1 %v13130_v39 }
 0x92e   :  { %v10827_v37 = vpop.f32.mrb[20].mxu1 }
 0x92f   :  { %v1375_v40 = vpop.f32.mrb[21].mxu1 }
 0x930   :  { %v11737_v41 = vpack.i.bf16 %v10827_v37, %v1375_v40 }
 0x967   :  { %v10830_v42 = vpop.f32.mrb[22].mxu1 }
 0x968   :  { %v1385_v44 = vpop.f32.mrb[23].mxu1 }
 0x969   :  { %v11742_v45 = vpack.i.bf16 %v10830_v42, %v1385_v44  ;;  %v12083_v44 = vld [vmem:[#allocation4] sm:$0xff]  }
 0x96b   :  { %v10841_v46 = vpop.f32.mrb[24].mxu1 }
 0x96c   :  { %v1512_v47 = vmul.f32 0.17677669, %v10841_v46  ;;  %v1492_v49 = vpop.f32.mrb[25].mxu1  ;;  %v12085_v46 = vld [vmem:[#allocation4 + $0x10] sm:$0xff]  }
 0x96d   :  { %v1511_v50 = vmul.f32 0.17677669, %v1492_v49  ;;  %v12087_v49 = vld [vmem:[#allocation4 + $0x20] sm:$0xff]  }
 0x96e   :  { %v1516_v51 = vadd.f32 %v1512_v47, %v13332_v15  ;;  %v12086_v47 = vld [vmem:[#allocation4 + $0x18] sm:$0xff]  }
 0x96f   :  { %v10844_v52 = vpop.f32.mrb[26].mxu1  ;;  %v1515_v53 = vadd.f32 %v1511_v50, %v13337_v18  ;;  %v12088_v50 = vld [vmem:[#allocation4 + $0x28] sm:$0xff]  }
 0x970   :  { %v1502_v48 = vpop.f32.mrb[27].mxu1  ;;  %v1522_v5 = vsel %vm575_vm0, %v1516_v51, -inf  ;;  %v1514_v54 = vmul.f32 0.17677669, %v10844_v52  ;;  %v12090_v52 = vld [vmem:[#allocation4 + $0x38] sm:$0xff]  }
 0x971   :  { %v1513_v55 = vmul.f32 0.17677669, %v1502_v48  ;;  %1523 = vmax.xlane.f32.xlu1 %v1522_v5  ;;  %v1519_v56 = vsel %vm575_vm0, %v1515_v53, -inf }
 0x972   :  { %1520 = vmax.xlane.f32.xlu0 %v1519_v56  ;;  %v1518_v3 = vadd.f32 %v1514_v54, %v13344_v23 }
 0x973   :  { %v1517_v57 = vadd.f32 %v1513_v55, %v13350_v27 }
 0x974   :  { %v1528_v15 = vsel %vm575_vm0, %v1518_v3, -inf }
 0x975   :  { %v1525_v58 = vsel %vm575_vm0, %v1517_v57, -inf }
 0x976   :  { %1526 = vmax.xlane.f32.xlu0 %v1525_v58 }
 0x97a   :  { %1529 = vmax.xlane.f32.xlu0 %v1528_v15 }
 0x9fe   :  { %v1524_v18 = vpop.xlane.xlu1 %1523 }
 0x9ff   :  { %v1532_v4 = vsub.f32 %v1516_v51, %v1524_v18  ;;  %v1521_v34 = vpop.xlane.xlu0 %1520  ;;  %v12089_v51 = vld [vmem:[#allocation4 + $0x30] sm:$0xff]  }
 0xa00   :  { %v1531_v6 = vsub.f32 %v1515_v53, %v1521_v34 }
 0xa01   :  { %v1537_v7 = vmul.f32 1.442695, %v1532_v4 }
 0xa02   :  { %v1535_v38 = vmul.f32 1.442695, %v1531_v6 }
 0xa03   :  { %12595 = vpow2.f32 %v1537_v7  ;;  %v1527_v8 = vpop.xlane.xlu0 %1526 }
 0xa04   :  { %12597 = vpow2.f32 %v1535_v38  ;;  %v1533_v62 = vsub.f32 %v1517_v57, %v1527_v8 }
 0xa06   :  { %v1539_v2 = vmul.f32 1.442695, %v1533_v62 }
 0xa07   :  { %v1530_v27 = vpop.xlane.xlu0 %1529 }
 0xa08   :  { %12599 = vpow2.f32 %v1539_v2  ;;  %v1534_v9 = vsub.f32 %v1518_v3, %v1530_v27 }
 0xa0a   :  { %v1541_v10 = vmul.f32 1.442695, %v1534_v9 }
 0xa0c   :  { %12601 = vpow2.f32 %v1541_v10 }
 0xa0d   :  { %v12596_v23 = vpop.eup %12595 }
 0xa0e   :  { %v12598_v12 = vpop.eup %12597  ;;  %v1546_v14 = vsel %vm575_vm0, %v12596_v23, 0.0 }
 0xa0f   :  { %1547 = vadd.xlane.f32.xlu1 %v1546_v14  ;;  %v1543_v16 = vsel %vm575_vm0, %v12598_v12, 0.0 }
 0xa10   :  { %1544 = vadd.xlane.f32.xlu0 %v1543_v16 }
 0xa12   :  { %v12600_v17 = vpop.eup %12599 }
 0xa13   :  { %v1549_v19 = vsel %vm575_vm0, %v12600_v17, 0.0 }
 0xa14   :  { %1550 = vadd.xlane.f32.xlu0 %v1549_v19 }
 0xa16   :  { %v12602_v20 = vpop.eup %12601 }
 0xa17   :  { %v1552_v21 = vsel %vm575_vm0, %v12602_v20, 0.0 }
 0xa18   :  { %1553 = vadd.xlane.f32.xlu1 %v1552_v21 }
 0xa29   :  { %11723 = vrot.lane.b32.xlu1 %v13325_v11, %s13132_s28 }
 0xa2a   :  { %11718 = vrot.lane.b32.xlu0 %v13327_v13, %s13132_s28 }
 0xa2d   :  { %11728 = vrot.lane.b32.xlu1 %v11727_v61, %s13132_s28 }
 0xa2e   :  { %11738 = vrot.lane.b32.xlu0 %v11737_v41, %s13122_s13 }
 0xa31   :  { %11733 = vrot.lane.b32.xlu1 %v11732_v1, %s13132_s28 }
 0xa35   :  { %11743 = vrot.lane.b32.xlu1 %v11742_v45, %s13122_s13  ;;  %v12084_v45 = vld [vmem:[#allocation4 + $0x8] sm:$0xff]  }
 0xa9c   :  { %v1548_v11 = vpop.xlane.xlu1 %1547 }
 0xa9d   :  { %v1545_v22 = vpop.xlane.xlu0 %1544 }
 0xa9e   :  { %12603 = vrcp.f32 %v1545_v22 }
 0xa9f   :  { %12605 = vrcp.f32 %v1548_v11 }
 0xaa1   :  { %v1551_v24 = vpop.xlane.xlu0 %1550 }
 0xaa2   :  { %12607 = vrcp.f32 %v1551_v24 }
 0xaa5   :  { %v1554_v13 = vpop.xlane.xlu1 %1553  ;;  %v11719_v25 = vpop.permute.xlu0 %11718 }
 0xaa6   :  { %v11721_v26 = vunpack.i.h.bf16 %v11719_v25  ;;  %v11720_v59 = vunpack.i.l.bf16 %v11719_v25  ;;  %12609 = vrcp.f32 %v1554_v13 }
 0xaa8   :  { %v12604_v60 = vpop.eup %12603  ;;  %v11407_v61 = vpack.c.bf16 %v11721_v26, %v11720_v59  ;;  %v12091_v59 = vld [vmem:[#allocation6] ss:$16 sps:$4 sm:$0xff]  }
 0xaa9   :  { %v11724_v32 = vpop.permute.xlu1 %11723  ;;  %v1559_v33 = vmul.f32 %v12604_v60, %v12598_v12  ;;  %v12606_v1 = vpop.eup %12605  ;;  %v12094_v60 = vld [vmem:[#allocation6 + $0x8] ss:$16 sps:$4 sm:$0xff]  }
 0xaaa   :  { %v11726_v35 = vunpack.i.h.bf16 %v11724_v32  ;;  %v11725_v63 = vunpack.i.l.bf16 %v11724_v32  ;;  %11408 = vmatprep.subr.bf16.mxu0 %v11407_v61  ;;  %v1560_v37 = vmul.f32 %v12606_v1, %v12596_v23  ;;  %v11739_v18 = vpop.permute.xlu0 %11738  ;;  %v12102_v32 = vld [vmem:[#allocation6 + $0x2c] ss:$16 sps:$4 sm:$0xff]   ;;  %v12103_v1 = vld [vmem:[#allocation6 + $0x40] ss:$16 sps:$4 sm:$0xff]  }
 0xaab   :  { %11410 = vmatpush3.bf16.msra.mxu0 %v11407_v61  ;;  %10853 = vmatprep.mubr.msk.f32.mxu0 %vm575_vm0, %v1559_v33  ;;  %v11741_v7 = vunpack.i.h.bf16 %v11739_v18  ;;  %v11740_v38 = vunpack.i.l.bf16 %v11739_v18  ;;  %v12096_v61 = vld [vmem:[#allocation6 + $0xc] ss:$16 sps:$4 sm:$0xff]   ;;  %v12097_v33 = vld [vmem:[#allocation6 + $0x20] ss:$16 sps:$4 sm:$0xff]  }
 0xaac   :  { %v11411_v0 = vpack.c.bf16 %v11726_v35, %v11725_v63  ;;  %v12608_v36 = vpop.eup %12607  ;;  %v12100_v35 = vld [vmem:[#allocation6 + $0x28] ss:$16 sps:$4 sm:$0xff]   ;;  %v12105_v63 = vld [vmem:[#allocation6 + $0x44] ss:$16 sps:$4 sm:$0xff]   ;;  %v12115_v18 = vld [vmem:[#allocation6 + $0x80] ss:$16 sps:$4 sm:$0xff]  }
 0xaad   :  { %v1561_v41 = vmul.f32 %v12608_v36, %v12600_v17  ;;  %v11729_v57 = vpop.permute.xlu1 %11728  ;;  %v12106_v36 = vld [vmem:[#allocation6 + $0x48] ss:$16 sps:$4 sm:$0xff]  }
 0xaae   :  { %11412 = vmatprep.subr.bf16.mxu0 %v11411_v0  ;;  %v11731_v3 = vunpack.i.h.bf16 %v11729_v57  ;;  %v11730_v15 = vunpack.i.l.bf16 %v11729_v57  ;;  %v12109_v57 = vld [vmem:[#allocation6 + $0x60] ss:$16 sps:$4 sm:$0xff]  }
 0xaaf   :  { %11414 = vmatpush3.bf16.msra.mxu0 %v11411_v0  ;;  %v12108_v0 = vld [vmem:[#allocation6 + $0x4c] ss:$16 sps:$4 sm:$0xff]  }
 0xab0   :  { %v12610_v40 = vpop.eup %12609  ;;  %10859 = vmatprep.subr.bf16.mxu0 %v12083_v44  ;;  %v1721_v4 = vsel %vm575_vm0, %v13389_v28, %v11731_v3  ;;  %v1720_v34 = vsel %vm575_vm0, %v13391_v29, %v11730_v15  ;;  %v12117_v3 = vld [vmem:[#allocation6 + $0x84] ss:$16 sps:$4 sm:$0xff]   ;;  %v12120_v15 = vld [vmem:[#allocation6 + $0x8c] ss:$16 sps:$4 sm:$0xff]  }
 0xab1   :  { %v1562_v42 = vmul.f32 %v12610_v40, %v12602_v20  ;;  %v11734_v58 = vpop.permute.xlu1 %11733  ;;  %v1725_v12 = vsel %vm1724_vm2, %v1720_v34, %v11740_v38  ;;  %v1726_v14 = vsel %vm1724_vm2, %v1721_v4, %v11741_v7  ;;  %v12118_v4 = vld [vmem:[#allocation6 + $0x88] ss:$16 sps:$4 sm:$0xff]   ;;  %v12123_v34 = vld [vmem:[#allocation6 + $0xa4] ss:$16 sps:$4 sm:$0xff]   ;;  %v12121_v7 = vld [vmem:[#allocation6 + $0xa0] ss:$16 sps:$4 sm:$0xff]  }
 0xab2   :  { %10854 = vmatmul.mubr.msk.f32.vlgmr.msra.gmra.mrb[20].mxu0 %vm575_vm0, %v1560_v37  ;;  %v11736_v62 = vunpack.i.h.bf16 %v11734_v58  ;;  %v11735_v2 = vunpack.i.l.bf16 %v11734_v58  ;;  %v12112_v58 = vld [vmem:[#allocation6 + $0x68] ss:$16 sps:$4 sm:$0xff]  }
 0xab3   :  { %10856 = vmatprep.mubr.msk.f32.mxu0 %vm575_vm0, %v1561_v41  ;;  %10860 = vmatpush3.bf16.msra.mxu0 %v12083_v44  ;;  %v12999_v41 = vld [vmem:[%s14881_s0] sm:$0xff]  ;;  %v12124_v38 = vld [vmem:[#allocation6 + $0xa8] ss:$16 sps:$4 sm:$0xff]  }
 0xab4   :  { %10861 = vmatprep.subr.bf16.mxu0 %v12084_v45  ;;  %v1723_v19 = vsel %vm575_vm0, %v13393_v30, %v11736_v62  ;;  %v1722_v20 = vsel %vm575_vm0, %v13395_v31, %v11735_v2  ;;  %v12093_v30 = vld [vmem:[#allocation6 + $0x4] ss:$16 sps:$4 sm:$0xff]   ;;  %v12132_v62 = vld [vmem:[#allocation6 + $0xcc] ss:$16 sps:$4 sm:$0xff]   ;;  %v12127_v2 = vld [vmem:[#allocation6 + $0xc0] ss:$16 sps:$4 sm:$0xff]  }
 0xab5   :  { %v11744_v6 = vpop.permute.xlu1 %11743  ;;  %v12099_v31 = vld [vmem:[#allocation6 + $0x24] ss:$16 sps:$4 sm:$0xff]   ;;  %2086 = vmatprep.subr.bf16.mxu1 %v12093_v30  ;;  %v9645_v30 = vld [vmem:[%s14887_s6] ss:$0 sm:$0xff] }
 0xab6   :  { %10857 = vmatmul.mubr.msk.f32.gmra.mrb[22].mxu0 %vm575_vm0, %v1562_v42  ;;  %v11746_v10 = vunpack.i.h.bf16 %v11744_v6  ;;  %v11745_v23 = vunpack.i.l.bf16 %v11744_v6  ;;  %2087 = vmatpush1.bf16.msra.mxu1 %v12091_v59  ;;  %v12126_v6 = vld [vmem:[#allocation6 + $0xac] ss:$16 sps:$4 sm:$0xff]  }
 0xab7   :  { %10862 = vmatpush3.bf16.msra.mxu0 %v12084_v45  ;;  %2088 = vmatprep.subr.bf16.mxu1 %v12099_v31 }
 0xab8   :  { %10863 = vmatprep.subr.bf16.mxu0 %v12085_v46  ;;  %v1727_v11 = vsel %vm1724_vm2, %v1722_v20, %v11745_v23  ;;  %v1728_v24 = vsel %vm1724_vm2, %v1723_v19, %v11746_v10  ;;  %v12135_v10 = vld [vmem:[#allocation6 + $0xe4] ss:$16 sps:$4 sm:$0xff]   ;;  %v12136_v23 = vld [vmem:[#allocation6 + $0xe8] ss:$16 sps:$4 sm:$0xff]  }
 0xaba   :  { %2089 = vmatpush1.bf16.msra.mxu1 %v12097_v33 }
 0xabb   :  { %10864 = vmatpush3.bf16.msra.mxu0 %v12085_v46  ;;  %2090 = vmatprep.subr.bf16.mxu1 %v12105_v63  ;;  %v13000_v46 = vld [vmem:[%s14881_s0 + $0x10] sm:$0xff] }
 0xabc   :  { %10865 = vmatprep.subr.bf16.mxu0 %v12086_v47 }
 0xabe   :  { %2091 = vmatpush1.bf16.msra.mxu1 %v12103_v1 }
 0xabf   :  { %10866 = vmatpush3.bf16.msra.mxu0 %v12086_v47 }
 0xac0   :  { %10867 = vmatprep.subr.bf16.mxu0 %v12087_v49 }
 0xac3   :  { %10868 = vmatpush3.bf16.msra.mxu0 %v12087_v49  ;;  %v13001_v49 = vld [vmem:[%s14881_s0 + $0x8] sm:$0xff] }
 0xac4   :  { %10869 = vmatprep.subr.bf16.mxu0 %v12088_v50 }
 0xac7   :  { %10870 = vmatpush3.bf16.msra.mxu0 %v12088_v50 }
 0xac8   :  { %10871 = vmatprep.subr.bf16.mxu0 %v12089_v51 }
 0xacb   :  { %10872 = vmatpush3.bf16.msra.mxu0 %v12089_v51 }
 0xacc   :  { %10873 = vmatprep.subr.bf16.mxu0 %v12090_v52 }
 0xacf   :  { %10874 = vmatpush3.bf16.msra.mxu0 %v12090_v52 }
 0xad0   :  { %2139 = vmatprep.subr.bf16.mxu0 %v12096_v61 }
 0xb85   :  { %v10855_v53 = vpop.f32.mrb[20].mxu0 }
 0xb86   :  { %v1653_v48 = vpop.f32.mrb[21].mxu0 }
 0xb87   :  { %v11747_v5 = vpack.i.bf16 %v10855_v53, %v1653_v48  ;;  %v13002_v53 = vld [vmem:[%s14881_s0 + $0x18] sm:$0xff] }
 0xb89   :  { %11748 = vrot.lane.b32.xlu0 %v11747_v5, %s13131_s22  ;;  %v10858_v54 = vpop.f32.mrb[22].mxu0 }
 0xb8a   :  { %v1663_v55 = vpop.f32.mrb[23].mxu0 }
 0xb8b   :  { %v11752_v56 = vpack.i.bf16 %v10858_v54, %v1663_v55  ;;  %v12111_v55 = vld [vmem:[#allocation6 + $0x64] ss:$16 sps:$4 sm:$0xff]  }
 0xb8c   :  { %2092 = vmatprep.subr.bf16.mxu1 %v12111_v55  ;;  %v12150_v55 = vld [vmem:[%s14885_s4 + $0x28] sm:$0xff]  }
 0xb8d   :  { %11753 = vrot.lane.b32.xlu1 %v11752_v56, %s13131_s22  ;;  %v12114_v56 = vld [vmem:[#allocation6 + $0x6c] ss:$16 sps:$4 sm:$0xff]   ;;  %2093 = vmatpush1.bf16.msra.mxu1 %v12109_v57  ;;  %v12152_v57 = vld [vmem:[%s14885_s4 + $0x30] sm:$0xff]  }
 0xb8e   :  { %2094 = vmatprep.subr.bf16.mxu1 %v12117_v3  ;;  %v12154_v3 = vld [vmem:[%s14885_s4 + $0x38] sm:$0xff]  }
 0xb91   :  { %2095 = vmatpush1.bf16.msra.mxu1 %v12115_v18 }
 0xb92   :  { %2096 = vmatprep.subr.bf16.mxu1 %v12123_v34 }
 0xb95   :  { %2097 = vmatpush1.bf16.msra.mxu1 %v12121_v7 }
 0xbfb   :  { %v11749_v8 = vpop.permute.xlu0 %11748 }
 0xbfc   :  { %v11751_v27 = vunpack.i.h.bf16 %v11749_v8  ;;  %v11750_v9 = vunpack.i.l.bf16 %v11749_v8  ;;  %v12129_v8 = vld [vmem:[#allocation6 + $0xc4] ss:$16 sps:$4 sm:$0xff]  }
 0xbfd   :  { %2098 = vmatprep.subr.bf16.mxu1 %v12129_v8 }
 0xbfe   :  { %v1730_v28 = vsel %vm1729_vm3, %v1725_v12, %v11750_v9  ;;  %v1731_v29 = vsel %vm1729_vm3, %v1726_v14, %v11751_v27  ;;  %v12130_v27 = vld [vmem:[#allocation6 + $0xc8] ss:$16 sps:$4 sm:$0xff]   ;;  %2099 = vmatpush1.bf16.msra.mxu1 %v12127_v2  ;;  %v12133_v9 = vld [vmem:[#allocation6 + $0xe0] ss:$16 sps:$4 sm:$0xff]   ;;  %v12138_v12 = vld [vmem:[#allocation6 + $0xec] ss:$16 sps:$4 sm:$0xff]  }
 0xbff   :  { %v11754_v16 = vpop.permute.xlu1 %11753  ;;  %v1734_v17 = vpack.c.bf16 %v1731_v29, %v1730_v28  ;;  %2100 = vmatprep.subr.bf16.mxu1 %v12135_v10 }
 0xc00   :  { %v11756_v21 = vunpack.i.h.bf16 %v11754_v16  ;;  %v11755_v22 = vunpack.i.l.bf16 %v11754_v16 }
 0xc01   :  { %10875 = vmatprep.mubr.bf16.mxu0 %v1734_v17 }
 0xc02   :  { %v1733_v13 = vsel %vm1729_vm3, %v1728_v24, %v11756_v21  ;;  %v1732_v25 = vsel %vm1729_vm3, %v1727_v11, %v11755_v22  ;;  %2101 = vmatpush1.bf16.msra.mxu1 %v12133_v9 }
 0xc03   :  { %v1735_v26 = vpack.c.bf16 %v1733_v13, %v1732_v25 }
 0xc05   :  { %10876 = vmatmul.mubr.bf16.vlgmr.msra.gmra.mrb[24].mxu0 %v1735_v26 }
 0xc06   :  { %2171 = vmatprep.mubr.bf16.mxu0 %v13130_v39  ;;  %2140 = vmatpush1.bf16.msra.mxu0 %v12094_v60 }
 0xc07   :  { %2141 = vmatprep.subr.bf16.mxu0 %v12102_v32 }
 0xc0a   :  { %2142 = vmatpush1.bf16.msra.mxu0 %v12100_v35 }
 0xc0b   :  { %2143 = vmatprep.subr.bf16.mxu0 %v12108_v0 }
 0xc0e   :  { %2144 = vmatpush1.bf16.msra.mxu0 %v12106_v36 }
 0xc0f   :  { %2145 = vmatprep.subr.bf16.mxu0 %v12114_v56  ;;  %v12151_v56 = vld [vmem:[%s14885_s4 + $0x70] sm:$0xff]  }
 0xc12   :  { %2146 = vmatpush1.bf16.msra.mxu0 %v12112_v58  ;;  %v12153_v58 = vld [vmem:[%s14885_s4 + $0x78] sm:$0xff]  }
 0xc13   :  { %2147 = vmatprep.subr.bf16.mxu0 %v12120_v15 }
 0xc16   :  { %2148 = vmatpush1.bf16.msra.mxu0 %v12118_v4 }
 0xc17   :  { %2149 = vmatprep.subr.bf16.mxu0 %v12126_v6 }
 0xc1a   :  { %2150 = vmatpush1.bf16.msra.mxu0 %v12124_v38 }
 0xc1b   :  { %2151 = vmatprep.subr.bf16.mxu0 %v12132_v62 }
 0xc1e   :  { %2152 = vmatpush1.bf16.msra.mxu0 %v12130_v27 }
 0xc1f   :  { %2153 = vmatprep.subr.bf16.mxu0 %v12138_v12 }
 0xc22   :  { %2154 = vmatpush1.bf16.msra.mxu0 %v12136_v23 }
 0xcd8   :  { %v10877_v37 = vpop.f32.mrb[24].mxu0 }
 0xcd9   :  { %v1834_v40 = vpop.f32.mrb[25].mxu0  ;;  %v13555_v47 = vadd.f32 %v13000_v46, %v10877_v37  ;;  %v12143_v46 = vld [vmem:[%s14885_s4 + $0x50] sm:$0xff]  }
 0xcda   :  { %v13550_v42 = vadd.f32 %v12999_v41, %v1834_v40  ;;  %v10878_v44 = vpop.f32.mrb[26].mxu0  ;;  %v12139_v40 = vld [vmem:[%s14885_s4 + $0x40] sm:$0xff]  }
 0xcdb   :  { %v1837_v45 = vpop.f32.mrb[27].mxu0  ;;  %v13569_v48 = vadd.f32 %v13002_v53, %v10878_v44  ;;  %v1856_v5 = vmul.f32 %v13555_v47, %v13555_v47  ;;  %v12140_v41 = vld [vmem:[%s14885_s4] sm:$0xff]   ;;  %10363 = vmatprep.subr.bf16.mxu1 %v12139_v40  ;;  %v12141_v44 = vld [vmem:[%s14885_s4 + $0x48] sm:$0xff]  }
 0xcdc   :  { %v13560_v50 = vadd.f32 %v13001_v49, %v1837_v45  ;;  %v1854_v51 = vmul.f32 %v13550_v42, %v13550_v42  ;;  %v12142_v45 = vld [vmem:[%s14885_s4 + $0x8] sm:$0xff]   ;;  %v12144_v49 = vld [vmem:[%s14885_s4 + $0x10] sm:$0xff]   ;;  %v12147_v53 = vld [vmem:[%s14885_s4 + $0x60] sm:$0xff]  }
 0xcdd   :  { %v1857_v54 = vmul.f32 %v13569_v48, %v13569_v48 }
 0xcde   :  { %1858 = vadd.xlane.f32.xlu0 %v1854_v51  ;;  %v1855_v52 = vmul.f32 %v13560_v50, %v13560_v50  ;;  %v12145_v51 = vld [vmem:[%s14885_s4 + $0x58] sm:$0xff]  }
 0xce0   :  { %1860 = vadd.xlane.f32.xlu1 %v1855_v52  ;;  %v12146_v52 = vld [vmem:[%s14885_s4 + $0x18] sm:$0xff]  }
 0xce2   :  { %1862 = vadd.xlane.f32.xlu0 %v1856_v5  ;;  %v12148_v5 = vld [vmem:[%s14885_s4 + $0x20] sm:$0xff]  }
 0xce6   :  { %1864 = vadd.xlane.f32.xlu0 %v1857_v54  ;;  %v12149_v54 = vld [vmem:[%s14885_s4 + $0x68] sm:$0xff]  }
 0xd6b   :  { %v1859_v14 = vpop.xlane.xlu0 %1858 }
 0xd6c   :  { %v1866_v28 = vmul.f32 0.0078125, %v1859_v14 }
 0xd6d   :  { %v1861_v29 = vpop.xlane.xlu1 %1860 }
 0xd6e   :  { %v1870_v16 = vadd.f32 1e-06, %v1866_v28  ;;  %v1867_v17 = vmul.f32 0.0078125, %v1861_v29 }
 0xd6f   :  { %v1863_v19 = vpop.xlane.xlu0 %1862 }
 0xd70   :  { %12611 = vrsqrt.f32 %v1870_v16  ;;  %v1871_v20 = vadd.f32 1e-06, %v1867_v17  ;;  %v1868_v21 = vmul.f32 0.0078125, %v1863_v19 }
 0xd72   :  { %12613 = vrsqrt.f32 %v1871_v20  ;;  %v1872_v22 = vadd.f32 1e-06, %v1868_v21 }
 0xd73   :  { %v1865_v11 = vpop.xlane.xlu0 %1864 }
 0xd74   :  { %v1869_v24 = vmul.f32 0.0078125, %v1865_v11  ;;  %12615 = vrsqrt.f32 %v1872_v22 }
 0xd76   :  { %v1873_v13 = vadd.f32 1e-06, %v1869_v24 }
 0xd78   :  { %12617 = vrsqrt.f32 %v1873_v13 }
 0xd7a   :  { %v12612_v25 = vpop.eup %12611 }
 0xd7b   :  { %v1878_v26 = vmul.f32 %v12612_v25, %v13550_v42 }
 0xd7c   :  { %v12614_v59 = vpop.eup %12613 }
 0xd7d   :  { %v1879_v60 = vmul.f32 %v12614_v59, %v13560_v50  ;;  %v1888_v61 = vmul.f32 %v9645_v30, %v1878_v26 }
 0xd7e   :  { %v12616_v32 = vpop.eup %12615 }
 0xd7f   :  { %v1889_v31 = vmul.f32 %v9645_v30, %v1879_v60  ;;  %v1880_v63 = vmul.f32 %v12616_v32, %v13555_v47 }
 0xd81   :  { %v1892_v33 = vpack.c.bf16 %v1889_v31, %v1888_v61  ;;  %v1890_v36 = vmul.f32 %v9645_v30, %v1880_v63 }
 0xd82   :  { %v12618_v35 = vpop.eup %12617 }
 0xd83   :  { %2119 = vmatmul.mubr.bf16.vlgmr.msra.gmra.mrb[28].mxu1 %v1892_v33  ;;  %2172 = vmatmul.mubr.bf16.vlgmr.msra.gmra.mrb[28].mxu0 %v1892_v33  ;;  %v1881_v0 = vmul.f32 %v12618_v35, %v13569_v48 }
 0xd84   :  { %2128 = vmatprep.mubr.bf16.mxu1 %v13130_v39  ;;  %2181 = vmatprep.mubr.bf16.mxu0 %v13130_v39 }
 0xd85   :  { %v1891_v1 = vmul.f32 %v9645_v30, %v1881_v0  ;;  %10364 = vmatpush3.bf16.msra.mxu1 %v12140_v41 }
 0xd86   :  { %10365 = vmatprep.subr.bf16.mxu1 %v12141_v44 }
 0xd87   :  { %v1893_v37 = vpack.c.bf16 %v1891_v1, %v1890_v36 }
 0xd89   :  { %10366 = vmatpush3.bf16.msra.mxu1 %v12142_v45 }
 0xd8a   :  { %10367 = vmatprep.subr.bf16.mxu1 %v12143_v46 }
 0xd8b   :  { %2129 = vmatmul.mubr.bf16.gmra.mrb[32].mxu1 %v1893_v37  ;;  %2182 = vmatmul.mubr.bf16.gmra.mrb[32].mxu0 %v1893_v37 }
 0xd8c   :  { %2776 = vmatprep.mubr.bf16.mxu0 %v13130_v39 }
 0xd8d   :  { %10368 = vmatpush3.bf16.msra.mxu1 %v12144_v49 }
 0xd8e   :  { %10369 = vmatprep.subr.bf16.mxu1 %v12145_v51 }
 0xd91   :  { %10370 = vmatpush3.bf16.msra.mxu1 %v12146_v52 }
 0xd92   :  { %10371 = vmatprep.subr.bf16.mxu1 %v12147_v53 }
 0xd95   :  { %10372 = vmatpush3.bf16.msra.mxu1 %v12148_v5 }
 0xd96   :  { %10373 = vmatprep.subr.bf16.mxu1 %v12149_v54 }
 0xd99   :  { %10374 = vmatpush3.bf16.msra.mxu1 %v12150_v55 }
 0xd9a   :  { %10375 = vmatprep.subr.bf16.mxu1 %v12151_v56 }
 0xd9d   :  { %10376 = vmatpush3.bf16.msra.mxu1 %v12152_v57 }
 0xd9e   :  { %10377 = vmatprep.subr.bf16.mxu1 %v12153_v58 }
 0xda1   :  { %10378 = vmatpush3.bf16.msra.mxu1 %v12154_v3 }
 0xe56   :  { %v2120_v15 = vpop.f32.mrb[28].mxu1  ;;  %v2173_v18 = vpop.f32.mrb[28].mxu0 }
 0xe57   :  { %v9678_v4 = vmul.f32 -1.442695, %v2120_v15  ;;  %v2122_v34 = vpop.f32.mrb[29].mxu1  ;;  %v2175_v6 = vpop.f32.mrb[29].mxu0 }
 0xe58   :  { %v9679_v7 = vmul.f32 -1.442695, %v2122_v34  ;;  %v2124_v38 = vpop.f32.mrb[30].mxu1  ;;  %v2177_v8 = vpop.f32.mrb[30].mxu0 }
 0xe59   :  { %12619 = vpow2.f32 %v9678_v4  ;;  %v9680_v62 = vmul.f32 -1.442695, %v2124_v38  ;;  %v2126_v2 = vpop.f32.mrb[31].mxu1  ;;  %v2179_v27 = vpop.f32.mrb[31].mxu0 }
 0xe5a   :  { %12621 = vpow2.f32 %v9679_v7  ;;  %v9681_v9 = vmul.f32 -1.442695, %v2126_v2 }
 0xe5b   :  { %12623 = vpow2.f32 %v9680_v62 }
 0xe5c   :  { %12625 = vpow2.f32 %v9681_v9 }
 0xe5e   :  { %v2130_v10 = vpop.f32.mrb[32].mxu1  ;;  %v2183_v23 = vpop.f32.mrb[32].mxu0 }
 0xe5f   :  { %v9682_v12 = vmul.f32 -1.442695, %v2130_v10  ;;  %v2132_v14 = vpop.f32.mrb[33].mxu1  ;;  %v2185_v28 = vpop.f32.mrb[33].mxu0 }
 0xe60   :  { %v9683_v29 = vmul.f32 -1.442695, %v2132_v14  ;;  %v2134_v16 = vpop.f32.mrb[34].mxu1  ;;  %v2187_v17 = vpop.f32.mrb[34].mxu0 }
 0xe61   :  { %12627 = vpow2.f32 %v9682_v12  ;;  %v9684_v19 = vmul.f32 -1.442695, %v2134_v16  ;;  %v2136_v20 = vpop.f32.mrb[35].mxu1  ;;  %v2189_v21 = vpop.f32.mrb[35].mxu0  ;;  %v12160_v12 = vld [vmem:[#allocation2 + $0x14c] ss:$20 sps:$4 sm:$0xff]  }
 0xe62   :  { %12629 = vpow2.f32 %v9683_v29  ;;  %v9685_v22 = vmul.f32 -1.442695, %v2136_v20  ;;  %v12166_v29 = vld [vmem:[#allocation2 + $0x174] ss:$20 sps:$4 sm:$0xff]   ;;  %2797 = vmatprep.subr.bf16.mxu1 %v12160_v12 }
 0xe63   :  { %v12620_v11 = vpop.eup %12619  ;;  %12631 = vpow2.f32 %v9684_v19  ;;  %v12167_v19 = vld [vmem:[#allocation2 + $0x190] ss:$20 sps:$4 sm:$0xff]  }
 0xe64   :  { %v12622_v24 = vpop.eup %12621  ;;  %v2216_v13 = vadd.f32 1.0, %v12620_v11  ;;  %12633 = vpow2.f32 %v9685_v22 }
 0xe65   :  { %v12624_v25 = vpop.eup %12623  ;;  %v2217_v26 = vadd.f32 1.0, %v12622_v24 }
 0xe66   :  { %v12626_v59 = vpop.eup %12625  ;;  %12635 = vrcp.f32 %v2216_v13  ;;  %v2218_v30 = vadd.f32 1.0, %v12624_v25 }
 0xe67   :  { %12637 = vrcp.f32 %v2217_v26  ;;  %v2219_v60 = vadd.f32 1.0, %v12626_v59 }
 0xe68   :  { %12639 = vrcp.f32 %v2218_v30 }
 0xe69   :  { %12641 = vrcp.f32 %v2219_v60 }
 0xe6b   :  { %v12628_v61 = vpop.eup %12627 }
 0xe6c   :  { %v12630_v31 = vpop.eup %12629  ;;  %v2220_v32 = vadd.f32 1.0, %v12628_v61 }
 0xe6d   :  { %v12632_v33 = vpop.eup %12631  ;;  %v2221_v35 = vadd.f32 1.0, %v12630_v31 }
 0xe6e   :  { %v12634_v63 = vpop.eup %12633  ;;  %12643 = vrcp.f32 %v2220_v32  ;;  %v2222_v0 = vadd.f32 1.0, %v12632_v33 }
 0xe6f   :  { %12645 = vrcp.f32 %v2221_v35  ;;  %v2223_v1 = vadd.f32 1.0, %v12634_v63 }
 0xe70   :  { %v12636_v36 = vpop.eup %12635  ;;  %12647 = vrcp.f32 %v2222_v0 }
 0xe71   :  { %v12638_v37 = vpop.eup %12637  ;;  %v2240_v40 = vmul.f32 %v12636_v36, %v2120_v15  ;;  %12649 = vrcp.f32 %v2223_v1  ;;  %v12175_v1 = vld [vmem:[#allocation2 + $0x1bc] ss:$20 sps:$4 sm:$0xff]   ;;  %v12173_v36 = vld [vmem:[#allocation2 + $0x1b8] ss:$20 sps:$4 sm:$0xff]  }
 0xe72   :  { %v12640_v41 = vpop.eup %12639  ;;  %v2241_v44 = vmul.f32 %v12638_v37, %v2122_v34  ;;  %v12178_v37 = vld [vmem:[#allocation2 + $0x1c4] ss:$20 sps:$4 sm:$0xff]  }
 0xe73   :  { %v12642_v45 = vpop.eup %12641  ;;  %v2248_v46 = vmul.f32 %v2240_v40, %v2173_v18  ;;  %v2242_v49 = vmul.f32 %v12640_v41, %v2124_v38  ;;  %v12176_v40 = vld [vmem:[#allocation2 + $0x1c0] ss:$20 sps:$4 sm:$0xff]  }
 0xe74   :  { %v2249_v51 = vmul.f32 %v2241_v44, %v2175_v6  ;;  %v2243_v52 = vmul.f32 %v12642_v45, %v2126_v2  ;;  %v12179_v41 = vld [vmem:[#allocation2 + $0x1e0] ss:$20 sps:$4 sm:$0xff]   ;;  %v12182_v45 = vld [vmem:[#allocation2 + $0x1e8] ss:$20 sps:$4 sm:$0xff]  }
 0xe75   :  { %v2250_v53 = vmul.f32 %v2242_v49, %v2177_v8  ;;  %v12155_v8 = vld [vmem:[#allocation2 + $0x140] ss:$20 sps:$4 sm:$0xff]   ;;  %v12185_v49 = vld [vmem:[#allocation2 + $0x208] ss:$20 sps:$4 sm:$0xff]  }
 0xe76   :  { %v2251_v5 = vmul.f32 %v2243_v52, %v2179_v27  ;;  %v12157_v27 = vld [vmem:[#allocation2 + $0x144] ss:$20 sps:$4 sm:$0xff]   ;;  %v12184_v44 = vld [vmem:[#allocation2 + $0x1ec] ss:$20 sps:$4 sm:$0xff]  }
 0xe77   :  { %v2256_v54 = vpack.c.bf16 %v2250_v53, %v2248_v46  ;;  %2744 = vmatprep.subr.bf16.mxu0 %v12157_v27  ;;  %v12187_v46 = vld [vmem:[#allocation2 + $0x20c] ss:$20 sps:$4 sm:$0xff]   ;;  %v12188_v52 = vld [vmem:[#allocation2 + $0x210] ss:$20 sps:$4 sm:$0xff]   ;;  %v12193_v53 = vld [vmem:[#allocation2 + $0x234] ss:$20 sps:$4 sm:$0xff]  }
 0xe78   :  { %v12644_v55 = vpop.eup %12643  ;;  %v2257_v56 = vpack.c.bf16 %v2251_v5, %v2249_v51  ;;  %2745 = vmatpush1.bf16.msra.mxu0 %v12155_v8  ;;  %v12190_v51 = vld [vmem:[#allocation2 + $0x214] ss:$20 sps:$4 sm:$0xff]   ;;  %v12191_v5 = vld [vmem:[#allocation2 + $0x230] ss:$20 sps:$4 sm:$0xff]  }
 0xe79   :  { %v12646_v57 = vpop.eup %12645  ;;  %v2244_v58 = vmul.f32 %v12644_v55, %v2130_v10  ;;  %v12158_v10 = vld [vmem:[#allocation2 + $0x148] ss:$20 sps:$4 sm:$0xff]   ;;  %v12194_v55 = vld [vmem:[#allocation2 + $0x238] ss:$20 sps:$4 sm:$0xff]  }
 0xe7a   :  { %v12648_v3 = vpop.eup %12647  ;;  %v2245_v4 = vmul.f32 %v12646_v57, %v2132_v14  ;;  %2420 = vmatprep.mubr.bf16.mxu1 %v2257_v56  ;;  %v12163_v14 = vld [vmem:[#allocation2 + $0x16c] ss:$20 sps:$4 sm:$0xff]   ;;  %v12199_v56 = vld [vmem:[#allocation2 + $0x25c] ss:$20 sps:$4 sm:$0xff]  }
 0xe7b   :  { %v12650_v7 = vpop.eup %12649  ;;  %v2252_v15 = vmul.f32 %v2244_v58, %v2183_v23  ;;  %v2246_v62 = vmul.f32 %v12648_v3, %v2134_v16  ;;  %2421 = vmatmul.mubr.bf16.vlgmr.msra.gmra.mrb[36].mxu1 %v2256_v54  ;;  %v12161_v23 = vld [vmem:[#allocation2 + $0x168] ss:$20 sps:$4 sm:$0xff]   ;;  %2746 = vmatprep.subr.bf16.mxu0 %v12163_v14  ;;  %v12197_v57 = vld [vmem:[#allocation2 + $0x258] ss:$20 sps:$4 sm:$0xff]   ;;  %v12200_v58 = vld [vmem:[#allocation2 + $0x260] ss:$20 sps:$4 sm:$0xff]  }
 0xe7c   :  { %v2253_v34 = vmul.f32 %v2245_v4, %v2185_v28  ;;  %v2247_v9 = vmul.f32 %v12650_v7, %v2136_v20  ;;  %2798 = vmatpush1.bf16.msra.mxu1 %v12158_v10  ;;  %v12164_v28 = vld [vmem:[#allocation2 + $0x170] ss:$20 sps:$4 sm:$0xff]   ;;  %v12169_v16 = vld [vmem:[#allocation2 + $0x194] ss:$20 sps:$4 sm:$0xff]   ;;  %2747 = vmatpush1.bf16.msra.mxu0 %v12161_v23  ;;  %v12170_v20 = vld [vmem:[#allocation2 + $0x198] ss:$20 sps:$4 sm:$0xff]  }
 0xe7d   :  { %v2254_v18 = vmul.f32 %v2246_v62, %v2187_v17  ;;  %2799 = vmatprep.subr.bf16.mxu1 %v12166_v29  ;;  %v12172_v17 = vld [vmem:[#allocation2 + $0x19c] ss:$20 sps:$4 sm:$0xff]   ;;  %2748 = vmatprep.subr.bf16.mxu0 %v12169_v16  ;;  %v12202_v3 = vld [vmem:[#allocation2 + $0x264] ss:$20 sps:$4 sm:$0xff]   ;;  %v9703_v23 = vld [vmem:[%s14886_s5 + $0x1] ss:$0 sm:$0xff] }
 0xe7e   :  { %v2255_v38 = vmul.f32 %v2247_v9, %v2189_v21  ;;  %v12196_v54 = vld [vmem:[#allocation2 + $0x23c] ss:$20 sps:$4 sm:$0xff]  }
 0xe7f   :  { %v2258_v6 = vpack.c.bf16 %v2254_v18, %v2252_v15  ;;  %v12203_v4 = vld [vmem:[#allocation2 + $0x150] ss:$20 sps:$4 sm:$0xff]  }
 0xe80   :  { %v2259_v2 = vpack.c.bf16 %v2255_v38, %v2253_v34  ;;  %2800 = vmatpush1.bf16.msra.mxu1 %v12164_v28  ;;  %2749 = vmatpush1.bf16.msra.mxu0 %v12167_v19 }
 0xe81   :  { %2801 = vmatprep.subr.bf16.mxu1 %v12172_v17  ;;  %2750 = vmatprep.subr.bf16.mxu0 %v12175_v1  ;;  %v13004_v1 = vld [vmem:[%s14890_s9] sm:$0xff] }
 0xe82   :  { %2428 = vmatprep.mubr.bf16.mxu1 %v2259_v2 }
 0xe83   :  { %2429 = vmatmul.mubr.bf16.gmra.mrb[40].mxu1 %v2258_v6 }
 0xe84   :  { %2829 = vmatprep.mubr.bf16.mxu1 %v13130_v39  ;;  %2802 = vmatpush1.bf16.msra.mxu1 %v12170_v20  ;;  %v12204_v20 = vld [vmem:[#allocation2 + $0x178] ss:$20 sps:$4 sm:$0xff]  }
 0xe85   :  { %2751 = vmatpush1.bf16.msra.mxu0 %v12173_v36  ;;  %2803 = vmatprep.subr.bf16.mxu1 %v12178_v37 }
 0xe88   :  { %2804 = vmatpush1.bf16.msra.mxu1 %v12176_v40 }
 0xe89   :  { %2805 = vmatprep.subr.bf16.mxu1 %v12184_v44 }
 0xe8c   :  { %2806 = vmatpush1.bf16.msra.mxu1 %v12182_v45 }
 0xe8d   :  { %2807 = vmatprep.subr.bf16.mxu1 %v12190_v51 }
 0xe90   :  { %2808 = vmatpush1.bf16.msra.mxu1 %v12188_v52 }
 0xe91   :  { %2809 = vmatprep.subr.bf16.mxu1 %v12196_v54 }
 0xe94   :  { %2810 = vmatpush1.bf16.msra.mxu1 %v12194_v55 }
 0xe95   :  { %2811 = vmatprep.subr.bf16.mxu1 %v12202_v3 }
 0xe98   :  { %2812 = vmatpush1.bf16.msra.mxu1 %v12200_v58 }
 0xf4e   :  { %v10379_v21 = vpop.f32.mrb[36].mxu1 }
 0xf4f   :  { %v10380_v22 = vpop.f32.mrb[37].mxu1 }
 0xf50   :  { %v10381_v11 = vadd.f32 %v10380_v22, %v10379_v21  ;;  %v10382_v24 = vpop.f32.mrb[38].mxu1 }
 0xf51   :  { %v10383_v13 = vpop.f32.mrb[39].mxu1 }
 0xf52   :  { %v13635_v25 = vadd.f32 %v10381_v11, %v13550_v42  ;;  %v10384_v26 = vadd.f32 %v10383_v13, %v10382_v24  ;;  %v12205_v24 = vld [vmem:[#allocation2 + $0x1a0] ss:$20 sps:$4 sm:$0xff]  }
 0xf54   :  { %2441 = vst [vmem:[%s14892_s11] sm:$0xff] %v13635_v25  ;;  %v13642_v59 = vadd.f32 %v10384_v26, %v13560_v50  ;;  %v2447_v30 = vmul.f32 %v13635_v25, %v13635_v25 }
 0xf56   :  { %2442 = vst [vmem:[%s14892_s11 + $0x8] sm:$0xff] %v13642_v59  ;;  %2451 = vadd.xlane.f32.xlu0 %v2447_v30  ;;  %v10385_v42 = vpop.f32.mrb[40].mxu1  ;;  %v2448_v60 = vmul.f32 %v13642_v59, %v13642_v59  ;;  %v12206_v30 = vld [vmem:[#allocation2 + $0x1c8] ss:$20 sps:$4 sm:$0xff]  }
 0xf57   :  { %v10386_v61 = vpop.f32.mrb[41].mxu1 }
 0xf58   :  { %v10387_v31 = vadd.f32 %v10386_v61, %v10385_v42  ;;  %2453 = vadd.xlane.f32.xlu1 %v2448_v60  ;;  %v10388_v32 = vpop.f32.mrb[42].mxu1  ;;  %v12207_v42 = vld [vmem:[#allocation2 + $0x1f0] ss:$20 sps:$4 sm:$0xff]   ;;  %v12208_v60 = vld [vmem:[#allocation2 + $0x218] ss:$20 sps:$4 sm:$0xff]  }
 0xf59   :  { %v10389_v33 = vpop.f32.mrb[43].mxu1  ;;  %v12209_v61 = vld [vmem:[#allocation2 + $0x240] ss:$20 sps:$4 sm:$0xff]  }
 0xf5a   :  { %v13653_v50 = vadd.f32 %v10387_v31, %v13555_v47  ;;  %v10390_v35 = vadd.f32 %v10389_v33, %v10388_v32  ;;  %v12210_v31 = vld [vmem:[#allocation2 + $0x268] ss:$20 sps:$4 sm:$0xff]  }
 0xf5c   :  { %2443 = vst [vmem:[%s14892_s11 + $0x10] sm:$0xff] %v13653_v50  ;;  %v13660_v63 = vadd.f32 %v10390_v35, %v13569_v48  ;;  %v2449_v0 = vmul.f32 %v13653_v50, %v13653_v50  ;;  %v12181_v48 = vld [vmem:[#allocation2 + $0x1e4] ss:$20 sps:$4 sm:$0xff]  }
 0xf5d   :  { %2752 = vmatprep.subr.bf16.mxu0 %v12181_v48 }
 0xf5e   :  { %2444 = vst [vmem:[%s14892_s11 + $0x18] sm:$0xff] %v13660_v63  ;;  %2455 = vadd.xlane.f32.xlu0 %v2449_v0  ;;  %v2450_v47 = vmul.f32 %v13660_v63, %v13660_v63  ;;  %2753 = vmatpush1.bf16.msra.mxu0 %v12179_v41  ;;  %v13005_v41 = vld [vmem:[%s14889_s8 + $0x8] sm:$0xff] }
 0xf5f   :  { %2754 = vmatprep.subr.bf16.mxu0 %v12187_v46 }
 0xf60   :  { %2457 = vadd.xlane.f32.xlu1 %v2450_v47 }
 0xf62   :  { %2755 = vmatpush1.bf16.msra.mxu0 %v12185_v49 }
 0xf63   :  { %2756 = vmatprep.subr.bf16.mxu0 %v12193_v53  ;;  %v13006_v53 = vld [vmem:[%s14890_s9 + $0x8] sm:$0xff] }
 0xf66   :  { %2757 = vmatpush1.bf16.msra.mxu0 %v12191_v5 }
 0xf67   :  { %2758 = vmatprep.subr.bf16.mxu0 %v12199_v56 }
 0xf6a   :  { %2759 = vmatpush1.bf16.msra.mxu0 %v12197_v57 }
 0xf6b   :  { %10879 = vmatprep.subr.bf16.mxu0 %v12203_v4 }
 0xfe3   :  { %v2452_v7 = vpop.xlane.xlu0 %2451 }
 0xfe4   :  { %v2459_v15 = vmul.f32 0.0078125, %v2452_v7  ;;  %v13007_v7 = vld [vmem:[%s14889_s8 + $0x10] sm:$0xff] }
 0xfe5   :  { %v2454_v62 = vpop.xlane.xlu1 %2453 }
 0xfe6   :  { %v2463_v34 = vadd.f32 1e-06, %v2459_v15  ;;  %v2460_v9 = vmul.f32 0.0078125, %v2454_v62 }
 0xfe8   :  { %12651 = vrsqrt.f32 %v2463_v34  ;;  %v2464_v18 = vadd.f32 1e-06, %v2460_v9 }
 0xfea   :  { %12653 = vrsqrt.f32 %v2464_v18  ;;  %v13008_v18 = vld [vmem:[%s14890_s9 + $0x10] sm:$0xff] }
 0xfeb   :  { %v2456_v38 = vpop.xlane.xlu0 %2455 }
 0xfec   :  { %v2461_v6 = vmul.f32 0.0078125, %v2456_v38 }
 0xfed   :  { %v2458_v2 = vpop.xlane.xlu1 %2457 }
 0xfee   :  { %v2465_v8 = vadd.f32 1e-06, %v2461_v6  ;;  %v2462_v27 = vmul.f32 0.0078125, %v2458_v2 }
 0xff0   :  { %12655 = vrsqrt.f32 %v2465_v8  ;;  %v2466_v10 = vadd.f32 1e-06, %v2462_v27  ;;  %v13009_v27 = vld [vmem:[%s14889_s8 + $0x18] sm:$0xff] }
 0xff2   :  { %v12652_v12 = vpop.eup %12651  ;;  %12657 = vrsqrt.f32 %v2466_v10 }
 0xff3   :  { %v2471_v14 = vmul.f32 %v12652_v12, %v13635_v25 }
 0xff4   :  { %v12654_v29 = vpop.eup %12653 }
 0xff5   :  { %v2472_v28 = vmul.f32 %v12654_v29, %v13642_v59  ;;  %v2481_v16 = vmul.f32 %v9703_v23, %v2471_v14 }
 0xff7   :  { %v2482_v17 = vmul.f32 %v9703_v23, %v2472_v28 }
 0xff9   :  { %v2485_v19 = vpack.c.bf16 %v2482_v17, %v2481_v16  ;;  %v13010_v16 = vld [vmem:[%s14890_s9 + $0x18] sm:$0xff] }
 0xffa   :  { %v12656_v21 = vpop.eup %12655 }
 0xffb   :  { %2777 = vmatmul.mubr.bf16.vlgmr.msra.gmra.mrb[36].mxu0 %v2485_v19  ;;  %2830 = vmatmul.mubr.bf16.vlgmr.msra.gmra.mrb[44].mxu1 %v2485_v19  ;;  %v2473_v22 = vmul.f32 %v12656_v21, %v13653_v50  ;;  %v13003_v50 = vld [vmem:[%s14889_s8] sm:$0xff] }
 0xffc   :  { %v12658_v11 = vpop.eup %12657  ;;  %10880 = vmatpush3.bf16.msra.mxu0 %v12203_v4  ;;  %2786 = vmatprep.mubr.bf16.mxu0 %v13130_v39 }
 0xffd   :  { %10881 = vmatprep.subr.bf16.mxu0 %v12204_v20  ;;  %2839 = vmatprep.mubr.bf16.mxu1 %v13130_v39  ;;  %v2474_v13 = vmul.f32 %v12658_v11, %v13660_v63  ;;  %v2483_v25 = vmul.f32 %v9703_v23, %v2473_v22 }
 0xfff   :  { %v2484_v26 = vmul.f32 %v9703_v23, %v2474_v13 }
0x1000   :  { %10882 = vmatpush3.bf16.msra.mxu0 %v12204_v20 }
0x1001   :  { %10883 = vmatprep.subr.bf16.mxu0 %v12205_v24  ;;  %v2486_v59 = vpack.c.bf16 %v2484_v26, %v2483_v25 }
0x1003   :  { %2787 = vmatmul.mubr.bf16.gmra.mrb[40].mxu0 %v2486_v59  ;;  %2840 = vmatmul.mubr.bf16.gmra.mrb[48].mxu1 %v2486_v59 }
0x1004   :  { %10884 = vmatpush3.bf16.msra.mxu0 %v12205_v24  ;;  %10895 = vmatprep.mubr.bf16.mxu0 %v2485_v19 }
0x1005   :  { %10885 = vmatprep.subr.bf16.mxu0 %v12206_v30 }
0x1008   :  { %10886 = vmatpush3.bf16.msra.mxu0 %v12206_v30 }
0x1009   :  { %10887 = vmatprep.subr.bf16.mxu0 %v12207_v42 }
0x100c   :  { %10888 = vmatpush3.bf16.msra.mxu0 %v12207_v42 }
0x100d   :  { %10889 = vmatprep.subr.bf16.mxu0 %v12208_v60 }
0x1010   :  { %10890 = vmatpush3.bf16.msra.mxu0 %v12208_v60 }
0x1011   :  { %10891 = vmatprep.subr.bf16.mxu0 %v12209_v61 }
0x1014   :  { %10892 = vmatpush3.bf16.msra.mxu0 %v12209_v61 }
0x1015   :  { %10893 = vmatprep.subr.bf16.mxu0 %v12210_v31 }
0x1018   :  { %10894 = vmatpush3.bf16.msra.mxu0 %v12210_v31 }
0x101b   :  { %10896 = vmatmul.mubr.bf16.vlgmr.msra.gmra.mrb[44].mxu0 %v2486_v59 }
0x10ce   :  { %v2778_v32 = vpop.f32.mrb[36].mxu0  ;;  %v2831_v33 = vpop.f32.mrb[44].mxu1 }
0x10cf   :  { %v2899_v35 = vmul.f32 %v13003_v50, %v2778_v32  ;;  %v2911_v63 = vmul.f32 %v13003_v50, %v2831_v33  ;;  %v2780_v0 = vpop.f32.mrb[37].mxu0  ;;  %v2833_v47 = vpop.f32.mrb[45].mxu1  ;;  %v13738_v50 = vld [vmem:[%s14891_s10 + $0x8] sm:$0xff] }
0x10d0   :  { %v2903_v36 = vmul.f32 %v13004_v1, %v2780_v0  ;;  %v2915_v37 = vmul.f32 %v13004_v1, %v2833_v47  ;;  %v2782_v40 = vpop.f32.mrb[38].mxu0  ;;  %v2835_v48 = vpop.f32.mrb[46].mxu1  ;;  %v13744_v0 = vld [vmem:[%s14891_s10] sm:$0xff] }
0x10d1   :  { %v2900_v44 = vmul.f32 %v13005_v41, %v2782_v40  ;;  %v2912_v45 = vmul.f32 %v13005_v41, %v2835_v48  ;;  %v2784_v46 = vpop.f32.mrb[39].mxu0  ;;  %v2837_v49 = vpop.f32.mrb[47].mxu1  ;;  %v13752_v41 = vld [vmem:[%s14891_s10 + $0x18] sm:$0xff] }
0x10d2   :  { %v13688_v51 = vadd.f32 %v2903_v36, %v2899_v35  ;;  %v2919_v52 = vadd.f32 %v2915_v37, %v2911_v63  ;;  %v2904_v5 = vmul.f32 %v13006_v53, %v2784_v46  ;;  %v2916_v54 = vmul.f32 %v13006_v53, %v2837_v49 }
0x10d4   :  { %v13693_v55 = vadd.f32 %v2904_v5, %v2900_v44  ;;  %v2920_v56 = vadd.f32 %v2916_v54, %v2912_v45  ;;  %10907 = vmatprep.mubr.msk.f32.mxu1 %vm575_vm0, %v13688_v51  ;;  %v13758_v45 = vld [vmem:[%s14891_s10 + $0x10] sm:$0xff] }
0x10d6   :  { %v2788_v57 = vpop.f32.mrb[40].mxu0  ;;  %v2841_v58 = vpop.f32.mrb[48].mxu1  ;;  %v11415_v3 = vpack.c.bf16 %v2920_v56, %v2919_v52  ;;  %v13697_v4 = vpack.i.bf16 %v2920_v56, %v2919_v52 }
0x10d7   :  { %v2901_v15 = vmul.f32 %v13007_v7, %v2788_v57  ;;  %v2913_v62 = vmul.f32 %v13007_v7, %v2841_v58  ;;  %v2790_v34 = vpop.f32.mrb[41].mxu0  ;;  %v2843_v9 = vpop.f32.mrb[49].mxu1 }
0x10d8   :  { %v2905_v38 = vmul.f32 %v13008_v18, %v2790_v34  ;;  %v2917_v6 = vmul.f32 %v13008_v18, %v2843_v9  ;;  %v2792_v2 = vpop.f32.mrb[42].mxu0  ;;  %v2845_v8 = vpop.f32.mrb[50].mxu1  ;;  %11417 = vmatprep.subr.msk.bf16.mxu1 %vm13293_vm1, %v11415_v3 }
0x10d9   :  { %v2902_v10 = vmul.f32 %v13009_v27, %v2792_v2  ;;  %v2914_v12 = vmul.f32 %v13009_v27, %v2845_v8  ;;  %v2794_v14 = vpop.f32.mrb[43].mxu0  ;;  %v2847_v29 = vpop.f32.mrb[51].mxu1  ;;  %11420 = vmatpush3.bf16.xpose.msk.msra.mxu1 %vm13293_vm1, %v11415_v3 }
0x10da   :  { %v13712_v23 = vadd.f32 %v2905_v38, %v2901_v15  ;;  %v2921_v28 = vadd.f32 %v2917_v6, %v2913_v62  ;;  %v2906_v17 = vmul.f32 %v13010_v16, %v2794_v14  ;;  %v2918_v19 = vmul.f32 %v13010_v16, %v2847_v29 }
0x10dc   :  { %v13717_v20 = vadd.f32 %v2906_v17, %v2902_v10  ;;  %v2922_v21 = vadd.f32 %v2918_v19, %v2914_v12 }
0x10de   :  { %v11421_v22 = vpack.c.bf16 %v2922_v21, %v2921_v28  ;;  %v13719_v11 = vpack.i.bf16 %v2922_v21, %v2921_v28 }
0x10e0   :  { %11423 = vmatprep.subr.msk.bf16.mxu1 %vm13293_vm1, %v11421_v22 }
0x10e1   :  { %11426 = vmatpush3.bf16.xpose.msk.msra.mxu1 %vm13293_vm1, %v11421_v22 }
0x10e8   :  { %10908 = vmatmul.mubr.msk.f32.vlgmr.msra.gmra.mrb[52].mxu1 %vm575_vm0, %v13693_v55 }
0x10e9   :  { %10910 = vmatprep.mubr.msk.f32.mxu1 %vm575_vm0, %v13712_v23 }
0x10ec   :  { %10911 = vmatmul.mubr.msk.f32.gmra.mrb[54].mxu1 %vm575_vm0, %v13717_v20 }
0x10ee   :  { %v10897_v24 = vpop.f32.mrb[44].mxu0 }
0x10ef   :  { %v2884_v13 = vpop.f32.mrb[45].mxu0 }
0x10f0   :  { %v10898_v25 = vpop.f32.mrb[46].mxu0 }
0x10f1   :  { %v13731_v26 = vpack.i.bf16 %v10898_v25, %v10897_v24  ;;  %v2887_v59 = vpop.f32.mrb[47].mxu0  ;;  %v11431_v30 = vpack.c.bf16 %v10898_v25, %v10897_v24 }
0x10f2   :  { %v13733_v42 = vpack.i.bf16 %v2887_v59, %v2884_v13  ;;  %v11427_v60 = vpack.c.bf16 %v2887_v59, %v2884_v13 }
0x10f4   :  { %11428 = vmatprep.subr.bf16.mxu1 %v11427_v60 }
0x10f5   :  { %11430 = vmatpush3.bf16.msra.mxu1 %v11427_v60 }
0x10f6   :  { %11432 = vmatprep.subr.bf16.mxu1 %v11431_v30 }
0x10f9   :  { %11434 = vmatpush3.bf16.msra.mxu1 %v11431_v30 }
0x11bb   :  { %v10909_v61 = vpop.f32.mrb[52].mxu1 }
0x11bc   :  { %v3033_v31 = vmul.f32 0.17677669, %v10909_v61  ;;  %v3013_v32 = vpop.f32.mrb[53].mxu1 }
0x11bd   :  { %v3032_v33 = vmul.f32 0.17677669, %v3013_v32 }
0x11be   :  { %v3037_v35 = vadd.f32 %v13738_v50, %v3033_v31 }
0x11bf   :  { %v10912_v63 = vpop.f32.mrb[54].mxu1  ;;  %v3036_v47 = vadd.f32 %v13744_v0, %v3032_v33 }
0x11c0   :  { %v3035_v1 = vmul.f32 0.17677669, %v10912_v63  ;;  %v3023_v36 = vpop.f32.mrb[55].mxu1  ;;  %v3043_v37 = vsel %vm575_vm0, %v3037_v35, -inf }
0x11c1   :  { %v3034_v40 = vmul.f32 0.17677669, %v3023_v36  ;;  %3044 = vmax.xlane.f32.xlu1 %v3043_v37  ;;  %v3040_v48 = vsel %vm575_vm0, %v3036_v47, -inf }
0x11c2   :  { %3041 = vmax.xlane.f32.xlu0 %v3040_v48  ;;  %v3039_v44 = vadd.f32 %v13752_v41, %v3035_v1 }
0x11c3   :  { %v3038_v46 = vadd.f32 %v13758_v45, %v3034_v40 }
0x11c4   :  { %v3049_v49 = vsel %vm575_vm0, %v3039_v44, -inf }
0x11c5   :  { %3050 = vmax.xlane.f32.xlu1 %v3049_v49  ;;  %v3046_v52 = vsel %vm575_vm0, %v3038_v46, -inf }
0x11c6   :  { %3047 = vmax.xlane.f32.xlu0 %v3046_v52 }
0x124e   :  { %v3045_v53 = vpop.xlane.xlu1 %3044 }
0x124f   :  { %v3053_v5 = vsub.f32 %v3037_v35, %v3045_v53  ;;  %v3042_v54 = vpop.xlane.xlu0 %3041 }
0x1250   :  { %v3052_v56 = vsub.f32 %v3036_v47, %v3042_v54 }
0x1251   :  { %v3058_v57 = vmul.f32 1.442695, %v3053_v5 }
0x1252   :  { %v3056_v58 = vmul.f32 1.442695, %v3052_v56  ;;  %v3051_v3 = vpop.xlane.xlu1 %3050 }
0x1253   :  { %12659 = vpow2.f32 %v3058_v57  ;;  %v3055_v7 = vsub.f32 %v3039_v44, %v3051_v3  ;;  %v3048_v15 = vpop.xlane.xlu0 %3047 }
0x1254   :  { %12661 = vpow2.f32 %v3056_v58  ;;  %v3054_v62 = vsub.f32 %v3038_v46, %v3048_v15 }
0x1255   :  { %v3062_v34 = vmul.f32 1.442695, %v3055_v7 }
0x1256   :  { %v3060_v9 = vmul.f32 1.442695, %v3054_v62 }
0x1257   :  { %12663 = vpow2.f32 %v3062_v34 }
0x1258   :  { %12665 = vpow2.f32 %v3060_v9 }
0x125d   :  { %v12660_v18 = vpop.eup %12659 }
0x125e   :  { %v12662_v38 = vpop.eup %12661  ;;  %v3067_v6 = vsel %vm575_vm0, %v12660_v18, 0.0 }
0x125f   :  { %3068 = vadd.xlane.f32.xlu1 %v3067_v6  ;;  %v3064_v2 = vsel %vm575_vm0, %v12662_v38, 0.0 }
0x1260   :  { %3065 = vadd.xlane.f32.xlu0 %v3064_v2 }
0x1261   :  { %v12664_v8 = vpop.eup %12663 }
0x1262   :  { %v12666_v27 = vpop.eup %12665  ;;  %v3073_v10 = vsel %vm575_vm0, %v12664_v8, 0.0 }
0x1263   :  { %3074 = vadd.xlane.f32.xlu1 %v3073_v10  ;;  %v3070_v12 = vsel %vm575_vm0, %v12666_v27, 0.0 }
0x1264   :  { %3071 = vadd.xlane.f32.xlu0 %v3070_v12 }
0x1274   :  { %11763 = vrot.lane.b32.xlu1 %v13719_v11, %s13131_s22 }
0x1278   :  { %3181 = vrot.lane.b32.xlu1 %v13688_v51, %s13131_s22 }
0x127a   :  { %11758 = vrot.lane.b32.xlu0 %v13697_v4, %s13131_s22 }
0x127c   :  { %3183 = vrot.lane.b32.xlu1 %v13693_v55, %s13131_s22 }
0x127e   :  { %3185 = vrot.lane.b32.xlu0 %v13712_v23, %s13131_s22 }
0x1280   :  { %3187 = vrot.lane.b32.xlu1 %v13717_v20, %s13131_s22 }
0x12ec   :  { %v3069_v14 = vpop.xlane.xlu1 %3068 }
0x12ed   :  { %12667 = vrcp.f32 %v3069_v14  ;;  %v3066_v29 = vpop.xlane.xlu0 %3065 }
0x12ee   :  { %12669 = vrcp.f32 %v3066_v29 }
0x12f0   :  { %v3075_v28 = vpop.xlane.xlu1 %3074 }
0x12f1   :  { %12671 = vrcp.f32 %v3075_v28  ;;  %v3072_v16 = vpop.xlane.xlu0 %3071 }
0x12f2   :  { %12673 = vrcp.f32 %v3072_v16 }
0x12f4   :  { %v11764_v17 = vpop.permute.xlu1 %11763 }
0x12f5   :  { %v11759_v19 = vpop.permute.xlu0 %11758  ;;  %v11766_v25 = vunpack.i.h.bf16 %v11764_v17  ;;  %v11765_v59 = vunpack.i.l.bf16 %v11764_v17 }
0x12f6   :  { %v11761_v21 = vunpack.i.h.bf16 %v11759_v19  ;;  %v11760_v22 = vunpack.i.l.bf16 %v11759_v19 }
0x12f7   :  { %v12668_v24 = vpop.eup %12667  ;;  %v11441_v33 = vpack.c.bf16 %v11766_v25, %v11765_v59 }
0x12f8   :  { %v12670_v13 = vpop.eup %12669  ;;  %v11435_v30 = vpack.c.bf16 %v11761_v21, %v11760_v22  ;;  %v3081_v61 = vmul.f32 %v12668_v24, %v12660_v18  ;;  %v3182_v47 = vpop.permute.xlu1 %3181 }
0x12f9   :  { %v3080_v60 = vmul.f32 %v12670_v13, %v12662_v38  ;;  %v3186_v36 = vpop.permute.xlu0 %3185 }
0x12fa   :  { %11437 = vmatprep.subr.msk.bf16.mxu1 %vm13293_vm1, %v11435_v30 }
0x12fb   :  { %v12672_v31 = vpop.eup %12671  ;;  %10921 = vmatprep.mubr.msk.f32.mxu1 %vm575_vm0, %v3080_v60 }
0x12fc   :  { %v12674_v32 = vpop.eup %12673  ;;  %10922 = vmatmul.mubr.msk.f32.vlgmr.msra.gmra.mrb[56].mxu1 %vm575_vm0, %v3081_v61  ;;  %v3083_v63 = vmul.f32 %v12672_v31, %v12664_v8  ;;  %v3184_v1 = vpop.permute.xlu1 %3183 }
0x12fd   :  { %11440 = vmatpush3.bf16.xpose.msk.msra.mxu1 %vm13293_vm1, %v11435_v30  ;;  %v3082_v35 = vmul.f32 %v12674_v32, %v12666_v27 }
0x12fe   :  { %11443 = vmatprep.subr.msk.bf16.mxu1 %vm13293_vm1, %v11441_v33 }
0x12ff   :  { %10924 = vmatprep.mubr.msk.f32.mxu1 %vm575_vm0, %v3082_v35 }
0x1300   :  { %10925 = vmatmul.mubr.msk.f32.gmra.mrb[58].mxu1 %vm575_vm0, %v3083_v63  ;;  %v3188_v37 = vpop.permute.xlu1 %3187 }
0x1301   :  { %10935 = vmatprep.mubr.msk.f32.mxu1 %vm575_vm0, %v3182_v47 }
0x1305   :  { %11446 = vmatpush3.bf16.xpose.msk.msra.mxu1 %vm13293_vm1, %v11441_v33 }
0x130c   :  { %10936 = vmatmul.mubr.msk.f32.vlgmr.msra.gmra.mrb[60].mxu1 %vm575_vm0, %v3184_v1 }
0x130d   :  { %10938 = vmatprep.mubr.msk.f32.mxu1 %vm575_vm0, %v3186_v36 }
0x1310   :  { %10939 = vmatmul.mubr.msk.f32.gmra.mrb[62].mxu1 %vm575_vm0, %v3188_v37 }
0x13cf   :  { %v13795_v40 = vpop.f32.mrb[56].mxu1 }
0x13d0   :  { %v13797_v48 = vpop.f32.mrb[57].mxu1 }
0x13d3   :  { %v13799_v44 = vpop.f32.mrb[58].mxu1 }
0x13d4   :  { %v13801_v46 = vpop.f32.mrb[59].mxu1 }
0x13df   :  { %v10937_v49 = vpop.f32.mrb[60].mxu1 }
0x13e0   :  { %v3299_v52 = vmul.f32 0.17677669, %v10937_v49  ;;  %v3279_v53 = vpop.f32.mrb[61].mxu1 }
0x13e1   :  { %v3298_v5 = vmul.f32 0.17677669, %v3279_v53 }
0x13e2   :  { %v3303_v54 = vadd.f32 %v13738_v50, %v3299_v52 }
0x13e3   :  { %v10940_v56 = vpop.f32.mrb[62].mxu1  ;;  %v3302_v57 = vadd.f32 %v13744_v0, %v3298_v5 }
0x13e4   :  { %v3289_v58 = vpop.f32.mrb[63].mxu1  ;;  %v3309_v3 = vsel %vm575_vm0, %v3303_v54, -inf  ;;  %v3301_v7 = vmul.f32 0.17677669, %v10940_v56 }
0x13e5   :  { %v3300_v15 = vmul.f32 0.17677669, %v3289_v58  ;;  %3310 = vmax.xlane.f32.xlu1 %v3309_v3  ;;  %v3306_v62 = vsel %vm575_vm0, %v3302_v57, -inf }
0x13e6   :  { %3307 = vmax.xlane.f32.xlu0 %v3306_v62  ;;  %v3305_v18 = vadd.f32 %v13752_v41, %v3301_v7 }
0x13e7   :  { %v3304_v34 = vadd.f32 %v13758_v45, %v3300_v15 }
0x13e8   :  { %v3315_v38 = vsel %vm575_vm0, %v3305_v18, -inf }
0x13e9   :  { %v3312_v9 = vsel %vm575_vm0, %v3304_v34, -inf }
0x13ea   :  { %3313 = vmax.xlane.f32.xlu0 %v3312_v9 }
0x13ee   :  { %3316 = vmax.xlane.f32.xlu0 %v3315_v38 }
0x1472   :  { %v3311_v6 = vpop.xlane.xlu1 %3310 }
0x1473   :  { %v3319_v2 = vsub.f32 %v3303_v54, %v3311_v6  ;;  %v3308_v8 = vpop.xlane.xlu0 %3307 }
0x1474   :  { %v3318_v27 = vsub.f32 %v3302_v57, %v3308_v8 }
0x1475   :  { %v3324_v10 = vmul.f32 1.442695, %v3319_v2 }
0x1476   :  { %v3322_v12 = vmul.f32 1.442695, %v3318_v27 }
0x1477   :  { %12675 = vpow2.f32 %v3324_v10  ;;  %v3314_v17 = vpop.xlane.xlu0 %3313 }
0x1478   :  { %12677 = vpow2.f32 %v3322_v12  ;;  %v3320_v19 = vsub.f32 %v3304_v34, %v3314_v17 }
0x147a   :  { %v3326_v21 = vmul.f32 1.442695, %v3320_v19 }
0x147b   :  { %v3317_v22 = vpop.xlane.xlu0 %3316 }
0x147c   :  { %v3321_v24 = vsub.f32 %v3305_v18, %v3317_v22  ;;  %12679 = vpow2.f32 %v3326_v21 }
0x147e   :  { %v3328_v13 = vmul.f32 1.442695, %v3321_v24 }
0x1480   :  { %12681 = vpow2.f32 %v3328_v13 }
0x1481   :  { %v12676_v14 = vpop.eup %12675 }
0x1482   :  { %v12678_v29 = vpop.eup %12677  ;;  %v3333_v28 = vsel %vm575_vm0, %v12676_v14, 0.0 }
0x1483   :  { %3334 = vadd.xlane.f32.xlu1 %v3333_v28  ;;  %v3330_v16 = vsel %vm575_vm0, %v12678_v29, 0.0 }
0x1484   :  { %3331 = vadd.xlane.f32.xlu0 %v3330_v16 }
0x1486   :  { %v12680_v25 = vpop.eup %12679 }
0x1487   :  { %v3336_v59 = vsel %vm575_vm0, %v12680_v25, 0.0 }
0x148a   :  { %v12682_v30 = vpop.eup %12681 }
0x148b   :  { %v3339_v60 = vsel %vm575_vm0, %v12682_v30, 0.0 }
0x1494   :  { %11773 = vrot.lane.b32.xlu1 %v13731_v26, %s13131_s22 }
0x1498   :  { %11778 = vrot.lane.b32.xlu1 %v13697_v4, %s13122_s13 }
0x149a   :  { %11768 = vrot.lane.b32.xlu0 %v13733_v42, %s13131_s22 }
0x149c   :  { %11783 = vrot.lane.b32.xlu1 %v13719_v11, %s13122_s13 }
0x14b9   :  { %3337 = vadd.xlane.f32.xlu0 %v3336_v59 }
0x14c0   :  { %3340 = vadd.xlane.f32.xlu1 %v3339_v60 }
0x14cf   :  { %3463 = vrot.lane.b32.xlu0 %v13688_v51, %s13122_s13 }
0x14d1   :  { %3465 = vrot.lane.b32.xlu1 %v13693_v55, %s13122_s13 }
0x14d3   :  { %3467 = vrot.lane.b32.xlu0 %v13712_v23, %s13122_s13 }
0x14d5   :  { %3469 = vrot.lane.b32.xlu1 %v13717_v20, %s13122_s13 }
0x1510   :  { %v3335_v61 = vpop.xlane.xlu1 %3334 }
0x1511   :  { %v3332_v31 = vpop.xlane.xlu0 %3331 }
0x1512   :  { %12683 = vrcp.f32 %v3332_v31 }
0x1513   :  { %12685 = vrcp.f32 %v3335_v61 }
0x1514   :  { %v11774_v32 = vpop.permute.xlu1 %11773 }
0x1515   :  { %v11769_v33 = vpop.permute.xlu0 %11768  ;;  %v11776_v35 = vunpack.i.h.bf16 %v11774_v32  ;;  %v11775_v63 = vunpack.i.l.bf16 %v11774_v32 }
0x1516   :  { %v11771_v47 = vunpack.i.h.bf16 %v11769_v33  ;;  %v11770_v1 = vunpack.i.l.bf16 %v11769_v33 }
0x1517   :  { %v11451_v53 = vpack.c.bf16 %v11776_v35, %v11775_v63 }
0x1518   :  { %v11779_v36 = vpop.permute.xlu1 %11778  ;;  %v11447_v37 = vpack.c.bf16 %v11771_v47, %v11770_v1 }
0x1519   :  { %v11781_v49 = vunpack.i.h.bf16 %v11779_v36  ;;  %v11780_v52 = vunpack.i.l.bf16 %v11779_v36 }
0x151a   :  { %11448 = vmatprep.subr.bf16.mxu0 %v11447_v37 }
0x151b   :  { %11450 = vmatpush3.bf16.msra.mxu0 %v11447_v37  ;;  %v11455_v57 = vpack.c.bf16 %v11781_v49, %v11780_v52 }
0x151c   :  { %v12684_v5 = vpop.eup %12683  ;;  %11452 = vmatprep.subr.bf16.mxu0 %v11451_v53  ;;  %v11784_v58 = vpop.permute.xlu1 %11783 }
0x151d   :  { %v12686_v54 = vpop.eup %12685  ;;  %v3346_v56 = vmul.f32 %v12684_v5, %v12678_v29  ;;  %v11786_v7 = vunpack.i.h.bf16 %v11784_v58  ;;  %v11785_v15 = vunpack.i.l.bf16 %v11784_v58 }
0x151e   :  { %v3347_v3 = vmul.f32 %v12686_v54, %v12676_v14 }
0x151f   :  { %11454 = vmatpush3.bf16.msra.mxu0 %v11451_v53  ;;  %10949 = vmatprep.mubr.msk.f32.mxu0 %vm575_vm0, %v3346_v56  ;;  %v11461_v62 = vpack.c.bf16 %v11786_v7, %v11785_v15 }
0x1520   :  { %11457 = vmatprep.subr.msk.bf16.mxu0 %vm13293_vm1, %v11455_v57 }
0x1522   :  { %10950 = vmatmul.mubr.msk.f32.vlgmr.msra.gmra.mrb[48].mxu0 %vm575_vm0, %v3347_v3 }
0x1528   :  { %11460 = vmatpush3.bf16.xpose.msk.msra.mxu0 %vm13293_vm1, %v11455_v57 }
0x1529   :  { %11463 = vmatprep.subr.msk.bf16.mxu0 %vm13293_vm1, %v11461_v62 }
0x1530   :  { %11466 = vmatpush3.bf16.xpose.msk.msra.mxu0 %vm13293_vm1, %v11461_v62 }
0x1546   :  { %v3338_v34 = vpop.xlane.xlu0 %3337 }
0x1547   :  { %12687 = vrcp.f32 %v3338_v34 }
0x154a   :  { %v3464_v2 = vpop.permute.xlu0 %3463 }
0x154d   :  { %v3341_v9 = vpop.xlane.xlu1 %3340 }
0x154e   :  { %12689 = vrcp.f32 %v3341_v9  ;;  %v3468_v10 = vpop.permute.xlu0 %3467 }
0x1551   :  { %v12688_v18 = vpop.eup %12687  ;;  %v3466_v27 = vpop.permute.xlu1 %3465 }
0x1552   :  { %v3348_v38 = vmul.f32 %v12688_v18, %v12680_v25 }
0x1554   :  { %10952 = vmatprep.mubr.msk.f32.mxu0 %vm575_vm0, %v3348_v38 }
0x1555   :  { %v3470_v12 = vpop.permute.xlu1 %3469 }
0x1558   :  { %v12690_v6 = vpop.eup %12689 }
0x1559   :  { %v3349_v8 = vmul.f32 %v12690_v6, %v12682_v30 }
0x155b   :  { %10953 = vmatmul.mubr.msk.f32.gmra.mrb[50].mxu0 %vm575_vm0, %v3349_v8 }
0x155c   :  { %10963 = vmatprep.mubr.msk.f32.mxu0 %vm575_vm0, %v3464_v2 }
0x155f   :  { %10964 = vmatmul.mubr.msk.f32.vlgmr.msra.gmra.mrb[52].mxu0 %vm575_vm0, %v3466_v27 }
0x1560   :  { %10966 = vmatprep.mubr.msk.f32.mxu0 %vm575_vm0, %v3468_v10 }
0x1563   :  { %10967 = vmatmul.mubr.msk.f32.gmra.mrb[54].mxu0 %vm575_vm0, %v3470_v12 }
0x15f5   :  { %v13847_v14 = vpop.f32.mrb[48].mxu0 }
0x15f6   :  { %v13849_v29 = vpop.f32.mrb[49].mxu0 }
0x15f7   :  { %v11817_v28 = vpack.i.bf16 %v13847_v14, %v13849_v29 }
0x162e   :  { %v13853_v16 = vpop.f32.mrb[50].mxu0 }
0x162f   :  { %v13855_v17 = vpop.f32.mrb[51].mxu0 }
0x1630   :  { %v11822_v19 = vpack.i.bf16 %v13853_v16, %v13855_v17 }
0x1632   :  { %v10965_v21 = vpop.f32.mrb[52].mxu0 }
0x1633   :  { %v3581_v22 = vmul.f32 0.17677669, %v10965_v21  ;;  %v3561_v24 = vpop.f32.mrb[53].mxu0 }
0x1634   :  { %v3580_v13 = vmul.f32 0.17677669, %v3561_v24 }
0x1635   :  { %v3585_v25 = vadd.f32 %v13738_v50, %v3581_v22 }
0x1636   :  { %v3584_v59 = vadd.f32 %v13744_v0, %v3580_v13  ;;  %v10968_v30 = vpop.f32.mrb[54].mxu0 }
0x1637   :  { %v3571_v60 = vpop.f32.mrb[55].mxu0  ;;  %v3591_v61 = vsel %vm575_vm0, %v3585_v25, -inf  ;;  %v3583_v31 = vmul.f32 0.17677669, %v10968_v30 }
0x1638   :  { %v3582_v32 = vmul.f32 0.17677669, %v3571_v60  ;;  %3592 = vmax.xlane.f32.xlu1 %v3591_v61  ;;  %v3588_v33 = vsel %vm575_vm0, %v3584_v59, -inf }
0x1639   :  { %3589 = vmax.xlane.f32.xlu0 %v3588_v33  ;;  %v3587_v63 = vadd.f32 %v13752_v41, %v3583_v31 }
0x163a   :  { %v3586_v35 = vadd.f32 %v13758_v45, %v3582_v32 }
0x163b   :  { %v3597_v1 = vsel %vm575_vm0, %v3587_v63, -inf }
0x163c   :  { %v3594_v47 = vsel %vm575_vm0, %v3586_v35, -inf }
0x163d   :  { %3595 = vmax.xlane.f32.xlu0 %v3594_v47 }
0x1641   :  { %3598 = vmax.xlane.f32.xlu0 %v3597_v1 }
0x16c5   :  { %v3593_v36 = vpop.xlane.xlu1 %3592 }
0x16c6   :  { %v3601_v37 = vsub.f32 %v3585_v25, %v3593_v36  ;;  %v3590_v49 = vpop.xlane.xlu0 %3589 }
0x16c7   :  { %v3600_v52 = vsub.f32 %v3584_v59, %v3590_v49 }
0x16c8   :  { %v3606_v53 = vmul.f32 1.442695, %v3601_v37 }
0x16c9   :  { %v3604_v5 = vmul.f32 1.442695, %v3600_v52 }
0x16ca   :  { %12691 = vpow2.f32 %v3606_v53  ;;  %v3596_v3 = vpop.xlane.xlu0 %3595 }
0x16cb   :  { %12693 = vpow2.f32 %v3604_v5  ;;  %v3602_v7 = vsub.f32 %v3586_v35, %v3596_v3 }
0x16cd   :  { %v3608_v15 = vmul.f32 1.442695, %v3602_v7 }
0x16ce   :  { %v3599_v62 = vpop.xlane.xlu0 %3598 }
0x16cf   :  { %v3603_v34 = vsub.f32 %v3587_v63, %v3599_v62  ;;  %12695 = vpow2.f32 %v3608_v15 }
0x16d1   :  { %v3610_v9 = vmul.f32 1.442695, %v3603_v34 }
0x16d3   :  { %12697 = vpow2.f32 %v3610_v9 }
0x16d4   :  { %v12692_v54 = vpop.eup %12691 }
0x16d5   :  { %v12694_v56 = vpop.eup %12693  ;;  %v3615_v57 = vsel %vm575_vm0, %v12692_v54, 0.0 }
0x16d6   :  { %3616 = vadd.xlane.f32.xlu1 %v3615_v57  ;;  %v3612_v58 = vsel %vm575_vm0, %v12694_v56, 0.0 }
0x16d7   :  { %3613 = vadd.xlane.f32.xlu0 %v3612_v58 }
0x16d9   :  { %v12696_v18 = vpop.eup %12695 }
0x16da   :  { %v3618_v38 = vsel %vm575_vm0, %v12696_v18, 0.0 }
0x16dd   :  { %v12698_v6 = vpop.eup %12697 }
0x16e7   :  { %11793 = vrot.lane.b32.xlu1 %v13731_v26, %s13122_s13 }
0x16eb   :  { %11798 = vrot.lane.b32.xlu1 %v13697_v4, %s13132_s28  ;;  %v3621_v4 = vsel %vm575_vm0, %v12698_v6, 0.0 }
0x16ed   :  { %11788 = vrot.lane.b32.xlu0 %v13733_v42, %s13122_s13 }
0x16ef   :  { %11803 = vrot.lane.b32.xlu1 %v13719_v11, %s13132_s28 }
0x170c   :  { %3619 = vadd.xlane.f32.xlu0 %v3618_v38 }
0x1713   :  { %3622 = vadd.xlane.f32.xlu1 %v3621_v4 }
0x1722   :  { %3741 = vrot.lane.b32.xlu0 %v13688_v51, %s13132_s28 }
0x1724   :  { %3743 = vrot.lane.b32.xlu1 %v13693_v55, %s13132_s28 }
0x1726   :  { %3745 = vrot.lane.b32.xlu0 %v13712_v23, %s13132_s28 }
0x1728   :  { %3747 = vrot.lane.b32.xlu1 %v13717_v20, %s13132_s28 }
0x1763   :  { %v3617_v11 = vpop.xlane.xlu1 %3616 }
0x1764   :  { %v3614_v2 = vpop.xlane.xlu0 %3613 }
0x1765   :  { %12699 = vrcp.f32 %v3614_v2 }
0x1766   :  { %12701 = vrcp.f32 %v3617_v11 }
0x1767   :  { %v11794_v8 = vpop.permute.xlu1 %11793 }
0x1768   :  { %v11789_v27 = vpop.permute.xlu0 %11788  ;;  %v11796_v10 = vunpack.i.h.bf16 %v11794_v8  ;;  %v11795_v12 = vunpack.i.l.bf16 %v11794_v8 }
0x1769   :  { %v11791_v21 = vunpack.i.h.bf16 %v11789_v27  ;;  %v11790_v22 = vunpack.i.l.bf16 %v11789_v27 }
0x176a   :  { %v11471_v25 = vpack.c.bf16 %v11796_v10, %v11795_v12 }
0x176b   :  { %v11799_v51 = vpop.permute.xlu1 %11798  ;;  %v11467_v24 = vpack.c.bf16 %v11791_v21, %v11790_v22 }
0x176c   :  { %v11801_v13 = vunpack.i.h.bf16 %v11799_v51  ;;  %v11800_v55 = vunpack.i.l.bf16 %v11799_v51 }
0x176d   :  { %11468 = vmatprep.subr.bf16.mxu1 %v11467_v24 }
0x176e   :  { %11470 = vmatpush3.bf16.msra.mxu1 %v11467_v24  ;;  %v11475_v30 = vpack.c.bf16 %v11801_v13, %v11800_v55 }
0x176f   :  { %v12700_v23 = vpop.eup %12699  ;;  %11472 = vmatprep.subr.bf16.mxu1 %v11471_v25  ;;  %v11804_v61 = vpop.permute.xlu1 %11803 }
0x1770   :  { %v12702_v20 = vpop.eup %12701  ;;  %v3628_v59 = vmul.f32 %v12700_v23, %v12694_v56  ;;  %v11806_v31 = vunpack.i.h.bf16 %v11804_v61  ;;  %v11805_v32 = vunpack.i.l.bf16 %v11804_v61 }
0x1771   :  { %v3629_v60 = vmul.f32 %v12702_v20, %v12692_v54 }
0x1772   :  { %11474 = vmatpush3.bf16.msra.mxu1 %v11471_v25  ;;  %10977 = vmatprep.mubr.msk.f32.mxu1 %vm575_vm0, %v3628_v59  ;;  %v11481_v33 = vpack.c.bf16 %v11806_v31, %v11805_v32 }
0x1773   :  { %11477 = vmatprep.subr.msk.bf16.mxu1 %vm13293_vm1, %v11475_v30 }
0x1775   :  { %10978 = vmatmul.mubr.msk.f32.vlgmr.msra.gmra.mrb[64].mxu1 %vm575_vm0, %v3629_v60 }
0x177b   :  { %11480 = vmatpush3.bf16.xpose.msk.msra.mxu1 %vm13293_vm1, %v11475_v30 }
0x177c   :  { %11483 = vmatprep.subr.msk.bf16.mxu1 %vm13293_vm1, %v11481_v33 }
0x1783   :  { %11486 = vmatpush3.bf16.xpose.msk.msra.mxu1 %vm13293_vm1, %v11481_v33 }
0x1799   :  { %v3620_v35 = vpop.xlane.xlu0 %3619 }
0x179a   :  { %12703 = vrcp.f32 %v3620_v35 }
0x179d   :  { %v3742_v37 = vpop.permute.xlu0 %3741 }
0x17a0   :  { %v3623_v63 = vpop.xlane.xlu1 %3622 }
0x17a1   :  { %12705 = vrcp.f32 %v3623_v63  ;;  %v3746_v53 = vpop.permute.xlu0 %3745 }
0x17a4   :  { %v12704_v47 = vpop.eup %12703  ;;  %v3744_v52 = vpop.permute.xlu1 %3743 }
0x17a5   :  { %v3630_v1 = vmul.f32 %v12704_v47, %v12696_v18 }
0x17a7   :  { %10980 = vmatprep.mubr.msk.f32.mxu1 %vm575_vm0, %v3630_v1 }
0x17a8   :  { %v3748_v5 = vpop.permute.xlu1 %3747 }
0x17ab   :  { %v12706_v36 = vpop.eup %12705 }
0x17ac   :  { %v3631_v49 = vmul.f32 %v12706_v36, %v12698_v6 }
0x17ae   :  { %10981 = vmatmul.mubr.msk.f32.gmra.mrb[66].mxu1 %vm575_vm0, %v3631_v49 }
0x17af   :  { %10991 = vmatprep.mubr.msk.f32.mxu1 %vm575_vm0, %v3742_v37 }
0x17b2   :  { %10992 = vmatmul.mubr.msk.f32.vlgmr.msra.gmra.mrb[68].mxu1 %vm575_vm0, %v3744_v52 }
0x17b3   :  { %10994 = vmatprep.mubr.msk.f32.mxu1 %vm575_vm0, %v3746_v53 }
0x17b6   :  { %10995 = vmatmul.mubr.msk.f32.gmra.mrb[70].mxu1 %vm575_vm0, %v3748_v5 }
0x17b7   :  { %4466 = vmatprep.mubr.bf16.mxu1 %v13130_v39 }
0x1848   :  { %v10979_v54 = vpop.f32.mrb[64].mxu1 }
0x1849   :  { %v3722_v56 = vpop.f32.mrb[65].mxu1 }
0x184a   :  { %v11827_v57 = vpack.i.bf16 %v10979_v54, %v3722_v56 }
0x1881   :  { %v10982_v58 = vpop.f32.mrb[66].mxu1 }
0x1882   :  { %v3732_v3 = vpop.f32.mrb[67].mxu1 }
0x1883   :  { %v11832_v7 = vpack.i.bf16 %v10982_v58, %v3732_v3  ;;  %v12211_v3 = vld [vmem:[#allocation4 + $0x40] sm:$0xff]  }
0x1885   :  { %v10993_v15 = vpop.f32.mrb[68].mxu1 }
0x1886   :  { %v3859_v62 = vmul.f32 0.17677669, %v10993_v15  ;;  %v3839_v34 = vpop.f32.mrb[69].mxu1  ;;  %v12213_v15 = vld [vmem:[#allocation4 + $0x50] sm:$0xff]  }
0x1887   :  { %v3858_v9 = vmul.f32 0.17677669, %v3839_v34  ;;  %v12215_v34 = vld [vmem:[#allocation4 + $0x60] sm:$0xff]  }
0x1888   :  { %v3863_v18 = vadd.f32 %v13738_v50, %v3859_v62  ;;  %v12214_v62 = vld [vmem:[#allocation4 + $0x58] sm:$0xff]  }
0x1889   :  { %v3862_v38 = vadd.f32 %v13744_v0, %v3858_v9  ;;  %v10996_v6 = vpop.f32.mrb[70].mxu1  ;;  %v12216_v9 = vld [vmem:[#allocation4 + $0x68] sm:$0xff]  }
0x188a   :  { %v3849_v4 = vpop.f32.mrb[71].mxu1  ;;  %v3869_v11 = vsel %vm575_vm0, %v3863_v18, -inf  ;;  %v3861_v2 = vmul.f32 0.17677669, %v10996_v6 }
0x188b   :  { %v3860_v8 = vmul.f32 0.17677669, %v3849_v4  ;;  %3870 = vmax.xlane.f32.xlu1 %v3869_v11  ;;  %v3866_v27 = vsel %vm575_vm0, %v3862_v38, -inf }
0x188c   :  { %3867 = vmax.xlane.f32.xlu0 %v3866_v27  ;;  %v3865_v12 = vadd.f32 %v13752_v41, %v3861_v2 }
0x188d   :  { %v3864_v10 = vadd.f32 %v13758_v45, %v3860_v8 }
0x188e   :  { %v3875_v50 = vsel %vm575_vm0, %v3865_v12, -inf }
0x188f   :  { %v3872_v21 = vsel %vm575_vm0, %v3864_v10, -inf }
0x1890   :  { %3873 = vmax.xlane.f32.xlu0 %v3872_v21 }
0x1894   :  { %3876 = vmax.xlane.f32.xlu0 %v3875_v50 }
0x1918   :  { %v3871_v0 = vpop.xlane.xlu1 %3870 }
0x1919   :  { %v3879_v22 = vsub.f32 %v3863_v18, %v3871_v0  ;;  %v3868_v51 = vpop.xlane.xlu0 %3867  ;;  %v12217_v18 = vld [vmem:[#allocation4 + $0x70] sm:$0xff]  }
0x191a   :  { %v3878_v24 = vsub.f32 %v3862_v38, %v3868_v51  ;;  %v12218_v38 = vld [vmem:[#allocation4 + $0x78] sm:$0xff]  }
0x191b   :  { %v3884_v13 = vmul.f32 1.442695, %v3879_v22 }
0x191c   :  { %v3882_v55 = vmul.f32 1.442695, %v3878_v24 }
0x191d   :  { %12707 = vpow2.f32 %v3884_v13  ;;  %v3874_v25 = vpop.xlane.xlu0 %3873 }
0x191e   :  { %12709 = vpow2.f32 %v3882_v55  ;;  %v3880_v23 = vsub.f32 %v3864_v10, %v3874_v25 }
0x1920   :  { %v3886_v20 = vmul.f32 1.442695, %v3880_v23 }
0x1921   :  { %v3877_v45 = vpop.xlane.xlu0 %3876 }
0x1922   :  { %12711 = vpow2.f32 %v3886_v20  ;;  %v3881_v41 = vsub.f32 %v3865_v12, %v3877_v45 }
0x1924   :  { %v3888_v59 = vmul.f32 1.442695, %v3881_v41 }
0x1926   :  { %12713 = vpow2.f32 %v3888_v59 }
0x1927   :  { %v12708_v30 = vpop.eup %12707 }
0x1928   :  { %v12710_v60 = vpop.eup %12709  ;;  %v3893_v61 = vsel %vm575_vm0, %v12708_v30, 0.0 }
0x1929   :  { %3894 = vadd.xlane.f32.xlu1 %v3893_v61  ;;  %v3890_v31 = vsel %vm575_vm0, %v12710_v60, 0.0 }
0x192a   :  { %3891 = vadd.xlane.f32.xlu0 %v3890_v31 }
0x192c   :  { %v12712_v32 = vpop.eup %12711 }
0x192d   :  { %v3896_v33 = vsel %vm575_vm0, %v12712_v32, 0.0 }
0x192e   :  { %3897 = vadd.xlane.f32.xlu0 %v3896_v33 }
0x1930   :  { %v12714_v35 = vpop.eup %12713 }
0x1931   :  { %v3899_v63 = vsel %vm575_vm0, %v12714_v35, 0.0 }
0x1932   :  { %3900 = vadd.xlane.f32.xlu1 %v3899_v63 }
0x1943   :  { %11813 = vrot.lane.b32.xlu1 %v13731_v26, %s13132_s28 }
0x1944   :  { %11808 = vrot.lane.b32.xlu0 %v13733_v42, %s13132_s28 }
0x1947   :  { %11818 = vrot.lane.b32.xlu1 %v11817_v28, %s13132_s28 }
0x1948   :  { %11828 = vrot.lane.b32.xlu0 %v11827_v57, %s13122_s13 }
0x194b   :  { %11823 = vrot.lane.b32.xlu1 %v11822_v19, %s13132_s28 }
0x194f   :  { %11833 = vrot.lane.b32.xlu1 %v11832_v7, %s13122_s13  ;;  %v12212_v7 = vld [vmem:[#allocation4 + $0x48] sm:$0xff]  }
0x19b6   :  { %v3895_v26 = vpop.xlane.xlu1 %3894 }
0x19b7   :  { %v3892_v47 = vpop.xlane.xlu0 %3891 }
0x19b8   :  { %12715 = vrcp.f32 %v3892_v47 }
0x19b9   :  { %12717 = vrcp.f32 %v3895_v26 }
0x19bb   :  { %v3898_v1 = vpop.xlane.xlu0 %3897 }
0x19bc   :  { %12719 = vrcp.f32 %v3898_v1 }
0x19bf   :  { %v3901_v42 = vpop.xlane.xlu1 %3900  ;;  %v11809_v36 = vpop.permute.xlu0 %11808 }
0x19c0   :  { %v11811_v37 = vunpack.i.h.bf16 %v11809_v36  ;;  %v11810_v14 = vunpack.i.l.bf16 %v11809_v36  ;;  %12721 = vrcp.f32 %v3901_v42 }
0x19c2   :  { %v12716_v29 = vpop.eup %12715  ;;  %v11487_v28 = vpack.c.bf16 %v11811_v37, %v11810_v14  ;;  %v12219_v14 = vld [vmem:[#allocation6 + $0x100] ss:$16 sps:$4 sm:$0xff]  }
0x19c3   :  { %v11814_v49 = vpop.permute.xlu1 %11813  ;;  %v3906_v52 = vmul.f32 %v12716_v29, %v12710_v60  ;;  %v12718_v19 = vpop.eup %12717  ;;  %v12222_v29 = vld [vmem:[#allocation6 + $0x108] ss:$16 sps:$4 sm:$0xff]  }
0x19c4   :  { %v11816_v53 = vunpack.i.h.bf16 %v11814_v49  ;;  %v11815_v16 = vunpack.i.l.bf16 %v11814_v49  ;;  %11488 = vmatprep.subr.bf16.mxu0 %v11487_v28  ;;  %v3907_v54 = vmul.f32 %v12718_v19, %v12708_v30  ;;  %v11829_v0 = vpop.permute.xlu0 %11828  ;;  %v12230_v49 = vld [vmem:[#allocation6 + $0x12c] ss:$16 sps:$4 sm:$0xff]   ;;  %v12231_v19 = vld [vmem:[#allocation6 + $0x140] ss:$16 sps:$4 sm:$0xff]  }
0x19c5   :  { %11490 = vmatpush3.bf16.msra.mxu0 %v11487_v28  ;;  %11005 = vmatprep.mubr.msk.f32.mxu0 %vm575_vm0, %v3906_v52  ;;  %v11831_v13 = vunpack.i.h.bf16 %v11829_v0  ;;  %v11830_v55 = vunpack.i.l.bf16 %v11829_v0  ;;  %v12224_v28 = vld [vmem:[#allocation6 + $0x10c] ss:$16 sps:$4 sm:$0xff]   ;;  %v12225_v52 = vld [vmem:[#allocation6 + $0x120] ss:$16 sps:$4 sm:$0xff]  }
0x19c6   :  { %v11491_v17 = vpack.c.bf16 %v11816_v53, %v11815_v16  ;;  %v12720_v5 = vpop.eup %12719  ;;  %v12228_v53 = vld [vmem:[#allocation6 + $0x128] ss:$16 sps:$4 sm:$0xff]   ;;  %v12233_v16 = vld [vmem:[#allocation6 + $0x144] ss:$16 sps:$4 sm:$0xff]   ;;  %v12243_v0 = vld [vmem:[#allocation6 + $0x180] ss:$16 sps:$4 sm:$0xff]  }
0x19c7   :  { %v3908_v57 = vmul.f32 %v12720_v5, %v12712_v32  ;;  %v11819_v10 = vpop.permute.xlu1 %11818  ;;  %v12234_v5 = vld [vmem:[#allocation6 + $0x148] ss:$16 sps:$4 sm:$0xff]  }
0x19c8   :  { %11492 = vmatprep.subr.bf16.mxu0 %v11491_v17  ;;  %v11821_v21 = vunpack.i.h.bf16 %v11819_v10  ;;  %v11820_v50 = vunpack.i.l.bf16 %v11819_v10  ;;  %v12237_v10 = vld [vmem:[#allocation6 + $0x160] ss:$16 sps:$4 sm:$0xff]  }
0x19c9   :  { %11494 = vmatpush3.bf16.msra.mxu0 %v11491_v17  ;;  %v12236_v17 = vld [vmem:[#allocation6 + $0x14c] ss:$16 sps:$4 sm:$0xff]  }
0x19ca   :  { %v12722_v56 = vpop.eup %12721  ;;  %11011 = vmatprep.subr.bf16.mxu0 %v12211_v3  ;;  %v4068_v22 = vsel %vm575_vm0, %v13795_v40, %v11821_v21  ;;  %v4067_v51 = vsel %vm575_vm0, %v13797_v48, %v11820_v50  ;;  %v12245_v21 = vld [vmem:[#allocation6 + $0x184] ss:$16 sps:$4 sm:$0xff]   ;;  %v12248_v50 = vld [vmem:[#allocation6 + $0x18c] ss:$16 sps:$4 sm:$0xff]  }
0x19cb   :  { %v3909_v58 = vmul.f32 %v12722_v56, %v12714_v35  ;;  %v11824_v12 = vpop.permute.xlu1 %11823  ;;  %v4071_v60 = vsel %vm1724_vm2, %v4067_v51, %v11830_v55  ;;  %v4072_v61 = vsel %vm1724_vm2, %v4068_v22, %v11831_v13  ;;  %v12246_v22 = vld [vmem:[#allocation6 + $0x188] ss:$16 sps:$4 sm:$0xff]   ;;  %v12251_v51 = vld [vmem:[#allocation6 + $0x1a4] ss:$16 sps:$4 sm:$0xff]   ;;  %v12249_v13 = vld [vmem:[#allocation6 + $0x1a0] ss:$16 sps:$4 sm:$0xff]  }
0x19cc   :  { %11006 = vmatmul.mubr.msk.f32.vlgmr.msra.gmra.mrb[56].mxu0 %vm575_vm0, %v3907_v54  ;;  %v11826_v23 = vunpack.i.h.bf16 %v11824_v12  ;;  %v11825_v20 = vunpack.i.l.bf16 %v11824_v12  ;;  %v12240_v12 = vld [vmem:[#allocation6 + $0x168] ss:$16 sps:$4 sm:$0xff]  }
0x19cd   :  { %11008 = vmatprep.mubr.msk.f32.mxu0 %vm575_vm0, %v3908_v57  ;;  %11012 = vmatpush3.bf16.msra.mxu0 %v12211_v3  ;;  %v13015_v57 = vld [vmem:[%s14892_s11] sm:$0xff]  ;;  %v12252_v55 = vld [vmem:[#allocation6 + $0x1a8] ss:$16 sps:$4 sm:$0xff]  }
0x19ce   :  { %11013 = vmatprep.subr.bf16.mxu0 %v12212_v7  ;;  %v4070_v33 = vsel %vm575_vm0, %v13799_v44, %v11826_v23  ;;  %v4069_v35 = vsel %vm575_vm0, %v13801_v46, %v11825_v20  ;;  %v12221_v44 = vld [vmem:[#allocation6 + $0x104] ss:$16 sps:$4 sm:$0xff]   ;;  %v12260_v23 = vld [vmem:[#allocation6 + $0x1cc] ss:$16 sps:$4 sm:$0xff]   ;;  %v12255_v20 = vld [vmem:[#allocation6 + $0x1c0] ss:$16 sps:$4 sm:$0xff]  }
0x19cf   :  { %v11834_v24 = vpop.permute.xlu1 %11833  ;;  %v12227_v46 = vld [vmem:[#allocation6 + $0x124] ss:$16 sps:$4 sm:$0xff]   ;;  %4434 = vmatprep.subr.bf16.mxu1 %v12221_v44  ;;  %v9801_v44 = vld [vmem:[%s14887_s6 + $0x1] ss:$0 sm:$0xff] }
0x19d0   :  { %11009 = vmatmul.mubr.msk.f32.gmra.mrb[58].mxu0 %vm575_vm0, %v3909_v58  ;;  %v11836_v59 = vunpack.i.h.bf16 %v11834_v24  ;;  %v11835_v30 = vunpack.i.l.bf16 %v11834_v24  ;;  %4435 = vmatpush1.bf16.msra.mxu1 %v12219_v14  ;;  %v12254_v24 = vld [vmem:[#allocation6 + $0x1ac] ss:$16 sps:$4 sm:$0xff]  }
0x19d1   :  { %11014 = vmatpush3.bf16.msra.mxu0 %v12212_v7  ;;  %4436 = vmatprep.subr.bf16.mxu1 %v12227_v46 }
0x19d2   :  { %11015 = vmatprep.subr.bf16.mxu0 %v12213_v15  ;;  %v4073_v26 = vsel %vm1724_vm2, %v4069_v35, %v11835_v30  ;;  %v4074_v1 = vsel %vm1724_vm2, %v4070_v33, %v11836_v59  ;;  %v12263_v59 = vld [vmem:[#allocation6 + $0x1e4] ss:$16 sps:$4 sm:$0xff]   ;;  %v12264_v30 = vld [vmem:[#allocation6 + $0x1e8] ss:$16 sps:$4 sm:$0xff]  }
0x19d4   :  { %4437 = vmatpush1.bf16.msra.mxu1 %v12225_v52 }
0x19d5   :  { %11016 = vmatpush3.bf16.msra.mxu0 %v12213_v15  ;;  %4438 = vmatprep.subr.bf16.mxu1 %v12233_v16  ;;  %v13016_v15 = vld [vmem:[%s14892_s11 + $0x10] sm:$0xff] }
0x19d6   :  { %11017 = vmatprep.subr.bf16.mxu0 %v12214_v62 }
0x19d8   :  { %4439 = vmatpush1.bf16.msra.mxu1 %v12231_v19 }
0x19d9   :  { %11018 = vmatpush3.bf16.msra.mxu0 %v12214_v62 }
0x19da   :  { %11019 = vmatprep.subr.bf16.mxu0 %v12215_v34 }
0x19dd   :  { %11020 = vmatpush3.bf16.msra.mxu0 %v12215_v34  ;;  %v13017_v34 = vld [vmem:[%s14892_s11 + $0x8] sm:$0xff] }
0x19de   :  { %11021 = vmatprep.subr.bf16.mxu0 %v12216_v9 }
0x19e1   :  { %11022 = vmatpush3.bf16.msra.mxu0 %v12216_v9 }
0x19e2   :  { %11023 = vmatprep.subr.bf16.mxu0 %v12217_v18 }
0x19e5   :  { %11024 = vmatpush3.bf16.msra.mxu0 %v12217_v18 }
0x19e6   :  { %11025 = vmatprep.subr.bf16.mxu0 %v12218_v38 }
0x19e9   :  { %11026 = vmatpush3.bf16.msra.mxu0 %v12218_v38 }
0x19ea   :  { %4487 = vmatprep.subr.bf16.mxu0 %v12224_v28 }
0x1a9f   :  { %v11007_v6 = vpop.f32.mrb[56].mxu0 }
0x1aa0   :  { %v4000_v4 = vpop.f32.mrb[57].mxu0 }
0x1aa1   :  { %v11837_v11 = vpack.i.bf16 %v11007_v6, %v4000_v4  ;;  %v13018_v6 = vld [vmem:[%s14892_s11 + $0x18] sm:$0xff] }
0x1aa3   :  { %11838 = vrot.lane.b32.xlu0 %v11837_v11, %s13131_s22  ;;  %v11010_v2 = vpop.f32.mrb[58].mxu0 }
0x1aa4   :  { %v4010_v8 = vpop.f32.mrb[59].mxu0 }
0x1aa5   :  { %v11842_v27 = vpack.i.bf16 %v11010_v2, %v4010_v8  ;;  %v12239_v8 = vld [vmem:[#allocation6 + $0x164] ss:$16 sps:$4 sm:$0xff]  }
0x1aa6   :  { %4440 = vmatprep.subr.bf16.mxu1 %v12239_v8  ;;  %v12278_v8 = vld [vmem:[%s14885_s4 + $0xa8] sm:$0xff]  }
0x1aa7   :  { %11843 = vrot.lane.b32.xlu1 %v11842_v27, %s13131_s22  ;;  %v12242_v27 = vld [vmem:[#allocation6 + $0x16c] ss:$16 sps:$4 sm:$0xff]   ;;  %4441 = vmatpush1.bf16.msra.mxu1 %v12237_v10  ;;  %v12280_v10 = vld [vmem:[%s14885_s4 + $0xb0] sm:$0xff]  }
0x1aa8   :  { %4442 = vmatprep.subr.bf16.mxu1 %v12245_v21  ;;  %v12282_v21 = vld [vmem:[%s14885_s4 + $0xb8] sm:$0xff]  }
0x1aab   :  { %4443 = vmatpush1.bf16.msra.mxu1 %v12243_v0 }
0x1aac   :  { %4444 = vmatprep.subr.bf16.mxu1 %v12251_v51 }
0x1aaf   :  { %4445 = vmatpush1.bf16.msra.mxu1 %v12249_v13 }
0x1b15   :  { %v11839_v25 = vpop.permute.xlu0 %11838 }
0x1b16   :  { %v11841_v45 = vunpack.i.h.bf16 %v11839_v25  ;;  %v11840_v41 = vunpack.i.l.bf16 %v11839_v25  ;;  %v12257_v25 = vld [vmem:[#allocation6 + $0x1c4] ss:$16 sps:$4 sm:$0xff]  }
0x1b17   :  { %4446 = vmatprep.subr.bf16.mxu1 %v12257_v25 }
0x1b18   :  { %v4075_v31 = vsel %vm1729_vm3, %v4071_v60, %v11840_v41  ;;  %v4076_v40 = vsel %vm1729_vm3, %v4072_v61, %v11841_v45  ;;  %v12258_v45 = vld [vmem:[#allocation6 + $0x1c8] ss:$16 sps:$4 sm:$0xff]   ;;  %4447 = vmatpush1.bf16.msra.mxu1 %v12255_v20  ;;  %v12261_v41 = vld [vmem:[#allocation6 + $0x1e0] ss:$16 sps:$4 sm:$0xff]   ;;  %v12266_v60 = vld [vmem:[#allocation6 + $0x1ec] ss:$16 sps:$4 sm:$0xff]  }
0x1b19   :  { %v11844_v32 = vpop.permute.xlu1 %11843  ;;  %v4079_v48 = vpack.c.bf16 %v4076_v40, %v4075_v31  ;;  %4448 = vmatprep.subr.bf16.mxu1 %v12263_v59 }
0x1b1a   :  { %v11846_v63 = vunpack.i.h.bf16 %v11844_v32  ;;  %v11845_v47 = vunpack.i.l.bf16 %v11844_v32 }
0x1b1b   :  { %11027 = vmatprep.mubr.bf16.mxu0 %v4079_v48 }
0x1b1c   :  { %v4078_v42 = vsel %vm1729_vm3, %v4074_v1, %v11846_v63  ;;  %v4077_v36 = vsel %vm1729_vm3, %v4073_v26, %v11845_v47  ;;  %4449 = vmatpush1.bf16.msra.mxu1 %v12261_v41 }
0x1b1d   :  { %v4080_v37 = vpack.c.bf16 %v4078_v42, %v4077_v36 }
0x1b1f   :  { %11028 = vmatmul.mubr.bf16.vlgmr.msra.gmra.mrb[60].mxu0 %v4080_v37 }
0x1b20   :  { %4519 = vmatprep.mubr.bf16.mxu0 %v13130_v39  ;;  %4488 = vmatpush1.bf16.msra.mxu0 %v12222_v29 }
0x1b21   :  { %4489 = vmatprep.subr.bf16.mxu0 %v12230_v49 }
0x1b24   :  { %4490 = vmatpush1.bf16.msra.mxu0 %v12228_v53 }
0x1b25   :  { %4491 = vmatprep.subr.bf16.mxu0 %v12236_v17 }
0x1b28   :  { %4492 = vmatpush1.bf16.msra.mxu0 %v12234_v5 }
0x1b29   :  { %4493 = vmatprep.subr.bf16.mxu0 %v12242_v27  ;;  %v12279_v27 = vld [vmem:[%s14885_s4 + $0xf0] sm:$0xff]  }
0x1b2c   :  { %4494 = vmatpush1.bf16.msra.mxu0 %v12240_v12  ;;  %v12281_v12 = vld [vmem:[%s14885_s4 + $0xf8] sm:$0xff]  }
0x1b2d   :  { %4495 = vmatprep.subr.bf16.mxu0 %v12248_v50 }
0x1b30   :  { %4496 = vmatpush1.bf16.msra.mxu0 %v12246_v22 }
0x1b31   :  { %4497 = vmatprep.subr.bf16.mxu0 %v12254_v24 }
0x1b34   :  { %4498 = vmatpush1.bf16.msra.mxu0 %v12252_v55 }
0x1b35   :  { %4499 = vmatprep.subr.bf16.mxu0 %v12260_v23 }
0x1b38   :  { %4500 = vmatpush1.bf16.msra.mxu0 %v12258_v45 }
0x1b39   :  { %4501 = vmatprep.subr.bf16.mxu0 %v12266_v60 }
0x1b3c   :  { %4502 = vmatpush1.bf16.msra.mxu0 %v12264_v30 }
0x1bf2   :  { %v11029_v54 = vpop.f32.mrb[60].mxu0 }
0x1bf3   :  { %v4180_v56 = vpop.f32.mrb[61].mxu0  ;;  %v13961_v62 = vadd.f32 %v13016_v15, %v11029_v54  ;;  %v12271_v15 = vld [vmem:[%s14885_s4 + $0xd0] sm:$0xff]  }
0x1bf4   :  { %v13956_v58 = vadd.f32 %v13015_v57, %v4180_v56  ;;  %v11030_v3 = vpop.f32.mrb[62].mxu0  ;;  %v12267_v56 = vld [vmem:[%s14885_s4 + $0xc0] sm:$0xff]  }
0x1bf5   :  { %v4183_v7 = vpop.f32.mrb[63].mxu0  ;;  %v13975_v4 = vadd.f32 %v13018_v6, %v11030_v3  ;;  %v4203_v11 = vmul.f32 %v13961_v62, %v13961_v62  ;;  %v12268_v57 = vld [vmem:[%s14885_s4 + $0x80] sm:$0xff]   ;;  %10475 = vmatprep.subr.bf16.mxu1 %v12267_v56  ;;  %v12269_v3 = vld [vmem:[%s14885_s4 + $0xc8] sm:$0xff]  }
0x1bf6   :  { %v13966_v9 = vadd.f32 %v13017_v34, %v4183_v7  ;;  %v4201_v18 = vmul.f32 %v13956_v58, %v13956_v58  ;;  %v12270_v7 = vld [vmem:[%s14885_s4 + $0x88] sm:$0xff]   ;;  %v12272_v34 = vld [vmem:[%s14885_s4 + $0x90] sm:$0xff]   ;;  %v12275_v6 = vld [vmem:[%s14885_s4 + $0xe0] sm:$0xff]  }
0x1bf7   :  { %v4204_v2 = vmul.f32 %v13975_v4, %v13975_v4 }
0x1bf8   :  { %4205 = vadd.xlane.f32.xlu0 %v4201_v18  ;;  %v4202_v38 = vmul.f32 %v13966_v9, %v13966_v9  ;;  %v12273_v18 = vld [vmem:[%s14885_s4 + $0xd8] sm:$0xff]  }
0x1bfa   :  { %4207 = vadd.xlane.f32.xlu1 %v4202_v38  ;;  %v12274_v38 = vld [vmem:[%s14885_s4 + $0x98] sm:$0xff]  }
0x1bfc   :  { %4209 = vadd.xlane.f32.xlu0 %v4203_v11  ;;  %v12276_v11 = vld [vmem:[%s14885_s4 + $0xa0] sm:$0xff]  }
0x1c00   :  { %4211 = vadd.xlane.f32.xlu0 %v4204_v2  ;;  %v12277_v2 = vld [vmem:[%s14885_s4 + $0xe8] sm:$0xff]  }
0x1c85   :  { %v4206_v61 = vpop.xlane.xlu0 %4205 }
0x1c86   :  { %v4213_v31 = vmul.f32 0.0078125, %v4206_v61 }
0x1c87   :  { %v4208_v40 = vpop.xlane.xlu1 %4207 }
0x1c88   :  { %v4217_v32 = vadd.f32 1e-06, %v4213_v31  ;;  %v4214_v48 = vmul.f32 0.0078125, %v4208_v40 }
0x1c89   :  { %v4210_v33 = vpop.xlane.xlu0 %4209 }
0x1c8a   :  { %12723 = vrsqrt.f32 %v4217_v32  ;;  %v4218_v35 = vadd.f32 1e-06, %v4214_v48  ;;  %v4215_v63 = vmul.f32 0.0078125, %v4210_v33 }
0x1c8c   :  { %12725 = vrsqrt.f32 %v4218_v35  ;;  %v4219_v47 = vadd.f32 1e-06, %v4215_v63 }
0x1c8d   :  { %v4212_v26 = vpop.xlane.xlu0 %4211 }
0x1c8e   :  { %v4216_v1 = vmul.f32 0.0078125, %v4212_v26  ;;  %12727 = vrsqrt.f32 %v4219_v47 }
0x1c90   :  { %v4220_v42 = vadd.f32 1e-06, %v4216_v1 }
0x1c92   :  { %12729 = vrsqrt.f32 %v4220_v42 }
0x1c94   :  { %v12724_v36 = vpop.eup %12723 }
0x1c95   :  { %v4225_v37 = vmul.f32 %v12724_v36, %v13956_v58 }
0x1c96   :  { %v12726_v14 = vpop.eup %12725 }
0x1c97   :  { %v4226_v29 = vmul.f32 %v12726_v14, %v13966_v9  ;;  %v4235_v28 = vmul.f32 %v9801_v44, %v4225_v37 }
0x1c98   :  { %v12728_v49 = vpop.eup %12727 }
0x1c99   :  { %v4236_v46 = vmul.f32 %v9801_v44, %v4226_v29  ;;  %v4227_v16 = vmul.f32 %v12728_v49, %v13961_v62 }
0x1c9b   :  { %v4239_v52 = vpack.c.bf16 %v4236_v46, %v4235_v28  ;;  %v4237_v5 = vmul.f32 %v9801_v44, %v4227_v16 }
0x1c9c   :  { %v12730_v53 = vpop.eup %12729 }
0x1c9d   :  { %4467 = vmatmul.mubr.bf16.vlgmr.msra.gmra.mrb[72].mxu1 %v4239_v52  ;;  %4520 = vmatmul.mubr.bf16.vlgmr.msra.gmra.mrb[64].mxu0 %v4239_v52  ;;  %v4228_v17 = vmul.f32 %v12730_v53, %v13975_v4 }
0x1c9e   :  { %4476 = vmatprep.mubr.bf16.mxu1 %v13130_v39  ;;  %4529 = vmatprep.mubr.bf16.mxu0 %v13130_v39 }
0x1c9f   :  { %v4238_v19 = vmul.f32 %v9801_v44, %v4228_v17  ;;  %10476 = vmatpush3.bf16.msra.mxu1 %v12268_v57 }
0x1ca0   :  { %10477 = vmatprep.subr.bf16.mxu1 %v12269_v3 }
0x1ca1   :  { %v4240_v54 = vpack.c.bf16 %v4238_v19, %v4237_v5 }
0x1ca3   :  { %10478 = vmatpush3.bf16.msra.mxu1 %v12270_v7 }
0x1ca4   :  { %10479 = vmatprep.subr.bf16.mxu1 %v12271_v15 }
0x1ca5   :  { %4477 = vmatmul.mubr.bf16.gmra.mrb[76].mxu1 %v4240_v54  ;;  %4530 = vmatmul.mubr.bf16.gmra.mrb[68].mxu0 %v4240_v54 }
0x1ca6   :  { %5126 = vmatprep.mubr.bf16.mxu0 %v13130_v39 }
0x1ca7   :  { %10480 = vmatpush3.bf16.msra.mxu1 %v12272_v34 }
0x1ca8   :  { %10481 = vmatprep.subr.bf16.mxu1 %v12273_v18 }
0x1cab   :  { %10482 = vmatpush3.bf16.msra.mxu1 %v12274_v38 }
0x1cac   :  { %10483 = vmatprep.subr.bf16.mxu1 %v12275_v6 }
0x1caf   :  { %10484 = vmatpush3.bf16.msra.mxu1 %v12276_v11 }
0x1cb0   :  { %10485 = vmatprep.subr.bf16.mxu1 %v12277_v2 }
0x1cb3   :  { %10486 = vmatpush3.bf16.msra.mxu1 %v12278_v8 }
0x1cb4   :  { %10487 = vmatprep.subr.bf16.mxu1 %v12279_v27 }
0x1cb7   :  { %10488 = vmatpush3.bf16.msra.mxu1 %v12280_v10 }
0x1cb8   :  { %10489 = vmatprep.subr.bf16.mxu1 %v12281_v12 }
0x1cbb   :  { %10490 = vmatpush3.bf16.msra.mxu1 %v12282_v21 }
0x1d70   :  { %v4468_v50 = vpop.f32.mrb[72].mxu1  ;;  %v4521_v0 = vpop.f32.mrb[64].mxu0 }
0x1d71   :  { %v9834_v22 = vmul.f32 -1.442695, %v4468_v50  ;;  %v4470_v51 = vpop.f32.mrb[73].mxu1  ;;  %v4523_v24 = vpop.f32.mrb[65].mxu0 }
0x1d72   :  { %v9835_v13 = vmul.f32 -1.442695, %v4470_v51  ;;  %v4472_v55 = vpop.f32.mrb[74].mxu1  ;;  %v4525_v25 = vpop.f32.mrb[66].mxu0 }
0x1d73   :  { %12731 = vpow2.f32 %v9834_v22  ;;  %v9836_v23 = vmul.f32 -1.442695, %v4472_v55  ;;  %v4474_v20 = vpop.f32.mrb[75].mxu1  ;;  %v4527_v45 = vpop.f32.mrb[67].mxu0 }
0x1d74   :  { %12733 = vpow2.f32 %v9835_v13  ;;  %v9837_v41 = vmul.f32 -1.442695, %v4474_v20 }
0x1d75   :  { %12735 = vpow2.f32 %v9836_v23 }
0x1d76   :  { %12737 = vpow2.f32 %v9837_v41 }
0x1d78   :  { %v4478_v59 = vpop.f32.mrb[76].mxu1  ;;  %v4531_v30 = vpop.f32.mrb[68].mxu0 }
0x1d79   :  { %v9838_v60 = vmul.f32 -1.442695, %v4478_v59  ;;  %v4480_v61 = vpop.f32.mrb[77].mxu1  ;;  %v4533_v31 = vpop.f32.mrb[69].mxu0 }
0x1d7a   :  { %v9839_v40 = vmul.f32 -1.442695, %v4480_v61  ;;  %v4482_v32 = vpop.f32.mrb[78].mxu1  ;;  %v4535_v48 = vpop.f32.mrb[70].mxu0 }
0x1d7b   :  { %12739 = vpow2.f32 %v9838_v60  ;;  %v9840_v33 = vmul.f32 -1.442695, %v4482_v32  ;;  %v4484_v35 = vpop.f32.mrb[79].mxu1  ;;  %v4537_v63 = vpop.f32.mrb[71].mxu0  ;;  %v12288_v60 = vld [vmem:[#allocation2 + $0x28c] ss:$20 sps:$4 sm:$0xff]  }
0x1d7c   :  { %12741 = vpow2.f32 %v9839_v40  ;;  %v9841_v47 = vmul.f32 -1.442695, %v4484_v35  ;;  %v12294_v40 = vld [vmem:[#allocation2 + $0x2b4] ss:$20 sps:$4 sm:$0xff]   ;;  %5147 = vmatprep.subr.bf16.mxu1 %v12288_v60 }
0x1d7d   :  { %v12732_v26 = vpop.eup %12731  ;;  %12743 = vpow2.f32 %v9840_v33  ;;  %v12295_v33 = vld [vmem:[#allocation2 + $0x2d0] ss:$20 sps:$4 sm:$0xff]  }
0x1d7e   :  { %v12734_v1 = vpop.eup %12733  ;;  %v4564_v42 = vadd.f32 1.0, %v12732_v26  ;;  %12745 = vpow2.f32 %v9841_v47 }
0x1d7f   :  { %v12736_v36 = vpop.eup %12735  ;;  %v4565_v37 = vadd.f32 1.0, %v12734_v1 }
0x1d80   :  { %v12738_v14 = vpop.eup %12737  ;;  %12747 = vrcp.f32 %v4564_v42  ;;  %v4566_v44 = vadd.f32 1.0, %v12736_v36 }
0x1d81   :  { %12749 = vrcp.f32 %v4565_v37  ;;  %v4567_v29 = vadd.f32 1.0, %v12738_v14 }
0x1d82   :  { %12751 = vrcp.f32 %v4566_v44 }
0x1d83   :  { %12753 = vrcp.f32 %v4567_v29 }
0x1d85   :  { %v12740_v28 = vpop.eup %12739 }
0x1d86   :  { %v12742_v46 = vpop.eup %12741  ;;  %v4568_v49 = vadd.f32 1.0, %v12740_v28 }
0x1d87   :  { %v12744_v52 = vpop.eup %12743  ;;  %v4569_v53 = vadd.f32 1.0, %v12742_v46 }
0x1d88   :  { %v12746_v16 = vpop.eup %12745  ;;  %12755 = vrcp.f32 %v4568_v49  ;;  %v4570_v17 = vadd.f32 1.0, %v12744_v52 }
0x1d89   :  { %12757 = vrcp.f32 %v4569_v53  ;;  %v4571_v19 = vadd.f32 1.0, %v12746_v16 }
0x1d8a   :  { %v12748_v5 = vpop.eup %12747  ;;  %12759 = vrcp.f32 %v4570_v17 }
0x1d8b   :  { %v12750_v54 = vpop.eup %12749  ;;  %v4588_v56 = vmul.f32 %v12748_v5, %v4468_v50  ;;  %12761 = vrcp.f32 %v4571_v19  ;;  %v12303_v19 = vld [vmem:[#allocation2 + $0x2fc] ss:$20 sps:$4 sm:$0xff]   ;;  %v12301_v5 = vld [vmem:[#allocation2 + $0x2f8] ss:$20 sps:$4 sm:$0xff]  }
0x1d8c   :  { %v12752_v57 = vpop.eup %12751  ;;  %v4589_v3 = vmul.f32 %v12750_v54, %v4470_v51  ;;  %v12306_v54 = vld [vmem:[#allocation2 + $0x304] ss:$20 sps:$4 sm:$0xff]  }
0x1d8d   :  { %v12754_v7 = vpop.eup %12753  ;;  %v4596_v15 = vmul.f32 %v4588_v56, %v4521_v0  ;;  %v4590_v34 = vmul.f32 %v12752_v57, %v4472_v55  ;;  %v12304_v56 = vld [vmem:[#allocation2 + $0x300] ss:$20 sps:$4 sm:$0xff]  }
0x1d8e   :  { %v4597_v18 = vmul.f32 %v4589_v3, %v4523_v24  ;;  %v4591_v38 = vmul.f32 %v12754_v7, %v4474_v20  ;;  %v12307_v57 = vld [vmem:[#allocation2 + $0x320] ss:$20 sps:$4 sm:$0xff]   ;;  %v12310_v7 = vld [vmem:[#allocation2 + $0x328] ss:$20 sps:$4 sm:$0xff]  }
0x1d8f   :  { %v4598_v6 = vmul.f32 %v4590_v34, %v4525_v25  ;;  %v12283_v25 = vld [vmem:[#allocation2 + $0x280] ss:$20 sps:$4 sm:$0xff]   ;;  %v12313_v34 = vld [vmem:[#allocation2 + $0x348] ss:$20 sps:$4 sm:$0xff]  }
0x1d90   :  { %v4599_v11 = vmul.f32 %v4591_v38, %v4527_v45  ;;  %v12285_v45 = vld [vmem:[#allocation2 + $0x284] ss:$20 sps:$4 sm:$0xff]   ;;  %v12312_v3 = vld [vmem:[#allocation2 + $0x32c] ss:$20 sps:$4 sm:$0xff]  }
0x1d91   :  { %v4604_v2 = vpack.c.bf16 %v4598_v6, %v4596_v15  ;;  %5094 = vmatprep.subr.bf16.mxu0 %v12285_v45  ;;  %v12315_v15 = vld [vmem:[#allocation2 + $0x34c] ss:$20 sps:$4 sm:$0xff]   ;;  %v12316_v38 = vld [vmem:[#allocation2 + $0x350] ss:$20 sps:$4 sm:$0xff]   ;;  %v12321_v6 = vld [vmem:[#allocation2 + $0x374] ss:$20 sps:$4 sm:$0xff]  }
0x1d92   :  { %v12756_v8 = vpop.eup %12755  ;;  %v4605_v27 = vpack.c.bf16 %v4599_v11, %v4597_v18  ;;  %5095 = vmatpush1.bf16.msra.mxu0 %v12283_v25  ;;  %v12318_v18 = vld [vmem:[#allocation2 + $0x354] ss:$20 sps:$4 sm:$0xff]   ;;  %v12319_v11 = vld [vmem:[#allocation2 + $0x370] ss:$20 sps:$4 sm:$0xff]  }
0x1d93   :  { %v12758_v10 = vpop.eup %12757  ;;  %v4592_v12 = vmul.f32 %v12756_v8, %v4478_v59  ;;  %v12286_v59 = vld [vmem:[#allocation2 + $0x288] ss:$20 sps:$4 sm:$0xff]   ;;  %v12322_v8 = vld [vmem:[#allocation2 + $0x378] ss:$20 sps:$4 sm:$0xff]  }
0x1d94   :  { %v12760_v21 = vpop.eup %12759  ;;  %v4593_v22 = vmul.f32 %v12758_v10, %v4480_v61  ;;  %4769 = vmatprep.mubr.bf16.mxu1 %v4605_v27  ;;  %v12291_v61 = vld [vmem:[#allocation2 + $0x2ac] ss:$20 sps:$4 sm:$0xff]   ;;  %v12327_v27 = vld [vmem:[#allocation2 + $0x39c] ss:$20 sps:$4 sm:$0xff]  }
0x1d95   :  { %v12762_v13 = vpop.eup %12761  ;;  %v4600_v50 = vmul.f32 %v4592_v12, %v4531_v30  ;;  %v4594_v23 = vmul.f32 %v12760_v21, %v4482_v32  ;;  %4770 = vmatmul.mubr.bf16.vlgmr.msra.gmra.mrb[80].mxu1 %v4604_v2  ;;  %v12289_v30 = vld [vmem:[#allocation2 + $0x2a8] ss:$20 sps:$4 sm:$0xff]   ;;  %5096 = vmatprep.subr.bf16.mxu0 %v12291_v61  ;;  %v12325_v10 = vld [vmem:[#allocation2 + $0x398] ss:$20 sps:$4 sm:$0xff]   ;;  %v12328_v12 = vld [vmem:[#allocation2 + $0x3a0] ss:$20 sps:$4 sm:$0xff]  }
0x1d96   :  { %v4601_v51 = vmul.f32 %v4593_v22, %v4533_v31  ;;  %v4595_v41 = vmul.f32 %v12762_v13, %v4484_v35  ;;  %5148 = vmatpush1.bf16.msra.mxu1 %v12286_v59  ;;  %v12292_v31 = vld [vmem:[#allocation2 + $0x2b0] ss:$20 sps:$4 sm:$0xff]   ;;  %v12297_v32 = vld [vmem:[#allocation2 + $0x2d4] ss:$20 sps:$4 sm:$0xff]   ;;  %5097 = vmatpush1.bf16.msra.mxu0 %v12289_v30  ;;  %v12298_v35 = vld [vmem:[#allocation2 + $0x2d8] ss:$20 sps:$4 sm:$0xff]  }
0x1d97   :  { %v4602_v0 = vmul.f32 %v4594_v23, %v4535_v48  ;;  %5149 = vmatprep.subr.bf16.mxu1 %v12294_v40  ;;  %v12300_v48 = vld [vmem:[#allocation2 + $0x2dc] ss:$20 sps:$4 sm:$0xff]   ;;  %5098 = vmatprep.subr.bf16.mxu0 %v12297_v32  ;;  %v12330_v21 = vld [vmem:[#allocation2 + $0x3a4] ss:$20 sps:$4 sm:$0xff]   ;;  %v9895_v30 = vld [vmem:[%s14886_s5 + $0x2] ss:$0 sm:$0xff] }
0x1d98   :  { %v4603_v55 = vmul.f32 %v4595_v41, %v4537_v63  ;;  %v12324_v2 = vld [vmem:[#allocation2 + $0x37c] ss:$20 sps:$4 sm:$0xff]  }
0x1d99   :  { %v4606_v24 = vpack.c.bf16 %v4602_v0, %v4600_v50  ;;  %v12331_v22 = vld [vmem:[#allocation2 + $0x290] ss:$20 sps:$4 sm:$0xff]  }
0x1d9a   :  { %v4607_v20 = vpack.c.bf16 %v4603_v55, %v4601_v51  ;;  %5150 = vmatpush1.bf16.msra.mxu1 %v12292_v31  ;;  %5099 = vmatpush1.bf16.msra.mxu0 %v12295_v33 }
0x1d9b   :  { %5151 = vmatprep.subr.bf16.mxu1 %v12300_v48  ;;  %5100 = vmatprep.subr.bf16.mxu0 %v12303_v19  ;;  %v13020_v19 = vld [vmem:[%s14890_s9] sm:$0xff] }
0x1d9c   :  { %4777 = vmatprep.mubr.bf16.mxu1 %v4607_v20 }
0x1d9d   :  { %4778 = vmatmul.mubr.bf16.gmra.mrb[84].mxu1 %v4606_v24 }
0x1d9e   :  { %5179 = vmatprep.mubr.bf16.mxu1 %v13130_v39  ;;  %5152 = vmatpush1.bf16.msra.mxu1 %v12298_v35  ;;  %v12332_v35 = vld [vmem:[#allocation2 + $0x2b8] ss:$20 sps:$4 sm:$0xff]  }
0x1d9f   :  { %5101 = vmatpush1.bf16.msra.mxu0 %v12301_v5  ;;  %5153 = vmatprep.subr.bf16.mxu1 %v12306_v54 }
0x1da2   :  { %5154 = vmatpush1.bf16.msra.mxu1 %v12304_v56 }
0x1da3   :  { %5155 = vmatprep.subr.bf16.mxu1 %v12312_v3 }
0x1da6   :  { %5156 = vmatpush1.bf16.msra.mxu1 %v12310_v7 }
0x1da7   :  { %5157 = vmatprep.subr.bf16.mxu1 %v12318_v18 }
0x1daa   :  { %5158 = vmatpush1.bf16.msra.mxu1 %v12316_v38 }
0x1dab   :  { %5159 = vmatprep.subr.bf16.mxu1 %v12324_v2 }
0x1dae   :  { %5160 = vmatpush1.bf16.msra.mxu1 %v12322_v8 }
0x1daf   :  { %5161 = vmatprep.subr.bf16.mxu1 %v12330_v21 }
0x1db2   :  { %5162 = vmatpush1.bf16.msra.mxu1 %v12328_v12 }
0x1e68   :  { %v10491_v63 = vpop.f32.mrb[80].mxu1 }
0x1e69   :  { %v10492_v47 = vpop.f32.mrb[81].mxu1 }
0x1e6a   :  { %v10493_v26 = vadd.f32 %v10492_v47, %v10491_v63  ;;  %v10494_v1 = vpop.f32.mrb[82].mxu1 }
0x1e6b   :  { %v10495_v42 = vpop.f32.mrb[83].mxu1 }
0x1e6c   :  { %v14041_v36 = vadd.f32 %v10493_v26, %v13956_v58  ;;  %v10496_v37 = vadd.f32 %v10495_v42, %v10494_v1  ;;  %v12333_v1 = vld [vmem:[#allocation2 + $0x2e0] ss:$20 sps:$4 sm:$0xff]  }
0x1e6e   :  { %9890 = vst [vmem:[%s14892_s11 + $0x20] sm:$0xff] %v14041_v36  ;;  %v14048_v14 = vadd.f32 %v10496_v37, %v13966_v9  ;;  %v4797_v44 = vmul.f32 %v14041_v36, %v14041_v36 }
0x1e70   :  { %9891 = vst [vmem:[%s14892_s11 + $0x28] sm:$0xff] %v14048_v14  ;;  %4801 = vadd.xlane.f32.xlu0 %v4797_v44  ;;  %v10497_v58 = vpop.f32.mrb[84].mxu1  ;;  %v4798_v29 = vmul.f32 %v14048_v14, %v14048_v14  ;;  %v12334_v44 = vld [vmem:[#allocation2 + $0x308] ss:$20 sps:$4 sm:$0xff]  }
0x1e71   :  { %v10498_v28 = vpop.f32.mrb[85].mxu1 }
0x1e72   :  { %v10499_v46 = vadd.f32 %v10498_v28, %v10497_v58  ;;  %4803 = vadd.xlane.f32.xlu1 %v4798_v29  ;;  %v10500_v49 = vpop.f32.mrb[86].mxu1  ;;  %v12335_v58 = vld [vmem:[#allocation2 + $0x330] ss:$20 sps:$4 sm:$0xff]   ;;  %v12336_v29 = vld [vmem:[#allocation2 + $0x358] ss:$20 sps:$4 sm:$0xff]  }
0x1e73   :  { %v10501_v52 = vpop.f32.mrb[87].mxu1  ;;  %v12337_v28 = vld [vmem:[#allocation2 + $0x380] ss:$20 sps:$4 sm:$0xff]  }
0x1e74   :  { %v14059_v9 = vadd.f32 %v10499_v46, %v13961_v62  ;;  %v10502_v53 = vadd.f32 %v10501_v52, %v10500_v49  ;;  %v12338_v46 = vld [vmem:[#allocation2 + $0x3a8] ss:$20 sps:$4 sm:$0xff]  }
0x1e76   :  { %9892 = vst [vmem:[%s14892_s11 + $0x30] sm:$0xff] %v14059_v9  ;;  %v14066_v16 = vadd.f32 %v10502_v53, %v13975_v4  ;;  %v4799_v17 = vmul.f32 %v14059_v9, %v14059_v9  ;;  %v12309_v4 = vld [vmem:[#allocation2 + $0x324] ss:$20 sps:$4 sm:$0xff]  }
0x1e77   :  { %5102 = vmatprep.subr.bf16.mxu0 %v12309_v4 }
0x1e78   :  { %9893 = vst [vmem:[%s14892_s11 + $0x38] sm:$0xff] %v14066_v16  ;;  %4805 = vadd.xlane.f32.xlu0 %v4799_v17  ;;  %v4800_v62 = vmul.f32 %v14066_v16, %v14066_v16  ;;  %5103 = vmatpush1.bf16.msra.mxu0 %v12307_v57  ;;  %v13021_v57 = vld [vmem:[%s14889_s8 + $0x8] sm:$0xff] }
0x1e79   :  { %5104 = vmatprep.subr.bf16.mxu0 %v12315_v15 }
0x1e7a   :  { %4807 = vadd.xlane.f32.xlu1 %v4800_v62 }
0x1e7c   :  { %5105 = vmatpush1.bf16.msra.mxu0 %v12313_v34 }
0x1e7d   :  { %5106 = vmatprep.subr.bf16.mxu0 %v12321_v6  ;;  %v13022_v6 = vld [vmem:[%s14890_s9 + $0x8] sm:$0xff] }
0x1e80   :  { %5107 = vmatpush1.bf16.msra.mxu0 %v12319_v11 }
0x1e81   :  { %5108 = vmatprep.subr.bf16.mxu0 %v12327_v27 }
0x1e84   :  { %5109 = vmatpush1.bf16.msra.mxu0 %v12325_v10 }
0x1e85   :  { %11031 = vmatprep.subr.bf16.mxu0 %v12331_v22 }
0x1efd   :  { %v4802_v13 = vpop.xlane.xlu0 %4801 }
0x1efe   :  { %v4809_v50 = vmul.f32 0.0078125, %v4802_v13  ;;  %v13023_v13 = vld [vmem:[%s14889_s8 + $0x10] sm:$0xff] }
0x1eff   :  { %v4804_v23 = vpop.xlane.xlu1 %4803 }
0x1f00   :  { %v4813_v51 = vadd.f32 1e-06, %v4809_v50  ;;  %v4810_v41 = vmul.f32 0.0078125, %v4804_v23 }
0x1f02   :  { %12763 = vrsqrt.f32 %v4813_v51  ;;  %v4814_v0 = vadd.f32 1e-06, %v4810_v41 }
0x1f04   :  { %12765 = vrsqrt.f32 %v4814_v0  ;;  %v13024_v0 = vld [vmem:[%s14890_s9 + $0x10] sm:$0xff] }
0x1f05   :  { %v4806_v55 = vpop.xlane.xlu0 %4805 }
0x1f06   :  { %v4811_v24 = vmul.f32 0.0078125, %v4806_v55 }
0x1f07   :  { %v4808_v20 = vpop.xlane.xlu1 %4807 }
0x1f08   :  { %v4815_v25 = vadd.f32 1e-06, %v4811_v24  ;;  %v4812_v45 = vmul.f32 0.0078125, %v4808_v20 }
0x1f0a   :  { %12767 = vrsqrt.f32 %v4815_v25  ;;  %v4816_v59 = vadd.f32 1e-06, %v4812_v45  ;;  %v13025_v45 = vld [vmem:[%s14889_s8 + $0x18] sm:$0xff] }
0x1f0c   :  { %v12764_v60 = vpop.eup %12763  ;;  %12769 = vrsqrt.f32 %v4816_v59 }
0x1f0d   :  { %v4821_v61 = vmul.f32 %v12764_v60, %v14041_v36 }
0x1f0e   :  { %v12766_v40 = vpop.eup %12765 }
0x1f0f   :  { %v4822_v31 = vmul.f32 %v12766_v40, %v14048_v14  ;;  %v4831_v32 = vmul.f32 %v9895_v30, %v4821_v61 }
0x1f11   :  { %v4832_v48 = vmul.f32 %v9895_v30, %v4822_v31 }
0x1f13   :  { %v4835_v33 = vpack.c.bf16 %v4832_v48, %v4831_v32  ;;  %v13026_v32 = vld [vmem:[%s14890_s9 + $0x18] sm:$0xff] }
0x1f14   :  { %v12768_v63 = vpop.eup %12767 }
0x1f15   :  { %5127 = vmatmul.mubr.bf16.vlgmr.msra.gmra.mrb[72].mxu0 %v4835_v33  ;;  %5180 = vmatmul.mubr.bf16.vlgmr.msra.gmra.mrb[88].mxu1 %v4835_v33  ;;  %v4823_v47 = vmul.f32 %v12768_v63, %v14059_v9  ;;  %v13019_v9 = vld [vmem:[%s14889_s8] sm:$0xff] }
0x1f16   :  { %v12770_v26 = vpop.eup %12769  ;;  %11032 = vmatpush3.bf16.msra.mxu0 %v12331_v22  ;;  %5136 = vmatprep.mubr.bf16.mxu0 %v13130_v39 }
0x1f17   :  { %11033 = vmatprep.subr.bf16.mxu0 %v12332_v35  ;;  %5189 = vmatprep.mubr.bf16.mxu1 %v13130_v39  ;;  %v4824_v42 = vmul.f32 %v12770_v26, %v14066_v16  ;;  %v4833_v36 = vmul.f32 %v9895_v30, %v4823_v47 }
0x1f19   :  { %v4834_v37 = vmul.f32 %v9895_v30, %v4824_v42 }
0x1f1a   :  { %11034 = vmatpush3.bf16.msra.mxu0 %v12332_v35 }
0x1f1b   :  { %11035 = vmatprep.subr.bf16.mxu0 %v12333_v1  ;;  %v4836_v14 = vpack.c.bf16 %v4834_v37, %v4833_v36 }
0x1f1d   :  { %5137 = vmatmul.mubr.bf16.gmra.mrb[76].mxu0 %v4836_v14  ;;  %5190 = vmatmul.mubr.bf16.gmra.mrb[92].mxu1 %v4836_v14 }
0x1f1e   :  { %11036 = vmatpush3.bf16.msra.mxu0 %v12333_v1  ;;  %11047 = vmatprep.mubr.bf16.mxu0 %v4835_v33 }
0x1f1f   :  { %11037 = vmatprep.subr.bf16.mxu0 %v12334_v44 }
0x1f22   :  { %11038 = vmatpush3.bf16.msra.mxu0 %v12334_v44 }
0x1f23   :  { %11039 = vmatprep.subr.bf16.mxu0 %v12335_v58 }
0x1f26   :  { %11040 = vmatpush3.bf16.msra.mxu0 %v12335_v58 }
0x1f27   :  { %11041 = vmatprep.subr.bf16.mxu0 %v12336_v29 }
0x1f2a   :  { %11042 = vmatpush3.bf16.msra.mxu0 %v12336_v29 }
0x1f2b   :  { %11043 = vmatprep.subr.bf16.mxu0 %v12337_v28 }
0x1f2e   :  { %11044 = vmatpush3.bf16.msra.mxu0 %v12337_v28 }
0x1f2f   :  { %11045 = vmatprep.subr.bf16.mxu0 %v12338_v46 }
0x1f32   :  { %11046 = vmatpush3.bf16.msra.mxu0 %v12338_v46 }
0x1f35   :  { %11048 = vmatmul.mubr.bf16.vlgmr.msra.gmra.mrb[80].mxu0 %v4836_v14 }
0x1fe8   :  { %v5128_v49 = vpop.f32.mrb[72].mxu0  ;;  %v5181_v52 = vpop.f32.mrb[88].mxu1 }
0x1fe9   :  { %v5249_v53 = vmul.f32 %v13019_v9, %v5128_v49  ;;  %v5261_v16 = vmul.f32 %v13019_v9, %v5181_v52  ;;  %v5130_v17 = vpop.f32.mrb[73].mxu0  ;;  %v5183_v62 = vpop.f32.mrb[89].mxu1  ;;  %v14144_v9 = vld [vmem:[%s14891_s10 + $0x8] sm:$0xff] }
0x1fea   :  { %v5253_v5 = vmul.f32 %v13020_v19, %v5130_v17  ;;  %v5265_v54 = vmul.f32 %v13020_v19, %v5183_v62  ;;  %v5132_v56 = vpop.f32.mrb[74].mxu0  ;;  %v5185_v4 = vpop.f32.mrb[90].mxu1 }
0x1feb   :  { %v5250_v3 = vmul.f32 %v13021_v57, %v5132_v56  ;;  %v5262_v7 = vmul.f32 %v13021_v57, %v5185_v4  ;;  %v5134_v15 = vpop.f32.mrb[75].mxu0  ;;  %v5187_v34 = vpop.f32.mrb[91].mxu1  ;;  %v14158_v57 = vld [vmem:[%s14891_s10 + $0x18] sm:$0xff] }
0x1fec   :  { %v14094_v18 = vadd.f32 %v5253_v5, %v5249_v53  ;;  %v5269_v38 = vadd.f32 %v5265_v54, %v5261_v16  ;;  %v5254_v11 = vmul.f32 %v13022_v6, %v5134_v15  ;;  %v5266_v2 = vmul.f32 %v13022_v6, %v5187_v34  ;;  %v14150_v16 = vld [vmem:[%s14891_s10] sm:$0xff] }
0x1fee   :  { %v14099_v8 = vadd.f32 %v5254_v11, %v5250_v3  ;;  %v5270_v27 = vadd.f32 %v5266_v2, %v5262_v7  ;;  %11059 = vmatprep.mubr.msk.f32.mxu1 %vm575_vm0, %v14094_v18  ;;  %v14164_v7 = vld [vmem:[%s14891_s10 + $0x10] sm:$0xff] }
0x1ff0   :  { %v5138_v10 = vpop.f32.mrb[76].mxu0  ;;  %v5191_v12 = vpop.f32.mrb[92].mxu1  ;;  %v11495_v21 = vpack.c.bf16 %v5270_v27, %v5269_v38  ;;  %v14103_v22 = vpack.i.bf16 %v5270_v27, %v5269_v38 }
0x1ff1   :  { %v5251_v50 = vmul.f32 %v13023_v13, %v5138_v10  ;;  %v5263_v23 = vmul.f32 %v13023_v13, %v5191_v12  ;;  %v5140_v51 = vpop.f32.mrb[77].mxu0  ;;  %v5193_v41 = vpop.f32.mrb[93].mxu1 }
0x1ff2   :  { %v5255_v55 = vmul.f32 %v13024_v0, %v5140_v51  ;;  %v5267_v24 = vmul.f32 %v13024_v0, %v5193_v41  ;;  %v5142_v20 = vpop.f32.mrb[78].mxu0  ;;  %v5195_v25 = vpop.f32.mrb[94].mxu1  ;;  %11497 = vmatprep.subr.msk.bf16.mxu1 %vm13293_vm1, %v11495_v21 }
0x1ff3   :  { %v5252_v59 = vmul.f32 %v13025_v45, %v5142_v20  ;;  %v5264_v60 = vmul.f32 %v13025_v45, %v5195_v25  ;;  %v5144_v61 = vpop.f32.mrb[79].mxu0  ;;  %v5197_v40 = vpop.f32.mrb[95].mxu1  ;;  %11500 = vmatpush3.bf16.xpose.msk.msra.mxu1 %vm13293_vm1, %v11495_v21 }
0x1ff4   :  { %v14118_v30 = vadd.f32 %v5255_v55, %v5251_v50  ;;  %v5271_v31 = vadd.f32 %v5267_v24, %v5263_v23  ;;  %v5256_v48 = vmul.f32 %v13026_v32, %v5144_v61  ;;  %v5268_v33 = vmul.f32 %v13026_v32, %v5197_v40 }
0x1ff6   :  { %v14123_v35 = vadd.f32 %v5256_v48, %v5252_v59  ;;  %v5272_v63 = vadd.f32 %v5268_v33, %v5264_v60 }
0x1ff8   :  { %v11501_v47 = vpack.c.bf16 %v5272_v63, %v5271_v31  ;;  %v14125_v26 = vpack.i.bf16 %v5272_v63, %v5271_v31 }
0x1ffa   :  { %11503 = vmatprep.subr.msk.bf16.mxu1 %vm13293_vm1, %v11501_v47 }
0x1ffb   :  { %11506 = vmatpush3.bf16.xpose.msk.msra.mxu1 %vm13293_vm1, %v11501_v47 }
0x2002   :  { %11060 = vmatmul.mubr.msk.f32.vlgmr.msra.gmra.mrb[96].mxu1 %vm575_vm0, %v14099_v8 }
0x2003   :  { %11062 = vmatprep.mubr.msk.f32.mxu1 %vm575_vm0, %v14118_v30 }
0x2006   :  { %11063 = vmatmul.mubr.msk.f32.gmra.mrb[98].mxu1 %vm575_vm0, %v14123_v35 }
0x2008   :  { %v11049_v1 = vpop.f32.mrb[80].mxu0 }
0x2009   :  { %v5234_v42 = vpop.f32.mrb[81].mxu0 }
0x200a   :  { %v11050_v36 = vpop.f32.mrb[82].mxu0 }
0x200b   :  { %v14137_v37 = vpack.i.bf16 %v11050_v36, %v11049_v1  ;;  %v5237_v14 = vpop.f32.mrb[83].mxu0  ;;  %v11511_v44 = vpack.c.bf16 %v11050_v36, %v11049_v1 }
0x200c   :  { %v14139_v58 = vpack.i.bf16 %v5237_v14, %v5234_v42  ;;  %v11507_v29 = vpack.c.bf16 %v5237_v14, %v5234_v42 }
0x200e   :  { %11508 = vmatprep.subr.bf16.mxu1 %v11507_v29 }
0x200f   :  { %11510 = vmatpush3.bf16.msra.mxu1 %v11507_v29 }
0x2010   :  { %11512 = vmatprep.subr.bf16.mxu1 %v11511_v44 }
0x2013   :  { %11514 = vmatpush3.bf16.msra.mxu1 %v11511_v44 }
0x20d5   :  { %v11061_v28 = vpop.f32.mrb[96].mxu1 }
0x20d6   :  { %v5383_v46 = vmul.f32 0.17677669, %v11061_v28  ;;  %v5363_v49 = vpop.f32.mrb[97].mxu1 }
0x20d7   :  { %v5382_v52 = vmul.f32 0.17677669, %v5363_v49 }
0x20d8   :  { %v5387_v53 = vadd.f32 %v14144_v9, %v5383_v46 }
0x20d9   :  { %v5386_v17 = vadd.f32 %v14150_v16, %v5382_v52  ;;  %v11064_v62 = vpop.f32.mrb[98].mxu1 }
0x20da   :  { %v5385_v19 = vmul.f32 0.17677669, %v11064_v62  ;;  %v5373_v5 = vpop.f32.mrb[99].mxu1  ;;  %v5393_v54 = vsel %vm575_vm0, %v5387_v53, -inf }
0x20db   :  { %v5384_v56 = vmul.f32 0.17677669, %v5373_v5  ;;  %5394 = vmax.xlane.f32.xlu1 %v5393_v54  ;;  %v5390_v4 = vsel %vm575_vm0, %v5386_v17, -inf }
0x20dc   :  { %v5389_v3 = vadd.f32 %v14158_v57, %v5385_v19  ;;  %5391 = vmax.xlane.f32.xlu0 %v5390_v4 }
0x20dd   :  { %v5388_v15 = vadd.f32 %v14164_v7, %v5384_v56 }
0x20de   :  { %v5399_v34 = vsel %vm575_vm0, %v5389_v3, -inf }
0x20df   :  { %5400 = vmax.xlane.f32.xlu1 %v5399_v34  ;;  %v5396_v38 = vsel %vm575_vm0, %v5388_v15, -inf }
0x20e0   :  { %5397 = vmax.xlane.f32.xlu0 %v5396_v38 }
0x2168   :  { %v5395_v6 = vpop.xlane.xlu1 %5394 }
0x2169   :  { %v5403_v11 = vsub.f32 %v5387_v53, %v5395_v6  ;;  %v5392_v2 = vpop.xlane.xlu0 %5391 }
0x216a   :  { %v5402_v27 = vsub.f32 %v5386_v17, %v5392_v2 }
0x216b   :  { %v5408_v10 = vmul.f32 1.442695, %v5403_v11 }
0x216c   :  { %v5406_v12 = vmul.f32 1.442695, %v5402_v27  ;;  %v5401_v21 = vpop.xlane.xlu1 %5400 }
0x216d   :  { %12771 = vpow2.f32 %v5408_v10  ;;  %v5405_v13 = vsub.f32 %v5389_v3, %v5401_v21  ;;  %v5398_v50 = vpop.xlane.xlu0 %5397 }
0x216e   :  { %12773 = vpow2.f32 %v5406_v12  ;;  %v5404_v23 = vsub.f32 %v5388_v15, %v5398_v50 }
0x216f   :  { %v5412_v51 = vmul.f32 1.442695, %v5405_v13 }
0x2170   :  { %v5410_v41 = vmul.f32 1.442695, %v5404_v23 }
0x2171   :  { %12775 = vpow2.f32 %v5412_v51 }
0x2172   :  { %12777 = vpow2.f32 %v5410_v41 }
0x2177   :  { %v12772_v0 = vpop.eup %12771 }
0x2178   :  { %v12774_v55 = vpop.eup %12773  ;;  %v5417_v24 = vsel %vm575_vm0, %v12772_v0, 0.0 }
0x2179   :  { %5418 = vadd.xlane.f32.xlu1 %v5417_v24  ;;  %v5414_v20 = vsel %vm575_vm0, %v12774_v55, 0.0 }
0x217a   :  { %5415 = vadd.xlane.f32.xlu0 %v5414_v20 }
0x217b   :  { %v12776_v25 = vpop.eup %12775 }
0x217c   :  { %v12778_v45 = vpop.eup %12777  ;;  %v5423_v59 = vsel %vm575_vm0, %v12776_v25, 0.0 }
0x217d   :  { %5424 = vadd.xlane.f32.xlu1 %v5423_v59  ;;  %v5420_v60 = vsel %vm575_vm0, %v12778_v45, 0.0 }
0x217e   :  { %5421 = vadd.xlane.f32.xlu0 %v5420_v60 }
0x218e   :  { %11853 = vrot.lane.b32.xlu1 %v14125_v26, %s13131_s22 }
0x2192   :  { %5531 = vrot.lane.b32.xlu1 %v14094_v18, %s13131_s22 }
0x2194   :  { %11848 = vrot.lane.b32.xlu0 %v14103_v22, %s13131_s22 }
0x2196   :  { %5533 = vrot.lane.b32.xlu1 %v14099_v8, %s13131_s22 }
0x2198   :  { %5535 = vrot.lane.b32.xlu0 %v14118_v30, %s13131_s22 }
0x219a   :  { %5537 = vrot.lane.b32.xlu1 %v14123_v35, %s13131_s22 }
0x2206   :  { %v5419_v61 = vpop.xlane.xlu1 %5418 }
0x2207   :  { %12779 = vrcp.f32 %v5419_v61  ;;  %v5416_v40 = vpop.xlane.xlu0 %5415 }
0x2208   :  { %12781 = vrcp.f32 %v5416_v40 }
0x220a   :  { %v5425_v31 = vpop.xlane.xlu1 %5424 }
0x220b   :  { %12783 = vrcp.f32 %v5425_v31  ;;  %v5422_v32 = vpop.xlane.xlu0 %5421 }
0x220c   :  { %12785 = vrcp.f32 %v5422_v32 }
0x220e   :  { %v11854_v48 = vpop.permute.xlu1 %11853 }
0x220f   :  { %v11849_v33 = vpop.permute.xlu0 %11848  ;;  %v11856_v36 = vunpack.i.h.bf16 %v11854_v48  ;;  %v11855_v14 = vunpack.i.l.bf16 %v11854_v48 }
0x2210   :  { %v11851_v63 = vunpack.i.h.bf16 %v11849_v33  ;;  %v11850_v47 = vunpack.i.l.bf16 %v11849_v33 }
0x2211   :  { %v12780_v1 = vpop.eup %12779  ;;  %v11521_v52 = vpack.c.bf16 %v11856_v36, %v11855_v14 }
0x2212   :  { %v12782_v42 = vpop.eup %12781  ;;  %v11515_v44 = vpack.c.bf16 %v11851_v63, %v11850_v47  ;;  %v5431_v28 = vmul.f32 %v12780_v1, %v12772_v0  ;;  %v5532_v62 = vpop.permute.xlu1 %5531 }
0x2213   :  { %v5430_v29 = vmul.f32 %v12782_v42, %v12774_v55  ;;  %v5536_v5 = vpop.permute.xlu0 %5535 }
0x2214   :  { %11517 = vmatprep.subr.msk.bf16.mxu1 %vm13293_vm1, %v11515_v44 }
0x2215   :  { %v12784_v46 = vpop.eup %12783  ;;  %11073 = vmatprep.mubr.msk.f32.mxu1 %vm575_vm0, %v5430_v29 }
0x2216   :  { %v12786_v49 = vpop.eup %12785  ;;  %11074 = vmatmul.mubr.msk.f32.vlgmr.msra.gmra.mrb[100].mxu1 %vm575_vm0, %v5431_v28  ;;  %v5433_v17 = vmul.f32 %v12784_v46, %v12776_v25  ;;  %v5534_v19 = vpop.permute.xlu1 %5533 }
0x2217   :  { %11520 = vmatpush3.bf16.xpose.msk.msra.mxu1 %vm13293_vm1, %v11515_v44  ;;  %v5432_v53 = vmul.f32 %v12786_v49, %v12778_v45 }
0x2218   :  { %11523 = vmatprep.subr.msk.bf16.mxu1 %vm13293_vm1, %v11521_v52 }
0x2219   :  { %11076 = vmatprep.mubr.msk.f32.mxu1 %vm575_vm0, %v5432_v53 }
0x221a   :  { %11077 = vmatmul.mubr.msk.f32.gmra.mrb[102].mxu1 %vm575_vm0, %v5433_v17  ;;  %v5538_v54 = vpop.permute.xlu1 %5537 }
0x221b   :  { %11087 = vmatprep.mubr.msk.f32.mxu1 %vm575_vm0, %v5532_v62 }
0x221f   :  { %11526 = vmatpush3.bf16.xpose.msk.msra.mxu1 %vm13293_vm1, %v11521_v52 }
0x2226   :  { %11088 = vmatmul.mubr.msk.f32.vlgmr.msra.gmra.mrb[104].mxu1 %vm575_vm0, %v5534_v19 }
0x2227   :  { %11090 = vmatprep.mubr.msk.f32.mxu1 %vm575_vm0, %v5536_v5 }
0x222a   :  { %11091 = vmatmul.mubr.msk.f32.gmra.mrb[106].mxu1 %vm575_vm0, %v5538_v54 }
0x22e9   :  { %v14201_v56 = vpop.f32.mrb[100].mxu1 }
0x22ea   :  { %v14203_v4 = vpop.f32.mrb[101].mxu1 }
0x22ed   :  { %v14205_v3 = vpop.f32.mrb[102].mxu1 }
0x22ee   :  { %v14207_v15 = vpop.f32.mrb[103].mxu1 }
0x22f9   :  { %v11089_v34 = vpop.f32.mrb[104].mxu1 }
0x22fa   :  { %v5649_v38 = vmul.f32 0.17677669, %v11089_v34  ;;  %v5629_v6 = vpop.f32.mrb[105].mxu1 }
0x22fb   :  { %v5648_v11 = vmul.f32 0.17677669, %v5629_v6 }
0x22fc   :  { %v5653_v2 = vadd.f32 %v14144_v9, %v5649_v38 }
0x22fd   :  { %v5652_v27 = vadd.f32 %v14150_v16, %v5648_v11  ;;  %v11092_v10 = vpop.f32.mrb[106].mxu1 }
0x22fe   :  { %v5639_v12 = vpop.f32.mrb[107].mxu1  ;;  %v5659_v21 = vsel %vm575_vm0, %v5653_v2, -inf  ;;  %v5651_v13 = vmul.f32 0.17677669, %v11092_v10 }
0x22ff   :  { %v5650_v50 = vmul.f32 0.17677669, %v5639_v12  ;;  %5660 = vmax.xlane.f32.xlu1 %v5659_v21  ;;  %v5656_v23 = vsel %vm575_vm0, %v5652_v27, -inf }
0x2300   :  { %5657 = vmax.xlane.f32.xlu0 %v5656_v23  ;;  %v5655_v41 = vadd.f32 %v14158_v57, %v5651_v13 }
0x2301   :  { %v5654_v51 = vadd.f32 %v14164_v7, %v5650_v50 }
0x2302   :  { %v5665_v55 = vsel %vm575_vm0, %v5655_v41, -inf }
0x2303   :  { %v5662_v0 = vsel %vm575_vm0, %v5654_v51, -inf }
0x2304   :  { %5663 = vmax.xlane.f32.xlu0 %v5662_v0 }
0x2308   :  { %5666 = vmax.xlane.f32.xlu0 %v5665_v55 }
0x238c   :  { %v5661_v24 = vpop.xlane.xlu1 %5660 }
0x238d   :  { %v5669_v20 = vsub.f32 %v5653_v2, %v5661_v24  ;;  %v5658_v25 = vpop.xlane.xlu0 %5657 }
0x238e   :  { %v5668_v45 = vsub.f32 %v5652_v27, %v5658_v25 }
0x238f   :  { %v5674_v59 = vmul.f32 1.442695, %v5669_v20 }
0x2390   :  { %v5672_v60 = vmul.f32 1.442695, %v5668_v45 }
0x2391   :  { %12787 = vpow2.f32 %v5674_v59  ;;  %v5664_v48 = vpop.xlane.xlu0 %5663 }
0x2392   :  { %12789 = vpow2.f32 %v5672_v60  ;;  %v5670_v33 = vsub.f32 %v5654_v51, %v5664_v48 }
0x2394   :  { %v5676_v63 = vmul.f32 1.442695, %v5670_v33 }
0x2395   :  { %v5667_v47 = vpop.xlane.xlu0 %5666 }
0x2396   :  { %v5671_v1 = vsub.f32 %v5655_v41, %v5667_v47  ;;  %12791 = vpow2.f32 %v5676_v63 }
0x2398   :  { %v5678_v42 = vmul.f32 1.442695, %v5671_v1 }
0x239a   :  { %12793 = vpow2.f32 %v5678_v42 }
0x239b   :  { %v12788_v61 = vpop.eup %12787 }
0x239c   :  { %v12790_v40 = vpop.eup %12789  ;;  %v5683_v31 = vsel %vm575_vm0, %v12788_v61, 0.0 }
0x239d   :  { %5684 = vadd.xlane.f32.xlu1 %v5683_v31  ;;  %v5680_v32 = vsel %vm575_vm0, %v12790_v40, 0.0 }
0x239e   :  { %5681 = vadd.xlane.f32.xlu0 %v5680_v32 }
0x23a0   :  { %v12792_v36 = vpop.eup %12791 }
0x23a1   :  { %v5686_v14 = vsel %vm575_vm0, %v12792_v36, 0.0 }
0x23a4   :  { %v12794_v44 = vpop.eup %12793 }
0x23a5   :  { %v5689_v29 = vsel %vm575_vm0, %v12794_v44, 0.0 }
0x23ae   :  { %11863 = vrot.lane.b32.xlu1 %v14137_v37, %s13131_s22 }
0x23b2   :  { %11868 = vrot.lane.b32.xlu1 %v14103_v22, %s13122_s13 }
0x23b4   :  { %11858 = vrot.lane.b32.xlu0 %v14139_v58, %s13131_s22 }
0x23b6   :  { %11873 = vrot.lane.b32.xlu1 %v14125_v26, %s13122_s13 }
0x23d3   :  { %5687 = vadd.xlane.f32.xlu0 %v5686_v14 }
0x23da   :  { %5690 = vadd.xlane.f32.xlu1 %v5689_v29 }
0x23e9   :  { %5813 = vrot.lane.b32.xlu0 %v14094_v18, %s13122_s13 }
0x23eb   :  { %5815 = vrot.lane.b32.xlu1 %v14099_v8, %s13122_s13 }
0x23ed   :  { %5817 = vrot.lane.b32.xlu0 %v14118_v30, %s13122_s13 }
0x23ef   :  { %5819 = vrot.lane.b32.xlu1 %v14123_v35, %s13122_s13 }
0x242a   :  { %v5685_v28 = vpop.xlane.xlu1 %5684 }
0x242b   :  { %v5682_v46 = vpop.xlane.xlu0 %5681 }
0x242c   :  { %12795 = vrcp.f32 %v5682_v46 }
0x242d   :  { %12797 = vrcp.f32 %v5685_v28 }
0x242e   :  { %v11864_v49 = vpop.permute.xlu1 %11863 }
0x242f   :  { %v11859_v52 = vpop.permute.xlu0 %11858  ;;  %v11866_v53 = vunpack.i.h.bf16 %v11864_v49  ;;  %v11865_v17 = vunpack.i.l.bf16 %v11864_v49 }
0x2430   :  { %v11861_v62 = vunpack.i.h.bf16 %v11859_v52  ;;  %v11860_v19 = vunpack.i.l.bf16 %v11859_v52 }
0x2431   :  { %v11531_v6 = vpack.c.bf16 %v11866_v53, %v11865_v17 }
0x2432   :  { %v11869_v5 = vpop.permute.xlu1 %11868  ;;  %v11527_v54 = vpack.c.bf16 %v11861_v62, %v11860_v19 }
0x2433   :  { %v11871_v34 = vunpack.i.h.bf16 %v11869_v5  ;;  %v11870_v38 = vunpack.i.l.bf16 %v11869_v5 }
0x2434   :  { %11528 = vmatprep.subr.bf16.mxu0 %v11527_v54 }
0x2435   :  { %11530 = vmatpush3.bf16.msra.mxu0 %v11527_v54  ;;  %v11535_v10 = vpack.c.bf16 %v11871_v34, %v11870_v38 }
0x2436   :  { %v12796_v11 = vpop.eup %12795  ;;  %11532 = vmatprep.subr.bf16.mxu0 %v11531_v6  ;;  %v11874_v12 = vpop.permute.xlu1 %11873 }
0x2437   :  { %v12798_v2 = vpop.eup %12797  ;;  %v5696_v27 = vmul.f32 %v12796_v11, %v12790_v40  ;;  %v11876_v13 = vunpack.i.h.bf16 %v11874_v12  ;;  %v11875_v50 = vunpack.i.l.bf16 %v11874_v12 }
0x2438   :  { %v5697_v21 = vmul.f32 %v12798_v2, %v12788_v61 }
0x2439   :  { %11534 = vmatpush3.bf16.msra.mxu0 %v11531_v6  ;;  %11101 = vmatprep.mubr.msk.f32.mxu0 %vm575_vm0, %v5696_v27  ;;  %v11541_v23 = vpack.c.bf16 %v11876_v13, %v11875_v50 }
0x243a   :  { %11537 = vmatprep.subr.msk.bf16.mxu0 %vm13293_vm1, %v11535_v10 }
0x243c   :  { %11102 = vmatmul.mubr.msk.f32.vlgmr.msra.gmra.mrb[84].mxu0 %vm575_vm0, %v5697_v21 }
0x2442   :  { %11540 = vmatpush3.bf16.xpose.msk.msra.mxu0 %vm13293_vm1, %v11535_v10 }
0x2443   :  { %11543 = vmatprep.subr.msk.bf16.mxu0 %vm13293_vm1, %v11541_v23 }
0x244a   :  { %11546 = vmatpush3.bf16.xpose.msk.msra.mxu0 %vm13293_vm1, %v11541_v23 }
0x2460   :  { %v5688_v51 = vpop.xlane.xlu0 %5687 }
0x2461   :  { %12799 = vrcp.f32 %v5688_v51 }
0x2464   :  { %v5814_v20 = vpop.permute.xlu0 %5813 }
0x2467   :  { %v5691_v41 = vpop.xlane.xlu1 %5690 }
0x2468   :  { %12801 = vrcp.f32 %v5691_v41  ;;  %v5818_v59 = vpop.permute.xlu0 %5817 }
0x246b   :  { %v12800_v0 = vpop.eup %12799  ;;  %v5816_v45 = vpop.permute.xlu1 %5815 }
0x246c   :  { %v5698_v55 = vmul.f32 %v12800_v0, %v12792_v36 }
0x246e   :  { %11104 = vmatprep.mubr.msk.f32.mxu0 %vm575_vm0, %v5698_v55 }
0x246f   :  { %v5820_v60 = vpop.permute.xlu1 %5819 }
0x2472   :  { %v12802_v24 = vpop.eup %12801 }
0x2473   :  { %v5699_v25 = vmul.f32 %v12802_v24, %v12794_v44 }
0x2475   :  { %11105 = vmatmul.mubr.msk.f32.gmra.mrb[86].mxu0 %vm575_vm0, %v5699_v25 }
0x2476   :  { %11115 = vmatprep.mubr.msk.f32.mxu0 %vm575_vm0, %v5814_v20 }
0x2479   :  { %11116 = vmatmul.mubr.msk.f32.vlgmr.msra.gmra.mrb[88].mxu0 %vm575_vm0, %v5816_v45 }
0x247a   :  { %11118 = vmatprep.mubr.msk.f32.mxu0 %vm575_vm0, %v5818_v59 }
0x247d   :  { %11119 = vmatmul.mubr.msk.f32.gmra.mrb[90].mxu0 %vm575_vm0, %v5820_v60 }
0x250f   :  { %v14253_v61 = vpop.f32.mrb[84].mxu0 }
0x2510   :  { %v14255_v40 = vpop.f32.mrb[85].mxu0 }
0x2511   :  { %v11907_v31 = vpack.i.bf16 %v14253_v61, %v14255_v40 }
0x2548   :  { %v14259_v32 = vpop.f32.mrb[86].mxu0 }
0x2549   :  { %v14261_v48 = vpop.f32.mrb[87].mxu0 }
0x254a   :  { %v11912_v33 = vpack.i.bf16 %v14259_v32, %v14261_v48 }
0x254c   :  { %v11117_v63 = vpop.f32.mrb[88].mxu0 }
0x254d   :  { %v5931_v47 = vmul.f32 0.17677669, %v11117_v63  ;;  %v5911_v1 = vpop.f32.mrb[89].mxu0 }
0x254e   :  { %v5930_v42 = vmul.f32 0.17677669, %v5911_v1 }
0x254f   :  { %v5935_v36 = vadd.f32 %v14144_v9, %v5931_v47 }
0x2550   :  { %v5934_v14 = vadd.f32 %v14150_v16, %v5930_v42  ;;  %v11120_v44 = vpop.f32.mrb[90].mxu0 }
0x2551   :  { %v5921_v29 = vpop.f32.mrb[91].mxu0  ;;  %v5941_v28 = vsel %vm575_vm0, %v5935_v36, -inf  ;;  %v5933_v46 = vmul.f32 0.17677669, %v11120_v44 }
0x2552   :  { %v5932_v49 = vmul.f32 0.17677669, %v5921_v29  ;;  %5942 = vmax.xlane.f32.xlu1 %v5941_v28  ;;  %v5938_v52 = vsel %vm575_vm0, %v5934_v14, -inf }
0x2553   :  { %5939 = vmax.xlane.f32.xlu0 %v5938_v52  ;;  %v5937_v17 = vadd.f32 %v14158_v57, %v5933_v46 }
0x2554   :  { %v5936_v53 = vadd.f32 %v14164_v7, %v5932_v49 }
0x2555   :  { %v5947_v19 = vsel %vm575_vm0, %v5937_v17, -inf }
0x2556   :  { %v5944_v62 = vsel %vm575_vm0, %v5936_v53, -inf }
0x2557   :  { %5945 = vmax.xlane.f32.xlu0 %v5944_v62 }
0x255b   :  { %5948 = vmax.xlane.f32.xlu0 %v5947_v19 }
0x25df   :  { %v5943_v5 = vpop.xlane.xlu1 %5942 }
0x25e0   :  { %v5951_v54 = vsub.f32 %v5935_v36, %v5943_v5  ;;  %v5940_v34 = vpop.xlane.xlu0 %5939 }
0x25e1   :  { %v5950_v38 = vsub.f32 %v5934_v14, %v5940_v34 }
0x25e2   :  { %v5956_v6 = vmul.f32 1.442695, %v5951_v54 }
0x25e3   :  { %v5954_v11 = vmul.f32 1.442695, %v5950_v38 }
0x25e4   :  { %12803 = vpow2.f32 %v5956_v6  ;;  %v5946_v21 = vpop.xlane.xlu0 %5945 }
0x25e5   :  { %12805 = vpow2.f32 %v5954_v11  ;;  %v5952_v13 = vsub.f32 %v5936_v53, %v5946_v21 }
0x25e7   :  { %v5958_v50 = vmul.f32 1.442695, %v5952_v13 }
0x25e8   :  { %v5949_v23 = vpop.xlane.xlu0 %5948 }
0x25e9   :  { %v5953_v51 = vsub.f32 %v5937_v17, %v5949_v23  ;;  %12807 = vpow2.f32 %v5958_v50 }
0x25eb   :  { %v5960_v41 = vmul.f32 1.442695, %v5953_v51 }
0x25ed   :  { %12809 = vpow2.f32 %v5960_v41 }
0x25ee   :  { %v12804_v2 = vpop.eup %12803 }
0x25ef   :  { %v12806_v27 = vpop.eup %12805  ;;  %v5965_v10 = vsel %vm575_vm0, %v12804_v2, 0.0 }
0x25f0   :  { %5966 = vadd.xlane.f32.xlu1 %v5965_v10  ;;  %v5962_v12 = vsel %vm575_vm0, %v12806_v27, 0.0 }
0x25f1   :  { %5963 = vadd.xlane.f32.xlu0 %v5962_v12 }
0x25f3   :  { %v12808_v0 = vpop.eup %12807 }
0x25f4   :  { %v5968_v55 = vsel %vm575_vm0, %v12808_v0, 0.0 }
0x25f7   :  { %v12810_v24 = vpop.eup %12809 }
0x2601   :  { %11883 = vrot.lane.b32.xlu1 %v14137_v37, %s13122_s13 }
0x2605   :  { %11888 = vrot.lane.b32.xlu1 %v14103_v22, %s13132_s28  ;;  %v5971_v22 = vsel %vm575_vm0, %v12810_v24, 0.0 }
0x2607   :  { %11878 = vrot.lane.b32.xlu0 %v14139_v58, %s13122_s13 }
0x2609   :  { %11893 = vrot.lane.b32.xlu1 %v14125_v26, %s13132_s28 }
0x2626   :  { %5969 = vadd.xlane.f32.xlu0 %v5968_v55 }
0x262d   :  { %5972 = vadd.xlane.f32.xlu1 %v5971_v22 }
0x263c   :  { %6091 = vrot.lane.b32.xlu0 %v14094_v18, %s13132_s28 }
0x263e   :  { %6093 = vrot.lane.b32.xlu1 %v14099_v8, %s13132_s28 }
0x2640   :  { %6095 = vrot.lane.b32.xlu0 %v14118_v30, %s13132_s28 }
0x2642   :  { %6097 = vrot.lane.b32.xlu1 %v14123_v35, %s13132_s28 }
0x267d   :  { %v5967_v26 = vpop.xlane.xlu1 %5966 }
0x267e   :  { %v5964_v20 = vpop.xlane.xlu0 %5963 }
0x267f   :  { %12811 = vrcp.f32 %v5964_v20 }
0x2680   :  { %12813 = vrcp.f32 %v5967_v26 }
0x2681   :  { %v11884_v25 = vpop.permute.xlu1 %11883 }
0x2682   :  { %v11879_v45 = vpop.permute.xlu0 %11878  ;;  %v11886_v59 = vunpack.i.h.bf16 %v11884_v25  ;;  %v11885_v60 = vunpack.i.l.bf16 %v11884_v25 }
0x2683   :  { %v11881_v63 = vunpack.i.h.bf16 %v11879_v45  ;;  %v11880_v47 = vunpack.i.l.bf16 %v11879_v45 }
0x2684   :  { %v11551_v36 = vpack.c.bf16 %v11886_v59, %v11885_v60 }
0x2685   :  { %v11889_v18 = vpop.permute.xlu1 %11888  ;;  %v11547_v1 = vpack.c.bf16 %v11881_v63, %v11880_v47 }
0x2686   :  { %v11891_v42 = vunpack.i.h.bf16 %v11889_v18  ;;  %v11890_v8 = vunpack.i.l.bf16 %v11889_v18 }
0x2687   :  { %11548 = vmatprep.subr.bf16.mxu1 %v11547_v1 }
0x2688   :  { %11550 = vmatpush3.bf16.msra.mxu1 %v11547_v1  ;;  %v11555_v44 = vpack.c.bf16 %v11891_v42, %v11890_v8 }
0x2689   :  { %v12812_v30 = vpop.eup %12811  ;;  %11552 = vmatprep.subr.bf16.mxu1 %v11551_v36  ;;  %v11894_v28 = vpop.permute.xlu1 %11893 }
0x268a   :  { %v12814_v35 = vpop.eup %12813  ;;  %v5978_v14 = vmul.f32 %v12812_v30, %v12806_v27  ;;  %v11896_v46 = vunpack.i.h.bf16 %v11894_v28  ;;  %v11895_v49 = vunpack.i.l.bf16 %v11894_v28 }
0x268b   :  { %v5979_v29 = vmul.f32 %v12814_v35, %v12804_v2 }
0x268c   :  { %11554 = vmatpush3.bf16.msra.mxu1 %v11551_v36  ;;  %11129 = vmatprep.mubr.msk.f32.mxu1 %vm575_vm0, %v5978_v14  ;;  %v11561_v52 = vpack.c.bf16 %v11896_v46, %v11895_v49 }
0x268d   :  { %11557 = vmatprep.subr.msk.bf16.mxu1 %vm13293_vm1, %v11555_v44 }
0x268f   :  { %11130 = vmatmul.mubr.msk.f32.vlgmr.msra.gmra.mrb[108].mxu1 %vm575_vm0, %v5979_v29 }
0x2695   :  { %11560 = vmatpush3.bf16.xpose.msk.msra.mxu1 %vm13293_vm1, %v11555_v44 }
0x2696   :  { %11563 = vmatprep.subr.msk.bf16.mxu1 %vm13293_vm1, %v11561_v52 }
0x269d   :  { %11566 = vmatpush3.bf16.xpose.msk.msra.mxu1 %vm13293_vm1, %v11561_v52 }
0x26b3   :  { %v5970_v53 = vpop.xlane.xlu0 %5969 }
0x26b4   :  { %12815 = vrcp.f32 %v5970_v53 }
0x26b7   :  { %v6092_v54 = vpop.permute.xlu0 %6091 }
0x26ba   :  { %v5973_v17 = vpop.xlane.xlu1 %5972 }
0x26bb   :  { %12817 = vrcp.f32 %v5973_v17  ;;  %v6096_v6 = vpop.permute.xlu0 %6095 }
0x26be   :  { %v12816_v62 = vpop.eup %12815  ;;  %v6094_v38 = vpop.permute.xlu1 %6093 }
0x26bf   :  { %v5980_v19 = vmul.f32 %v12816_v62, %v12808_v0 }
0x26c1   :  { %11132 = vmatprep.mubr.msk.f32.mxu1 %vm575_vm0, %v5980_v19 }
0x26c2   :  { %v6098_v11 = vpop.permute.xlu1 %6097 }
0x26c5   :  { %v12818_v5 = vpop.eup %12817 }
0x26c6   :  { %v5981_v34 = vmul.f32 %v12818_v5, %v12810_v24 }
0x26c8   :  { %11133 = vmatmul.mubr.msk.f32.gmra.mrb[110].mxu1 %vm575_vm0, %v5981_v34 }
0x26c9   :  { %11143 = vmatprep.mubr.msk.f32.mxu1 %vm575_vm0, %v6092_v54 }
0x26cc   :  { %11144 = vmatmul.mubr.msk.f32.vlgmr.msra.gmra.mrb[112].mxu1 %vm575_vm0, %v6094_v38 }
0x26cd   :  { %11146 = vmatprep.mubr.msk.f32.mxu1 %vm575_vm0, %v6096_v6 }
0x26d0   :  { %11147 = vmatmul.mubr.msk.f32.gmra.mrb[114].mxu1 %vm575_vm0, %v6098_v11 }
0x26d1   :  { %6816 = vmatprep.mubr.bf16.mxu1 %v13130_v39 }
0x2762   :  { %v11131_v2 = vpop.f32.mrb[108].mxu1 }
0x2763   :  { %v6072_v27 = vpop.f32.mrb[109].mxu1 }
0x2764   :  { %v11917_v10 = vpack.i.bf16 %v11131_v2, %v6072_v27 }
0x279b   :  { %v11134_v12 = vpop.f32.mrb[110].mxu1 }
0x279c   :  { %v6082_v21 = vpop.f32.mrb[111].mxu1 }
0x279d   :  { %v11922_v13 = vpack.i.bf16 %v11134_v12, %v6082_v21  ;;  %v12339_v21 = vld [vmem:[#allocation4 + $0x80] sm:$0xff]  }
0x279f   :  { %v11145_v50 = vpop.f32.mrb[112].mxu1 }
0x27a0   :  { %v6209_v23 = vmul.f32 0.17677669, %v11145_v50  ;;  %v6189_v51 = vpop.f32.mrb[113].mxu1  ;;  %v12341_v50 = vld [vmem:[#allocation4 + $0x90] sm:$0xff]  }
0x27a1   :  { %v6208_v41 = vmul.f32 0.17677669, %v6189_v51  ;;  %v12343_v51 = vld [vmem:[#allocation4 + $0xa0] sm:$0xff]  }
0x27a2   :  { %v6213_v0 = vadd.f32 %v14144_v9, %v6209_v23  ;;  %v12342_v23 = vld [vmem:[#allocation4 + $0x98] sm:$0xff]  }
0x27a3   :  { %v6212_v55 = vadd.f32 %v14150_v16, %v6208_v41  ;;  %v11148_v24 = vpop.f32.mrb[114].mxu1  ;;  %v12344_v41 = vld [vmem:[#allocation4 + $0xa8] sm:$0xff]  }
0x27a4   :  { %v6199_v22 = vpop.f32.mrb[115].mxu1  ;;  %v6219_v26 = vsel %vm575_vm0, %v6213_v0, -inf  ;;  %v6211_v20 = vmul.f32 0.17677669, %v11148_v24 }
0x27a5   :  { %v6210_v25 = vmul.f32 0.17677669, %v6199_v22  ;;  %6220 = vmax.xlane.f32.xlu1 %v6219_v26  ;;  %v6216_v45 = vsel %vm575_vm0, %v6212_v55, -inf }
0x27a6   :  { %6217 = vmax.xlane.f32.xlu0 %v6216_v45  ;;  %v6215_v60 = vadd.f32 %v14158_v57, %v6211_v20 }
0x27a7   :  { %v6214_v59 = vadd.f32 %v14164_v7, %v6210_v25 }
0x27a8   :  { %v6225_v9 = vsel %vm575_vm0, %v6215_v60, -inf }
0x27a9   :  { %v6222_v63 = vsel %vm575_vm0, %v6214_v59, -inf }
0x27aa   :  { %6223 = vmax.xlane.f32.xlu0 %v6222_v63 }
0x27ae   :  { %6226 = vmax.xlane.f32.xlu0 %v6225_v9 }
0x2832   :  { %v6221_v16 = vpop.xlane.xlu1 %6220 }
0x2833   :  { %v6229_v47 = vsub.f32 %v6213_v0, %v6221_v16  ;;  %v6218_v18 = vpop.xlane.xlu0 %6217  ;;  %v12345_v0 = vld [vmem:[#allocation4 + $0xb0] sm:$0xff]  }
0x2834   :  { %v6228_v1 = vsub.f32 %v6212_v55, %v6218_v18  ;;  %v12346_v55 = vld [vmem:[#allocation4 + $0xb8] sm:$0xff]  }
0x2835   :  { %v6234_v42 = vmul.f32 1.442695, %v6229_v47 }
0x2836   :  { %v6232_v8 = vmul.f32 1.442695, %v6228_v1 }
0x2837   :  { %12819 = vpow2.f32 %v6234_v42  ;;  %v6224_v36 = vpop.xlane.xlu0 %6223 }
0x2838   :  { %12821 = vpow2.f32 %v6232_v8  ;;  %v6230_v30 = vsub.f32 %v6214_v59, %v6224_v36 }
0x283a   :  { %v6236_v35 = vmul.f32 1.442695, %v6230_v30 }
0x283b   :  { %v6227_v7 = vpop.xlane.xlu0 %6226 }
0x283c   :  { %12823 = vpow2.f32 %v6236_v35  ;;  %v6231_v57 = vsub.f32 %v6215_v60, %v6227_v7 }
0x283e   :  { %v6238_v14 = vmul.f32 1.442695, %v6231_v57 }
0x2840   :  { %12825 = vpow2.f32 %v6238_v14 }
0x2841   :  { %v12820_v44 = vpop.eup %12819 }
0x2842   :  { %v12822_v29 = vpop.eup %12821  ;;  %v6243_v28 = vsel %vm575_vm0, %v12820_v44, 0.0 }
0x2843   :  { %6244 = vadd.xlane.f32.xlu1 %v6243_v28  ;;  %v6240_v46 = vsel %vm575_vm0, %v12822_v29, 0.0 }
0x2844   :  { %6241 = vadd.xlane.f32.xlu0 %v6240_v46 }
0x2846   :  { %v12824_v49 = vpop.eup %12823 }
0x2847   :  { %v6246_v52 = vsel %vm575_vm0, %v12824_v49, 0.0 }
0x2848   :  { %6247 = vadd.xlane.f32.xlu0 %v6246_v52 }
0x284a   :  { %v12826_v53 = vpop.eup %12825 }
0x284b   :  { %v6249_v17 = vsel %vm575_vm0, %v12826_v53, 0.0 }
0x284c   :  { %6250 = vadd.xlane.f32.xlu1 %v6249_v17 }
0x285d   :  { %11903 = vrot.lane.b32.xlu1 %v14137_v37, %s13132_s28 }
0x285e   :  { %11898 = vrot.lane.b32.xlu0 %v14139_v58, %s13132_s28 }
0x2861   :  { %11908 = vrot.lane.b32.xlu1 %v11907_v31, %s13132_s28 }
0x2862   :  { %11918 = vrot.lane.b32.xlu0 %v11917_v10, %s13122_s13 }
0x2865   :  { %11913 = vrot.lane.b32.xlu1 %v11912_v33, %s13132_s28 }
0x2869   :  { %11923 = vrot.lane.b32.xlu1 %v11922_v13, %s13122_s13  ;;  %v12340_v13 = vld [vmem:[#allocation4 + $0x88] sm:$0xff]  }
0x28d0   :  { %v6245_v37 = vpop.xlane.xlu1 %6244 }
0x28d1   :  { %v6242_v62 = vpop.xlane.xlu0 %6241 }
0x28d2   :  { %12827 = vrcp.f32 %v6242_v62 }
0x28d3   :  { %12829 = vrcp.f32 %v6245_v37 }
0x28d5   :  { %v6248_v19 = vpop.xlane.xlu0 %6247 }
0x28d6   :  { %12831 = vrcp.f32 %v6248_v19 }
0x28d9   :  { %v6251_v58 = vpop.xlane.xlu1 %6250  ;;  %v11899_v5 = vpop.permute.xlu0 %11898 }
0x28da   :  { %v11901_v54 = vunpack.i.h.bf16 %v11899_v5  ;;  %v11900_v61 = vunpack.i.l.bf16 %v11899_v5  ;;  %12833 = vrcp.f32 %v6251_v58 }
0x28dc   :  { %v12828_v40 = vpop.eup %12827  ;;  %v11567_v31 = vpack.c.bf16 %v11901_v54, %v11900_v61  ;;  %v12347_v61 = vld [vmem:[#allocation6 + $0x200] ss:$16 sps:$4 sm:$0xff]  }
0x28dd   :  { %v11904_v34 = vpop.permute.xlu1 %11903  ;;  %v6256_v38 = vmul.f32 %v12828_v40, %v12822_v29  ;;  %v12830_v33 = vpop.eup %12829  ;;  %v12350_v40 = vld [vmem:[#allocation6 + $0x208] ss:$16 sps:$4 sm:$0xff]  }
0x28de   :  { %v11906_v6 = vunpack.i.h.bf16 %v11904_v34  ;;  %v11905_v32 = vunpack.i.l.bf16 %v11904_v34  ;;  %11568 = vmatprep.subr.bf16.mxu0 %v11567_v31  ;;  %v6257_v2 = vmul.f32 %v12830_v33, %v12820_v44  ;;  %v11919_v16 = vpop.permute.xlu0 %11918  ;;  %v12358_v34 = vld [vmem:[#allocation6 + $0x22c] ss:$16 sps:$4 sm:$0xff]   ;;  %v12359_v33 = vld [vmem:[#allocation6 + $0x240] ss:$16 sps:$4 sm:$0xff]  }
0x28df   :  { %11570 = vmatpush3.bf16.msra.mxu0 %v11567_v31  ;;  %11157 = vmatprep.mubr.msk.f32.mxu0 %vm575_vm0, %v6256_v38  ;;  %v11921_v42 = vunpack.i.h.bf16 %v11919_v16  ;;  %v11920_v8 = vunpack.i.l.bf16 %v11919_v16  ;;  %v12352_v31 = vld [vmem:[#allocation6 + $0x20c] ss:$16 sps:$4 sm:$0xff]   ;;  %v12353_v38 = vld [vmem:[#allocation6 + $0x220] ss:$16 sps:$4 sm:$0xff]  }
0x28e0   :  { %v11571_v48 = vpack.c.bf16 %v11906_v6, %v11905_v32  ;;  %v12832_v11 = vpop.eup %12831  ;;  %v12356_v6 = vld [vmem:[#allocation6 + $0x228] ss:$16 sps:$4 sm:$0xff]   ;;  %v12361_v32 = vld [vmem:[#allocation6 + $0x244] ss:$16 sps:$4 sm:$0xff]   ;;  %v12371_v16 = vld [vmem:[#allocation6 + $0x280] ss:$16 sps:$4 sm:$0xff]  }
0x28e1   :  { %v6258_v10 = vmul.f32 %v12832_v11, %v12824_v49  ;;  %v11909_v59 = vpop.permute.xlu1 %11908  ;;  %v12362_v11 = vld [vmem:[#allocation6 + $0x248] ss:$16 sps:$4 sm:$0xff]  }
0x28e2   :  { %11572 = vmatprep.subr.bf16.mxu0 %v11571_v48  ;;  %v11911_v63 = vunpack.i.h.bf16 %v11909_v59  ;;  %v11910_v9 = vunpack.i.l.bf16 %v11909_v59  ;;  %v12365_v59 = vld [vmem:[#allocation6 + $0x260] ss:$16 sps:$4 sm:$0xff]  }
0x28e3   :  { %11574 = vmatpush3.bf16.msra.mxu0 %v11571_v48  ;;  %v12364_v48 = vld [vmem:[#allocation6 + $0x24c] ss:$16 sps:$4 sm:$0xff]  }
0x28e4   :  { %v12834_v27 = vpop.eup %12833  ;;  %11163 = vmatprep.subr.bf16.mxu0 %v12339_v21  ;;  %v6418_v47 = vsel %vm575_vm0, %v14201_v56, %v11911_v63  ;;  %v6417_v18 = vsel %vm575_vm0, %v14203_v4, %v11910_v9  ;;  %v12373_v63 = vld [vmem:[#allocation6 + $0x284] ss:$16 sps:$4 sm:$0xff]   ;;  %v12376_v9 = vld [vmem:[#allocation6 + $0x28c] ss:$16 sps:$4 sm:$0xff]  }
0x28e5   :  { %v6259_v12 = vmul.f32 %v12834_v27, %v12826_v53  ;;  %v11914_v60 = vpop.permute.xlu1 %11913  ;;  %v6421_v29 = vsel %vm1724_vm2, %v6417_v18, %v11920_v8  ;;  %v6422_v28 = vsel %vm1724_vm2, %v6418_v47, %v11921_v42  ;;  %v12374_v47 = vld [vmem:[#allocation6 + $0x288] ss:$16 sps:$4 sm:$0xff]   ;;  %v12379_v18 = vld [vmem:[#allocation6 + $0x2a4] ss:$16 sps:$4 sm:$0xff]   ;;  %v12377_v42 = vld [vmem:[#allocation6 + $0x2a0] ss:$16 sps:$4 sm:$0xff]  }
0x28e6   :  { %11158 = vmatmul.mubr.msk.f32.vlgmr.msra.gmra.mrb[92].mxu0 %vm575_vm0, %v6257_v2  ;;  %v11916_v30 = vunpack.i.h.bf16 %v11914_v60  ;;  %v11915_v35 = vunpack.i.l.bf16 %v11914_v60  ;;  %v12368_v60 = vld [vmem:[#allocation6 + $0x268] ss:$16 sps:$4 sm:$0xff]  }
0x28e7   :  { %11160 = vmatprep.mubr.msk.f32.mxu0 %vm575_vm0, %v6258_v10  ;;  %11164 = vmatpush3.bf16.msra.mxu0 %v12339_v21  ;;  %v13031_v10 = vld [vmem:[%s14892_s11 + $0x20] sm:$0xff]  ;;  %v12380_v8 = vld [vmem:[#allocation6 + $0x2a8] ss:$16 sps:$4 sm:$0xff]  }
0x28e8   :  { %11165 = vmatprep.subr.bf16.mxu0 %v12340_v13  ;;  %v6420_v52 = vsel %vm575_vm0, %v14205_v3, %v11916_v30  ;;  %v6419_v53 = vsel %vm575_vm0, %v14207_v15, %v11915_v35  ;;  %v12349_v3 = vld [vmem:[#allocation6 + $0x204] ss:$16 sps:$4 sm:$0xff]   ;;  %v12388_v30 = vld [vmem:[#allocation6 + $0x2cc] ss:$16 sps:$4 sm:$0xff]   ;;  %v12383_v35 = vld [vmem:[#allocation6 + $0x2c0] ss:$16 sps:$4 sm:$0xff]  }
0x28e9   :  { %v11924_v1 = vpop.permute.xlu1 %11923  ;;  %v12355_v15 = vld [vmem:[#allocation6 + $0x224] ss:$16 sps:$4 sm:$0xff]   ;;  %6784 = vmatprep.subr.bf16.mxu1 %v12349_v3  ;;  %v9993_v3 = vld [vmem:[%s14887_s6 + $0x2] ss:$0 sm:$0xff] }
0x28ea   :  { %11161 = vmatmul.mubr.msk.f32.gmra.mrb[94].mxu0 %vm575_vm0, %v6259_v12  ;;  %v11926_v14 = vunpack.i.h.bf16 %v11924_v1  ;;  %v11925_v44 = vunpack.i.l.bf16 %v11924_v1  ;;  %6785 = vmatpush1.bf16.msra.mxu1 %v12347_v61  ;;  %v12382_v1 = vld [vmem:[#allocation6 + $0x2ac] ss:$16 sps:$4 sm:$0xff]  }
0x28eb   :  { %11166 = vmatpush3.bf16.msra.mxu0 %v12340_v13  ;;  %6786 = vmatprep.subr.bf16.mxu1 %v12355_v15 }
0x28ec   :  { %11167 = vmatprep.subr.bf16.mxu0 %v12341_v50  ;;  %v6423_v37 = vsel %vm1724_vm2, %v6419_v53, %v11925_v44  ;;  %v6424_v19 = vsel %vm1724_vm2, %v6420_v52, %v11926_v14  ;;  %v12391_v14 = vld [vmem:[#allocation6 + $0x2e4] ss:$16 sps:$4 sm:$0xff]   ;;  %v12392_v44 = vld [vmem:[#allocation6 + $0x2e8] ss:$16 sps:$4 sm:$0xff]  }
0x28ee   :  { %6787 = vmatpush1.bf16.msra.mxu1 %v12353_v38 }
0x28ef   :  { %11168 = vmatpush3.bf16.msra.mxu0 %v12341_v50  ;;  %6788 = vmatprep.subr.bf16.mxu1 %v12361_v32  ;;  %v13032_v50 = vld [vmem:[%s14892_s11 + $0x30] sm:$0xff] }
0x28f0   :  { %11169 = vmatprep.subr.bf16.mxu0 %v12342_v23 }
0x28f2   :  { %6789 = vmatpush1.bf16.msra.mxu1 %v12359_v33 }
0x28f3   :  { %11170 = vmatpush3.bf16.msra.mxu0 %v12342_v23 }
0x28f4   :  { %11171 = vmatprep.subr.bf16.mxu0 %v12343_v51 }
0x28f7   :  { %11172 = vmatpush3.bf16.msra.mxu0 %v12343_v51  ;;  %v13033_v51 = vld [vmem:[%s14892_s11 + $0x28] sm:$0xff] }
0x28f8   :  { %11173 = vmatprep.subr.bf16.mxu0 %v12344_v41 }
0x28fb   :  { %11174 = vmatpush3.bf16.msra.mxu0 %v12344_v41 }
0x28fc   :  { %11175 = vmatprep.subr.bf16.mxu0 %v12345_v0 }
0x28ff   :  { %11176 = vmatpush3.bf16.msra.mxu0 %v12345_v0 }
0x2900   :  { %11177 = vmatprep.subr.bf16.mxu0 %v12346_v55 }
0x2903   :  { %11178 = vmatpush3.bf16.msra.mxu0 %v12346_v55 }
0x2904   :  { %6837 = vmatprep.subr.bf16.mxu0 %v12352_v31 }
0x29b9   :  { %v11159_v24 = vpop.f32.mrb[92].mxu0 }
0x29ba   :  { %v6350_v22 = vpop.f32.mrb[93].mxu0 }
0x29bb   :  { %v11927_v26 = vpack.i.bf16 %v11159_v24, %v6350_v22  ;;  %v13034_v24 = vld [vmem:[%s14892_s11 + $0x38] sm:$0xff] }
0x29bd   :  { %11928 = vrot.lane.b32.xlu0 %v11927_v26, %s13131_s22  ;;  %v11162_v20 = vpop.f32.mrb[94].mxu0 }
0x29be   :  { %v6360_v25 = vpop.f32.mrb[95].mxu0 }
0x29bf   :  { %v11932_v45 = vpack.i.bf16 %v11162_v20, %v6360_v25  ;;  %v12367_v25 = vld [vmem:[#allocation6 + $0x264] ss:$16 sps:$4 sm:$0xff]  }
0x29c0   :  { %6790 = vmatprep.subr.bf16.mxu1 %v12367_v25  ;;  %v12406_v25 = vld [vmem:[%s14885_s4 + $0x128] sm:$0xff]  }
0x29c1   :  { %11933 = vrot.lane.b32.xlu1 %v11932_v45, %s13131_s22  ;;  %v12370_v45 = vld [vmem:[#allocation6 + $0x26c] ss:$16 sps:$4 sm:$0xff]   ;;  %6791 = vmatpush1.bf16.msra.mxu1 %v12365_v59  ;;  %v12408_v59 = vld [vmem:[%s14885_s4 + $0x130] sm:$0xff]  }
0x29c2   :  { %6792 = vmatprep.subr.bf16.mxu1 %v12373_v63  ;;  %v12410_v63 = vld [vmem:[%s14885_s4 + $0x138] sm:$0xff]  }
0x29c5   :  { %6793 = vmatpush1.bf16.msra.mxu1 %v12371_v16 }
0x29c6   :  { %6794 = vmatprep.subr.bf16.mxu1 %v12379_v18 }
0x29c9   :  { %6795 = vmatpush1.bf16.msra.mxu1 %v12377_v42 }
0x2a2f   :  { %v11929_v36 = vpop.permute.xlu0 %11928 }
0x2a30   :  { %v11931_v7 = vunpack.i.h.bf16 %v11929_v36  ;;  %v11930_v57 = vunpack.i.l.bf16 %v11929_v36  ;;  %v12385_v36 = vld [vmem:[#allocation6 + $0x2c4] ss:$16 sps:$4 sm:$0xff]  }
0x2a31   :  { %6796 = vmatprep.subr.bf16.mxu1 %v12385_v36 }
0x2a32   :  { %v6425_v46 = vsel %vm1729_vm3, %v6421_v29, %v11930_v57  ;;  %v6426_v56 = vsel %vm1729_vm3, %v6422_v28, %v11931_v7  ;;  %v12386_v7 = vld [vmem:[#allocation6 + $0x2c8] ss:$16 sps:$4 sm:$0xff]   ;;  %6797 = vmatpush1.bf16.msra.mxu1 %v12383_v35  ;;  %v12389_v57 = vld [vmem:[#allocation6 + $0x2e0] ss:$16 sps:$4 sm:$0xff]   ;;  %v12394_v29 = vld [vmem:[#allocation6 + $0x2ec] ss:$16 sps:$4 sm:$0xff]  }
0x2a33   :  { %v11934_v49 = vpop.permute.xlu1 %11933  ;;  %v6429_v4 = vpack.c.bf16 %v6426_v56, %v6425_v46  ;;  %6798 = vmatprep.subr.bf16.mxu1 %v12391_v14 }
0x2a34   :  { %v11936_v17 = vunpack.i.h.bf16 %v11934_v49  ;;  %v11935_v62 = vunpack.i.l.bf16 %v11934_v49 }
0x2a35   :  { %11179 = vmatprep.mubr.bf16.mxu0 %v6429_v4 }
0x2a36   :  { %v6428_v58 = vsel %vm1729_vm3, %v6424_v19, %v11936_v17  ;;  %v6427_v5 = vsel %vm1729_vm3, %v6423_v37, %v11935_v62  ;;  %6799 = vmatpush1.bf16.msra.mxu1 %v12389_v57 }
0x2a37   :  { %v6430_v54 = vpack.c.bf16 %v6428_v58, %v6427_v5 }
0x2a39   :  { %11180 = vmatmul.mubr.bf16.vlgmr.msra.gmra.mrb[96].mxu0 %v6430_v54 }
0x2a3a   :  { %6869 = vmatprep.mubr.bf16.mxu0 %v13130_v39  ;;  %6838 = vmatpush1.bf16.msra.mxu0 %v12350_v40 }
0x2a3b   :  { %6839 = vmatprep.subr.bf16.mxu0 %v12358_v34 }
0x2a3e   :  { %6840 = vmatpush1.bf16.msra.mxu0 %v12356_v6 }
0x2a3f   :  { %6841 = vmatprep.subr.bf16.mxu0 %v12364_v48 }
0x2a42   :  { %6842 = vmatpush1.bf16.msra.mxu0 %v12362_v11 }
0x2a43   :  { %6843 = vmatprep.subr.bf16.mxu0 %v12370_v45  ;;  %v12407_v45 = vld [vmem:[%s14885_s4 + $0x170] sm:$0xff]  }
0x2a46   :  { %6844 = vmatpush1.bf16.msra.mxu0 %v12368_v60  ;;  %v12409_v60 = vld [vmem:[%s14885_s4 + $0x178] sm:$0xff]  }
0x2a47   :  { %6845 = vmatprep.subr.bf16.mxu0 %v12376_v9 }
0x2a4a   :  { %6846 = vmatpush1.bf16.msra.mxu0 %v12374_v47 }
0x2a4b   :  { %6847 = vmatprep.subr.bf16.mxu0 %v12382_v1 }
0x2a4e   :  { %6848 = vmatpush1.bf16.msra.mxu0 %v12380_v8 }
0x2a4f   :  { %6849 = vmatprep.subr.bf16.mxu0 %v12388_v30 }
0x2a52   :  { %6850 = vmatpush1.bf16.msra.mxu0 %v12386_v7 }
0x2a53   :  { %6851 = vmatprep.subr.bf16.mxu0 %v12394_v29 }
0x2a56   :  { %6852 = vmatpush1.bf16.msra.mxu0 %v12392_v44 }
0x2b0c   :  { %v11181_v2 = vpop.f32.mrb[96].mxu0 }
0x2b0d   :  { %v6530_v27 = vpop.f32.mrb[97].mxu0  ;;  %v14367_v23 = vadd.f32 %v13032_v50, %v11181_v2  ;;  %v12399_v50 = vld [vmem:[%s14885_s4 + $0x150] sm:$0xff]  }
0x2b0e   :  { %v14362_v12 = vadd.f32 %v13031_v10, %v6530_v27  ;;  %v11182_v21 = vpop.f32.mrb[98].mxu0  ;;  %v12395_v27 = vld [vmem:[%s14885_s4 + $0x140] sm:$0xff]  }
0x2b0f   :  { %v6533_v13 = vpop.f32.mrb[99].mxu0  ;;  %v14381_v22 = vadd.f32 %v13034_v24, %v11182_v21  ;;  %v6553_v26 = vmul.f32 %v14367_v23, %v14367_v23  ;;  %v12396_v10 = vld [vmem:[%s14885_s4 + $0x100] sm:$0xff]   ;;  %10587 = vmatprep.subr.bf16.mxu1 %v12395_v27  ;;  %v12397_v21 = vld [vmem:[%s14885_s4 + $0x148] sm:$0xff]  }
0x2b10   :  { %v14372_v41 = vadd.f32 %v13033_v51, %v6533_v13  ;;  %v6551_v0 = vmul.f32 %v14362_v12, %v14362_v12  ;;  %v12398_v13 = vld [vmem:[%s14885_s4 + $0x108] sm:$0xff]   ;;  %v12400_v51 = vld [vmem:[%s14885_s4 + $0x110] sm:$0xff]   ;;  %v12403_v24 = vld [vmem:[%s14885_s4 + $0x160] sm:$0xff]  }
0x2b11   :  { %v6554_v20 = vmul.f32 %v14381_v22, %v14381_v22 }
0x2b12   :  { %6555 = vadd.xlane.f32.xlu0 %v6551_v0  ;;  %v6552_v55 = vmul.f32 %v14372_v41, %v14372_v41  ;;  %v12401_v0 = vld [vmem:[%s14885_s4 + $0x158] sm:$0xff]  }
0x2b14   :  { %6557 = vadd.xlane.f32.xlu1 %v6552_v55  ;;  %v12402_v55 = vld [vmem:[%s14885_s4 + $0x118] sm:$0xff]  }
0x2b16   :  { %6559 = vadd.xlane.f32.xlu0 %v6553_v26  ;;  %v12404_v26 = vld [vmem:[%s14885_s4 + $0x120] sm:$0xff]  }
0x2b1a   :  { %6561 = vadd.xlane.f32.xlu0 %v6554_v20  ;;  %v12405_v20 = vld [vmem:[%s14885_s4 + $0x168] sm:$0xff]  }
0x2b9f   :  { %v6556_v28 = vpop.xlane.xlu0 %6555 }
0x2ba0   :  { %v6563_v46 = vmul.f32 0.0078125, %v6556_v28 }
0x2ba1   :  { %v6558_v56 = vpop.xlane.xlu1 %6557 }
0x2ba2   :  { %v6567_v49 = vadd.f32 1e-06, %v6563_v46  ;;  %v6564_v4 = vmul.f32 0.0078125, %v6558_v56 }
0x2ba3   :  { %v6560_v52 = vpop.xlane.xlu0 %6559 }
0x2ba4   :  { %12835 = vrsqrt.f32 %v6567_v49  ;;  %v6568_v53 = vadd.f32 1e-06, %v6564_v4  ;;  %v6565_v17 = vmul.f32 0.0078125, %v6560_v52 }
0x2ba6   :  { %12837 = vrsqrt.f32 %v6568_v53  ;;  %v6569_v62 = vadd.f32 1e-06, %v6565_v17 }
0x2ba7   :  { %v6562_v37 = vpop.xlane.xlu0 %6561 }
0x2ba8   :  { %v6566_v19 = vmul.f32 0.0078125, %v6562_v37  ;;  %12839 = vrsqrt.f32 %v6569_v62 }
0x2baa   :  { %v6570_v58 = vadd.f32 1e-06, %v6566_v19 }
0x2bac   :  { %12841 = vrsqrt.f32 %v6570_v58 }
0x2bae   :  { %v12836_v5 = vpop.eup %12835 }
0x2baf   :  { %v6575_v54 = vmul.f32 %v12836_v5, %v14362_v12 }
0x2bb0   :  { %v12838_v61 = vpop.eup %12837 }
0x2bb1   :  { %v6576_v40 = vmul.f32 %v12838_v61, %v14372_v41  ;;  %v6585_v31 = vmul.f32 %v9993_v3, %v6575_v54 }
0x2bb2   :  { %v12840_v34 = vpop.eup %12839 }
0x2bb3   :  { %v6586_v15 = vmul.f32 %v9993_v3, %v6576_v40  ;;  %v6577_v32 = vmul.f32 %v12840_v34, %v14367_v23 }
0x2bb5   :  { %v6589_v38 = vpack.c.bf16 %v6586_v15, %v6585_v31  ;;  %v6587_v11 = vmul.f32 %v9993_v3, %v6577_v32 }
0x2bb6   :  { %v12842_v6 = vpop.eup %12841 }
0x2bb7   :  { %6817 = vmatmul.mubr.bf16.vlgmr.msra.gmra.mrb[116].mxu1 %v6589_v38  ;;  %6870 = vmatmul.mubr.bf16.vlgmr.msra.gmra.mrb[100].mxu0 %v6589_v38  ;;  %v6578_v48 = vmul.f32 %v12842_v6, %v14381_v22 }
0x2bb8   :  { %6826 = vmatprep.mubr.bf16.mxu1 %v13130_v39  ;;  %6879 = vmatprep.mubr.bf16.mxu0 %v13130_v39 }
0x2bb9   :  { %v6588_v33 = vmul.f32 %v9993_v3, %v6578_v48  ;;  %10588 = vmatpush3.bf16.msra.mxu1 %v12396_v10 }
0x2bba   :  { %10589 = vmatprep.subr.bf16.mxu1 %v12397_v21 }
0x2bbb   :  { %v6590_v2 = vpack.c.bf16 %v6588_v33, %v6587_v11 }
0x2bbd   :  { %10590 = vmatpush3.bf16.msra.mxu1 %v12398_v13 }
0x2bbe   :  { %10591 = vmatprep.subr.bf16.mxu1 %v12399_v50 }
0x2bbf   :  { %6827 = vmatmul.mubr.bf16.gmra.mrb[120].mxu1 %v6590_v2  ;;  %6880 = vmatmul.mubr.bf16.gmra.mrb[104].mxu0 %v6590_v2 }
0x2bc0   :  { %7476 = vmatprep.mubr.bf16.mxu0 %v13130_v39 }
0x2bc1   :  { %10592 = vmatpush3.bf16.msra.mxu1 %v12400_v51 }
0x2bc2   :  { %10593 = vmatprep.subr.bf16.mxu1 %v12401_v0 }
0x2bc5   :  { %10594 = vmatpush3.bf16.msra.mxu1 %v12402_v55 }
0x2bc6   :  { %10595 = vmatprep.subr.bf16.mxu1 %v12403_v24 }
0x2bc9   :  { %10596 = vmatpush3.bf16.msra.mxu1 %v12404_v26 }
0x2bca   :  { %10597 = vmatprep.subr.bf16.mxu1 %v12405_v20 }
0x2bcd   :  { %10598 = vmatpush3.bf16.msra.mxu1 %v12406_v25 }
0x2bce   :  { %10599 = vmatprep.subr.bf16.mxu1 %v12407_v45 }
0x2bd1   :  { %10600 = vmatpush3.bf16.msra.mxu1 %v12408_v59 }
0x2bd2   :  { %10601 = vmatprep.subr.bf16.mxu1 %v12409_v60 }
0x2bd5   :  { %10602 = vmatpush3.bf16.msra.mxu1 %v12410_v63 }
0x2c8a   :  { %v6818_v9 = vpop.f32.mrb[116].mxu1  ;;  %v6871_v16 = vpop.f32.mrb[100].mxu0 }
0x2c8b   :  { %v10026_v47 = vmul.f32 -1.442695, %v6818_v9  ;;  %v6820_v18 = vpop.f32.mrb[117].mxu1  ;;  %v6873_v1 = vpop.f32.mrb[101].mxu0 }
0x2c8c   :  { %v10027_v42 = vmul.f32 -1.442695, %v6820_v18  ;;  %v6822_v8 = vpop.f32.mrb[118].mxu1  ;;  %v6875_v36 = vpop.f32.mrb[102].mxu0 }
0x2c8d   :  { %12843 = vpow2.f32 %v10026_v47  ;;  %v10028_v30 = vmul.f32 -1.442695, %v6822_v8  ;;  %v6824_v35 = vpop.f32.mrb[119].mxu1  ;;  %v6877_v7 = vpop.f32.mrb[103].mxu0 }
0x2c8e   :  { %12845 = vpow2.f32 %v10027_v42  ;;  %v10029_v57 = vmul.f32 -1.442695, %v6824_v35 }
0x2c8f   :  { %12847 = vpow2.f32 %v10028_v30 }
0x2c90   :  { %12849 = vpow2.f32 %v10029_v57 }
0x2c92   :  { %v6828_v14 = vpop.f32.mrb[120].mxu1  ;;  %v6881_v44 = vpop.f32.mrb[104].mxu0 }
0x2c93   :  { %v10030_v29 = vmul.f32 -1.442695, %v6828_v14  ;;  %v6830_v28 = vpop.f32.mrb[121].mxu1  ;;  %v6883_v46 = vpop.f32.mrb[105].mxu0 }
0x2c94   :  { %v10031_v56 = vmul.f32 -1.442695, %v6830_v28  ;;  %v6832_v49 = vpop.f32.mrb[122].mxu1  ;;  %v6885_v4 = vpop.f32.mrb[106].mxu0 }
0x2c95   :  { %12851 = vpow2.f32 %v10030_v29  ;;  %v10032_v52 = vmul.f32 -1.442695, %v6832_v49  ;;  %v6834_v53 = vpop.f32.mrb[123].mxu1  ;;  %v6887_v17 = vpop.f32.mrb[107].mxu0  ;;  %v12416_v29 = vld [vmem:[#allocation2 + $0x3cc] ss:$20 sps:$4 sm:$0xff]  }
0x2c96   :  { %12853 = vpow2.f32 %v10031_v56  ;;  %v10033_v62 = vmul.f32 -1.442695, %v6834_v53  ;;  %v12422_v56 = vld [vmem:[#allocation2 + $0x3f4] ss:$20 sps:$4 sm:$0xff]   ;;  %7497 = vmatprep.subr.bf16.mxu1 %v12416_v29 }
0x2c97   :  { %v12844_v37 = vpop.eup %12843  ;;  %12855 = vpow2.f32 %v10032_v52  ;;  %v12423_v52 = vld [vmem:[#allocation2 + $0x410] ss:$20 sps:$4 sm:$0xff]  }
0x2c98   :  { %v12846_v19 = vpop.eup %12845  ;;  %v6914_v58 = vadd.f32 1.0, %v12844_v37  ;;  %12857 = vpow2.f32 %v10033_v62 }
0x2c99   :  { %v12848_v5 = vpop.eup %12847  ;;  %v6915_v54 = vadd.f32 1.0, %v12846_v19 }
0x2c9a   :  { %v12850_v61 = vpop.eup %12849  ;;  %12859 = vrcp.f32 %v6914_v58  ;;  %v6916_v3 = vadd.f32 1.0, %v12848_v5 }
0x2c9b   :  { %12861 = vrcp.f32 %v6915_v54  ;;  %v6917_v40 = vadd.f32 1.0, %v12850_v61 }
0x2c9c   :  { %12863 = vrcp.f32 %v6916_v3 }
0x2c9d   :  { %12865 = vrcp.f32 %v6917_v40 }
0x2c9f   :  { %v12852_v31 = vpop.eup %12851 }
0x2ca0   :  { %v12854_v15 = vpop.eup %12853  ;;  %v6918_v34 = vadd.f32 1.0, %v12852_v31 }
0x2ca1   :  { %v12856_v38 = vpop.eup %12855  ;;  %v6919_v6 = vadd.f32 1.0, %v12854_v15 }
0x2ca2   :  { %v12858_v32 = vpop.eup %12857  ;;  %12867 = vrcp.f32 %v6918_v34  ;;  %v6920_v48 = vadd.f32 1.0, %v12856_v38 }
0x2ca3   :  { %12869 = vrcp.f32 %v6919_v6  ;;  %v6921_v33 = vadd.f32 1.0, %v12858_v32 }
0x2ca4   :  { %v12860_v11 = vpop.eup %12859  ;;  %12871 = vrcp.f32 %v6920_v48 }
0x2ca5   :  { %v12862_v2 = vpop.eup %12861  ;;  %v6938_v27 = vmul.f32 %v12860_v11, %v6818_v9  ;;  %12873 = vrcp.f32 %v6921_v33  ;;  %v12431_v33 = vld [vmem:[#allocation2 + $0x43c] ss:$20 sps:$4 sm:$0xff]   ;;  %v12429_v11 = vld [vmem:[#allocation2 + $0x438] ss:$20 sps:$4 sm:$0xff]  }
0x2ca6   :  { %v12864_v10 = vpop.eup %12863  ;;  %v6939_v21 = vmul.f32 %v12862_v2, %v6820_v18  ;;  %v12434_v2 = vld [vmem:[#allocation2 + $0x444] ss:$20 sps:$4 sm:$0xff]  }
0x2ca7   :  { %v12866_v13 = vpop.eup %12865  ;;  %v6946_v50 = vmul.f32 %v6938_v27, %v6871_v16  ;;  %v6940_v51 = vmul.f32 %v12864_v10, %v6822_v8  ;;  %v12432_v27 = vld [vmem:[#allocation2 + $0x440] ss:$20 sps:$4 sm:$0xff]  }
0x2ca8   :  { %v6947_v0 = vmul.f32 %v6939_v21, %v6873_v1  ;;  %v6941_v55 = vmul.f32 %v12866_v13, %v6824_v35  ;;  %v12435_v10 = vld [vmem:[#allocation2 + $0x460] ss:$20 sps:$4 sm:$0xff]   ;;  %v12438_v13 = vld [vmem:[#allocation2 + $0x468] ss:$20 sps:$4 sm:$0xff]  }
0x2ca9   :  { %v6948_v24 = vmul.f32 %v6940_v51, %v6875_v36  ;;  %v12411_v36 = vld [vmem:[#allocation2 + $0x3c0] ss:$20 sps:$4 sm:$0xff]   ;;  %v12441_v51 = vld [vmem:[#allocation2 + $0x488] ss:$20 sps:$4 sm:$0xff]  }
0x2caa   :  { %v6949_v26 = vmul.f32 %v6941_v55, %v6877_v7  ;;  %v12413_v7 = vld [vmem:[#allocation2 + $0x3c4] ss:$20 sps:$4 sm:$0xff]   ;;  %v12440_v21 = vld [vmem:[#allocation2 + $0x46c] ss:$20 sps:$4 sm:$0xff]  }
0x2cab   :  { %v6954_v20 = vpack.c.bf16 %v6948_v24, %v6946_v50  ;;  %7444 = vmatprep.subr.bf16.mxu0 %v12413_v7  ;;  %v12443_v50 = vld [vmem:[#allocation2 + $0x48c] ss:$20 sps:$4 sm:$0xff]   ;;  %v12444_v55 = vld [vmem:[#allocation2 + $0x490] ss:$20 sps:$4 sm:$0xff]   ;;  %v12449_v24 = vld [vmem:[#allocation2 + $0x4b4] ss:$20 sps:$4 sm:$0xff]  }
0x2cac   :  { %v12868_v25 = vpop.eup %12867  ;;  %v6955_v45 = vpack.c.bf16 %v6949_v26, %v6947_v0  ;;  %7445 = vmatpush1.bf16.msra.mxu0 %v12411_v36  ;;  %v12446_v0 = vld [vmem:[#allocation2 + $0x494] ss:$20 sps:$4 sm:$0xff]   ;;  %v12447_v26 = vld [vmem:[#allocation2 + $0x4b0] ss:$20 sps:$4 sm:$0xff]  }
0x2cad   :  { %v12870_v59 = vpop.eup %12869  ;;  %v6942_v60 = vmul.f32 %v12868_v25, %v6828_v14  ;;  %v12414_v14 = vld [vmem:[#allocation2 + $0x3c8] ss:$20 sps:$4 sm:$0xff]   ;;  %v12450_v25 = vld [vmem:[#allocation2 + $0x4b8] ss:$20 sps:$4 sm:$0xff]  }
0x2cae   :  { %v12872_v63 = vpop.eup %12871  ;;  %v6943_v47 = vmul.f32 %v12870_v59, %v6830_v28  ;;  %7119 = vmatprep.mubr.bf16.mxu1 %v6955_v45  ;;  %v12419_v28 = vld [vmem:[#allocation2 + $0x3ec] ss:$20 sps:$4 sm:$0xff]   ;;  %v12455_v45 = vld [vmem:[#allocation2 + $0x4dc] ss:$20 sps:$4 sm:$0xff]  }
0x2caf   :  { %v12874_v42 = vpop.eup %12873  ;;  %v6950_v9 = vmul.f32 %v6942_v60, %v6881_v44  ;;  %v6944_v30 = vmul.f32 %v12872_v63, %v6832_v49  ;;  %7120 = vmatmul.mubr.bf16.vlgmr.msra.gmra.mrb[124].mxu1 %v6954_v20  ;;  %v12417_v44 = vld [vmem:[#allocation2 + $0x3e8] ss:$20 sps:$4 sm:$0xff]   ;;  %7446 = vmatprep.subr.bf16.mxu0 %v12419_v28  ;;  %v12453_v59 = vld [vmem:[#allocation2 + $0x4d8] ss:$20 sps:$4 sm:$0xff]   ;;  %v12456_v60 = vld [vmem:[#allocation2 + $0x4e0] ss:$20 sps:$4 sm:$0xff]  }
0x2cb0   :  { %v6951_v18 = vmul.f32 %v6943_v47, %v6883_v46  ;;  %v6945_v57 = vmul.f32 %v12874_v42, %v6834_v53  ;;  %7498 = vmatpush1.bf16.msra.mxu1 %v12414_v14  ;;  %v12420_v46 = vld [vmem:[#allocation2 + $0x3f0] ss:$20 sps:$4 sm:$0xff]   ;;  %v12425_v49 = vld [vmem:[#allocation2 + $0x414] ss:$20 sps:$4 sm:$0xff]   ;;  %7447 = vmatpush1.bf16.msra.mxu0 %v12417_v44  ;;  %v12426_v53 = vld [vmem:[#allocation2 + $0x418] ss:$20 sps:$4 sm:$0xff]  }
0x2cb1   :  { %v6952_v16 = vmul.f32 %v6944_v30, %v6885_v4  ;;  %7499 = vmatprep.subr.bf16.mxu1 %v12422_v56  ;;  %v12428_v4 = vld [vmem:[#allocation2 + $0x41c] ss:$20 sps:$4 sm:$0xff]   ;;  %7448 = vmatprep.subr.bf16.mxu0 %v12425_v49  ;;  %v12458_v63 = vld [vmem:[#allocation2 + $0x4e4] ss:$20 sps:$4 sm:$0xff]   ;;  %v10087_v44 = vld [vmem:[%s14886_s5 + $0x3] ss:$0 sm:$0xff] }
0x2cb2   :  { %v6953_v8 = vmul.f32 %v6945_v57, %v6887_v17  ;;  %v12452_v20 = vld [vmem:[#allocation2 + $0x4bc] ss:$20 sps:$4 sm:$0xff]  }
0x2cb3   :  { %v6956_v1 = vpack.c.bf16 %v6952_v16, %v6950_v9  ;;  %v12459_v47 = vld [vmem:[#allocation2 + $0x3d0] ss:$20 sps:$4 sm:$0xff]  }
0x2cb4   :  { %v6957_v35 = vpack.c.bf16 %v6953_v8, %v6951_v18  ;;  %7500 = vmatpush1.bf16.msra.mxu1 %v12420_v46  ;;  %7449 = vmatpush1.bf16.msra.mxu0 %v12423_v52 }
0x2cb5   :  { %7501 = vmatprep.subr.bf16.mxu1 %v12428_v4  ;;  %7450 = vmatprep.subr.bf16.mxu0 %v12431_v33  ;;  %v13036_v33 = vld [vmem:[%s14890_s9] sm:$0xff] }
0x2cb6   :  { %7127 = vmatprep.mubr.bf16.mxu1 %v6957_v35 }
0x2cb7   :  { %7128 = vmatmul.mubr.bf16.gmra.mrb[128].mxu1 %v6956_v1 }
0x2cb8   :  { %7529 = vmatprep.mubr.bf16.mxu1 %v13130_v39  ;;  %7502 = vmatpush1.bf16.msra.mxu1 %v12426_v53  ;;  %v12460_v53 = vld [vmem:[#allocation2 + $0x3f8] ss:$20 sps:$4 sm:$0xff]  }
0x2cb9   :  { %7451 = vmatpush1.bf16.msra.mxu0 %v12429_v11  ;;  %7503 = vmatprep.subr.bf16.mxu1 %v12434_v2 }
0x2cbc   :  { %7504 = vmatpush1.bf16.msra.mxu1 %v12432_v27 }
0x2cbd   :  { %7505 = vmatprep.subr.bf16.mxu1 %v12440_v21 }
0x2cc0   :  { %7506 = vmatpush1.bf16.msra.mxu1 %v12438_v13 }
0x2cc1   :  { %7507 = vmatprep.subr.bf16.mxu1 %v12446_v0 }
0x2cc4   :  { %7508 = vmatpush1.bf16.msra.mxu1 %v12444_v55 }
0x2cc5   :  { %7509 = vmatprep.subr.bf16.mxu1 %v12452_v20 }
0x2cc8   :  { %7510 = vmatpush1.bf16.msra.mxu1 %v12450_v25 }
0x2cc9   :  { %7511 = vmatprep.subr.bf16.mxu1 %v12458_v63 }
0x2ccc   :  { %7512 = vmatpush1.bf16.msra.mxu1 %v12456_v60 }
0x2d82   :  { %v10603_v17 = vpop.f32.mrb[124].mxu1 }
0x2d83   :  { %v10604_v62 = vpop.f32.mrb[125].mxu1 }
0x2d84   :  { %v10605_v37 = vadd.f32 %v10604_v62, %v10603_v17  ;;  %v10606_v19 = vpop.f32.mrb[126].mxu1 }
0x2d85   :  { %v10607_v58 = vpop.f32.mrb[127].mxu1 }
0x2d86   :  { %v14447_v5 = vadd.f32 %v10605_v37, %v14362_v12  ;;  %v10608_v54 = vadd.f32 %v10607_v58, %v10606_v19  ;;  %v12461_v19 = vld [vmem:[#allocation2 + $0x420] ss:$20 sps:$4 sm:$0xff]  }
0x2d88   :  { %10082 = vst [vmem:[%s14892_s11 + $0x40] sm:$0xff] %v14447_v5  ;;  %v14454_v61 = vadd.f32 %v10608_v54, %v14372_v41  ;;  %v7147_v3 = vmul.f32 %v14447_v5, %v14447_v5 }
0x2d8a   :  { %10083 = vst [vmem:[%s14892_s11 + $0x48] sm:$0xff] %v14454_v61  ;;  %7151 = vadd.xlane.f32.xlu0 %v7147_v3  ;;  %v10609_v12 = vpop.f32.mrb[128].mxu1  ;;  %v7148_v40 = vmul.f32 %v14454_v61, %v14454_v61  ;;  %v12462_v3 = vld [vmem:[#allocation2 + $0x448] ss:$20 sps:$4 sm:$0xff]  }
0x2d8b   :  { %v10610_v31 = vpop.f32.mrb[129].mxu1 }
0x2d8c   :  { %v10611_v15 = vadd.f32 %v10610_v31, %v10609_v12  ;;  %7153 = vadd.xlane.f32.xlu1 %v7148_v40  ;;  %v10612_v34 = vpop.f32.mrb[130].mxu1  ;;  %v12463_v12 = vld [vmem:[#allocation2 + $0x470] ss:$20 sps:$4 sm:$0xff]   ;;  %v12464_v40 = vld [vmem:[#allocation2 + $0x498] ss:$20 sps:$4 sm:$0xff]  }
0x2d8d   :  { %v10613_v38 = vpop.f32.mrb[131].mxu1  ;;  %v12465_v31 = vld [vmem:[#allocation2 + $0x4c0] ss:$20 sps:$4 sm:$0xff]  }
0x2d8e   :  { %v14465_v41 = vadd.f32 %v10611_v15, %v14367_v23  ;;  %v10614_v6 = vadd.f32 %v10613_v38, %v10612_v34  ;;  %v12466_v15 = vld [vmem:[#allocation2 + $0x4e8] ss:$20 sps:$4 sm:$0xff]  }
0x2d90   :  { %10084 = vst [vmem:[%s14892_s11 + $0x50] sm:$0xff] %v14465_v41  ;;  %v14472_v32 = vadd.f32 %v10614_v6, %v14381_v22  ;;  %v7149_v48 = vmul.f32 %v14465_v41, %v14465_v41  ;;  %v12437_v22 = vld [vmem:[#allocation2 + $0x464] ss:$20 sps:$4 sm:$0xff]  }
0x2d91   :  { %7452 = vmatprep.subr.bf16.mxu0 %v12437_v22 }
0x2d92   :  { %10085 = vst [vmem:[%s14892_s11 + $0x58] sm:$0xff] %v14472_v32  ;;  %7155 = vadd.xlane.f32.xlu0 %v7149_v48  ;;  %v7150_v23 = vmul.f32 %v14472_v32, %v14472_v32  ;;  %7453 = vmatpush1.bf16.msra.mxu0 %v12435_v10  ;;  %v13037_v10 = vld [vmem:[%s14889_s8 + $0x8] sm:$0xff] }
0x2d93   :  { %7454 = vmatprep.subr.bf16.mxu0 %v12443_v50 }
0x2d94   :  { %7157 = vadd.xlane.f32.xlu1 %v7150_v23 }
0x2d96   :  { %7455 = vmatpush1.bf16.msra.mxu0 %v12441_v51 }
0x2d97   :  { %7456 = vmatprep.subr.bf16.mxu0 %v12449_v24  ;;  %v13038_v24 = vld [vmem:[%s14890_s9 + $0x8] sm:$0xff] }
0x2d9a   :  { %7457 = vmatpush1.bf16.msra.mxu0 %v12447_v26 }
0x2d9b   :  { %7458 = vmatprep.subr.bf16.mxu0 %v12455_v45 }
0x2d9e   :  { %7459 = vmatpush1.bf16.msra.mxu0 %v12453_v59 }
0x2d9f   :  { %11183 = vmatprep.subr.bf16.mxu0 %v12459_v47 }
0x2e17   :  { %v7152_v42 = vpop.xlane.xlu0 %7151 }
0x2e18   :  { %v7159_v9 = vmul.f32 0.0078125, %v7152_v42  ;;  %v13039_v42 = vld [vmem:[%s14889_s8 + $0x10] sm:$0xff] }
0x2e19   :  { %v7154_v30 = vpop.xlane.xlu1 %7153 }
0x2e1a   :  { %v7163_v18 = vadd.f32 1e-06, %v7159_v9  ;;  %v7160_v57 = vmul.f32 0.0078125, %v7154_v30 }
0x2e1c   :  { %12875 = vrsqrt.f32 %v7163_v18  ;;  %v7164_v16 = vadd.f32 1e-06, %v7160_v57 }
0x2e1e   :  { %12877 = vrsqrt.f32 %v7164_v16  ;;  %v13040_v16 = vld [vmem:[%s14890_s9 + $0x10] sm:$0xff] }
0x2e1f   :  { %v7156_v8 = vpop.xlane.xlu0 %7155 }
0x2e20   :  { %v7161_v1 = vmul.f32 0.0078125, %v7156_v8 }
0x2e21   :  { %v7158_v35 = vpop.xlane.xlu1 %7157 }
0x2e22   :  { %v7165_v36 = vadd.f32 1e-06, %v7161_v1  ;;  %v7162_v7 = vmul.f32 0.0078125, %v7158_v35 }
0x2e24   :  { %12879 = vrsqrt.f32 %v7165_v36  ;;  %v7166_v14 = vadd.f32 1e-06, %v7162_v7  ;;  %v13041_v7 = vld [vmem:[%s14889_s8 + $0x18] sm:$0xff] }
0x2e26   :  { %v12876_v29 = vpop.eup %12875  ;;  %12881 = vrsqrt.f32 %v7166_v14 }
0x2e27   :  { %v7171_v28 = vmul.f32 %v12876_v29, %v14447_v5 }
0x2e28   :  { %v12878_v56 = vpop.eup %12877 }
0x2e29   :  { %v7172_v46 = vmul.f32 %v12878_v56, %v14454_v61  ;;  %v7181_v49 = vmul.f32 %v10087_v44, %v7171_v28 }
0x2e2b   :  { %v7182_v4 = vmul.f32 %v10087_v44, %v7172_v46 }
0x2e2d   :  { %v7185_v52 = vpack.c.bf16 %v7182_v4, %v7181_v49  ;;  %v13042_v49 = vld [vmem:[%s14890_s9 + $0x18] sm:$0xff] }
0x2e2e   :  { %v12880_v17 = vpop.eup %12879 }
0x2e2f   :  { %7477 = vmatmul.mubr.bf16.vlgmr.msra.gmra.mrb[108].mxu0 %v7185_v52  ;;  %7530 = vmatmul.mubr.bf16.vlgmr.msra.gmra.mrb[132].mxu1 %v7185_v52  ;;  %v7173_v62 = vmul.f32 %v12880_v17, %v14465_v41  ;;  %v13035_v41 = vld [vmem:[%s14889_s8] sm:$0xff] }
0x2e30   :  { %v12882_v37 = vpop.eup %12881  ;;  %11184 = vmatpush3.bf16.msra.mxu0 %v12459_v47  ;;  %7486 = vmatprep.mubr.bf16.mxu0 %v13130_v39 }
0x2e31   :  { %11185 = vmatprep.subr.bf16.mxu0 %v12460_v53  ;;  %7539 = vmatprep.mubr.bf16.mxu1 %v13130_v39  ;;  %v7174_v58 = vmul.f32 %v12882_v37, %v14472_v32  ;;  %v7183_v5 = vmul.f32 %v10087_v44, %v7173_v62 }
0x2e33   :  { %v7184_v54 = vmul.f32 %v10087_v44, %v7174_v58 }
0x2e34   :  { %11186 = vmatpush3.bf16.msra.mxu0 %v12460_v53 }
0x2e35   :  { %11187 = vmatprep.subr.bf16.mxu0 %v12461_v19  ;;  %v7186_v61 = vpack.c.bf16 %v7184_v54, %v7183_v5 }
0x2e37   :  { %7487 = vmatmul.mubr.bf16.gmra.mrb[112].mxu0 %v7186_v61  ;;  %7540 = vmatmul.mubr.bf16.gmra.mrb[136].mxu1 %v7186_v61 }
0x2e38   :  { %11188 = vmatpush3.bf16.msra.mxu0 %v12461_v19  ;;  %11199 = vmatprep.mubr.bf16.mxu0 %v7185_v52 }
0x2e39   :  { %11189 = vmatprep.subr.bf16.mxu0 %v12462_v3 }
0x2e3c   :  { %11190 = vmatpush3.bf16.msra.mxu0 %v12462_v3 }
0x2e3d   :  { %11191 = vmatprep.subr.bf16.mxu0 %v12463_v12 }
0x2e40   :  { %11192 = vmatpush3.bf16.msra.mxu0 %v12463_v12 }
0x2e41   :  { %11193 = vmatprep.subr.bf16.mxu0 %v12464_v40 }
0x2e44   :  { %11194 = vmatpush3.bf16.msra.mxu0 %v12464_v40 }
0x2e45   :  { %11195 = vmatprep.subr.bf16.mxu0 %v12465_v31 }
0x2e48   :  { %11196 = vmatpush3.bf16.msra.mxu0 %v12465_v31 }
0x2e49   :  { %11197 = vmatprep.subr.bf16.mxu0 %v12466_v15 }
0x2e4c   :  { %11198 = vmatpush3.bf16.msra.mxu0 %v12466_v15 }
0x2e4f   :  { %11200 = vmatmul.mubr.bf16.vlgmr.msra.gmra.mrb[116].mxu0 %v7186_v61 }
0x2f02   :  { %v7478_v34 = vpop.f32.mrb[108].mxu0  ;;  %v7531_v38 = vpop.f32.mrb[132].mxu1 }
0x2f03   :  { %v7599_v6 = vmul.f32 %v13035_v41, %v7478_v34  ;;  %v7611_v32 = vmul.f32 %v13035_v41, %v7531_v38  ;;  %v7480_v48 = vpop.f32.mrb[109].mxu0  ;;  %v7533_v23 = vpop.f32.mrb[133].mxu1  ;;  %v14550_v41 = vld [vmem:[%s14891_s10 + $0x8] sm:$0xff] }
0x2f04   :  { %v7603_v11 = vmul.f32 %v13036_v33, %v7480_v48  ;;  %v7615_v2 = vmul.f32 %v13036_v33, %v7533_v23  ;;  %v7482_v27 = vpop.f32.mrb[110].mxu0  ;;  %v7535_v22 = vpop.f32.mrb[134].mxu1 }
0x2f05   :  { %v7600_v21 = vmul.f32 %v13037_v10, %v7482_v27  ;;  %v7612_v13 = vmul.f32 %v13037_v10, %v7535_v22  ;;  %v7484_v50 = vpop.f32.mrb[111].mxu0  ;;  %v7537_v51 = vpop.f32.mrb[135].mxu1  ;;  %v14564_v10 = vld [vmem:[%s14891_s10 + $0x18] sm:$0xff] }
0x2f06   :  { %v14500_v0 = vadd.f32 %v7603_v11, %v7599_v6  ;;  %v7619_v55 = vadd.f32 %v7615_v2, %v7611_v32  ;;  %v7604_v26 = vmul.f32 %v13038_v24, %v7484_v50  ;;  %v7616_v20 = vmul.f32 %v13038_v24, %v7537_v51  ;;  %v14556_v32 = vld [vmem:[%s14891_s10] sm:$0xff] }
0x2f08   :  { %v14505_v25 = vadd.f32 %v7604_v26, %v7600_v21  ;;  %v7620_v45 = vadd.f32 %v7616_v20, %v7612_v13  ;;  %11211 = vmatprep.mubr.msk.f32.mxu1 %vm575_vm0, %v14500_v0  ;;  %v14570_v13 = vld [vmem:[%s14891_s10 + $0x10] sm:$0xff] }
0x2f0a   :  { %v7488_v59 = vpop.f32.mrb[112].mxu0  ;;  %v7541_v60 = vpop.f32.mrb[136].mxu1  ;;  %v11575_v63 = vpack.c.bf16 %v7620_v45, %v7619_v55  ;;  %v14509_v47 = vpack.i.bf16 %v7620_v45, %v7619_v55 }
0x2f0b   :  { %v7601_v9 = vmul.f32 %v13039_v42, %v7488_v59  ;;  %v7613_v30 = vmul.f32 %v13039_v42, %v7541_v60  ;;  %v7490_v18 = vpop.f32.mrb[113].mxu0  ;;  %v7543_v57 = vpop.f32.mrb[137].mxu1 }
0x2f0c   :  { %v7605_v8 = vmul.f32 %v13040_v16, %v7490_v18  ;;  %v7617_v1 = vmul.f32 %v13040_v16, %v7543_v57  ;;  %v7492_v35 = vpop.f32.mrb[114].mxu0  ;;  %v7545_v36 = vpop.f32.mrb[138].mxu1  ;;  %11577 = vmatprep.subr.msk.bf16.mxu1 %vm13293_vm1, %v11575_v63 }
0x2f0d   :  { %v7602_v14 = vmul.f32 %v13041_v7, %v7492_v35  ;;  %v7614_v29 = vmul.f32 %v13041_v7, %v7545_v36  ;;  %v7494_v28 = vpop.f32.mrb[115].mxu0  ;;  %v7547_v56 = vpop.f32.mrb[139].mxu1  ;;  %11580 = vmatpush3.bf16.xpose.msk.msra.mxu1 %vm13293_vm1, %v11575_v63 }
0x2f0e   :  { %v14524_v44 = vadd.f32 %v7605_v8, %v7601_v9  ;;  %v7621_v46 = vadd.f32 %v7617_v1, %v7613_v30  ;;  %v7606_v4 = vmul.f32 %v13042_v49, %v7494_v28  ;;  %v7618_v52 = vmul.f32 %v13042_v49, %v7547_v56 }
0x2f10   :  { %v14529_v53 = vadd.f32 %v7606_v4, %v7602_v14  ;;  %v7622_v17 = vadd.f32 %v7618_v52, %v7614_v29 }
0x2f12   :  { %v11581_v62 = vpack.c.bf16 %v7622_v17, %v7621_v46  ;;  %v14531_v37 = vpack.i.bf16 %v7622_v17, %v7621_v46 }
0x2f14   :  { %11583 = vmatprep.subr.msk.bf16.mxu1 %vm13293_vm1, %v11581_v62 }
0x2f15   :  { %11586 = vmatpush3.bf16.xpose.msk.msra.mxu1 %vm13293_vm1, %v11581_v62 }
0x2f1c   :  { %11212 = vmatmul.mubr.msk.f32.vlgmr.msra.gmra.mrb[140].mxu1 %vm575_vm0, %v14505_v25 }
0x2f1d   :  { %11214 = vmatprep.mubr.msk.f32.mxu1 %vm575_vm0, %v14524_v44 }
0x2f20   :  { %11215 = vmatmul.mubr.msk.f32.gmra.mrb[142].mxu1 %vm575_vm0, %v14529_v53 }
0x2f22   :  { %v11201_v19 = vpop.f32.mrb[116].mxu0 }
0x2f23   :  { %v7584_v58 = vpop.f32.mrb[117].mxu0 }
0x2f24   :  { %v11202_v5 = vpop.f32.mrb[118].mxu0 }
0x2f25   :  { %v14543_v54 = vpack.i.bf16 %v11202_v5, %v11201_v19  ;;  %v7587_v61 = vpop.f32.mrb[119].mxu0  ;;  %v11591_v3 = vpack.c.bf16 %v11202_v5, %v11201_v19 }
0x2f26   :  { %v14545_v12 = vpack.i.bf16 %v7587_v61, %v7584_v58  ;;  %v11587_v40 = vpack.c.bf16 %v7587_v61, %v7584_v58 }
0x2f28   :  { %11588 = vmatprep.subr.bf16.mxu1 %v11587_v40 }
0x2f29   :  { %11590 = vmatpush3.bf16.msra.mxu1 %v11587_v40 }
0x2f2a   :  { %11592 = vmatprep.subr.bf16.mxu1 %v11591_v3 }
0x2f2d   :  { %11594 = vmatpush3.bf16.msra.mxu1 %v11591_v3 }
0x2fef   :  { %v11213_v31 = vpop.f32.mrb[140].mxu1 }
0x2ff0   :  { %v7733_v15 = vmul.f32 0.17677669, %v11213_v31  ;;  %v7713_v34 = vpop.f32.mrb[141].mxu1 }
0x2ff1   :  { %v7732_v38 = vmul.f32 0.17677669, %v7713_v34 }
0x2ff2   :  { %v7737_v6 = vadd.f32 %v14550_v41, %v7733_v15 }
0x2ff3   :  { %v7736_v48 = vadd.f32 %v14556_v32, %v7732_v38  ;;  %v11216_v23 = vpop.f32.mrb[142].mxu1 }
0x2ff4   :  { %v7735_v33 = vmul.f32 0.17677669, %v11216_v23  ;;  %v7723_v11 = vpop.f32.mrb[143].mxu1  ;;  %v7743_v2 = vsel %vm575_vm0, %v7737_v6, -inf }
0x2ff5   :  { %v7734_v27 = vmul.f32 0.17677669, %v7723_v11  ;;  %7744 = vmax.xlane.f32.xlu1 %v7743_v2  ;;  %v7740_v22 = vsel %vm575_vm0, %v7736_v48, -inf }
0x2ff6   :  { %v7739_v21 = vadd.f32 %v14564_v10, %v7735_v33  ;;  %7741 = vmax.xlane.f32.xlu0 %v7740_v22 }
0x2ff7   :  { %v7738_v50 = vadd.f32 %v14570_v13, %v7734_v27 }
0x2ff8   :  { %v7749_v51 = vsel %vm575_vm0, %v7739_v21, -inf }
0x2ff9   :  { %7750 = vmax.xlane.f32.xlu1 %v7749_v51  ;;  %v7746_v55 = vsel %vm575_vm0, %v7738_v50, -inf }
0x2ffa   :  { %7747 = vmax.xlane.f32.xlu0 %v7746_v55 }
0x3082   :  { %v7745_v24 = vpop.xlane.xlu1 %7744 }
0x3083   :  { %v7753_v26 = vsub.f32 %v7737_v6, %v7745_v24  ;;  %v7742_v20 = vpop.xlane.xlu0 %7741 }
0x3084   :  { %v7752_v45 = vsub.f32 %v7736_v48, %v7742_v20 }
0x3085   :  { %v7758_v59 = vmul.f32 1.442695, %v7753_v26 }
0x3086   :  { %v7756_v60 = vmul.f32 1.442695, %v7752_v45  ;;  %v7751_v63 = vpop.xlane.xlu1 %7750 }
0x3087   :  { %12883 = vpow2.f32 %v7758_v59  ;;  %v7755_v42 = vsub.f32 %v7739_v21, %v7751_v63  ;;  %v7748_v9 = vpop.xlane.xlu0 %7747 }
0x3088   :  { %12885 = vpow2.f32 %v7756_v60  ;;  %v7754_v30 = vsub.f32 %v7738_v50, %v7748_v9 }
0x3089   :  { %v7762_v18 = vmul.f32 1.442695, %v7755_v42 }
0x308a   :  { %v7760_v57 = vmul.f32 1.442695, %v7754_v30 }
0x308b   :  { %12887 = vpow2.f32 %v7762_v18 }
0x308c   :  { %12889 = vpow2.f32 %v7760_v57 }
0x3091   :  { %v12884_v16 = vpop.eup %12883 }
0x3092   :  { %v12886_v8 = vpop.eup %12885  ;;  %v7767_v1 = vsel %vm575_vm0, %v12884_v16, 0.0 }
0x3093   :  { %7768 = vadd.xlane.f32.xlu1 %v7767_v1  ;;  %v7764_v35 = vsel %vm575_vm0, %v12886_v8, 0.0 }
0x3094   :  { %7765 = vadd.xlane.f32.xlu0 %v7764_v35 }
0x3095   :  { %v12888_v36 = vpop.eup %12887 }
0x3096   :  { %v12890_v7 = vpop.eup %12889  ;;  %v7773_v14 = vsel %vm575_vm0, %v12888_v36, 0.0 }
0x3097   :  { %7774 = vadd.xlane.f32.xlu1 %v7773_v14  ;;  %v7770_v29 = vsel %vm575_vm0, %v12890_v7, 0.0 }
0x3098   :  { %7771 = vadd.xlane.f32.xlu0 %v7770_v29 }
0x30a8   :  { %11943 = vrot.lane.b32.xlu1 %v14531_v37, %s13131_s22 }
0x30ac   :  { %7881 = vrot.lane.b32.xlu1 %v14500_v0, %s13131_s22 }
0x30ae   :  { %11938 = vrot.lane.b32.xlu0 %v14509_v47, %s13131_s22 }
0x30b0   :  { %7883 = vrot.lane.b32.xlu1 %v14505_v25, %s13131_s22 }
0x30b2   :  { %7885 = vrot.lane.b32.xlu0 %v14524_v44, %s13131_s22 }
0x30b4   :  { %7887 = vrot.lane.b32.xlu1 %v14529_v53, %s13131_s22 }
0x3120   :  { %v7769_v28 = vpop.xlane.xlu1 %7768 }
0x3121   :  { %12891 = vrcp.f32 %v7769_v28  ;;  %v7766_v56 = vpop.xlane.xlu0 %7765 }
0x3122   :  { %12893 = vrcp.f32 %v7766_v56 }
0x3124   :  { %v7775_v46 = vpop.xlane.xlu1 %7774 }
0x3125   :  { %12895 = vrcp.f32 %v7775_v46  ;;  %v7772_v49 = vpop.xlane.xlu0 %7771 }
0x3126   :  { %12897 = vrcp.f32 %v7772_v49 }
0x3128   :  { %v11944_v4 = vpop.permute.xlu1 %11943 }
0x3129   :  { %v11939_v52 = vpop.permute.xlu0 %11938  ;;  %v11946_v5 = vunpack.i.h.bf16 %v11944_v4  ;;  %v11945_v61 = vunpack.i.l.bf16 %v11944_v4 }
0x312a   :  { %v11941_v17 = vunpack.i.h.bf16 %v11939_v52  ;;  %v11940_v62 = vunpack.i.l.bf16 %v11939_v52 }
0x312b   :  { %v12892_v19 = vpop.eup %12891  ;;  %v11601_v38 = vpack.c.bf16 %v11946_v5, %v11945_v61 }
0x312c   :  { %v12894_v58 = vpop.eup %12893  ;;  %v11595_v3 = vpack.c.bf16 %v11941_v17, %v11940_v62  ;;  %v7781_v31 = vmul.f32 %v12892_v19, %v12884_v16  ;;  %v7882_v23 = vpop.permute.xlu1 %7881 }
0x312d   :  { %v7780_v40 = vmul.f32 %v12894_v58, %v12886_v8  ;;  %v7886_v11 = vpop.permute.xlu0 %7885 }
0x312e   :  { %11597 = vmatprep.subr.msk.bf16.mxu1 %vm13293_vm1, %v11595_v3 }
0x312f   :  { %v12896_v15 = vpop.eup %12895  ;;  %11225 = vmatprep.mubr.msk.f32.mxu1 %vm575_vm0, %v7780_v40 }
0x3130   :  { %v12898_v34 = vpop.eup %12897  ;;  %11226 = vmatmul.mubr.msk.f32.vlgmr.msra.gmra.mrb[144].mxu1 %vm575_vm0, %v7781_v31  ;;  %v7783_v48 = vmul.f32 %v12896_v15, %v12888_v36  ;;  %v7884_v33 = vpop.permute.xlu1 %7883 }
0x3131   :  { %11600 = vmatpush3.bf16.xpose.msk.msra.mxu1 %vm13293_vm1, %v11595_v3  ;;  %v7782_v6 = vmul.f32 %v12898_v34, %v12890_v7 }
0x3132   :  { %11603 = vmatprep.subr.msk.bf16.mxu1 %vm13293_vm1, %v11601_v38 }
0x3133   :  { %11228 = vmatprep.mubr.msk.f32.mxu1 %vm575_vm0, %v7782_v6 }
0x3134   :  { %11229 = vmatmul.mubr.msk.f32.gmra.mrb[146].mxu1 %vm575_vm0, %v7783_v48  ;;  %v7888_v2 = vpop.permute.xlu1 %7887 }
0x3135   :  { %11239 = vmatprep.mubr.msk.f32.mxu1 %vm575_vm0, %v7882_v23 }
0x3139   :  { %11606 = vmatpush3.bf16.xpose.msk.msra.mxu1 %vm13293_vm1, %v11601_v38 }
0x3140   :  { %11240 = vmatmul.mubr.msk.f32.vlgmr.msra.gmra.mrb[148].mxu1 %vm575_vm0, %v7884_v33 }
0x3141   :  { %11242 = vmatprep.mubr.msk.f32.mxu1 %vm575_vm0, %v7886_v11 }
0x3144   :  { %11243 = vmatmul.mubr.msk.f32.gmra.mrb[150].mxu1 %vm575_vm0, %v7888_v2 }
0x3203   :  { %v14607_v27 = vpop.f32.mrb[144].mxu1 }
0x3204   :  { %v14609_v22 = vpop.f32.mrb[145].mxu1 }
0x3207   :  { %v14611_v21 = vpop.f32.mrb[146].mxu1 }
0x3208   :  { %v14613_v50 = vpop.f32.mrb[147].mxu1 }
0x3213   :  { %v11241_v51 = vpop.f32.mrb[148].mxu1 }
0x3214   :  { %v7999_v55 = vmul.f32 0.17677669, %v11241_v51  ;;  %v7979_v24 = vpop.f32.mrb[149].mxu1 }
0x3215   :  { %v7998_v26 = vmul.f32 0.17677669, %v7979_v24 }
0x3216   :  { %v8003_v20 = vadd.f32 %v14550_v41, %v7999_v55 }
0x3217   :  { %v8002_v45 = vadd.f32 %v14556_v32, %v7998_v26  ;;  %v11244_v59 = vpop.f32.mrb[150].mxu1 }
0x3218   :  { %v7989_v60 = vpop.f32.mrb[151].mxu1  ;;  %v8009_v63 = vsel %vm575_vm0, %v8003_v20, -inf  ;;  %v8001_v42 = vmul.f32 0.17677669, %v11244_v59 }
0x3219   :  { %v8000_v9 = vmul.f32 0.17677669, %v7989_v60  ;;  %8010 = vmax.xlane.f32.xlu1 %v8009_v63  ;;  %v8006_v30 = vsel %vm575_vm0, %v8002_v45, -inf }
0x321a   :  { %8007 = vmax.xlane.f32.xlu0 %v8006_v30  ;;  %v8005_v57 = vadd.f32 %v14564_v10, %v8001_v42 }
0x321b   :  { %v8004_v18 = vadd.f32 %v14570_v13, %v8000_v9 }
0x321c   :  { %v8015_v8 = vsel %vm575_vm0, %v8005_v57, -inf }
0x321d   :  { %v8012_v16 = vsel %vm575_vm0, %v8004_v18, -inf }
0x321e   :  { %8013 = vmax.xlane.f32.xlu0 %v8012_v16 }
0x3222   :  { %8016 = vmax.xlane.f32.xlu0 %v8015_v8 }
0x32a6   :  { %v8011_v1 = vpop.xlane.xlu1 %8010 }
0x32a7   :  { %v8019_v35 = vsub.f32 %v8003_v20, %v8011_v1  ;;  %v8008_v36 = vpop.xlane.xlu0 %8007 }
0x32a8   :  { %v8018_v7 = vsub.f32 %v8002_v45, %v8008_v36 }
0x32a9   :  { %v8024_v14 = vmul.f32 1.442695, %v8019_v35 }
0x32aa   :  { %v8022_v29 = vmul.f32 1.442695, %v8018_v7 }
0x32ab   :  { %12899 = vpow2.f32 %v8024_v14  ;;  %v8014_v4 = vpop.xlane.xlu0 %8013 }
0x32ac   :  { %12901 = vpow2.f32 %v8022_v29  ;;  %v8020_v52 = vsub.f32 %v8004_v18, %v8014_v4 }
0x32ae   :  { %v8026_v17 = vmul.f32 1.442695, %v8020_v52 }
0x32af   :  { %v8017_v62 = vpop.xlane.xlu0 %8016 }
0x32b0   :  { %v8021_v19 = vsub.f32 %v8005_v57, %v8017_v62  ;;  %12903 = vpow2.f32 %v8026_v17 }
0x32b2   :  { %v8028_v58 = vmul.f32 1.442695, %v8021_v19 }
0x32b4   :  { %12905 = vpow2.f32 %v8028_v58 }
0x32b5   :  { %v12900_v28 = vpop.eup %12899 }
0x32b6   :  { %v12902_v56 = vpop.eup %12901  ;;  %v8033_v46 = vsel %vm575_vm0, %v12900_v28, 0.0 }
0x32b7   :  { %8034 = vadd.xlane.f32.xlu1 %v8033_v46  ;;  %v8030_v49 = vsel %vm575_vm0, %v12902_v56, 0.0 }
0x32b8   :  { %8031 = vadd.xlane.f32.xlu0 %v8030_v49 }
0x32ba   :  { %v12904_v5 = vpop.eup %12903 }
0x32bb   :  { %v8036_v61 = vsel %vm575_vm0, %v12904_v5, 0.0 }
0x32be   :  { %v12906_v3 = vpop.eup %12905 }
0x32bf   :  { %v8039_v40 = vsel %vm575_vm0, %v12906_v3, 0.0 }
0x32c8   :  { %11953 = vrot.lane.b32.xlu1 %v14543_v54, %s13131_s22 }
0x32cc   :  { %11958 = vrot.lane.b32.xlu1 %v14509_v47, %s13122_s13 }
0x32ce   :  { %11948 = vrot.lane.b32.xlu0 %v14545_v12, %s13131_s22 }
0x32d0   :  { %11963 = vrot.lane.b32.xlu1 %v14531_v37, %s13122_s13 }
0x32ed   :  { %8037 = vadd.xlane.f32.xlu0 %v8036_v61 }
0x32f4   :  { %8040 = vadd.xlane.f32.xlu1 %v8039_v40 }
0x3303   :  { %8163 = vrot.lane.b32.xlu0 %v14500_v0, %s13122_s13 }
0x3305   :  { %8165 = vrot.lane.b32.xlu1 %v14505_v25, %s13122_s13 }
0x3307   :  { %8167 = vrot.lane.b32.xlu0 %v14524_v44, %s13122_s13 }
0x3309   :  { %8169 = vrot.lane.b32.xlu1 %v14529_v53, %s13122_s13 }
0x3344   :  { %v8035_v31 = vpop.xlane.xlu1 %8034 }
0x3345   :  { %v8032_v15 = vpop.xlane.xlu0 %8031 }
0x3346   :  { %12907 = vrcp.f32 %v8032_v15 }
0x3347   :  { %12909 = vrcp.f32 %v8035_v31 }
0x3348   :  { %v11954_v34 = vpop.permute.xlu1 %11953 }
0x3349   :  { %v11949_v38 = vpop.permute.xlu0 %11948  ;;  %v11956_v6 = vunpack.i.h.bf16 %v11954_v34  ;;  %v11955_v48 = vunpack.i.l.bf16 %v11954_v34 }
0x334a   :  { %v11951_v23 = vunpack.i.h.bf16 %v11949_v38  ;;  %v11950_v33 = vunpack.i.l.bf16 %v11949_v38 }
0x334b   :  { %v11611_v51 = vpack.c.bf16 %v11956_v6, %v11955_v48 }
0x334c   :  { %v11607_v11 = vpack.c.bf16 %v11951_v23, %v11950_v33  ;;  %v11959_v2 = vpop.permute.xlu1 %11958 }
0x334d   :  { %v11961_v55 = vunpack.i.h.bf16 %v11959_v2  ;;  %v11960_v24 = vunpack.i.l.bf16 %v11959_v2 }
0x334e   :  { %11608 = vmatprep.subr.bf16.mxu0 %v11607_v11 }
0x334f   :  { %11610 = vmatpush3.bf16.msra.mxu0 %v11607_v11  ;;  %v11615_v59 = vpack.c.bf16 %v11961_v55, %v11960_v24 }
0x3350   :  { %v12908_v26 = vpop.eup %12907  ;;  %11612 = vmatprep.subr.bf16.mxu0 %v11611_v51  ;;  %v11964_v63 = vpop.permute.xlu1 %11963 }
0x3351   :  { %v12910_v20 = vpop.eup %12909  ;;  %v8046_v45 = vmul.f32 %v12908_v26, %v12902_v56  ;;  %v11966_v42 = vunpack.i.h.bf16 %v11964_v63  ;;  %v11965_v9 = vunpack.i.l.bf16 %v11964_v63 }
0x3352   :  { %v8047_v60 = vmul.f32 %v12910_v20, %v12900_v28 }
0x3353   :  { %11614 = vmatpush3.bf16.msra.mxu0 %v11611_v51  ;;  %11253 = vmatprep.mubr.msk.f32.mxu0 %vm575_vm0, %v8046_v45  ;;  %v11621_v30 = vpack.c.bf16 %v11966_v42, %v11965_v9 }
0x3354   :  { %11617 = vmatprep.subr.msk.bf16.mxu0 %vm13293_vm1, %v11615_v59 }
0x3356   :  { %11254 = vmatmul.mubr.msk.f32.vlgmr.msra.gmra.mrb[120].mxu0 %vm575_vm0, %v8047_v60 }
0x335c   :  { %11620 = vmatpush3.bf16.xpose.msk.msra.mxu0 %vm13293_vm1, %v11615_v59 }
0x335d   :  { %11623 = vmatprep.subr.msk.bf16.mxu0 %vm13293_vm1, %v11621_v30 }
0x3364   :  { %11626 = vmatpush3.bf16.xpose.msk.msra.mxu0 %vm13293_vm1, %v11621_v30 }
0x337a   :  { %v8038_v18 = vpop.xlane.xlu0 %8037 }
0x337b   :  { %12911 = vrcp.f32 %v8038_v18 }
0x337e   :  { %v8164_v35 = vpop.permute.xlu0 %8163 }
0x3381   :  { %v8041_v57 = vpop.xlane.xlu1 %8040 }
0x3382   :  { %12913 = vrcp.f32 %v8041_v57  ;;  %v8168_v14 = vpop.permute.xlu0 %8167 }
0x3385   :  { %v12912_v16 = vpop.eup %12911  ;;  %v8166_v7 = vpop.permute.xlu1 %8165 }
0x3386   :  { %v8048_v8 = vmul.f32 %v12912_v16, %v12904_v5 }
0x3388   :  { %11256 = vmatprep.mubr.msk.f32.mxu0 %vm575_vm0, %v8048_v8 }
0x3389   :  { %v8170_v29 = vpop.permute.xlu1 %8169 }
0x338c   :  { %v12914_v1 = vpop.eup %12913 }
0x338d   :  { %v8049_v36 = vmul.f32 %v12914_v1, %v12906_v3 }
0x338f   :  { %11257 = vmatmul.mubr.msk.f32.gmra.mrb[122].mxu0 %vm575_vm0, %v8049_v36 }
0x3390   :  { %11267 = vmatprep.mubr.msk.f32.mxu0 %vm575_vm0, %v8164_v35 }
0x3393   :  { %11268 = vmatmul.mubr.msk.f32.vlgmr.msra.gmra.mrb[124].mxu0 %vm575_vm0, %v8166_v7 }
0x3394   :  { %11270 = vmatprep.mubr.msk.f32.mxu0 %vm575_vm0, %v8168_v14 }
0x3397   :  { %11271 = vmatmul.mubr.msk.f32.gmra.mrb[126].mxu0 %vm575_vm0, %v8170_v29 }
0x3429   :  { %v14659_v28 = vpop.f32.mrb[120].mxu0 }
0x342a   :  { %v14661_v56 = vpop.f32.mrb[121].mxu0 }
0x342b   :  { %v11997_v46 = vpack.i.bf16 %v14659_v28, %v14661_v56 }
0x3462   :  { %v14665_v49 = vpop.f32.mrb[122].mxu0 }
0x3463   :  { %v14667_v4 = vpop.f32.mrb[123].mxu0 }
0x3464   :  { %v12002_v52 = vpack.i.bf16 %v14665_v49, %v14667_v4 }
0x3466   :  { %v11269_v17 = vpop.f32.mrb[124].mxu0 }
0x3467   :  { %v8281_v62 = vmul.f32 0.17677669, %v11269_v17  ;;  %v8261_v19 = vpop.f32.mrb[125].mxu0 }
0x3468   :  { %v8280_v58 = vmul.f32 0.17677669, %v8261_v19 }
0x3469   :  { %v8285_v5 = vadd.f32 %v14550_v41, %v8281_v62 }
0x346a   :  { %v8284_v61 = vadd.f32 %v14556_v32, %v8280_v58  ;;  %v11272_v3 = vpop.f32.mrb[126].mxu0 }
0x346b   :  { %v8271_v40 = vpop.f32.mrb[127].mxu0  ;;  %v8291_v31 = vsel %vm575_vm0, %v8285_v5, -inf  ;;  %v8283_v15 = vmul.f32 0.17677669, %v11272_v3 }
0x346c   :  { %v8282_v34 = vmul.f32 0.17677669, %v8271_v40  ;;  %8292 = vmax.xlane.f32.xlu1 %v8291_v31  ;;  %v8288_v38 = vsel %vm575_vm0, %v8284_v61, -inf }
0x346d   :  { %8289 = vmax.xlane.f32.xlu0 %v8288_v38  ;;  %v8287_v48 = vadd.f32 %v14564_v10, %v8283_v15 }
0x346e   :  { %v8286_v6 = vadd.f32 %v14570_v13, %v8282_v34 }
0x346f   :  { %v8297_v33 = vsel %vm575_vm0, %v8287_v48, -inf }
0x3470   :  { %v8294_v23 = vsel %vm575_vm0, %v8286_v6, -inf }
0x3471   :  { %8295 = vmax.xlane.f32.xlu0 %v8294_v23 }
0x3475   :  { %8298 = vmax.xlane.f32.xlu0 %v8297_v33 }
0x34f9   :  { %v8293_v11 = vpop.xlane.xlu1 %8292 }
0x34fa   :  { %v8301_v2 = vsub.f32 %v8285_v5, %v8293_v11  ;;  %v8290_v51 = vpop.xlane.xlu0 %8289 }
0x34fb   :  { %v8300_v55 = vsub.f32 %v8284_v61, %v8290_v51 }
0x34fc   :  { %v8306_v24 = vmul.f32 1.442695, %v8301_v2 }
0x34fd   :  { %v8304_v26 = vmul.f32 1.442695, %v8300_v55 }
0x34fe   :  { %12915 = vpow2.f32 %v8306_v24  ;;  %v8296_v63 = vpop.xlane.xlu0 %8295 }
0x34ff   :  { %12917 = vpow2.f32 %v8304_v26  ;;  %v8302_v42 = vsub.f32 %v8286_v6, %v8296_v63 }
0x3501   :  { %v8308_v9 = vmul.f32 1.442695, %v8302_v42 }
0x3502   :  { %v8299_v30 = vpop.xlane.xlu0 %8298 }
0x3503   :  { %v8303_v18 = vsub.f32 %v8287_v48, %v8299_v30  ;;  %12919 = vpow2.f32 %v8308_v9 }
0x3505   :  { %v8310_v57 = vmul.f32 1.442695, %v8303_v18 }
0x3507   :  { %12921 = vpow2.f32 %v8310_v57 }
0x3508   :  { %v12916_v20 = vpop.eup %12915 }
0x3509   :  { %v12918_v45 = vpop.eup %12917  ;;  %v8315_v59 = vsel %vm575_vm0, %v12916_v20, 0.0 }
0x350a   :  { %8316 = vadd.xlane.f32.xlu1 %v8315_v59  ;;  %v8312_v60 = vsel %vm575_vm0, %v12918_v45, 0.0 }
0x350b   :  { %8313 = vadd.xlane.f32.xlu0 %v8312_v60 }
0x350d   :  { %v12920_v16 = vpop.eup %12919 }
0x350e   :  { %v8318_v8 = vsel %vm575_vm0, %v12920_v16, 0.0 }
0x3511   :  { %v12922_v1 = vpop.eup %12921 }
0x351b   :  { %11973 = vrot.lane.b32.xlu1 %v14543_v54, %s13122_s13 }
0x351f   :  { %11978 = vrot.lane.b32.xlu1 %v14509_v47, %s13132_s28  ;;  %v8321_v47 = vsel %vm575_vm0, %v12922_v1, 0.0 }
0x3521   :  { %11968 = vrot.lane.b32.xlu0 %v14545_v12, %s13122_s13 }
0x3523   :  { %11983 = vrot.lane.b32.xlu1 %v14531_v37, %s13132_s28 }
0x3540   :  { %8319 = vadd.xlane.f32.xlu0 %v8318_v8 }
0x3547   :  { %8322 = vadd.xlane.f32.xlu1 %v8321_v47 }
0x3556   :  { %8441 = vrot.lane.b32.xlu0 %v14500_v0, %s13132_s28 }
0x3558   :  { %8443 = vrot.lane.b32.xlu1 %v14505_v25, %s13132_s28 }
0x355a   :  { %8445 = vrot.lane.b32.xlu0 %v14524_v44, %s13132_s28 }
0x355c   :  { %8447 = vrot.lane.b32.xlu1 %v14529_v53, %s13132_s28 }
0x3597   :  { %v8317_v37 = vpop.xlane.xlu1 %8316 }
0x3598   :  { %v8314_v35 = vpop.xlane.xlu0 %8313 }
0x3599   :  { %12923 = vrcp.f32 %v8314_v35 }
0x359a   :  { %12925 = vrcp.f32 %v8317_v37 }
0x359b   :  { %v11974_v36 = vpop.permute.xlu1 %11973 }
0x359c   :  { %v11969_v7 = vpop.permute.xlu0 %11968  ;;  %v11976_v14 = vunpack.i.h.bf16 %v11974_v36  ;;  %v11975_v29 = vunpack.i.l.bf16 %v11974_v36 }
0x359d   :  { %v11971_v17 = vunpack.i.h.bf16 %v11969_v7  ;;  %v11970_v62 = vunpack.i.l.bf16 %v11969_v7 }
0x359e   :  { %v11631_v58 = vpack.c.bf16 %v11976_v14, %v11975_v29 }
0x359f   :  { %v11627_v0 = vpack.c.bf16 %v11971_v17, %v11970_v62  ;;  %v11979_v19 = vpop.permute.xlu1 %11978 }
0x35a0   :  { %v11981_v25 = vunpack.i.h.bf16 %v11979_v19  ;;  %v11980_v5 = vunpack.i.l.bf16 %v11979_v19 }
0x35a1   :  { %11628 = vmatprep.subr.bf16.mxu1 %v11627_v0 }
0x35a2   :  { %11630 = vmatpush3.bf16.msra.mxu1 %v11627_v0  ;;  %v11635_v3 = vpack.c.bf16 %v11981_v25, %v11980_v5 }
0x35a3   :  { %v12924_v44 = vpop.eup %12923  ;;  %11632 = vmatprep.subr.bf16.mxu1 %v11631_v58  ;;  %v11984_v31 = vpop.permute.xlu1 %11983 }
0x35a4   :  { %v12926_v53 = vpop.eup %12925  ;;  %v8328_v61 = vmul.f32 %v12924_v44, %v12918_v45  ;;  %v11986_v15 = vunpack.i.h.bf16 %v11984_v31  ;;  %v11985_v34 = vunpack.i.l.bf16 %v11984_v31 }
0x35a5   :  { %v8329_v40 = vmul.f32 %v12926_v53, %v12916_v20 }
0x35a6   :  { %11634 = vmatpush3.bf16.msra.mxu1 %v11631_v58  ;;  %11281 = vmatprep.mubr.msk.f32.mxu1 %vm575_vm0, %v8328_v61  ;;  %v11641_v38 = vpack.c.bf16 %v11986_v15, %v11985_v34 }
0x35a7   :  { %11637 = vmatprep.subr.msk.bf16.mxu1 %vm13293_vm1, %v11635_v3 }
0x35a9   :  { %11282 = vmatmul.mubr.msk.f32.vlgmr.msra.gmra.mrb[152].mxu1 %vm575_vm0, %v8329_v40 }
0x35af   :  { %11640 = vmatpush3.bf16.xpose.msk.msra.mxu1 %vm13293_vm1, %v11635_v3 }
0x35b0   :  { %11643 = vmatprep.subr.msk.bf16.mxu1 %vm13293_vm1, %v11641_v38 }
0x35b7   :  { %11646 = vmatpush3.bf16.xpose.msk.msra.mxu1 %vm13293_vm1, %v11641_v38 }
0x35cd   :  { %v8320_v6 = vpop.xlane.xlu0 %8319 }
0x35ce   :  { %12927 = vrcp.f32 %v8320_v6 }
0x35d1   :  { %v8442_v2 = vpop.permute.xlu0 %8441 }
0x35d4   :  { %v8323_v48 = vpop.xlane.xlu1 %8322 }
0x35d5   :  { %12929 = vrcp.f32 %v8323_v48  ;;  %v8446_v24 = vpop.permute.xlu0 %8445 }
0x35d8   :  { %v12928_v23 = vpop.eup %12927  ;;  %v8444_v55 = vpop.permute.xlu1 %8443 }
0x35d9   :  { %v8330_v33 = vmul.f32 %v12928_v23, %v12920_v16 }
0x35db   :  { %11284 = vmatprep.mubr.msk.f32.mxu1 %vm575_vm0, %v8330_v33 }
0x35dc   :  { %v8448_v43 = vpop.permute.xlu1 %8447 }
0x35df   :  { %v12930_v11 = vpop.eup %12929 }
0x35e0   :  { %v8331_v51 = vmul.f32 %v12930_v11, %v12922_v1 }
0x35e2   :  { %11285 = vmatmul.mubr.msk.f32.gmra.mrb[154].mxu1 %vm575_vm0, %v8331_v51 }
0x35e3   :  { %11295 = vmatprep.mubr.msk.f32.mxu1 %vm575_vm0, %v8442_v2 }
0x35e6   :  { %11296 = vmatmul.mubr.msk.f32.vlgmr.msra.gmra.mrb[156].mxu1 %vm575_vm0, %v8444_v55 }
0x35e7   :  { %11298 = vmatprep.mubr.msk.f32.mxu1 %vm575_vm0, %v8446_v24 }
0x35ea   :  { %11299 = vmatmul.mubr.msk.f32.gmra.mrb[158].mxu1 %vm575_vm0, %v8448_v43 }
0x35eb   :  { %9166 = vmatprep.mubr.bf16.mxu1 %v13130_v39 }
0x367c   :  { %v11283_v26 = vpop.f32.mrb[152].mxu1 }
0x367d   :  { %v8422_v20 = vpop.f32.mrb[153].mxu1 }
0x367e   :  { %v12007_v45 = vpack.i.bf16 %v11283_v26, %v8422_v20 }
0x36b5   :  { %v11286_v59 = vpop.f32.mrb[154].mxu1 }
0x36b6   :  { %v8432_v60 = vpop.f32.mrb[155].mxu1 }
0x36b7   :  { %v12012_v63 = vpack.i.bf16 %v11286_v59, %v8432_v60  ;;  %v12467_v59 = vld [vmem:[#allocation4 + $0xc0] sm:$0xff]   ;;  %v12468_v60 = vld [vmem:[#allocation4 + $0xc8] sm:$0xff]  }
0x36b9   :  { %v11297_v42 = vpop.f32.mrb[156].mxu1 }
0x36ba   :  { %v8559_v9 = vmul.f32 0.17677669, %v11297_v42  ;;  %v8539_v30 = vpop.f32.mrb[157].mxu1  ;;  %v12470_v42 = vld [vmem:[#allocation4 + $0xd8] sm:$0xff]  }
0x36bb   :  { %v8558_v18 = vmul.f32 0.17677669, %v8539_v30  ;;  %v12472_v30 = vld [vmem:[#allocation4 + $0xe8] sm:$0xff]  }
0x36bc   :  { %v8563_v57 = vadd.f32 %v14550_v41, %v8559_v9  ;;  %v12471_v9 = vld [vmem:[#allocation4 + $0xe0] sm:$0xff]  }
0x36bd   :  { %v8562_v16 = vadd.f32 %v14556_v32, %v8558_v18  ;;  %v11300_v8 = vpop.f32.mrb[158].mxu1  ;;  %v12473_v18 = vld [vmem:[#allocation4 + $0xf0] sm:$0xff]  }
0x36be   :  { %v8549_v1 = vpop.f32.mrb[159].mxu1  ;;  %v8569_v47 = vsel %vm575_vm0, %v8563_v57, -inf  ;;  %v8561_v37 = vmul.f32 0.17677669, %v11300_v8 }
0x36bf   :  { %v8560_v35 = vmul.f32 0.17677669, %v8549_v1  ;;  %8570 = vmax.xlane.f32.xlu1 %v8569_v47  ;;  %v8566_v36 = vsel %vm575_vm0, %v8562_v16, -inf }
0x36c0   :  { %8567 = vmax.xlane.f32.xlu0 %v8566_v36  ;;  %v8565_v14 = vadd.f32 %v14564_v10, %v8561_v37 }
0x36c1   :  { %v8564_v7 = vadd.f32 %v14570_v13, %v8560_v35 }
0x36c2   :  { %v8575_v41 = vsel %vm575_vm0, %v8565_v14, -inf }
0x36c3   :  { %v8572_v29 = vsel %vm575_vm0, %v8564_v7, -inf }
0x36c4   :  { %8573 = vmax.xlane.f32.xlu0 %v8572_v29 }
0x36c8   :  { %8576 = vmax.xlane.f32.xlu0 %v8575_v41 }
0x374c   :  { %v8571_v32 = vpop.xlane.xlu1 %8570 }
0x374d   :  { %v8579_v17 = vsub.f32 %v8563_v57, %v8571_v32  ;;  %v8568_v62 = vpop.xlane.xlu0 %8567  ;;  %v12474_v57 = vld [vmem:[#allocation4 + $0xf8] sm:$0xff]  }
0x374e   :  { %v8578_v0 = vsub.f32 %v8562_v16, %v8568_v62 }
0x374f   :  { %v8584_v19 = vmul.f32 1.442695, %v8579_v17 }
0x3750   :  { %v8582_v58 = vmul.f32 1.442695, %v8578_v0 }
0x3751   :  { %12931 = vpow2.f32 %v8584_v19  ;;  %v8574_v25 = vpop.xlane.xlu0 %8573 }
0x3752   :  { %12933 = vpow2.f32 %v8582_v58  ;;  %v8580_v5 = vsub.f32 %v8564_v7, %v8574_v25 }
0x3754   :  { %v8586_v44 = vmul.f32 1.442695, %v8580_v5 }
0x3755   :  { %v8577_v13 = vpop.xlane.xlu0 %8576 }
0x3756   :  { %12935 = vpow2.f32 %v8586_v44  ;;  %v8581_v10 = vsub.f32 %v8565_v14, %v8577_v13 }
0x3758   :  { %v8588_v53 = vmul.f32 1.442695, %v8581_v10 }
0x375a   :  { %12937 = vpow2.f32 %v8588_v53 }
0x375b   :  { %v12932_v61 = vpop.eup %12931 }
0x375c   :  { %v12934_v3 = vpop.eup %12933  ;;  %v8593_v40 = vsel %vm575_vm0, %v12932_v61, 0.0 }
0x375d   :  { %8594 = vadd.xlane.f32.xlu1 %v8593_v40  ;;  %v8590_v31 = vsel %vm575_vm0, %v12934_v3, 0.0 }
0x375e   :  { %8591 = vadd.xlane.f32.xlu0 %v8590_v31 }
0x3760   :  { %v12936_v15 = vpop.eup %12935 }
0x3761   :  { %v8596_v34 = vsel %vm575_vm0, %v12936_v15, 0.0 }
0x3762   :  { %8597 = vadd.xlane.f32.xlu0 %v8596_v34 }
0x3764   :  { %v12938_v38 = vpop.eup %12937 }
0x3765   :  { %v8599_v6 = vsel %vm575_vm0, %v12938_v38, 0.0 }
0x3766   :  { %8600 = vadd.xlane.f32.xlu1 %v8599_v6 }
0x3777   :  { %11993 = vrot.lane.b32.xlu1 %v14543_v54, %s13132_s28 }
0x3778   :  { %11988 = vrot.lane.b32.xlu0 %v14545_v12, %s13132_s28 }
0x377b   :  { %11998 = vrot.lane.b32.xlu1 %v11997_v46, %s13132_s28 }
0x377c   :  { %12008 = vrot.lane.b32.xlu0 %v12007_v45, %s13122_s13 }
0x377f   :  { %12003 = vrot.lane.b32.xlu1 %v12002_v52, %s13132_s28 }
0x3783   :  { %12013 = vrot.lane.b32.xlu1 %v12012_v63, %s13122_s13  ;;  %v12469_v63 = vld [vmem:[#allocation4 + $0xd0] sm:$0xff]  }
0x37ea   :  { %v8595_v54 = vpop.xlane.xlu1 %8594 }
0x37eb   :  { %v8592_v48 = vpop.xlane.xlu0 %8591 }
0x37ec   :  { %12939 = vrcp.f32 %v8592_v48 }
0x37ed   :  { %12941 = vrcp.f32 %v8595_v54 }
0x37ef   :  { %v8598_v23 = vpop.xlane.xlu0 %8597 }
0x37f0   :  { %12943 = vrcp.f32 %v8598_v23 }
0x37f3   :  { %v8601_v12 = vpop.xlane.xlu1 %8600  ;;  %v11989_v33 = vpop.permute.xlu0 %11988 }
0x37f4   :  { %v11991_v11 = vunpack.i.h.bf16 %v11989_v33  ;;  %v11990_v28 = vunpack.i.l.bf16 %v11989_v33  ;;  %12945 = vrcp.f32 %v8601_v12 }
0x37f6   :  { %v12940_v56 = vpop.eup %12939  ;;  %v11647_v46 = vpack.c.bf16 %v11991_v11, %v11990_v28  ;;  %v12475_v11 = vld [vmem:[#allocation6 + $0x300] ss:$16 sps:$4 sm:$0xff]   ;;  %v12478_v28 = vld [vmem:[#allocation6 + $0x308] ss:$16 sps:$4 sm:$0xff]  }
0x37f7   :  { %v11994_v2 = vpop.permute.xlu1 %11993  ;;  %v8606_v51 = vmul.f32 %v12940_v56, %v12934_v3  ;;  %v12942_v52 = vpop.eup %12941  ;;  %v12480_v56 = vld [vmem:[#allocation6 + $0x30c] ss:$16 sps:$4 sm:$0xff]  }
0x37f8   :  { %v11996_v55 = vunpack.i.h.bf16 %v11994_v2  ;;  %v11995_v49 = vunpack.i.l.bf16 %v11994_v2  ;;  %11648 = vmatprep.subr.bf16.mxu0 %v11647_v46  ;;  %v8607_v43 = vmul.f32 %v12942_v52, %v12932_v61  ;;  %v12009_v41 = vpop.permute.xlu0 %12008  ;;  %v12481_v2 = vld [vmem:[#allocation6 + $0x320] ss:$16 sps:$4 sm:$0xff]   ;;  %v12490_v52 = vld [vmem:[#allocation6 + $0x348] ss:$16 sps:$4 sm:$0xff]  }
0x37f9   :  { %11650 = vmatpush3.bf16.msra.mxu0 %v11647_v46  ;;  %11309 = vmatprep.mubr.msk.f32.mxu0 %vm575_vm0, %v8606_v51  ;;  %v12011_v0 = vunpack.i.h.bf16 %v12009_v41  ;;  %v12010_v19 = vunpack.i.l.bf16 %v12009_v41  ;;  %v12486_v46 = vld [vmem:[#allocation6 + $0x32c] ss:$16 sps:$4 sm:$0xff]   ;;  %v12484_v51 = vld [vmem:[#allocation6 + $0x328] ss:$16 sps:$4 sm:$0xff]  }
0x37fa   :  { %v11651_v4 = vpack.c.bf16 %v11996_v55, %v11995_v49  ;;  %v12944_v24 = vpop.eup %12943  ;;  %v12489_v55 = vld [vmem:[#allocation6 + $0x344] ss:$16 sps:$4 sm:$0xff]   ;;  %v12492_v49 = vld [vmem:[#allocation6 + $0x34c] ss:$16 sps:$4 sm:$0xff]   ;;  %v12502_v41 = vld [vmem:[#allocation6 + $0x388] ss:$16 sps:$4 sm:$0xff]  }
0x37fb   :  { %v8608_v20 = vmul.f32 %v12944_v24, %v12936_v15  ;;  %v11999_v36 = vpop.permute.xlu1 %11998 }
0x37fc   :  { %11652 = vmatprep.subr.bf16.mxu0 %v11651_v4  ;;  %v12001_v14 = vunpack.i.h.bf16 %v11999_v36  ;;  %v12000_v29 = vunpack.i.l.bf16 %v11999_v36  ;;  %v12496_v36 = vld [vmem:[#allocation6 + $0x368] ss:$16 sps:$4 sm:$0xff]  }
0x37fd   :  { %11654 = vmatpush3.bf16.msra.mxu0 %v11651_v4  ;;  %v12487_v4 = vld [vmem:[#allocation6 + $0x340] ss:$16 sps:$4 sm:$0xff]  }
0x37fe   :  { %v12946_v26 = vpop.eup %12945  ;;  %11315 = vmatprep.subr.bf16.mxu0 %v12467_v59  ;;  %v8768_v32 = vsel %vm575_vm0, %v14607_v27, %v12001_v14  ;;  %v8767_v17 = vsel %vm575_vm0, %v14609_v22, %v12000_v29  ;;  %v12504_v14 = vld [vmem:[#allocation6 + $0x38c] ss:$16 sps:$4 sm:$0xff]   ;;  %v12499_v29 = vld [vmem:[#allocation6 + $0x380] ss:$16 sps:$4 sm:$0xff]  }
0x37ff   :  { %v8609_v45 = vmul.f32 %v12946_v26, %v12938_v38  ;;  %v12004_v7 = vpop.permute.xlu1 %12003  ;;  %v8771_v61 = vsel %vm1724_vm2, %v8767_v17, %v12010_v19  ;;  %v8772_v3 = vsel %vm1724_vm2, %v8768_v32, %v12011_v0  ;;  %v13047_v26 = vld [vmem:[%s14892_s11 + $0x40] sm:$0xff]  ;;  %v12510_v17 = vld [vmem:[#allocation6 + $0x3ac] ss:$16 sps:$4 sm:$0xff]   ;;  %v12508_v0 = vld [vmem:[#allocation6 + $0x3a8] ss:$16 sps:$4 sm:$0xff]  }
0x3800   :  { %11310 = vmatmul.mubr.msk.f32.vlgmr.msra.gmra.mrb[128].mxu0 %vm575_vm0, %v8607_v43  ;;  %v12006_v25 = vunpack.i.h.bf16 %v12004_v7  ;;  %v12005_v5 = vunpack.i.l.bf16 %v12004_v7  ;;  %v12501_v7 = vld [vmem:[#allocation6 + $0x384] ss:$16 sps:$4 sm:$0xff]  }
0x3801   :  { %11312 = vmatprep.mubr.msk.f32.mxu0 %vm575_vm0, %v8608_v20  ;;  %11316 = vmatpush3.bf16.msra.mxu0 %v12467_v59  ;;  %v12507_v32 = vld [vmem:[#allocation6 + $0x3a4] ss:$16 sps:$4 sm:$0xff]  }
0x3802   :  { %11317 = vmatprep.subr.bf16.mxu0 %v12468_v60  ;;  %v8770_v15 = vsel %vm575_vm0, %v14611_v21, %v12006_v25  ;;  %v8769_v34 = vsel %vm575_vm0, %v14613_v50, %v12005_v5  ;;  %v12477_v21 = vld [vmem:[#allocation6 + $0x304] ss:$16 sps:$4 sm:$0xff]   ;;  %v12511_v25 = vld [vmem:[#allocation6 + $0x3c0] ss:$16 sps:$4 sm:$0xff]   ;;  %v12514_v5 = vld [vmem:[#allocation6 + $0x3c8] ss:$16 sps:$4 sm:$0xff]  }
0x3803   :  { %v12014_v62 = vpop.permute.xlu1 %12013  ;;  %v12483_v50 = vld [vmem:[#allocation6 + $0x324] ss:$16 sps:$4 sm:$0xff]   ;;  %9134 = vmatprep.subr.bf16.mxu1 %v12477_v21 }
0x3804   :  { %11313 = vmatmul.mubr.msk.f32.gmra.mrb[130].mxu0 %vm575_vm0, %v8609_v45  ;;  %v12016_v10 = vunpack.i.h.bf16 %v12014_v62  ;;  %v12015_v53 = vunpack.i.l.bf16 %v12014_v62  ;;  %9135 = vmatpush1.bf16.msra.mxu1 %v12475_v11  ;;  %v12505_v62 = vld [vmem:[#allocation6 + $0x3a0] ss:$16 sps:$4 sm:$0xff]   ;;  %v12513_v19 = vld [vmem:[#allocation6 + $0x3c4] ss:$16 sps:$4 sm:$0xff]  }
0x3805   :  { %11318 = vmatpush3.bf16.msra.mxu0 %v12468_v60  ;;  %9136 = vmatprep.subr.bf16.mxu1 %v12483_v50  ;;  %v13048_v60 = vld [vmem:[%s14892_s11 + $0x50] sm:$0xff]  ;;  %v10185_v11 = vld [vmem:[%s14887_s6 + $0x3] ss:$0 sm:$0xff] }
0x3806   :  { %11319 = vmatprep.subr.bf16.mxu0 %v12469_v63  ;;  %v8773_v48 = vsel %vm1724_vm2, %v8769_v34, %v12015_v53  ;;  %v8774_v54 = vsel %vm1724_vm2, %v8770_v15, %v12016_v10  ;;  %v12520_v10 = vld [vmem:[#allocation6 + $0x3e8] ss:$16 sps:$4 sm:$0xff]   ;;  %v12522_v53 = vld [vmem:[#allocation6 + $0x3ec] ss:$16 sps:$4 sm:$0xff]  }
0x3808   :  { %9137 = vmatpush1.bf16.msra.mxu1 %v12481_v2 }
0x3809   :  { %11320 = vmatpush3.bf16.msra.mxu0 %v12469_v63  ;;  %9138 = vmatprep.subr.bf16.mxu1 %v12489_v55 }
0x380a   :  { %11321 = vmatprep.subr.bf16.mxu0 %v12470_v42 }
0x380c   :  { %9139 = vmatpush1.bf16.msra.mxu1 %v12487_v4 }
0x380d   :  { %11322 = vmatpush3.bf16.msra.mxu0 %v12470_v42  ;;  %v13049_v42 = vld [vmem:[%s14892_s11 + $0x48] sm:$0xff] }
0x380e   :  { %11323 = vmatprep.subr.bf16.mxu0 %v12471_v9 }
0x3811   :  { %11324 = vmatpush3.bf16.msra.mxu0 %v12471_v9 }
0x3812   :  { %11325 = vmatprep.subr.bf16.mxu0 %v12472_v30 }
0x3815   :  { %11326 = vmatpush3.bf16.msra.mxu0 %v12472_v30 }
0x3816   :  { %11327 = vmatprep.subr.bf16.mxu0 %v12473_v18 }
0x3819   :  { %11328 = vmatpush3.bf16.msra.mxu0 %v12473_v18 }
0x381a   :  { %11329 = vmatprep.subr.bf16.mxu0 %v12474_v57 }
0x381d   :  { %11330 = vmatpush3.bf16.msra.mxu0 %v12474_v57  ;;  %v13050_v57 = vld [vmem:[%s14892_s11 + $0x58] sm:$0xff] }
0x381e   :  { %9187 = vmatprep.subr.bf16.mxu0 %v12480_v56 }
0x38d3   :  { %v11311_v16 = vpop.f32.mrb[128].mxu0 }
0x38d4   :  { %v8700_v8 = vpop.f32.mrb[129].mxu0 }
0x38d5   :  { %v12017_v1 = vpack.i.bf16 %v11311_v16, %v8700_v8 }
0x38d7   :  { %12018 = vrot.lane.b32.xlu0 %v12017_v1, %s13131_s22  ;;  %v11314_v47 = vpop.f32.mrb[130].mxu0 }
0x38d8   :  { %v8710_v37 = vpop.f32.mrb[131].mxu0 }
0x38d9   :  { %v12022_v35 = vpack.i.bf16 %v11314_v47, %v8710_v37  ;;  %v12495_v47 = vld [vmem:[#allocation6 + $0x364] ss:$16 sps:$4 sm:$0xff]   ;;  %v12498_v37 = vld [vmem:[#allocation6 + $0x36c] ss:$16 sps:$4 sm:$0xff]  }
0x38da   :  { %9140 = vmatprep.subr.bf16.mxu1 %v12495_v47  ;;  %v12536_v47 = vld [vmem:[%s14885_s4 + $0x1b0] sm:$0xff]  }
0x38db   :  { %12023 = vrot.lane.b32.xlu1 %v12022_v35, %s13131_s22  ;;  %v12493_v35 = vld [vmem:[#allocation6 + $0x360] ss:$16 sps:$4 sm:$0xff]  }
0x38dc   :  { %9141 = vmatpush1.bf16.msra.mxu1 %v12493_v35  ;;  %v12538_v35 = vld [vmem:[%s14885_s4 + $0x1b8] sm:$0xff]  }
0x38dd   :  { %9142 = vmatprep.subr.bf16.mxu1 %v12501_v7 }
0x38e0   :  { %9143 = vmatpush1.bf16.msra.mxu1 %v12499_v29 }
0x38e1   :  { %9144 = vmatprep.subr.bf16.mxu1 %v12507_v32 }
0x38e4   :  { %9145 = vmatpush1.bf16.msra.mxu1 %v12505_v62 }
0x38e5   :  { %9146 = vmatprep.subr.bf16.mxu1 %v12513_v19 }
0x38e8   :  { %9147 = vmatpush1.bf16.msra.mxu1 %v12511_v25 }
0x3949   :  { %v12019_v58 = vpop.permute.xlu0 %12018 }
0x394a   :  { %v12021_v44 = vunpack.i.h.bf16 %v12019_v58  ;;  %v12020_v13 = vunpack.i.l.bf16 %v12019_v58  ;;  %v12516_v58 = vld [vmem:[#allocation6 + $0x3cc] ss:$16 sps:$4 sm:$0xff]  }
0x394c   :  { %v8775_v40 = vsel %vm1729_vm3, %v8771_v61, %v12020_v13  ;;  %v8776_v27 = vsel %vm1729_vm3, %v8772_v3, %v12021_v44  ;;  %v12517_v44 = vld [vmem:[#allocation6 + $0x3e0] ss:$16 sps:$4 sm:$0xff]   ;;  %v12519_v13 = vld [vmem:[#allocation6 + $0x3e4] ss:$16 sps:$4 sm:$0xff]  }
0x394d   :  { %v12024_v31 = vpop.permute.xlu1 %12023  ;;  %v8779_v22 = vpack.c.bf16 %v8776_v27, %v8775_v40  ;;  %9148 = vmatprep.subr.bf16.mxu1 %v12519_v13 }
0x394e   :  { %v12026_v38 = vunpack.i.h.bf16 %v12024_v31  ;;  %v12025_v6 = vunpack.i.l.bf16 %v12024_v31  ;;  %9149 = vmatpush1.bf16.msra.mxu1 %v12517_v44 }
0x394f   :  { %11331 = vmatprep.mubr.bf16.mxu0 %v8779_v22 }
0x3950   :  { %v8778_v23 = vsel %vm1729_vm3, %v8774_v54, %v12026_v38  ;;  %v8777_v12 = vsel %vm1729_vm3, %v8773_v48, %v12025_v6 }
0x3951   :  { %v8780_v33 = vpack.c.bf16 %v8778_v23, %v8777_v12 }
0x3953   :  { %11332 = vmatmul.mubr.bf16.vlgmr.msra.gmra.mrb[132].mxu0 %v8780_v33 }
0x3954   :  { %9219 = vmatprep.mubr.bf16.mxu0 %v13130_v39  ;;  %9188 = vmatpush1.bf16.msra.mxu0 %v12478_v28 }
0x3955   :  { %9189 = vmatprep.subr.bf16.mxu0 %v12486_v46 }
0x3958   :  { %9190 = vmatpush1.bf16.msra.mxu0 %v12484_v51 }
0x3959   :  { %9191 = vmatprep.subr.bf16.mxu0 %v12492_v49 }
0x395c   :  { %9192 = vmatpush1.bf16.msra.mxu0 %v12490_v52 }
0x395d   :  { %9193 = vmatprep.subr.bf16.mxu0 %v12498_v37  ;;  %v12537_v37 = vld [vmem:[%s14885_s4 + $0x1f8] sm:$0xff]  }
0x3960   :  { %9194 = vmatpush1.bf16.msra.mxu0 %v12496_v36 }
0x3961   :  { %9195 = vmatprep.subr.bf16.mxu0 %v12504_v14 }
0x3964   :  { %9196 = vmatpush1.bf16.msra.mxu0 %v12502_v41 }
0x3965   :  { %9197 = vmatprep.subr.bf16.mxu0 %v12510_v17 }
0x3968   :  { %9198 = vmatpush1.bf16.msra.mxu0 %v12508_v0 }
0x3969   :  { %9199 = vmatprep.subr.bf16.mxu0 %v12516_v58 }
0x396c   :  { %9200 = vmatpush1.bf16.msra.mxu0 %v12514_v5 }
0x396d   :  { %9201 = vmatprep.subr.bf16.mxu0 %v12522_v53 }
0x3970   :  { %9202 = vmatpush1.bf16.msra.mxu0 %v12520_v10 }
0x3a26   :  { %v11333_v24 = vpop.f32.mrb[132].mxu0 }
0x3a27   :  { %v8880_v43 = vpop.f32.mrb[133].mxu0  ;;  %v14773_v63 = vadd.f32 %v13048_v60, %v11333_v24  ;;  %v12523_v24 = vld [vmem:[%s14885_s4 + $0x1c0] sm:$0xff]   ;;  %v12529_v60 = vld [vmem:[%s14885_s4 + $0x1d8] sm:$0xff]  }
0x3a28   :  { %v14768_v20 = vadd.f32 %v13047_v26, %v8880_v43  ;;  %v11334_v45 = vpop.f32.mrb[134].mxu0  ;;  %v12524_v43 = vld [vmem:[%s14885_s4 + $0x180] sm:$0xff]   ;;  %10699 = vmatprep.subr.bf16.mxu1 %v12523_v24  ;;  %v12525_v26 = vld [vmem:[%s14885_s4 + $0x1c8] sm:$0xff]  }
0x3a29   :  { %v8883_v59 = vpop.f32.mrb[135].mxu0  ;;  %v14787_v16 = vadd.f32 %v13050_v57, %v11334_v45  ;;  %v8903_v8 = vmul.f32 %v14773_v63, %v14773_v63  ;;  %v12527_v45 = vld [vmem:[%s14885_s4 + $0x1d0] sm:$0xff]   ;;  %v12533_v57 = vld [vmem:[%s14885_s4 + $0x1e8] sm:$0xff]  }
0x3a2a   :  { %v14778_v9 = vadd.f32 %v13049_v42, %v8883_v59  ;;  %v8901_v30 = vmul.f32 %v14768_v20, %v14768_v20  ;;  %v12528_v59 = vld [vmem:[%s14885_s4 + $0x190] sm:$0xff]   ;;  %v12530_v42 = vld [vmem:[%s14885_s4 + $0x198] sm:$0xff]  }
0x3a2b   :  { %v8904_v1 = vmul.f32 %v14787_v16, %v14787_v16 }
0x3a2c   :  { %8905 = vadd.xlane.f32.xlu0 %v8901_v30  ;;  %v8902_v18 = vmul.f32 %v14778_v9, %v14778_v9  ;;  %v12531_v30 = vld [vmem:[%s14885_s4 + $0x1e0] sm:$0xff]  }
0x3a2e   :  { %8907 = vadd.xlane.f32.xlu1 %v8902_v18  ;;  %v12532_v18 = vld [vmem:[%s14885_s4 + $0x1a0] sm:$0xff]  }
0x3a30   :  { %8909 = vadd.xlane.f32.xlu0 %v8903_v8  ;;  %v12534_v8 = vld [vmem:[%s14885_s4 + $0x1a8] sm:$0xff]  }
0x3a34   :  { %8911 = vadd.xlane.f32.xlu0 %v8904_v1  ;;  %v12535_v1 = vld [vmem:[%s14885_s4 + $0x1f0] sm:$0xff]  }
0x3ab9   :  { %v8906_v61 = vpop.xlane.xlu0 %8905 }
0x3aba   :  { %v8913_v3 = vmul.f32 0.0078125, %v8906_v61 }
0x3abb   :  { %v8908_v40 = vpop.xlane.xlu1 %8907 }
0x3abc   :  { %v8917_v27 = vadd.f32 1e-06, %v8913_v3  ;;  %v8914_v31 = vmul.f32 0.0078125, %v8908_v40 }
0x3abd   :  { %v8910_v22 = vpop.xlane.xlu0 %8909 }
0x3abe   :  { %12947 = vrsqrt.f32 %v8917_v27  ;;  %v8918_v15 = vadd.f32 1e-06, %v8914_v31  ;;  %v8915_v34 = vmul.f32 0.0078125, %v8910_v22 }
0x3ac0   :  { %12949 = vrsqrt.f32 %v8918_v15  ;;  %v8919_v38 = vadd.f32 1e-06, %v8915_v34 }
0x3ac1   :  { %v8912_v6 = vpop.xlane.xlu0 %8911 }
0x3ac2   :  { %v8916_v48 = vmul.f32 0.0078125, %v8912_v6  ;;  %12951 = vrsqrt.f32 %v8919_v38 }
0x3ac4   :  { %v8920_v54 = vadd.f32 1e-06, %v8916_v48 }
0x3ac6   :  { %12953 = vrsqrt.f32 %v8920_v54 }
0x3ac8   :  { %v12948_v23 = vpop.eup %12947 }
0x3ac9   :  { %v8925_v12 = vmul.f32 %v12948_v23, %v14768_v20 }
0x3aca   :  { %v12950_v33 = vpop.eup %12949 }
0x3acb   :  { %v8926_v21 = vmul.f32 %v12950_v33, %v14778_v9  ;;  %v8935_v28 = vmul.f32 %v10185_v11, %v8925_v12 }
0x3acc   :  { %v12952_v50 = vpop.eup %12951 }
0x3acd   :  { %v8936_v56 = vmul.f32 %v10185_v11, %v8926_v21  ;;  %v8927_v51 = vmul.f32 %v12952_v50, %v14773_v63 }
0x3acf   :  { %v8939_v46 = vpack.c.bf16 %v8936_v56, %v8935_v28  ;;  %v8937_v4 = vmul.f32 %v10185_v11, %v8927_v51 }
0x3ad0   :  { %v12954_v2 = vpop.eup %12953 }
0x3ad1   :  { %9167 = vmatmul.mubr.bf16.vlgmr.msra.gmra.mrb[160].mxu1 %v8939_v46  ;;  %9220 = vmatmul.mubr.bf16.vlgmr.msra.gmra.mrb[136].mxu0 %v8939_v46  ;;  %v8928_v55 = vmul.f32 %v12954_v2, %v14787_v16 }
0x3ad2   :  { %9176 = vmatprep.mubr.bf16.mxu1 %v13130_v39  ;;  %9229 = vmatprep.mubr.bf16.mxu0 %v13130_v39  ;;  %v12526_v39 = vld [vmem:[%s14885_s4 + $0x188] sm:$0xff]  }
0x3ad3   :  { %v8938_v49 = vmul.f32 %v10185_v11, %v8928_v55  ;;  %10700 = vmatpush3.bf16.msra.mxu1 %v12524_v43 }
0x3ad4   :  { %10701 = vmatprep.subr.bf16.mxu1 %v12525_v26 }
0x3ad5   :  { %v8940_v52 = vpack.c.bf16 %v8938_v49, %v8937_v4 }
0x3ad7   :  { %10702 = vmatpush3.bf16.msra.mxu1 %v12526_v39 }
0x3ad8   :  { %10703 = vmatprep.subr.bf16.mxu1 %v12527_v45 }
0x3ad9   :  { %9177 = vmatmul.mubr.bf16.gmra.mrb[164].mxu1 %v8940_v52  ;;  %9230 = vmatmul.mubr.bf16.gmra.mrb[140].mxu0 %v8940_v52 }
0x3adb   :  { %10704 = vmatpush3.bf16.msra.mxu1 %v12528_v59 }
0x3adc   :  { %10705 = vmatprep.subr.bf16.mxu1 %v12529_v60 }
0x3adf   :  { %10706 = vmatpush3.bf16.msra.mxu1 %v12530_v42 }
0x3ae0   :  { %10707 = vmatprep.subr.bf16.mxu1 %v12531_v30 }
0x3ae3   :  { %10708 = vmatpush3.bf16.msra.mxu1 %v12532_v18 }
0x3ae4   :  { %10709 = vmatprep.subr.bf16.mxu1 %v12533_v57 }
0x3ae7   :  { %10710 = vmatpush3.bf16.msra.mxu1 %v12534_v8 }
0x3ae8   :  { %10711 = vmatprep.subr.bf16.mxu1 %v12535_v1 }
0x3aeb   :  { %10712 = vmatpush3.bf16.msra.mxu1 %v12536_v47 }
0x3aec   :  { %10713 = vmatprep.subr.bf16.mxu1 %v12537_v37 }
0x3aef   :  { %10714 = vmatpush3.bf16.msra.mxu1 %v12538_v35 }
0x3ba4   :  { %v9168_v36 = vpop.f32.mrb[160].mxu1  ;;  %v9221_v7 = vpop.f32.mrb[136].mxu0 }
0x3ba5   :  { %v10218_v14 = vmul.f32 -1.442695, %v9168_v36  ;;  %v9170_v29 = vpop.f32.mrb[161].mxu1  ;;  %v9223_v41 = vpop.f32.mrb[137].mxu0 }
0x3ba6   :  { %v10219_v32 = vmul.f32 -1.442695, %v9170_v29  ;;  %v9172_v17 = vpop.f32.mrb[162].mxu1  ;;  %v9225_v62 = vpop.f32.mrb[138].mxu0 }
0x3ba7   :  { %12955 = vpow2.f32 %v10218_v14  ;;  %v10220_v0 = vmul.f32 -1.442695, %v9172_v17  ;;  %v9174_v19 = vpop.f32.mrb[163].mxu1  ;;  %v9227_v58 = vpop.f32.mrb[139].mxu0 }
0x3ba8   :  { %12957 = vpow2.f32 %v10219_v32  ;;  %v10221_v25 = vmul.f32 -1.442695, %v9174_v19 }
0x3ba9   :  { %12959 = vpow2.f32 %v10220_v0 }
0x3baa   :  { %12961 = vpow2.f32 %v10221_v25 }
0x3bac   :  { %v9178_v5 = vpop.f32.mrb[164].mxu1  ;;  %v9231_v44 = vpop.f32.mrb[140].mxu0 }
0x3bad   :  { %v10222_v13 = vmul.f32 -1.442695, %v9178_v5  ;;  %v9180_v10 = vpop.f32.mrb[165].mxu1  ;;  %v9233_v53 = vpop.f32.mrb[141].mxu0 }
0x3bae   :  { %v10223_v61 = vmul.f32 -1.442695, %v9180_v10  ;;  %v9182_v3 = vpop.f32.mrb[166].mxu1  ;;  %v9235_v40 = vpop.f32.mrb[142].mxu0 }
0x3baf   :  { %12963 = vpow2.f32 %v10222_v13  ;;  %v10224_v27 = vmul.f32 -1.442695, %v9182_v3  ;;  %v9184_v31 = vpop.f32.mrb[167].mxu1  ;;  %v9237_v22 = vpop.f32.mrb[143].mxu0 }
0x3bb0   :  { %12965 = vpow2.f32 %v10223_v61  ;;  %v10225_v15 = vmul.f32 -1.442695, %v9184_v31 }
0x3bb1   :  { %v12956_v34 = vpop.eup %12955  ;;  %12967 = vpow2.f32 %v10224_v27 }
0x3bb2   :  { %v12958_v38 = vpop.eup %12957  ;;  %v9264_v6 = vadd.f32 1.0, %v12956_v34  ;;  %12969 = vpow2.f32 %v10225_v15 }
0x3bb3   :  { %v12960_v48 = vpop.eup %12959  ;;  %v9265_v54 = vadd.f32 1.0, %v12958_v38 }
0x3bb4   :  { %v12962_v23 = vpop.eup %12961  ;;  %12971 = vrcp.f32 %v9264_v6  ;;  %v9266_v12 = vadd.f32 1.0, %v12960_v48 }
0x3bb5   :  { %12973 = vrcp.f32 %v9265_v54  ;;  %v9267_v33 = vadd.f32 1.0, %v12962_v23 }
0x3bb6   :  { %12975 = vrcp.f32 %v9266_v12 }
0x3bb7   :  { %12977 = vrcp.f32 %v9267_v33 }
0x3bb9   :  { %v12964_v11 = vpop.eup %12963 }
0x3bba   :  { %v12966_v21 = vpop.eup %12965  ;;  %v9268_v28 = vadd.f32 1.0, %v12964_v11 }
0x3bbb   :  { %v12968_v56 = vpop.eup %12967  ;;  %v9269_v50 = vadd.f32 1.0, %v12966_v21 }
0x3bbc   :  { %v12970_v46 = vpop.eup %12969  ;;  %12979 = vrcp.f32 %v9268_v28  ;;  %v9270_v2 = vadd.f32 1.0, %v12968_v56 }
0x3bbd   :  { %12981 = vrcp.f32 %v9269_v50  ;;  %v9271_v51 = vadd.f32 1.0, %v12970_v46  ;;  %v10278_v46 = vld [vmem:[%s14888_s7] ss:$0 sm:$0xff] }
0x3bbe   :  { %v12972_v55 = vpop.eup %12971  ;;  %12983 = vrcp.f32 %v9270_v2 }
0x3bbf   :  { %v12974_v49 = vpop.eup %12973  ;;  %v9288_v4 = vmul.f32 %v12972_v55, %v9168_v36  ;;  %12985 = vrcp.f32 %v9271_v51 }
0x3bc0   :  { %v12976_v52 = vpop.eup %12975  ;;  %v9289_v24 = vmul.f32 %v12974_v49, %v9170_v29 }
0x3bc1   :  { %v12978_v43 = vpop.eup %12977  ;;  %v9296_v26 = vmul.f32 %v9288_v4, %v9221_v7  ;;  %v9290_v39 = vmul.f32 %v12976_v52, %v9172_v17 }
0x3bc2   :  { %v9297_v45 = vmul.f32 %v9289_v24, %v9223_v41  ;;  %v9291_v59 = vmul.f32 %v12978_v43, %v9174_v19 }
0x3bc3   :  { %v9298_v60 = vmul.f32 %v9290_v39, %v9225_v62 }
0x3bc4   :  { %v9299_v42 = vmul.f32 %v9291_v59, %v9227_v58 }
0x3bc5   :  { %v9304_v30 = vpack.c.bf16 %v9298_v60, %v9296_v26 }
0x3bc6   :  { %v12980_v18 = vpop.eup %12979  ;;  %v9305_v57 = vpack.c.bf16 %v9299_v42, %v9297_v45 }
0x3bc7   :  { %v12982_v8 = vpop.eup %12981  ;;  %v9292_v1 = vmul.f32 %v12980_v18, %v9178_v5 }
0x3bc8   :  { %v12984_v47 = vpop.eup %12983  ;;  %v9293_v37 = vmul.f32 %v12982_v8, %v9180_v10  ;;  %9469 = vmatprep.mubr.bf16.mxu1 %v9305_v57 }
0x3bc9   :  { %v12986_v35 = vpop.eup %12985  ;;  %v9300_v36 = vmul.f32 %v9292_v1, %v9231_v44  ;;  %v9294_v14 = vmul.f32 %v12984_v47, %v9182_v3  ;;  %9470 = vmatmul.mubr.bf16.vlgmr.msra.gmra.mrb[168].mxu1 %v9304_v30 }
0x3bca   :  { %v9301_v29 = vmul.f32 %v9293_v37, %v9233_v53  ;;  %v9295_v32 = vmul.f32 %v12986_v35, %v9184_v31 }
0x3bcb   :  { %v9302_v7 = vmul.f32 %v9294_v14, %v9235_v40 }
0x3bcc   :  { %v9303_v17 = vmul.f32 %v9295_v32, %v9237_v22 }
0x3bcd   :  { %v9306_v41 = vpack.c.bf16 %v9302_v7, %v9300_v36 }
0x3bce   :  { %v9307_v0 = vpack.c.bf16 %v9303_v17, %v9301_v29 }
0x3bd0   :  { %9477 = vmatprep.mubr.bf16.mxu1 %v9307_v0 }
0x3bd1   :  { %9478 = vmatmul.mubr.bf16.gmra.mrb[172].mxu1 %v9306_v41 }
0x3c9c   :  { %v10715_v62 = vpop.f32.mrb[168].mxu1 }
0x3c9d   :  { %v10716_v19 = vpop.f32.mrb[169].mxu1 }
0x3c9e   :  { %v10717_v58 = vadd.f32 %v10716_v19, %v10715_v62  ;;  %v10718_v25 = vpop.f32.mrb[170].mxu1 }
0x3c9f   :  { %v10719_v5 = vpop.f32.mrb[171].mxu1 }
0x3ca0   :  { %v9486_v13 = vadd.f32 %v10717_v58, %v14768_v20  ;;  %v10720_v10 = vadd.f32 %v10719_v5, %v10718_v25 }
0x3ca2   :  { %10274 = vst [vmem:[%s14892_s11 + $0x60] sm:$0xff] %v9486_v13  ;;  %v9487_v44 = vadd.f32 %v10720_v10, %v14778_v9  ;;  %v9496_v53 = vmul.f32 %v9486_v13, %v9486_v13 }
0x3ca4   :  { %10275 = vst [vmem:[%s14892_s11 + $0x68] sm:$0xff] %v9487_v44  ;;  %9500 = vadd.xlane.f32.xlu0 %v9496_v53  ;;  %v10721_v61 = vpop.f32.mrb[172].mxu1  ;;  %v9497_v3 = vmul.f32 %v9487_v44, %v9487_v44 }
0x3ca5   :  { %v10722_v40 = vpop.f32.mrb[173].mxu1 }
0x3ca6   :  { %v10723_v27 = vadd.f32 %v10722_v40, %v10721_v61  ;;  %9502 = vadd.xlane.f32.xlu1 %v9497_v3  ;;  %v10724_v31 = vpop.f32.mrb[174].mxu1 }
0x3ca7   :  { %v10725_v20 = vpop.f32.mrb[175].mxu1 }
0x3ca8   :  { %v9488_v22 = vadd.f32 %v10723_v27, %v14773_v63  ;;  %v10726_v15 = vadd.f32 %v10725_v20, %v10724_v31 }
0x3caa   :  { %10276 = vst [vmem:[%s14892_s11 + $0x70] sm:$0xff] %v9488_v22  ;;  %v9489_v9 = vadd.f32 %v10726_v15, %v14787_v16  ;;  %v9498_v34 = vmul.f32 %v9488_v22, %v9488_v22 }
0x3cac   :  { %10277 = vst [vmem:[%s14892_s11 + $0x78] sm:$0xff] %v9489_v9  ;;  %9504 = vadd.xlane.f32.xlu0 %v9498_v34  ;;  %v9499_v38 = vmul.f32 %v9489_v9, %v9489_v9 }
0x3cae   :  { %9506 = vadd.xlane.f32.xlu1 %v9499_v38 }
0x3d31   :  { %v9501_v6 = vpop.xlane.xlu0 %9500 }
0x3d32   :  { %v9508_v48 = vmul.f32 0.0078125, %v9501_v6 }
0x3d33   :  { %v9503_v54 = vpop.xlane.xlu1 %9502 }
0x3d34   :  { %v9512_v23 = vadd.f32 1e-06, %v9508_v48  ;;  %v9509_v63 = vmul.f32 0.0078125, %v9503_v54 }
0x3d36   :  { %12987 = vrsqrt.f32 %v9512_v23  ;;  %v9513_v12 = vadd.f32 1e-06, %v9509_v63 }
0x3d38   :  { %12989 = vrsqrt.f32 %v9513_v12 }
0x3d39   :  { %v9505_v33 = vpop.xlane.xlu0 %9504 }
0x3d3a   :  { %v9510_v11 = vmul.f32 0.0078125, %v9505_v33 }
0x3d3b   :  { %v9507_v21 = vpop.xlane.xlu1 %9506 }
0x3d3c   :  { %v9514_v16 = vadd.f32 1e-06, %v9510_v11  ;;  %v9511_v28 = vmul.f32 0.0078125, %v9507_v21 }
0x3d3e   :  { %12991 = vrsqrt.f32 %v9514_v16  ;;  %v9515_v56 = vadd.f32 1e-06, %v9511_v28 }
0x3d40   :  { %v12988_v50 = vpop.eup %12987  ;;  %12993 = vrsqrt.f32 %v9515_v56 }
0x3d41   :  { %v9520_v2 = vmul.f32 %v12988_v50, %v9486_v13 }
0x3d42   :  { %v12990_v51 = vpop.eup %12989 }
0x3d43   :  { %v9530_v55 = vmul.f32 %v10278_v46, %v9520_v2  ;;  %v9521_v49 = vmul.f32 %v12990_v51, %v9487_v44 }
0x3d45   :  { %9534 = vst [vmem:[%s14893_s12] sm:$0xff] %v9530_v55  ;;  %v9531_v4 = vmul.f32 %v10278_v46, %v9521_v49 }
0x3d47   :  { %9535 = vst [vmem:[%s14893_s12 + $0x8] sm:$0xff] %v9531_v4 }
0x3d48   :  { %v12992_v52 = vpop.eup %12991 }
0x3d49   :  { %v9522_v24 = vmul.f32 %v12992_v52, %v9488_v22 }
0x3d4a   :  { %v12994_v43 = vpop.eup %12993 }
0x3d4b   :  { %v9532_v26 = vmul.f32 %v10278_v46, %v9522_v24  ;;  %v9523_v39 = vmul.f32 %v12994_v43, %v9489_v9 }
0x3d4d   :  { %9536 = vst [vmem:[%s14893_s12 + $0x10] sm:$0xff] %v9532_v26  ;;  %v9533_v45 = vmul.f32 %v10278_v46, %v9523_v39 }
0x3d4f   :  { %9537 = vst [vmem:[%s14893_s12 + $0x18] sm:$0xff] %v9533_v45 }
0x3d50   :  { %9546 = vsyncpa [#allocation3], 1 }
0x3d51   :  { %9547 = vsyncpa [#allocation5], 1 }

</bundles_post_ra>
